<compile_context>
chip_gen: v7x
topology: tpu7x:2x2x1
jax: 0.10.0
libtpu: 0.0.40
codegen_flags: <defaults>
</compile_context>

<pallas_src>
import functools

import jax
import jax.numpy as jnp
from jax.experimental import pallas as pl
from jax.experimental.pallas import tpu as pltpu

_LANE = 128
_SUBLANE = 8


def _round_up(n, m):
    return ((n + m - 1) // m) * m


def _pad2(a, rows, cols):
    return jnp.pad(a, ((0, rows - a.shape[0]), (0, cols - a.shape[1])))


def _vmem_limit_bytes():
    """Generation-aware VMEM budget: physical capacity minus compiler headroom."""
    cap = 0
    try:
        info = pltpu.get_tpu_info()
        cap = int(getattr(info, "vmem_capacity_bytes", 0) or 0)
    except Exception:
        cap = 0
    if cap <= 0:
        cap = 64 * 1024 * 1024          # conservative default: v7x per-TC VMEM
    # Leave ~16 MiB headroom for compiler scratch; cap below v5e/v6e physical.
    return int(min(max(cap - 16 * 1024 * 1024, 16 * 1024 * 1024),
                   110 * 1024 * 1024))


def _fused_kernel(*refs, layer_cfg, d_in_real, d_out_real, eps):
    """All residual blocks fused; the activation tile stays on-chip end-to-end.

    refs = (x_ref, <6 refs per layer: w1, b1, w2, b2, gamma, beta>, o_ref, xpad_ref)
      x_ref : (TB, d_in_real) f32          o_ref : (TB, d_out_real) f32
      w*    : (Pin, Pout) / (Pout, Pout) bf16      b*/gamma/beta : (1, Pout) f32
      xpad_ref : (TB, Pin0) f32 VMEM scratch (lane-pads the real-width input)
    layer_cfg: static tuple of (d_out_real:int, residual:bool, p_out:int).
    """
    x_ref = refs[0]
    o_ref = refs[-2]
    xpad_ref = refs[-1]
    p_refs = refs[1:-2]

    # Lane-pad the real-width input to a 128-multiple inside VMEM (the HBM
    # read stays at the real width).  Padded lanes are exactly 0 and remain 0
    # through every block (zero-padded W/b/gamma enforce the invariant).
    p_in0 = xpad_ref.shape[-1]
    if d_in_real < p_in0:
        xpad_ref[...] = jnp.zeros_like(xpad_ref)
        xpad_ref[:, :d_in_real] = x_ref[...]
        x = xpad_ref[...]
    else:
        x = x_ref[...]

    for l, (d_real, residual, p_out) in enumerate(layer_cfg):
        w1 = p_refs[6 * l + 0][...]
        b1 = p_refs[6 * l + 1][...]
        w2 = p_refs[6 * l + 2][...]
        b2 = p_refs[6 * l + 3][...]
        g = p_refs[6 * l + 4][...]
        bt = p_refs[6 * l + 5][...]

        # Lin1 + ReLU  (MXU bf16 operands, f32 accumulate, f32 elementwise).
        h = jnp.dot(x.astype(jnp.bfloat16), w1,
                    preferred_element_type=jnp.float32)
        h = jnp.maximum(h + b1, 0.0)

        # Lin2.
        y = jnp.dot(h.astype(jnp.bfloat16), w2,
                    preferred_element_type=jnp.float32)
        y = y + b2

        # LayerNorm over the REAL feature count.  Two-pass variance (mask the
        # padded lanes of (y - mean)) to avoid E[y^2]-E[y]^2 cancellation.
        inv_d = 1.0 / d_real
        mean = jnp.sum(y, axis=-1, keepdims=True) * inv_d
        diff = y - mean
        if d_real < p_out:
            lane = jax.lax.broadcasted_iota(jnp.int32, (1, p_out), 1)
            diff = jnp.where(lane < d_real, diff, 0.0)
        var = jnp.sum(diff * diff, axis=-1, keepdims=True) * inv_d
        y = diff * jax.lax.rsqrt(var + eps)
        # gamma/beta are zero-padded -> padded lanes stay exactly 0.
        y = y * g + bt

        # Residual only when real shapes match (static per layer).
        if residual:
            y = y + x

        # Block output activation.
        x = jnp.maximum(y, 0.0)

    # Store only the real feature width (lane-padded columns never hit HBM).
    o_ref[...] = x[:, :d_out_real]


def feature_resnet_forward(x, params, *, tile_b=512, single_buffer_params=True,
                           eps=1e-5):
    """Full FeatureResNet forward as one pallas_call.

    params: list of (w1, b1, w2, b2, gamma, beta) with weights stored as
            (in, out) so the kernel computes x @ W; b/gamma/beta are (1, d).
    """
    B, d_in0 = x.shape
    L = len(params)
    d_ins = [int(p[0].shape[0]) for p in params]
    d_outs = [int(p[0].shape[1]) for p in params]
    assert d_ins[0] == d_in0
    for i in range(1, L):
        assert d_ins[i] == d_outs[i - 1]

    # Batch tiling: large tiles amortize per-grid-step overhead; keep >= 2
    # grid steps whenever B allows so ("parallel",) shards across v7x's 2 TCs.
    half = _round_up(pl.cdiv(B, 2), _SUBLANE)
    tb = max(_SUBLANE, min(_round_up(tile_b, _SUBLANE), half))
    B_pad = _round_up(B, tb)
    grid = (B_pad // tb,)

    # Input stays at its REAL feature width in HBM (no 4x lane-padding of the
    # activation read); only the batch is padded so no partial tile is lost.
    x_hbm = x.astype(jnp.float32)
    if B_pad != B:
        x_hbm = jnp.zeros((B_pad, d_in0), jnp.float32).at[:B].set(x_hbm)

    p_ins = [_round_up(d, _LANE) for d in d_ins]
    p_outs = [_round_up(d, _LANE) for d in d_outs]

    const_map2 = lambda i: (0, 0)

    def _const_spec(shape):
        # Grid-invariant parameter block: single-buffer it (it never changes
        # across grid steps) unless the caller asked for the default.
        if single_buffer_params:
            return pl.BlockSpec(shape, const_map2, pipeline_mode=pl.Buffered(1))
        return pl.BlockSpec(shape, const_map2)

    flat_params = []
    in_specs = [pl.BlockSpec((tb, d_in0), lambda i: (i, 0))]
    for i, (w1, b1, w2, b2, g, bt) in enumerate(params):
        pi, po = p_ins[i], p_outs[i]
        # Per-layer padded widths (no global-max padding); bf16 weights halve
        # their HBM/VMEM footprint, bias/gamma/beta stay f32.
        flat_params += [
            _pad2(w1, pi, po).astype(jnp.bfloat16),
            _pad2(b1, 1, po).astype(jnp.float32),
            _pad2(w2, po, po).astype(jnp.bfloat16),
            _pad2(b2, 1, po).astype(jnp.float32),
            _pad2(g, 1, po).astype(jnp.float32),
            _pad2(bt, 1, po).astype(jnp.float32),
        ]
        in_specs += [
            _const_spec((pi, po)),
            _const_spec((1, po)),
            _const_spec((po, po)),
            _const_spec((1, po)),
            _const_spec((1, po)),
            _const_spec((1, po)),
        ]

    layer_cfg = tuple(
        (d_outs[i], d_ins[i] == d_outs[i], p_outs[i]) for i in range(L))
    kernel = functools.partial(
        _fused_kernel, layer_cfg=layer_cfg, d_in_real=d_in0,
        d_out_real=d_outs[-1], eps=eps)

    out = pl.pallas_call(
        kernel,
        out_shape=jax.ShapeDtypeStruct((B_pad, d_outs[-1]), jnp.float32),
        grid=grid,
        in_specs=in_specs,
        out_specs=pl.BlockSpec((tb, d_outs[-1]), lambda i: (i, 0)),
        scratch_shapes=[pltpu.VMEM((tb, p_ins[0]), jnp.float32)],
        compiler_params=pltpu.CompilerParams(
            dimension_semantics=("parallel",),
            vmem_limit_bytes=_vmem_limit_bytes()),
    )(x_hbm, *flat_params)

    return out[:B]


def init_feature_resnet_params(key, dims):
    """Mirrors torch.nn.Linear default init (uniform(+-1/sqrt(fan_in)));
    LayerNorm gamma=1, beta=0.  Weights stored pre-transposed as (in, out)."""
    params = []
    for i in range(len(dims) - 1):
        din, dout = dims[i], dims[i + 1]
        key, k1, k2, k3, k4 = jax.random.split(key, 5)
        lim1 = 1.0 / jnp.sqrt(din)
        lim2 = 1.0 / jnp.sqrt(dout)
        w1 = jax.random.uniform(k1, (din, dout), jnp.float32, -lim1, lim1)
        b1 = jax.random.uniform(k2, (1, dout), jnp.float32, -lim1, lim1)
        w2 = jax.random.uniform(k3, (dout, dout), jnp.float32, -lim2, lim2)
        b2 = jax.random.uniform(k4, (1, dout), jnp.float32, -lim2, lim2)
        gamma = jnp.ones((1, dout), jnp.float32)
        beta = jnp.zeros((1, dout), jnp.float32)
        params.append((w1, b1, w2, b2, gamma, beta))
    return params


def _reference_forward(x, params):
    """Pure-JAX f32 reference of the PyTorch forward."""
    for (w1, b1, w2, b2, g, bt) in params:
        r = x
        h = jnp.maximum(x @ w1 + b1, 0.0)
        y = h @ w2 + b2
        mean = jnp.mean(y, axis=-1, keepdims=True)
        var = jnp.mean((y - mean) ** 2, axis=-1, keepdims=True)
        y = (y - mean) / jnp.sqrt(var + 1e-5) * g + bt
        if y.shape == r.shape:
            y = y + r
        x = jnp.maximum(y, 0.0)
    return x


if __name__ == "__main__":
    # Shapes consistent with the module: x is (batch, dims[0]).
    dims = [32, 64, 64, 32]   # block0: 32->64, block1: 64->64 (+res), block2: 64->32
    B = 512                   # -> tile_b=256, grid=(2,) (>=2 steps for v7x megacore)

    key = jax.random.PRNGKey(0)
    key, kx = jax.random.split(key)
    x = jax.random.normal(kx, (B, dims[0]), jnp.float32)
    params = init_feature_resnet_params(key, dims)

    def _run(single_buffer_params):
        fwd = jax.jit(functools.partial(
            feature_resnet_forward, tile_b=512,
            single_buffer_params=single_buffer_params))
        return jax.block_until_ready(fwd(x, params))

    try:
        out = _run(True)      # single-buffered grid-invariant parameter blocks
    except Exception:
        out = _run(False)     # fall back to default double-buffering

    assert out.shape == (B, dims[-1])

    # Loose tolerance covers the bf16 matmul operands (f32 accumulate).
    ref = _reference_forward(x, params)
    max_err = float(jnp.max(jnp.abs(out - ref)))
    assert max_err < 5e-2, f"max abs err vs reference: {max_err}"
    assert bool(jnp.all(jnp.isfinite(out)))

    print("KERNEL_OK")
</pallas_src>

<mosaic_0001>
module attributes {stable_mosaic.version = 11 : i64} {
  func.func @_fused_kernel(%arg0: i32, %arg1: memref<256x32xf32, #tpu.memory_space<vmem>>, %arg2: memref<128x128xbf16, #tpu.memory_space<vmem>>, %arg3: memref<1x128xf32, #tpu.memory_space<vmem>>, %arg4: memref<128x128xbf16, #tpu.memory_space<vmem>>, %arg5: memref<1x128xf32, #tpu.memory_space<vmem>>, %arg6: memref<1x128xf32, #tpu.memory_space<vmem>>, %arg7: memref<1x128xf32, #tpu.memory_space<vmem>>, %arg8: memref<128x128xbf16, #tpu.memory_space<vmem>>, %arg9: memref<1x128xf32, #tpu.memory_space<vmem>>, %arg10: memref<128x128xbf16, #tpu.memory_space<vmem>>, %arg11: memref<1x128xf32, #tpu.memory_space<vmem>>, %arg12: memref<1x128xf32, #tpu.memory_space<vmem>>, %arg13: memref<1x128xf32, #tpu.memory_space<vmem>>, %arg14: memref<128x128xbf16, #tpu.memory_space<vmem>>, %arg15: memref<1x128xf32, #tpu.memory_space<vmem>>, %arg16: memref<128x128xbf16, #tpu.memory_space<vmem>>, %arg17: memref<1x128xf32, #tpu.memory_space<vmem>>, %arg18: memref<1x128xf32, #tpu.memory_space<vmem>>, %arg19: memref<1x128xf32, #tpu.memory_space<vmem>>, %arg20: memref<256x32xf32, #tpu.memory_space<vmem>>, %arg21: memref<256x128xf32, #tpu.memory_space<vmem>>) attributes {dimension_semantics = [#tpu.dimension_semantics<parallel>], iteration_bounds = array<i64: 2>, scalar_prefetch = 0 : i64, scratch_operands = 1 : i64, tpu.core_type = #tpu.core_type<tc>, window_params = [{transform_indices = @transform_0, window_bounds = array<i64: 256, 32>}, {pipeline_mode = #tpu.pipeline_mode<synchronous>, transform_indices = @transform_1, window_bounds = array<i64: 128, 128>}, {pipeline_mode = #tpu.pipeline_mode<synchronous>, transform_indices = @transform_2, window_bounds = array<i64: 1, 128>}, {pipeline_mode = #tpu.pipeline_mode<synchronous>, transform_indices = @transform_3, window_bounds = array<i64: 128, 128>}, {pipeline_mode = #tpu.pipeline_mode<synchronous>, transform_indices = @transform_4, window_bounds = array<i64: 1, 128>}, {pipeline_mode = #tpu.pipeline_mode<synchronous>, transform_indices = @transform_5, window_bounds = array<i64: 1, 128>}, {pipeline_mode = #tpu.pipeline_mode<synchronous>, transform_indices = @transform_6, window_bounds = array<i64: 1, 128>}, {pipeline_mode = #tpu.pipeline_mode<synchronous>, transform_indices = @transform_7, window_bounds = array<i64: 128, 128>}, {pipeline_mode = #tpu.pipeline_mode<synchronous>, transform_indices = @transform_8, window_bounds = array<i64: 1, 128>}, {pipeline_mode = #tpu.pipeline_mode<synchronous>, transform_indices = @transform_9, window_bounds = array<i64: 128, 128>}, {pipeline_mode = #tpu.pipeline_mode<synchronous>, transform_indices = @transform_10, window_bounds = array<i64: 1, 128>}, {pipeline_mode = #tpu.pipeline_mode<synchronous>, transform_indices = @transform_11, window_bounds = array<i64: 1, 128>}, {pipeline_mode = #tpu.pipeline_mode<synchronous>, transform_indices = @transform_12, window_bounds = array<i64: 1, 128>}, {pipeline_mode = #tpu.pipeline_mode<synchronous>, transform_indices = @transform_13, window_bounds = array<i64: 128, 128>}, {pipeline_mode = #tpu.pipeline_mode<synchronous>, transform_indices = @transform_14, window_bounds = array<i64: 1, 128>}, {pipeline_mode = #tpu.pipeline_mode<synchronous>, transform_indices = @transform_15, window_bounds = array<i64: 128, 128>}, {pipeline_mode = #tpu.pipeline_mode<synchronous>, transform_indices = @transform_16, window_bounds = array<i64: 1, 128>}, {pipeline_mode = #tpu.pipeline_mode<synchronous>, transform_indices = @transform_17, window_bounds = array<i64: 1, 128>}, {pipeline_mode = #tpu.pipeline_mode<synchronous>, transform_indices = @transform_18, window_bounds = array<i64: 1, 128>}, {transform_indices = @transform_19, window_bounds = array<i64: 256, 32>}]} {
    %cst = arith.constant 0.000000e+00 : f32
    %0 = vector.broadcast %cst : f32 to vector<256x128xf32>
    %c0 = arith.constant 0 : index
    %c0_0 = arith.constant 0 : index
    %1 = vector.load %arg21[%c0, %c0_0] : memref<256x128xf32, #tpu.memory_space<vmem>>, vector<256x128xf32>
    tpu.vector_store %arg21[%c0, %c0_0], %0 {strides = array<i32>} : memref<256x128xf32, #tpu.memory_space<vmem>>, vector<256x128xf32>,
    %c0_1 = arith.constant 0 : index
    %c0_2 = arith.constant 0 : index
    %2 = vector.load %arg1[%c0_1, %c0_2] : memref<256x32xf32, #tpu.memory_space<vmem>>, vector<256x32xf32>
    %c0_3 = arith.constant 0 : index
    %c0_4 = arith.constant 0 : index
    %3 = vector.load %arg21[%c0_3, %c0_4] : memref<256x128xf32, #tpu.memory_space<vmem>>, vector<256x32xf32>
    tpu.vector_store %arg21[%c0_3, %c0_4], %2 {strides = array<i32>} : memref<256x128xf32, #tpu.memory_space<vmem>>, vector<256x32xf32>,
    %c0_5 = arith.constant 0 : index
    %c0_6 = arith.constant 0 : index
    %4 = vector.load %arg21[%c0_5, %c0_6] : memref<256x128xf32, #tpu.memory_space<vmem>>, vector<256x128xf32>
    %c0_7 = arith.constant 0 : index
    %c0_8 = arith.constant 0 : index
    %5 = vector.load %arg2[%c0_7, %c0_8] : memref<128x128xbf16, #tpu.memory_space<vmem>>, vector<128x128xbf16>
    %c0_9 = arith.constant 0 : index
    %c0_10 = arith.constant 0 : index
    %6 = vector.load %arg3[%c0_9, %c0_10] : memref<1x128xf32, #tpu.memory_space<vmem>>, vector<1x128xf32>
    %c0_11 = arith.constant 0 : index
    %c0_12 = arith.constant 0 : index
    %7 = vector.load %arg4[%c0_11, %c0_12] : memref<128x128xbf16, #tpu.memory_space<vmem>>, vector<128x128xbf16>
    %c0_13 = arith.constant 0 : index
    %c0_14 = arith.constant 0 : index
    %8 = vector.load %arg5[%c0_13, %c0_14] : memref<1x128xf32, #tpu.memory_space<vmem>>, vector<1x128xf32>
    %c0_15 = arith.constant 0 : index
    %c0_16 = arith.constant 0 : index
    %9 = vector.load %arg6[%c0_15, %c0_16] : memref<1x128xf32, #tpu.memory_space<vmem>>, vector<1x128xf32>
    %c0_17 = arith.constant 0 : index
    %c0_18 = arith.constant 0 : index
    %10 = vector.load %arg7[%c0_17, %c0_18] : memref<1x128xf32, #tpu.memory_space<vmem>>, vector<1x128xf32>
    %11 = arith.truncf %4 : vector<256x128xf32> to vector<256x128xbf16>
    %cst_19 = arith.constant dense<0.000000e+00> : vector<256x128xf32>
    %12 = tpu.matmul %11, %5, %cst_19 {dimension_numbers = #tpu.dot_dimension_numbers<[1], [0], [0], [1], [0, 0, 1, 1], [], []>} : vector<256x128xbf16>, vector<128x128xbf16>, vector<256x128xf32> -> vector<256x128xf32>
    %13 = vector.broadcast %6 : vector<1x128xf32> to vector<256x128xf32>
    %14 = arith.addf %12, %13 : vector<256x128xf32>
    %cst_20 = arith.constant 0.000000e+00 : f32
    %15 = vector.broadcast %cst_20 : f32 to vector<256x128xf32>
    %16 = arith.maximumf %14, %15 : vector<256x128xf32>
    %17 = arith.truncf %16 : vector<256x128xf32> to vector<256x128xbf16>
    %cst_21 = arith.constant dense<0.000000e+00> : vector<256x128xf32>
    %18 = tpu.matmul %17, %7, %cst_21 {dimension_numbers = #tpu.dot_dimension_numbers<[1], [0], [0], [1], [0, 0, 1, 1], [], []>} : vector<256x128xbf16>, vector<128x128xbf16>, vector<256x128xf32> -> vector<256x128xf32>
    %19 = vector.broadcast %8 : vector<1x128xf32> to vector<256x128xf32>
    %20 = arith.addf %18, %19 : vector<256x128xf32>
    %cst_22 = arith.constant dense<0.000000e+00> : vector<256xf32>
    %21 = vector.multi_reduction <add>, %20, %cst_22 [1] : vector<256x128xf32> to vector<256xf32>
    %22 = vector.shape_cast %21 : vector<256xf32> to vector<256x1xf32>
    %cst_23 = arith.constant 1.562500e-02 : f32
    %23 = vector.broadcast %cst_23 : f32 to vector<256x1xf32>
    %24 = arith.mulf %22, %23 : vector<256x1xf32>
    %25 = vector.broadcast %24 : vector<256x1xf32> to vector<256x128xf32>
    %26 = arith.subf %20, %25 : vector<256x128xf32>
    %27 = tpu.iota {dimensions = array<i32: 1>} : vector<1x128xi32>
    %c64_i32 = arith.constant 64 : i32
    %28 = vector.broadcast %c64_i32 : i32 to vector<1x128xi32>
    %29 = arith.cmpi slt, %27, %28 : vector<1x128xi32>
    %cst_24 = arith.constant 0.000000e+00 : f32
    %30 = vector.shape_cast %29 : vector<1x128xi1> to vector<1x128xi1>
    %31 = vector.broadcast %30 : vector<1x128xi1> to vector<256x128xi1>
    %32 = vector.broadcast %cst_24 : f32 to vector<256x128xf32>
    %33 = arith.select %31, %26, %32 : vector<256x128xi1>, vector<256x128xf32>
    %34 = arith.mulf %33, %33 : vector<256x128xf32>
    %cst_25 = arith.constant dense<0.000000e+00> : vector<256xf32>
    %35 = vector.multi_reduction <add>, %34, %cst_25 [1] : vector<256x128xf32> to vector<256xf32>
    %36 = vector.shape_cast %35 : vector<256xf32> to vector<256x1xf32>
    %cst_26 = arith.constant 1.562500e-02 : f32
    %37 = vector.broadcast %cst_26 : f32 to vector<256x1xf32>
    %38 = arith.mulf %36, %37 : vector<256x1xf32>
    %cst_27 = arith.constant 9.99999974E-6 : f32
    %39 = vector.broadcast %cst_27 : f32 to vector<256x1xf32>
    %40 = arith.addf %38, %39 : vector<256x1xf32>
    %41 = math.rsqrt %40 : vector<256x1xf32>
    %42 = vector.broadcast %41 : vector<256x1xf32> to vector<256x128xf32>
    %43 = arith.mulf %33, %42 : vector<256x128xf32>
    %44 = vector.broadcast %9 : vector<1x128xf32> to vector<256x128xf32>
    %45 = arith.mulf %43, %44 : vector<256x128xf32>
    %46 = vector.broadcast %10 : vector<1x128xf32> to vector<256x128xf32>
    %47 = arith.addf %45, %46 : vector<256x128xf32>
    %cst_28 = arith.constant 0.000000e+00 : f32
    %48 = vector.broadcast %cst_28 : f32 to vector<256x128xf32>
    %49 = arith.maximumf %47, %48 : vector<256x128xf32>
    %c0_29 = arith.constant 0 : index
    %c0_30 = arith.constant 0 : index
    %50 = vector.load %arg8[%c0_29, %c0_30] : memref<128x128xbf16, #tpu.memory_space<vmem>>, vector<128x128xbf16>
    %c0_31 = arith.constant 0 : index
    %c0_32 = arith.constant 0 : index
    %51 = vector.load %arg9[%c0_31, %c0_32] : memref<1x128xf32, #tpu.memory_space<vmem>>, vector<1x128xf32>
    %c0_33 = arith.constant 0 : index
    %c0_34 = arith.constant 0 : index
    %52 = vector.load %arg10[%c0_33, %c0_34] : memref<128x128xbf16, #tpu.memory_space<vmem>>, vector<128x128xbf16>
    %c0_35 = arith.constant 0 : index
    %c0_36 = arith.constant 0 : index
    %53 = vector.load %arg11[%c0_35, %c0_36] : memref<1x128xf32, #tpu.memory_space<vmem>>, vector<1x128xf32>
    %c0_37 = arith.constant 0 : index
    %c0_38 = arith.constant 0 : index
    %54 = vector.load %arg12[%c0_37, %c0_38] : memref<1x128xf32, #tpu.memory_space<vmem>>, vector<1x128xf32>
    %c0_39 = arith.constant 0 : index
    %c0_40 = arith.constant 0 : index
    %55 = vector.load %arg13[%c0_39, %c0_40] : memref<1x128xf32, #tpu.memory_space<vmem>>, vector<1x128xf32>
    %56 = arith.truncf %49 : vector<256x128xf32> to vector<256x128xbf16>
    %cst_41 = arith.constant dense<0.000000e+00> : vector<256x128xf32>
    %57 = tpu.matmul %56, %50, %cst_41 {dimension_numbers = #tpu.dot_dimension_numbers<[1], [0], [0], [1], [0, 0, 1, 1], [], []>} : vector<256x128xbf16>, vector<128x128xbf16>, vector<256x128xf32> -> vector<256x128xf32>
    %58 = vector.broadcast %51 : vector<1x128xf32> to vector<256x128xf32>
    %59 = arith.addf %57, %58 : vector<256x128xf32>
    %cst_42 = arith.constant 0.000000e+00 : f32
    %60 = vector.broadcast %cst_42 : f32 to vector<256x128xf32>
    %61 = arith.maximumf %59, %60 : vector<256x128xf32>
    %62 = arith.truncf %61 : vector<256x128xf32> to vector<256x128xbf16>
    %cst_43 = arith.constant dense<0.000000e+00> : vector<256x128xf32>
    %63 = tpu.matmul %62, %52, %cst_43 {dimension_numbers = #tpu.dot_dimension_numbers<[1], [0], [0], [1], [0, 0, 1, 1], [], []>} : vector<256x128xbf16>, vector<128x128xbf16>, vector<256x128xf32> -> vector<256x128xf32>
    %64 = vector.broadcast %53 : vector<1x128xf32> to vector<256x128xf32>
    %65 = arith.addf %63, %64 : vector<256x128xf32>
    %cst_44 = arith.constant dense<0.000000e+00> : vector<256xf32>
    %66 = vector.multi_reduction <add>, %65, %cst_44 [1] : vector<256x128xf32> to vector<256xf32>
    %67 = vector.shape_cast %66 : vector<256xf32> to vector<256x1xf32>
    %cst_45 = arith.constant 1.562500e-02 : f32
    %68 = vector.broadcast %cst_45 : f32 to vector<256x1xf32>
    %69 = arith.mulf %67, %68 : vector<256x1xf32>
    %70 = vector.broadcast %69 : vector<256x1xf32> to vector<256x128xf32>
    %71 = arith.subf %65, %70 : vector<256x128xf32>
    %72 = tpu.iota {dimensions = array<i32: 1>} : vector<1x128xi32>
    %c64_i32_46 = arith.constant 64 : i32
    %73 = vector.broadcast %c64_i32_46 : i32 to vector<1x128xi32>
    %74 = arith.cmpi slt, %72, %73 : vector<1x128xi32>
    %cst_47 = arith.constant 0.000000e+00 : f32
    %75 = vector.shape_cast %74 : vector<1x128xi1> to vector<1x128xi1>
    %76 = vector.broadcast %75 : vector<1x128xi1> to vector<256x128xi1>
    %77 = vector.broadcast %cst_47 : f32 to vector<256x128xf32>
    %78 = arith.select %76, %71, %77 : vector<256x128xi1>, vector<256x128xf32>
    %79 = arith.mulf %78, %78 : vector<256x128xf32>
    %cst_48 = arith.constant dense<0.000000e+00> : vector<256xf32>
    %80 = vector.multi_reduction <add>, %79, %cst_48 [1] : vector<256x128xf32> to vector<256xf32>
    %81 = vector.shape_cast %80 : vector<256xf32> to vector<256x1xf32>
    %cst_49 = arith.constant 1.562500e-02 : f32
    %82 = vector.broadcast %cst_49 : f32 to vector<256x1xf32>
    %83 = arith.mulf %81, %82 : vector<256x1xf32>
    %cst_50 = arith.constant 9.99999974E-6 : f32
    %84 = vector.broadcast %cst_50 : f32 to vector<256x1xf32>
    %85 = arith.addf %83, %84 : vector<256x1xf32>
    %86 = math.rsqrt %85 : vector<256x1xf32>
    %87 = vector.broadcast %86 : vector<256x1xf32> to vector<256x128xf32>
    %88 = arith.mulf %78, %87 : vector<256x128xf32>
    %89 = vector.broadcast %54 : vector<1x128xf32> to vector<256x128xf32>
    %90 = arith.mulf %88, %89 : vector<256x128xf32>
    %91 = vector.broadcast %55 : vector<1x128xf32> to vector<256x128xf32>
    %92 = arith.addf %90, %91 : vector<256x128xf32>
    %93 = arith.addf %92, %49 : vector<256x128xf32>
    %cst_51 = arith.constant 0.000000e+00 : f32
    %94 = vector.broadcast %cst_51 : f32 to vector<256x128xf32>
    %95 = arith.maximumf %93, %94 : vector<256x128xf32>
    %c0_52 = arith.constant 0 : index
    %c0_53 = arith.constant 0 : index
    %96 = vector.load %arg14[%c0_52, %c0_53] : memref<128x128xbf16, #tpu.memory_space<vmem>>, vector<128x128xbf16>
    %c0_54 = arith.constant 0 : index
    %c0_55 = arith.constant 0 : index
    %97 = vector.load %arg15[%c0_54, %c0_55] : memref<1x128xf32, #tpu.memory_space<vmem>>, vector<1x128xf32>
    %c0_56 = arith.constant 0 : index
    %c0_57 = arith.constant 0 : index
    %98 = vector.load %arg16[%c0_56, %c0_57] : memref<128x128xbf16, #tpu.memory_space<vmem>>, vector<128x128xbf16>
    %c0_58 = arith.constant 0 : index
    %c0_59 = arith.constant 0 : index
    %99 = vector.load %arg17[%c0_58, %c0_59] : memref<1x128xf32, #tpu.memory_space<vmem>>, vector<1x128xf32>
    %c0_60 = arith.constant 0 : index
    %c0_61 = arith.constant 0 : index
    %100 = vector.load %arg18[%c0_60, %c0_61] : memref<1x128xf32, #tpu.memory_space<vmem>>, vector<1x128xf32>
    %c0_62 = arith.constant 0 : index
    %c0_63 = arith.constant 0 : index
    %101 = vector.load %arg19[%c0_62, %c0_63] : memref<1x128xf32, #tpu.memory_space<vmem>>, vector<1x128xf32>
    %102 = arith.truncf %95 : vector<256x128xf32> to vector<256x128xbf16>
    %cst_64 = arith.constant dense<0.000000e+00> : vector<256x128xf32>
    %103 = tpu.matmul %102, %96, %cst_64 {dimension_numbers = #tpu.dot_dimension_numbers<[1], [0], [0], [1], [0, 0, 1, 1], [], []>} : vector<256x128xbf16>, vector<128x128xbf16>, vector<256x128xf32> -> vector<256x128xf32>
    %104 = vector.broadcast %97 : vector<1x128xf32> to vector<256x128xf32>
    %105 = arith.addf %103, %104 : vector<256x128xf32>
    %cst_65 = arith.constant 0.000000e+00 : f32
    %106 = vector.broadcast %cst_65 : f32 to vector<256x128xf32>
    %107 = arith.maximumf %105, %106 : vector<256x128xf32>
    %108 = arith.truncf %107 : vector<256x128xf32> to vector<256x128xbf16>
    %cst_66 = arith.constant dense<0.000000e+00> : vector<256x128xf32>
    %109 = tpu.matmul %108, %98, %cst_66 {dimension_numbers = #tpu.dot_dimension_numbers<[1], [0], [0], [1], [0, 0, 1, 1], [], []>} : vector<256x128xbf16>, vector<128x128xbf16>, vector<256x128xf32> -> vector<256x128xf32>
    %110 = vector.broadcast %99 : vector<1x128xf32> to vector<256x128xf32>
    %111 = arith.addf %109, %110 : vector<256x128xf32>
    %cst_67 = arith.constant dense<0.000000e+00> : vector<256xf32>
    %112 = vector.multi_reduction <add>, %111, %cst_67 [1] : vector<256x128xf32> to vector<256xf32>
    %113 = vector.shape_cast %112 : vector<256xf32> to vector<256x1xf32>
    %cst_68 = arith.constant 3.125000e-02 : f32
    %114 = vector.broadcast %cst_68 : f32 to vector<256x1xf32>
    %115 = arith.mulf %113, %114 : vector<256x1xf32>
    %116 = vector.broadcast %115 : vector<256x1xf32> to vector<256x128xf32>
    %117 = arith.subf %111, %116 : vector<256x128xf32>
    %118 = tpu.iota {dimensions = array<i32: 1>} : vector<1x128xi32>
    %c32_i32 = arith.constant 32 : i32
    %119 = vector.broadcast %c32_i32 : i32 to vector<1x128xi32>
    %120 = arith.cmpi slt, %118, %119 : vector<1x128xi32>
    %cst_69 = arith.constant 0.000000e+00 : f32
    %121 = vector.shape_cast %120 : vector<1x128xi1> to vector<1x128xi1>
    %122 = vector.broadcast %121 : vector<1x128xi1> to vector<256x128xi1>
    %123 = vector.broadcast %cst_69 : f32 to vector<256x128xf32>
    %124 = arith.select %122, %117, %123 : vector<256x128xi1>, vector<256x128xf32>
    %125 = arith.mulf %124, %124 : vector<256x128xf32>
    %cst_70 = arith.constant dense<0.000000e+00> : vector<256xf32>
    %126 = vector.multi_reduction <add>, %125, %cst_70 [1] : vector<256x128xf32> to vector<256xf32>
    %127 = vector.shape_cast %126 : vector<256xf32> to vector<256x1xf32>
    %cst_71 = arith.constant 3.125000e-02 : f32
    %128 = vector.broadcast %cst_71 : f32 to vector<256x1xf32>
    %129 = arith.mulf %127, %128 : vector<256x1xf32>
    %cst_72 = arith.constant 9.99999974E-6 : f32
    %130 = vector.broadcast %cst_72 : f32 to vector<256x1xf32>
    %131 = arith.addf %129, %130 : vector<256x1xf32>
    %132 = math.rsqrt %131 : vector<256x1xf32>
    %133 = vector.broadcast %132 : vector<256x1xf32> to vector<256x128xf32>
    %134 = arith.mulf %124, %133 : vector<256x128xf32>
    %135 = vector.broadcast %100 : vector<1x128xf32> to vector<256x128xf32>
    %136 = arith.mulf %134, %135 : vector<256x128xf32>
    %137 = vector.broadcast %101 : vector<1x128xf32> to vector<256x128xf32>
    %138 = arith.addf %136, %137 : vector<256x128xf32>
    %cst_73 = arith.constant 0.000000e+00 : f32
    %139 = vector.broadcast %cst_73 : f32 to vector<256x128xf32>
    %140 = arith.maximumf %138, %139 : vector<256x128xf32>
    %141 = vector.extract_strided_slice %140 {offsets = [0, 0], sizes = [256, 32], strides = [1, 1]} : vector<256x128xf32> to vector<256x32xf32>
    %c0_74 = arith.constant 0 : index
    %c0_75 = arith.constant 0 : index
    %142 = vector.load %arg20[%c0_74, %c0_75] : memref<256x32xf32, #tpu.memory_space<vmem>>, vector<256x32xf32>
    tpu.vector_store %arg20[%c0_74, %c0_75], %141 {strides = array<i32>} : memref<256x32xf32, #tpu.memory_space<vmem>>, vector<256x32xf32>,
    return
  }
  func.func @transform_0(%arg0: i32) -> (i32, i32) {
    %c0_i32 = arith.constant 0 : i32
    %c0_i32_0 = arith.constant 0 : i32
    return %arg0, %c0_i32 : i32, i32
  }
  func.func @transform_1(%arg0: i32) -> (i32, i32) {
    %c0_i32 = arith.constant 0 : i32
    %c0_i32_0 = arith.constant 0 : i32
    %c0_i32_1 = arith.constant 0 : i32
    return %c0_i32, %c0_i32_0 : i32, i32
  }
  func.func @transform_2(%arg0: i32) -> (i32, i32) {
    %c0_i32 = arith.constant 0 : i32
    %c0_i32_0 = arith.constant 0 : i32
    %c0_i32_1 = arith.constant 0 : i32
    return %c0_i32, %c0_i32_0 : i32, i32
  }
  func.func @transform_3(%arg0: i32) -> (i32, i32) {
    %c0_i32 = arith.constant 0 : i32
    %c0_i32_0 = arith.constant 0 : i32
    %c0_i32_1 = arith.constant 0 : i32
    return %c0_i32, %c0_i32_0 : i32, i32
  }
  func.func @transform_4(%arg0: i32) -> (i32, i32) {
    %c0_i32 = arith.constant 0 : i32
    %c0_i32_0 = arith.constant 0 : i32
    %c0_i32_1 = arith.constant 0 : i32
    return %c0_i32, %c0_i32_0 : i32, i32
  }
  func.func @transform_5(%arg0: i32) -> (i32, i32) {
    %c0_i32 = arith.constant 0 : i32
    %c0_i32_0 = arith.constant 0 : i32
    %c0_i32_1 = arith.constant 0 : i32
    return %c0_i32, %c0_i32_0 : i32, i32
  }
  func.func @transform_6(%arg0: i32) -> (i32, i32) {
    %c0_i32 = arith.constant 0 : i32
    %c0_i32_0 = arith.constant 0 : i32
    %c0_i32_1 = arith.constant 0 : i32
    return %c0_i32, %c0_i32_0 : i32, i32
  }
  func.func @transform_7(%arg0: i32) -> (i32, i32) {
    %c0_i32 = arith.constant 0 : i32
    %c0_i32_0 = arith.constant 0 : i32
    %c0_i32_1 = arith.constant 0 : i32
    return %c0_i32, %c0_i32_0 : i32, i32
  }
  func.func @transform_8(%arg0: i32) -> (i32, i32) {
    %c0_i32 = arith.constant 0 : i32
    %c0_i32_0 = arith.constant 0 : i32
    %c0_i32_1 = arith.constant 0 : i32
    return %c0_i32, %c0_i32_0 : i32, i32
  }
  func.func @transform_9(%arg0: i32) -> (i32, i32) {
    %c0_i32 = arith.constant 0 : i32
    %c0_i32_0 = arith.constant 0 : i32
    %c0_i32_1 = arith.constant 0 : i32
    return %c0_i32, %c0_i32_0 : i32, i32
  }
  func.func @transform_10(%arg0: i32) -> (i32, i32) {
    %c0_i32 = arith.constant 0 : i32
    %c0_i32_0 = arith.constant 0 : i32
    %c0_i32_1 = arith.constant 0 : i32
    return %c0_i32, %c0_i32_0 : i32, i32
  }
  func.func @transform_11(%arg0: i32) -> (i32, i32) {
    %c0_i32 = arith.constant 0 : i32
    %c0_i32_0 = arith.constant 0 : i32
    %c0_i32_1 = arith.constant 0 : i32
    return %c0_i32, %c0_i32_0 : i32, i32
  }
  func.func @transform_12(%arg0: i32) -> (i32, i32) {
    %c0_i32 = arith.constant 0 : i32
    %c0_i32_0 = arith.constant 0 : i32
    %c0_i32_1 = arith.constant 0 : i32
    return %c0_i32, %c0_i32_0 : i32, i32
  }
  func.func @transform_13(%arg0: i32) -> (i32, i32) {
    %c0_i32 = arith.constant 0 : i32
    %c0_i32_0 = arith.constant 0 : i32
    %c0_i32_1 = arith.constant 0 : i32
    return %c0_i32, %c0_i32_0 : i32, i32
  }
  func.func @transform_14(%arg0: i32) -> (i32, i32) {
    %c0_i32 = arith.constant 0 : i32
    %c0_i32_0 = arith.constant 0 : i32
    %c0_i32_1 = arith.constant 0 : i32
    return %c0_i32, %c0_i32_0 : i32, i32
  }
  func.func @transform_15(%arg0: i32) -> (i32, i32) {
    %c0_i32 = arith.constant 0 : i32
    %c0_i32_0 = arith.constant 0 : i32
    %c0_i32_1 = arith.constant 0 : i32
    return %c0_i32, %c0_i32_0 : i32, i32
  }
  func.func @transform_16(%arg0: i32) -> (i32, i32) {
    %c0_i32 = arith.constant 0 : i32
    %c0_i32_0 = arith.constant 0 : i32
    %c0_i32_1 = arith.constant 0 : i32
    return %c0_i32, %c0_i32_0 : i32, i32
  }
  func.func @transform_17(%arg0: i32) -> (i32, i32) {
    %c0_i32 = arith.constant 0 : i32
    %c0_i32_0 = arith.constant 0 : i32
    %c0_i32_1 = arith.constant 0 : i32
    return %c0_i32, %c0_i32_0 : i32, i32
  }
  func.func @transform_18(%arg0: i32) -> (i32, i32) {
    %c0_i32 = arith.constant 0 : i32
    %c0_i32_0 = arith.constant 0 : i32
    %c0_i32_1 = arith.constant 0 : i32
    return %c0_i32, %c0_i32_0 : i32, i32
  }
  func.func @transform_19(%arg0: i32) -> (i32, i32) {
    %c0_i32 = arith.constant 0 : i32
    %c0_i32_0 = arith.constant 0 : i32
    return %arg0, %c0_i32 : i32, i32
  }
}

module attributes {stable_mosaic.version = 11 : i64} {
  func.func @_fused_kernel(%arg0: i32, %arg1: memref<256x32xf32, #tpu.memory_space<vmem>>, %arg2: memref<128x128xbf16, #tpu.memory_space<vmem>>, %arg3: memref<1x128xf32, #tpu.memory_space<vmem>>, %arg4: memref<128x128xbf16, #tpu.memory_space<vmem>>, %arg5: memref<1x128xf32, #tpu.memory_space<vmem>>, %arg6: memref<1x128xf32, #tpu.memory_space<vmem>>, %arg7: memref<1x128xf32, #tpu.memory_space<vmem>>, %arg8: memref<128x128xbf16, #tpu.memory_space<vmem>>, %arg9: memref<1x128xf32, #tpu.memory_space<vmem>>, %arg10: memref<128x128xbf16, #tpu.memory_space<vmem>>, %arg11: memref<1x128xf32, #tpu.memory_space<vmem>>, %arg12: memref<1x128xf32, #tpu.memory_space<vmem>>, %arg13: memref<1x128xf32, #tpu.memory_space<vmem>>, %arg14: memref<128x128xbf16, #tpu.memory_space<vmem>>, %arg15: memref<1x128xf32, #tpu.memory_space<vmem>>, %arg16: memref<128x128xbf16, #tpu.memory_space<vmem>>, %arg17: memref<1x128xf32, #tpu.memory_space<vmem>>, %arg18: memref<1x128xf32, #tpu.memory_space<vmem>>, %arg19: memref<1x128xf32, #tpu.memory_space<vmem>>, %arg20: memref<256x32xf32, #tpu.memory_space<vmem>>, %arg21: memref<256x128xf32, #tpu.memory_space<vmem>>) attributes {dimension_semantics = [#tpu.dimension_semantics<parallel>], iteration_bounds = array<i64: 2>, scalar_prefetch = 0 : i64, scratch_operands = 1 : i64, tpu.core_type = #tpu.core_type<tc>, window_params = [{transform_indices = @transform_0, window_bounds = array<i64: 256, 32>}, {pipeline_mode = #tpu.pipeline_mode<synchronous>, transform_indices = @transform_1, window_bounds = array<i64: 128, 128>}, {pipeline_mode = #tpu.pipeline_mode<synchronous>, transform_indices = @transform_2, window_bounds = array<i64: 1, 128>}, {pipeline_mode = #tpu.pipeline_mode<synchronous>, transform_indices = @transform_3, window_bounds = array<i64: 128, 128>}, {pipeline_mode = #tpu.pipeline_mode<synchronous>, transform_indices = @transform_4, window_bounds = array<i64: 1, 128>}, {pipeline_mode = #tpu.pipeline_mode<synchronous>, transform_indices = @transform_5, window_bounds = array<i64: 1, 128>}, {pipeline_mode = #tpu.pipeline_mode<synchronous>, transform_indices = @transform_6, window_bounds = array<i64: 1, 128>}, {pipeline_mode = #tpu.pipeline_mode<synchronous>, transform_indices = @transform_7, window_bounds = array<i64: 128, 128>}, {pipeline_mode = #tpu.pipeline_mode<synchronous>, transform_indices = @transform_8, window_bounds = array<i64: 1, 128>}, {pipeline_mode = #tpu.pipeline_mode<synchronous>, transform_indices = @transform_9, window_bounds = array<i64: 128, 128>}, {pipeline_mode = #tpu.pipeline_mode<synchronous>, transform_indices = @transform_10, window_bounds = array<i64: 1, 128>}, {pipeline_mode = #tpu.pipeline_mode<synchronous>, transform_indices = @transform_11, window_bounds = array<i64: 1, 128>}, {pipeline_mode = #tpu.pipeline_mode<synchronous>, transform_indices = @transform_12, window_bounds = array<i64: 1, 128>}, {pipeline_mode = #tpu.pipeline_mode<synchronous>, transform_indices = @transform_13, window_bounds = array<i64: 128, 128>}, {pipeline_mode = #tpu.pipeline_mode<synchronous>, transform_indices = @transform_14, window_bounds = array<i64: 1, 128>}, {pipeline_mode = #tpu.pipeline_mode<synchronous>, transform_indices = @transform_15, window_bounds = array<i64: 128, 128>}, {pipeline_mode = #tpu.pipeline_mode<synchronous>, transform_indices = @transform_16, window_bounds = array<i64: 1, 128>}, {pipeline_mode = #tpu.pipeline_mode<synchronous>, transform_indices = @transform_17, window_bounds = array<i64: 1, 128>}, {pipeline_mode = #tpu.pipeline_mode<synchronous>, transform_indices = @transform_18, window_bounds = array<i64: 1, 128>}, {transform_indices = @transform_19, window_bounds = array<i64: 256, 32>}]} {
    %cst = arith.constant 0.000000e+00 : f32
    %0 = vector.broadcast %cst : f32 to vector<256x128xf32>
    %c0 = arith.constant 0 : index
    %c0_0 = arith.constant 0 : index
    %1 = vector.load %arg21[%c0, %c0_0] : memref<256x128xf32, #tpu.memory_space<vmem>>, vector<256x128xf32>
    tpu.vector_store %arg21[%c0, %c0_0], %0 {strides = array<i32>} : memref<256x128xf32, #tpu.memory_space<vmem>>, vector<256x128xf32>,
    %c0_1 = arith.constant 0 : index
    %c0_2 = arith.constant 0 : index
    %2 = vector.load %arg1[%c0_1, %c0_2] : memref<256x32xf32, #tpu.memory_space<vmem>>, vector<256x32xf32>
    %c0_3 = arith.constant 0 : index
    %c0_4 = arith.constant 0 : index
    %3 = vector.load %arg21[%c0_3, %c0_4] : memref<256x128xf32, #tpu.memory_space<vmem>>, vector<256x32xf32>
    tpu.vector_store %arg21[%c0_3, %c0_4], %2 {strides = array<i32>} : memref<256x128xf32, #tpu.memory_space<vmem>>, vector<256x32xf32>,
    %c0_5 = arith.constant 0 : index
    %c0_6 = arith.constant 0 : index
    %4 = vector.load %arg21[%c0_5, %c0_6] : memref<256x128xf32, #tpu.memory_space<vmem>>, vector<256x128xf32>
    %c0_7 = arith.constant 0 : index
    %c0_8 = arith.constant 0 : index
    %5 = vector.load %arg2[%c0_7, %c0_8] : memref<128x128xbf16, #tpu.memory_space<vmem>>, vector<128x128xbf16>
    %c0_9 = arith.constant 0 : index
    %c0_10 = arith.constant 0 : index
    %6 = vector.load %arg3[%c0_9, %c0_10] : memref<1x128xf32, #tpu.memory_space<vmem>>, vector<1x128xf32>
    %c0_11 = arith.constant 0 : index
    %c0_12 = arith.constant 0 : index
    %7 = vector.load %arg4[%c0_11, %c0_12] : memref<128x128xbf16, #tpu.memory_space<vmem>>, vector<128x128xbf16>
    %c0_13 = arith.constant 0 : index
    %c0_14 = arith.constant 0 : index
    %8 = vector.load %arg5[%c0_13, %c0_14] : memref<1x128xf32, #tpu.memory_space<vmem>>, vector<1x128xf32>
    %c0_15 = arith.constant 0 : index
    %c0_16 = arith.constant 0 : index
    %9 = vector.load %arg6[%c0_15, %c0_16] : memref<1x128xf32, #tpu.memory_space<vmem>>, vector<1x128xf32>
    %c0_17 = arith.constant 0 : index
    %c0_18 = arith.constant 0 : index
    %10 = vector.load %arg7[%c0_17, %c0_18] : memref<1x128xf32, #tpu.memory_space<vmem>>, vector<1x128xf32>
    %11 = arith.truncf %4 : vector<256x128xf32> to vector<256x128xbf16>
    %cst_19 = arith.constant dense<0.000000e+00> : vector<256x128xf32>
    %12 = tpu.matmul %11, %5, %cst_19 {dimension_numbers = #tpu.dot_dimension_numbers<[1], [0], [0], [1], [0, 0, 1, 1], [], []>} : vector<256x128xbf16>, vector<128x128xbf16>, vector<256x128xf32> -> vector<256x128xf32>
    %13 = vector.broadcast %6 : vector<1x128xf32> to vector<256x128xf32>
    %14 = arith.addf %12, %13 : vector<256x128xf32>
    %cst_20 = arith.constant 0.000000e+00 : f32
    %15 = vector.broadcast %cst_20 : f32 to vector<256x128xf32>
    %16 = arith.maximumf %14, %15 : vector<256x128xf32>
    %17 = arith.truncf %16 : vector<256x128xf32> to vector<256x128xbf16>
    %cst_21 = arith.constant dense<0.000000e+00> : vector<256x128xf32>
    %18 = tpu.matmul %17, %7, %cst_21 {dimension_numbers = #tpu.dot_dimension_numbers<[1], [0], [0], [1], [0, 0, 1, 1], [], []>} : vector<256x128xbf16>, vector<128x128xbf16>, vector<256x128xf32> -> vector<256x128xf32>
    %19 = vector.broadcast %8 : vector<1x128xf32> to vector<256x128xf32>
    %20 = arith.addf %18, %19 : vector<256x128xf32>
    %cst_22 = arith.constant dense<0.000000e+00> : vector<256xf32>
    %21 = vector.multi_reduction <add>, %20, %cst_22 [1] : vector<256x128xf32> to vector<256xf32>
    %22 = vector.shape_cast %21 : vector<256xf32> to vector<256x1xf32>
    %cst_23 = arith.constant 1.562500e-02 : f32
    %23 = vector.broadcast %cst_23 : f32 to vector<256x1xf32>
    %24 = arith.mulf %22, %23 : vector<256x1xf32>
    %25 = vector.broadcast %24 : vector<256x1xf32> to vector<256x128xf32>
    %26 = arith.subf %20, %25 : vector<256x128xf32>
    %27 = tpu.iota {dimensions = array<i32: 1>} : vector<1x128xi32>
    %c64_i32 = arith.constant 64 : i32
    %28 = vector.broadcast %c64_i32 : i32 to vector<1x128xi32>
    %29 = arith.cmpi slt, %27, %28 : vector<1x128xi32>
    %cst_24 = arith.constant 0.000000e+00 : f32
    %30 = vector.shape_cast %29 : vector<1x128xi1> to vector<1x128xi1>
    %31 = vector.broadcast %30 : vector<1x128xi1> to vector<256x128xi1>
    %32 = vector.broadcast %cst_24 : f32 to vector<256x128xf32>
    %33 = arith.select %31, %26, %32 : vector<256x128xi1>, vector<256x128xf32>
    %34 = arith.mulf %33, %33 : vector<256x128xf32>
    %cst_25 = arith.constant dense<0.000000e+00> : vector<256xf32>
    %35 = vector.multi_reduction <add>, %34, %cst_25 [1] : vector<256x128xf32> to vector<256xf32>
    %36 = vector.shape_cast %35 : vector<256xf32> to vector<256x1xf32>
    %cst_26 = arith.constant 1.562500e-02 : f32
    %37 = vector.broadcast %cst_26 : f32 to vector<256x1xf32>
    %38 = arith.mulf %36, %37 : vector<256x1xf32>
    %cst_27 = arith.constant 9.99999974E-6 : f32
    %39 = vector.broadcast %cst_27 : f32 to vector<256x1xf32>
    %40 = arith.addf %38, %39 : vector<256x1xf32>
    %41 = math.rsqrt %40 : vector<256x1xf32>
    %42 = vector.broadcast %41 : vector<256x1xf32> to vector<256x128xf32>
    %43 = arith.mulf %33, %42 : vector<256x128xf32>
    %44 = vector.broadcast %9 : vector<1x128xf32> to vector<256x128xf32>
    %45 = arith.mulf %43, %44 : vector<256x128xf32>
    %46 = vector.broadcast %10 : vector<1x128xf32> to vector<256x128xf32>
    %47 = arith.addf %45, %46 : vector<256x128xf32>
    %cst_28 = arith.constant 0.000000e+00 : f32
    %48 = vector.broadcast %cst_28 : f32 to vector<256x128xf32>
    %49 = arith.maximumf %47, %48 : vector<256x128xf32>
    %c0_29 = arith.constant 0 : index
    %c0_30 = arith.constant 0 : index
    %50 = vector.load %arg8[%c0_29, %c0_30] : memref<128x128xbf16, #tpu.memory_space<vmem>>, vector<128x128xbf16>
    %c0_31 = arith.constant 0 : index
    %c0_32 = arith.constant 0 : index
    %51 = vector.load %arg9[%c0_31, %c0_32] : memref<1x128xf32, #tpu.memory_space<vmem>>, vector<1x128xf32>
    %c0_33 = arith.constant 0 : index
    %c0_34 = arith.constant 0 : index
    %52 = vector.load %arg10[%c0_33, %c0_34] : memref<128x128xbf16, #tpu.memory_space<vmem>>, vector<128x128xbf16>
    %c0_35 = arith.constant 0 : index
    %c0_36 = arith.constant 0 : index
    %53 = vector.load %arg11[%c0_35, %c0_36] : memref<1x128xf32, #tpu.memory_space<vmem>>, vector<1x128xf32>
    %c0_37 = arith.constant 0 : index
    %c0_38 = arith.constant 0 : index
    %54 = vector.load %arg12[%c0_37, %c0_38] : memref<1x128xf32, #tpu.memory_space<vmem>>, vector<1x128xf32>
    %c0_39 = arith.constant 0 : index
    %c0_40 = arith.constant 0 : index
    %55 = vector.load %arg13[%c0_39, %c0_40] : memref<1x128xf32, #tpu.memory_space<vmem>>, vector<1x128xf32>
    %56 = arith.truncf %49 : vector<256x128xf32> to vector<256x128xbf16>
    %cst_41 = arith.constant dense<0.000000e+00> : vector<256x128xf32>
    %57 = tpu.matmul %56, %50, %cst_41 {dimension_numbers = #tpu.dot_dimension_numbers<[1], [0], [0], [1], [0, 0, 1, 1], [], []>} : vector<256x128xbf16>, vector<128x128xbf16>, vector<256x128xf32> -> vector<256x128xf32>
    %58 = vector.broadcast %51 : vector<1x128xf32> to vector<256x128xf32>
    %59 = arith.addf %57, %58 : vector<256x128xf32>
    %cst_42 = arith.constant 0.000000e+00 : f32
    %60 = vector.broadcast %cst_42 : f32 to vector<256x128xf32>
    %61 = arith.maximumf %59, %60 : vector<256x128xf32>
    %62 = arith.truncf %61 : vector<256x128xf32> to vector<256x128xbf16>
    %cst_43 = arith.constant dense<0.000000e+00> : vector<256x128xf32>
    %63 = tpu.matmul %62, %52, %cst_43 {dimension_numbers = #tpu.dot_dimension_numbers<[1], [0], [0], [1], [0, 0, 1, 1], [], []>} : vector<256x128xbf16>, vector<128x128xbf16>, vector<256x128xf32> -> vector<256x128xf32>
    %64 = vector.broadcast %53 : vector<1x128xf32> to vector<256x128xf32>
    %65 = arith.addf %63, %64 : vector<256x128xf32>
    %cst_44 = arith.constant dense<0.000000e+00> : vector<256xf32>
    %66 = vector.multi_reduction <add>, %65, %cst_44 [1] : vector<256x128xf32> to vector<256xf32>
    %67 = vector.shape_cast %66 : vector<256xf32> to vector<256x1xf32>
    %cst_45 = arith.constant 1.562500e-02 : f32
    %68 = vector.broadcast %cst_45 : f32 to vector<256x1xf32>
    %69 = arith.mulf %67, %68 : vector<256x1xf32>
    %70 = vector.broadcast %69 : vector<256x1xf32> to vector<256x128xf32>
    %71 = arith.subf %65, %70 : vector<256x128xf32>
    %72 = tpu.iota {dimensions = array<i32: 1>} : vector<1x128xi32>
    %c64_i32_46 = arith.constant 64 : i32
    %73 = vector.broadcast %c64_i32_46 : i32 to vector<1x128xi32>
    %74 = arith.cmpi slt, %72, %73 : vector<1x128xi32>
    %cst_47 = arith.constant 0.000000e+00 : f32
    %75 = vector.shape_cast %74 : vector<1x128xi1> to vector<1x128xi1>
    %76 = vector.broadcast %75 : vector<1x128xi1> to vector<256x128xi1>
    %77 = vector.broadcast %cst_47 : f32 to vector<256x128xf32>
    %78 = arith.select %76, %71, %77 : vector<256x128xi1>, vector<256x128xf32>
    %79 = arith.mulf %78, %78 : vector<256x128xf32>
    %cst_48 = arith.constant dense<0.000000e+00> : vector<256xf32>
    %80 = vector.multi_reduction <add>, %79, %cst_48 [1] : vector<256x128xf32> to vector<256xf32>
    %81 = vector.shape_cast %80 : vector<256xf32> to vector<256x1xf32>
    %cst_49 = arith.constant 1.562500e-02 : f32
    %82 = vector.broadcast %cst_49 : f32 to vector<256x1xf32>
    %83 = arith.mulf %81, %82 : vector<256x1xf32>
    %cst_50 = arith.constant 9.99999974E-6 : f32
    %84 = vector.broadcast %cst_50 : f32 to vector<256x1xf32>
    %85 = arith.addf %83, %84 : vector<256x1xf32>
    %86 = math.rsqrt %85 : vector<256x1xf32>
    %87 = vector.broadcast %86 : vector<256x1xf32> to vector<256x128xf32>
    %88 = arith.mulf %78, %87 : vector<256x128xf32>
    %89 = vector.broadcast %54 : vector<1x128xf32> to vector<256x128xf32>
    %90 = arith.mulf %88, %89 : vector<256x128xf32>
    %91 = vector.broadcast %55 : vector<1x128xf32> to vector<256x128xf32>
    %92 = arith.addf %90, %91 : vector<256x128xf32>
    %93 = arith.addf %92, %49 : vector<256x128xf32>
    %cst_51 = arith.constant 0.000000e+00 : f32
    %94 = vector.broadcast %cst_51 : f32 to vector<256x128xf32>
    %95 = arith.maximumf %93, %94 : vector<256x128xf32>
    %c0_52 = arith.constant 0 : index
    %c0_53 = arith.constant 0 : index
    %96 = vector.load %arg14[%c0_52, %c0_53] : memref<128x128xbf16, #tpu.memory_space<vmem>>, vector<128x128xbf16>
    %c0_54 = arith.constant 0 : index
    %c0_55 = arith.constant 0 : index
    %97 = vector.load %arg15[%c0_54, %c0_55] : memref<1x128xf32, #tpu.memory_space<vmem>>, vector<1x128xf32>
    %c0_56 = arith.constant 0 : index
    %c0_57 = arith.constant 0 : index
    %98 = vector.load %arg16[%c0_56, %c0_57] : memref<128x128xbf16, #tpu.memory_space<vmem>>, vector<128x128xbf16>
    %c0_58 = arith.constant 0 : index
    %c0_59 = arith.constant 0 : index
    %99 = vector.load %arg17[%c0_58, %c0_59] : memref<1x128xf32, #tpu.memory_space<vmem>>, vector<1x128xf32>
    %c0_60 = arith.constant 0 : index
    %c0_61 = arith.constant 0 : index
    %100 = vector.load %arg18[%c0_60, %c0_61] : memref<1x128xf32, #tpu.memory_space<vmem>>, vector<1x128xf32>
    %c0_62 = arith.constant 0 : index
    %c0_63 = arith.constant 0 : index
    %101 = vector.load %arg19[%c0_62, %c0_63] : memref<1x128xf32, #tpu.memory_space<vmem>>, vector<1x128xf32>
    %102 = arith.truncf %95 : vector<256x128xf32> to vector<256x128xbf16>
    %cst_64 = arith.constant dense<0.000000e+00> : vector<256x128xf32>
    %103 = tpu.matmul %102, %96, %cst_64 {dimension_numbers = #tpu.dot_dimension_numbers<[1], [0], [0], [1], [0, 0, 1, 1], [], []>} : vector<256x128xbf16>, vector<128x128xbf16>, vector<256x128xf32> -> vector<256x128xf32>
    %104 = vector.broadcast %97 : vector<1x128xf32> to vector<256x128xf32>
    %105 = arith.addf %103, %104 : vector<256x128xf32>
    %cst_65 = arith.constant 0.000000e+00 : f32
    %106 = vector.broadcast %cst_65 : f32 to vector<256x128xf32>
    %107 = arith.maximumf %105, %106 : vector<256x128xf32>
    %108 = arith.truncf %107 : vector<256x128xf32> to vector<256x128xbf16>
    %cst_66 = arith.constant dense<0.000000e+00> : vector<256x128xf32>
    %109 = tpu.matmul %108, %98, %cst_66 {dimension_numbers = #tpu.dot_dimension_numbers<[1], [0], [0], [1], [0, 0, 1, 1], [], []>} : vector<256x128xbf16>, vector<128x128xbf16>, vector<256x128xf32> -> vector<256x128xf32>
    %110 = vector.broadcast %99 : vector<1x128xf32> to vector<256x128xf32>
    %111 = arith.addf %109, %110 : vector<256x128xf32>
    %cst_67 = arith.constant dense<0.000000e+00> : vector<256xf32>
    %112 = vector.multi_reduction <add>, %111, %cst_67 [1] : vector<256x128xf32> to vector<256xf32>
    %113 = vector.shape_cast %112 : vector<256xf32> to vector<256x1xf32>
    %cst_68 = arith.constant 3.125000e-02 : f32
    %114 = vector.broadcast %cst_68 : f32 to vector<256x1xf32>
    %115 = arith.mulf %113, %114 : vector<256x1xf32>
    %116 = vector.broadcast %115 : vector<256x1xf32> to vector<256x128xf32>
    %117 = arith.subf %111, %116 : vector<256x128xf32>
    %118 = tpu.iota {dimensions = array<i32: 1>} : vector<1x128xi32>
    %c32_i32 = arith.constant 32 : i32
    %119 = vector.broadcast %c32_i32 : i32 to vector<1x128xi32>
    %120 = arith.cmpi slt, %118, %119 : vector<1x128xi32>
    %cst_69 = arith.constant 0.000000e+00 : f32
    %121 = vector.shape_cast %120 : vector<1x128xi1> to vector<1x128xi1>
    %122 = vector.broadcast %121 : vector<1x128xi1> to vector<256x128xi1>
    %123 = vector.broadcast %cst_69 : f32 to vector<256x128xf32>
    %124 = arith.select %122, %117, %123 : vector<256x128xi1>, vector<256x128xf32>
    %125 = arith.mulf %124, %124 : vector<256x128xf32>
    %cst_70 = arith.constant dense<0.000000e+00> : vector<256xf32>
    %126 = vector.multi_reduction <add>, %125, %cst_70 [1] : vector<256x128xf32> to vector<256xf32>
    %127 = vector.shape_cast %126 : vector<256xf32> to vector<256x1xf32>
    %cst_71 = arith.constant 3.125000e-02 : f32
    %128 = vector.broadcast %cst_71 : f32 to vector<256x1xf32>
    %129 = arith.mulf %127, %128 : vector<256x1xf32>
    %cst_72 = arith.constant 9.99999974E-6 : f32
    %130 = vector.broadcast %cst_72 : f32 to vector<256x1xf32>
    %131 = arith.addf %129, %130 : vector<256x1xf32>
    %132 = math.rsqrt %131 : vector<256x1xf32>
    %133 = vector.broadcast %132 : vector<256x1xf32> to vector<256x128xf32>
    %134 = arith.mulf %124, %133 : vector<256x128xf32>
    %135 = vector.broadcast %100 : vector<1x128xf32> to vector<256x128xf32>
    %136 = arith.mulf %134, %135 : vector<256x128xf32>
    %137 = vector.broadcast %101 : vector<1x128xf32> to vector<256x128xf32>
    %138 = arith.addf %136, %137 : vector<256x128xf32>
    %cst_73 = arith.constant 0.000000e+00 : f32
    %139 = vector.broadcast %cst_73 : f32 to vector<256x128xf32>
    %140 = arith.maximumf %138, %139 : vector<256x128xf32>
    %141 = vector.extract_strided_slice %140 {offsets = [0, 0], sizes = [256, 32], strides = [1, 1]} : vector<256x128xf32> to vector<256x32xf32>
    %c0_74 = arith.constant 0 : index
    %c0_75 = arith.constant 0 : index
    %142 = vector.load %arg20[%c0_74, %c0_75] : memref<256x32xf32, #tpu.memory_space<vmem>>, vector<256x32xf32>
    tpu.vector_store %arg20[%c0_74, %c0_75], %141 {strides = array<i32>} : memref<256x32xf32, #tpu.memory_space<vmem>>, vector<256x32xf32>,
    return
  }
  func.func @transform_0(%arg0: i32) -> (i32, i32) {
    %c0_i32 = arith.constant 0 : i32
    %c0_i32_0 = arith.constant 0 : i32
    return %arg0, %c0_i32 : i32, i32
  }
  func.func @transform_1(%arg0: i32) -> (i32, i32) {
    %c0_i32 = arith.constant 0 : i32
    %c0_i32_0 = arith.constant 0 : i32
    %c0_i32_1 = arith.constant 0 : i32
    return %c0_i32, %c0_i32_0 : i32, i32
  }
  func.func @transform_2(%arg0: i32) -> (i32, i32) {
    %c0_i32 = arith.constant 0 : i32
    %c0_i32_0 = arith.constant 0 : i32
    %c0_i32_1 = arith.constant 0 : i32
    return %c0_i32, %c0_i32_0 : i32, i32
  }
  func.func @transform_3(%arg0: i32) -> (i32, i32) {
    %c0_i32 = arith.constant 0 : i32
    %c0_i32_0 = arith.constant 0 : i32
    %c0_i32_1 = arith.constant 0 : i32
    return %c0_i32, %c0_i32_0 : i32, i32
  }
  func.func @transform_4(%arg0: i32) -> (i32, i32) {
    %c0_i32 = arith.constant 0 : i32
    %c0_i32_0 = arith.constant 0 : i32
    %c0_i32_1 = arith.constant 0 : i32
    return %c0_i32, %c0_i32_0 : i32, i32
  }
  func.func @transform_5(%arg0: i32) -> (i32, i32) {
    %c0_i32 = arith.constant 0 : i32
    %c0_i32_0 = arith.constant 0 : i32
    %c0_i32_1 = arith.constant 0 : i32
    return %c0_i32, %c0_i32_0 : i32, i32
  }
  func.func @transform_6(%arg0: i32) -> (i32, i32) {
    %c0_i32 = arith.constant 0 : i32
    %c0_i32_0 = arith.constant 0 : i32
    %c0_i32_1 = arith.constant 0 : i32
    return %c0_i32, %c0_i32_0 : i32, i32
  }
  func.func @transform_7(%arg0: i32) -> (i32, i32) {
    %c0_i32 = arith.constant 0 : i32
    %c0_i32_0 = arith.constant 0 : i32
    %c0_i32_1 = arith.constant 0 : i32
    return %c0_i32, %c0_i32_0 : i32, i32
  }
  func.func @transform_8(%arg0: i32) -> (i32, i32) {
    %c0_i32 = arith.constant 0 : i32
    %c0_i32_0 = arith.constant 0 : i32
    %c0_i32_1 = arith.constant 0 : i32
    return %c0_i32, %c0_i32_0 : i32, i32
  }
  func.func @transform_9(%arg0: i32) -> (i32, i32) {
    %c0_i32 = arith.constant 0 : i32
    %c0_i32_0 = arith.constant 0 : i32
    %c0_i32_1 = arith.constant 0 : i32
    return %c0_i32, %c0_i32_0 : i32, i32
  }
  func.func @transform_10(%arg0: i32) -> (i32, i32) {
    %c0_i32 = arith.constant 0 : i32
    %c0_i32_0 = arith.constant 0 : i32
    %c0_i32_1 = arith.constant 0 : i32
    return %c0_i32, %c0_i32_0 : i32, i32
  }
  func.func @transform_11(%arg0: i32) -> (i32, i32) {
    %c0_i32 = arith.constant 0 : i32
    %c0_i32_0 = arith.constant 0 : i32
    %c0_i32_1 = arith.constant 0 : i32
    return %c0_i32, %c0_i32_0 : i32, i32
  }
  func.func @transform_12(%arg0: i32) -> (i32, i32) {
    %c0_i32 = arith.constant 0 : i32
    %c0_i32_0 = arith.constant 0 : i32
    %c0_i32_1 = arith.constant 0 : i32
    return %c0_i32, %c0_i32_0 : i32, i32
  }
  func.func @transform_13(%arg0: i32) -> (i32, i32) {
    %c0_i32 = arith.constant 0 : i32
    %c0_i32_0 = arith.constant 0 : i32
    %c0_i32_1 = arith.constant 0 : i32
    return %c0_i32, %c0_i32_0 : i32, i32
  }
  func.func @transform_14(%arg0: i32) -> (i32, i32) {
    %c0_i32 = arith.constant 0 : i32
    %c0_i32_0 = arith.constant 0 : i32
    %c0_i32_1 = arith.constant 0 : i32
    return %c0_i32, %c0_i32_0 : i32, i32
  }
  func.func @transform_15(%arg0: i32) -> (i32, i32) {
    %c0_i32 = arith.constant 0 : i32
    %c0_i32_0 = arith.constant 0 : i32
    %c0_i32_1 = arith.constant 0 : i32
    return %c0_i32, %c0_i32_0 : i32, i32
  }
  func.func @transform_16(%arg0: i32) -> (i32, i32) {
    %c0_i32 = arith.constant 0 : i32
    %c0_i32_0 = arith.constant 0 : i32
    %c0_i32_1 = arith.constant 0 : i32
    return %c0_i32, %c0_i32_0 : i32, i32
  }
  func.func @transform_17(%arg0: i32) -> (i32, i32) {
    %c0_i32 = arith.constant 0 : i32
    %c0_i32_0 = arith.constant 0 : i32
    %c0_i32_1 = arith.constant 0 : i32
    return %c0_i32, %c0_i32_0 : i32, i32
  }
  func.func @transform_18(%arg0: i32) -> (i32, i32) {
    %c0_i32 = arith.constant 0 : i32
    %c0_i32_0 = arith.constant 0 : i32
    %c0_i32_1 = arith.constant 0 : i32
    return %c0_i32, %c0_i32_0 : i32, i32
  }
  func.func @transform_19(%arg0: i32) -> (i32, i32) {
    %c0_i32 = arith.constant 0 : i32
    %c0_i32_0 = arith.constant 0 : i32
    return %arg0, %c0_i32 : i32, i32
  }
}

</mosaic_0001>

<bundles_post_ra>
// kernel: feature_resnet_forward.1
= control target key start
LH: loop header
LB: loop body
LE: loop exit
PB: predicated region body
PF: predicated region fallthrough
CT: control target
= control target key end

     0   :  { %s6819_s0 = inlined_call_operand.vmem [shape: f32[512,32], index: 0, kind: input, shape index: {}]   ;;  %s6820_s1 = inlined_call_operand.vmem [shape: bf16[128,128], index: 1, kind: input, shape index: {}]   ;;  %s6821_s2 = inlined_call_operand.vmem [shape: f32[1,128], index: 2, kind: input, shape index: {}]   ;;  %s6822_s3 = inlined_call_operand.vmem [shape: bf16[128,128], index: 3, kind: input, shape index: {}]   ;;  %s6823_s4 = inlined_call_operand.vmem [shape: f32[1,128], index: 4, kind: input, shape index: {}]   ;;  %s6824_s5 = inlined_call_operand.vmem [shape: f32[1,128], index: 5, kind: input, shape index: {}]   ;;  %s6825_s6 = inlined_call_operand.vmem [shape: f32[1,128], index: 6, kind: input, shape index: {}]   ;;  %s6826_s7 = inlined_call_operand.vmem [shape: bf16[128,128], index: 7, kind: input, shape index: {}]   ;;  %s6827_s8 = inlined_call_operand.vmem [shape: f32[1,128], index: 8, kind: input, shape index: {}]   ;;  %s6828_s9 = inlined_call_operand.vmem [shape: bf16[128,128], index: 9, kind: input, shape index: {}]   ;;  %s6829_s10 = inlined_call_operand.vmem [shape: f32[1,128], index: 10, kind: input, shape index: {}]   ;;  %s6830_s11 = inlined_call_operand.vmem [shape: f32[1,128], index: 11, kind: input, shape index: {}]   ;;  %s6831_s12 = inlined_call_operand.vmem [shape: f32[1,128], index: 12, kind: input, shape index: {}]   ;;  %s6832_s13 = inlined_call_operand.vmem [shape: bf16[128,128], index: 13, kind: input, shape index: {}]   ;;  %s6833_s14 = inlined_call_operand.vmem [shape: f32[1,128], index: 14, kind: input, shape index: {}]   ;;  %s6834_s15 = inlined_call_operand.vmem [shape: bf16[128,128], index: 15, kind: input, shape index: {}]   ;;  %s6835_s16 = inlined_call_operand.vmem [shape: f32[1,128], index: 16, kind: input, shape index: {}]   ;;  %s6836_s17 = inlined_call_operand.vmem [shape: f32[1,128], index: 17, kind: input, shape index: {}]   ;;  %s6837_s18 = inlined_call_operand.vmem [shape: f32[1,128], index: 18, kind: input, shape index: {}]   ;;  %s6838_s19 = inlined_call_operand.vmem [shape: f32[512,32], index: 19, kind: output, shape index: {}]  }
   0x1   :  { %6894 = sst [smem:[#allocation23_spill]] %s6819_s0  ;;  %s4791_s0 = smov 0  }
   0x2   :  { %6895 = sst [smem:[#allocation24_spill]] %s6820_s1 }
   0x3   :  { %6896 = sst [smem:[#allocation25_spill]] %s6821_s2 }
   0x4   :  { %6897 = sst [smem:[#allocation26_spill]] %s6822_s3 }
   0x5 LB: > { %s3930_s30 = sadd.s32 4294967295, %s4688_s0   ;;  %p3934_p0 = scmp.ge.s32.totalorder %s4688_s0, 1  ;;  %s4688_s0 = sphi %s4791_s0, %s29_s0  }
   0x6   : > { %p538_p1 = scmp.lt.s32.totalorder %s4688_s0, 3 }
   0x8   : > { %p539_p2 = pnand %p3934_p0, %p538_p1 }
   0xa   : > { %542 = sbr.rel (%p539_p2) target bundleno = 2401 (0x961), region = 96 }
  0x11   : > { %s6898_s1 = sld [smem:[#allocation24_spill]]  ;;  %s3935_s22 = sshll.u32 %s3930_s30, 5  ;;  %v4690_v2 = vmov 0.0   ;;  %vm671_vm0 = vcmask 261120  }
  0x12   : > { %p595_p3 = scmp.lt.s32.totalorder %s3935_s22, 63  ;;  %607 = vst [vmem:[#allocation2] sm:$0xff] %v4690_v2  ;;  %608 = vst [vmem:[#allocation2 + $0x8] sm:$0xff] %v4690_v2  ;;  %s6899_s28 = sld [smem:[#allocation23_spill]] }
  0x13   : > { %609 = vst [vmem:[#allocation2 + $0x10] sm:$0xff] %v4690_v2  ;;  %610 = vst [vmem:[#allocation2 + $0x18] sm:$0xff] %v4690_v2  ;;  %s6900_s21 = sld [smem:[#allocation26_spill]]  ;;  %s6901_s27 = sld [smem:[#allocation25_spill]] }
  0x14   : > { %s6975_s22 = smov (!%p595_p3, %s3935_s22), 63  ;;  %611 = vst [vmem:[#allocation2 + $0x20] sm:$0xff] %v4690_v2  ;;  %612 = vst [vmem:[#allocation2 + $0x28] sm:$0xff] %v4690_v2 }
  0x15   : > { %613 = vst [vmem:[#allocation2 + $0x30] sm:$0xff] %v4690_v2  ;;  %614 = vst [vmem:[#allocation2 + $0x38] sm:$0xff] %v4690_v2  ;;  %s3936_s3 = sshll.u32 %s6975_s22, 3 }
  0x16   : > { %615 = vst [vmem:[#allocation2 + $0x40] sm:$0xff] %v4690_v2  ;;  %616 = vst [vmem:[#allocation2 + $0x48] sm:$0xff] %v4690_v2  ;;  %s6660_s26 = scalar_lea.vmem %s6838_s19, %s3936_s3 }
  0x17   : > { %v4442_v0 = vld [vmem:[%s6898_s1] sm:$0xff]   ;;  %v4443_v1 = vld [vmem:[%s6898_s1 + $0x8] sm:$0xff]   ;;  %617 = vst [vmem:[#allocation2 + $0x50] sm:$0xff] %v4690_v2  ;;  %618 = vst [vmem:[#allocation2 + $0x58] sm:$0xff] %v4690_v2 }
  0x18   : > { %4145 = vmatprep.subr.bf16.mxu0 %v4442_v0  ;;  %619 = vst [vmem:[#allocation2 + $0x60] sm:$0xff] %v4690_v2  ;;  %620 = vst [vmem:[#allocation2 + $0x68] sm:$0xff] %v4690_v2  ;;  %v4444_v3 = vld [vmem:[%s6898_s1 + $0x10] sm:$0xff]   ;;  %s4816_s29 = scalar_lea.vmem %s6899_s28, %s3936_s3  ;;  %v4445_v4 = vld [vmem:[%s6898_s1 + $0x18] sm:$0xff]  }
  0x19   : > { %4146 = vmatpush3.bf16.msra.mxu0 %v4442_v0  ;;  %621 = vst [vmem:[#allocation2 + $0x70] sm:$0xff] %v4690_v2  ;;  %622 = vst [vmem:[#allocation2 + $0x78] sm:$0xff] %v4690_v2  ;;  %v639_v5 = vld [vmem:[%s4816_s29] sm:$0xff]  ;;  %v640_v6 = vld [vmem:[%s4816_s29 + $0x8] sm:$0xff] }
  0x1a   : > { %623 = vst [vmem:[#allocation2 + $0x80] sm:$0xff] %v4690_v2  ;;  %624 = vst [vmem:[#allocation2 + $0x88] sm:$0xff] %v4690_v2  ;;  %4147 = vmatprep.subr.bf16.mxu0 %v4443_v1  ;;  %v641_v7 = vld [vmem:[%s4816_s29 + $0x10] sm:$0xff]  ;;  %v642_v8 = vld [vmem:[%s4816_s29 + $0x18] sm:$0xff] }
  0x1b   : > { %625 = vst [vmem:[#allocation2 + $0x90] sm:$0xff] %v4690_v2  ;;  %626 = vst [vmem:[#allocation2 + $0x98] sm:$0xff] %v4690_v2  ;;  %v643_v9 = vld [vmem:[%s4816_s29 + $0x20] sm:$0xff]  ;;  %v644_v10 = vld [vmem:[%s4816_s29 + $0x28] sm:$0xff] }
  0x1c   : > { %627 = vst [vmem:[#allocation2 + $0xa0] sm:$0xff] %v4690_v2  ;;  %628 = vst [vmem:[#allocation2 + $0xa8] sm:$0xff] %v4690_v2  ;;  %v4446_v11 = vld [vmem:[%s6898_s1 + $0x20] sm:$0xff]   ;;  %v645_v12 = vld [vmem:[%s4816_s29 + $0x30] sm:$0xff] }
  0x1d   : > { %629 = vst [vmem:[#allocation2 + $0xb0] sm:$0xff] %v4690_v2  ;;  %630 = vst [vmem:[#allocation2 + $0xb8] sm:$0xff] %v4690_v2  ;;  %4148 = vmatpush3.bf16.msra.mxu0 %v4443_v1  ;;  %v646_v13 = vld [vmem:[%s4816_s29 + $0x38] sm:$0xff]  ;;  %v647_v14 = vld [vmem:[%s4816_s29 + $0x40] sm:$0xff] }
  0x1e   : > { %631 = vst [vmem:[#allocation2 + $0xc0] sm:$0xff] %v4690_v2  ;;  %632 = vst [vmem:[#allocation2 + $0xc8] sm:$0xff] %v4690_v2  ;;  %4149 = vmatprep.subr.bf16.mxu0 %v4444_v3  ;;  %v648_v15 = vld [vmem:[%s4816_s29 + $0x48] sm:$0xff]  ;;  %v649_v16 = vld [vmem:[%s4816_s29 + $0x50] sm:$0xff] }
  0x1f   : > { %633 = vst [vmem:[#allocation2 + $0xd0] sm:$0xff] %v4690_v2  ;;  %634 = vst [vmem:[#allocation2 + $0xd8] sm:$0xff] %v4690_v2  ;;  %v650_v17 = vld [vmem:[%s4816_s29 + $0x58] sm:$0xff]  ;;  %v651_v18 = vld [vmem:[%s4816_s29 + $0x60] sm:$0xff] }
  0x20   : > { %635 = vst [vmem:[#allocation2 + $0xe0] sm:$0xff] %v4690_v2  ;;  %636 = vst [vmem:[#allocation2 + $0xe8] sm:$0xff] %v4690_v2  ;;  %v652_v19 = vld [vmem:[%s4816_s29 + $0x68] sm:$0xff]  ;;  %v653_v20 = vld [vmem:[%s4816_s29 + $0x70] sm:$0xff] }
  0x21   : > { %637 = vst [vmem:[#allocation2 + $0xf0] sm:$0xff] %v4690_v2  ;;  %638 = vst [vmem:[#allocation2 + $0xf8] sm:$0xff] %v4690_v2  ;;  %4150 = vmatpush3.bf16.msra.mxu0 %v4444_v3  ;;  %v654_v21 = vld [vmem:[%s4816_s29 + $0x78] sm:$0xff]  ;;  %v655_v22 = vld [vmem:[%s4816_s29 + $0x80] sm:$0xff] }
  0x22   : > { %672 = vst.msk [vmem:[#allocation2] sm:$0xff] %vm671_vm0, %v639_v5  ;;  %673 = vst.msk [vmem:[#allocation2 + $0x8] sm:$0xff] %vm671_vm0, %v640_v6  ;;  %4151 = vmatprep.subr.bf16.mxu0 %v4445_v4  ;;  %v656_v23 = vld [vmem:[%s4816_s29 + $0x88] sm:$0xff]  ;;  %v657_v24 = vld [vmem:[%s4816_s29 + $0x90] sm:$0xff] }
  0x23   : > { %674 = vst.msk [vmem:[#allocation2 + $0x10] sm:$0xff] %vm671_vm0, %v641_v7  ;;  %675 = vst.msk [vmem:[#allocation2 + $0x18] sm:$0xff] %vm671_vm0, %v642_v8  ;;  %v658_v25 = vld [vmem:[%s4816_s29 + $0x98] sm:$0xff]  ;;  %v659_v26 = vld [vmem:[%s4816_s29 + $0xa0] sm:$0xff] }
  0x24   : > { %676 = vst.msk [vmem:[#allocation2 + $0x20] sm:$0xff] %vm671_vm0, %v643_v9  ;;  %677 = vst.msk [vmem:[#allocation2 + $0x28] sm:$0xff] %vm671_vm0, %v644_v10  ;;  %v660_v27 = vld [vmem:[%s4816_s29 + $0xa8] sm:$0xff]  ;;  %v661_v28 = vld [vmem:[%s4816_s29 + $0xb0] sm:$0xff] }
  0x25   : > { %678 = vst.msk [vmem:[#allocation2 + $0x30] sm:$0xff] %vm671_vm0, %v645_v12  ;;  %679 = vst.msk [vmem:[#allocation2 + $0x38] sm:$0xff] %vm671_vm0, %v646_v13  ;;  %4152 = vmatpush3.bf16.msra.mxu0 %v4445_v4  ;;  %v662_v29 = vld [vmem:[%s4816_s29 + $0xb8] sm:$0xff]  ;;  %v4447_v30 = vld [vmem:[%s6898_s1 + $0x28] sm:$0xff]  }
  0x26   : > { %680 = vst.msk [vmem:[#allocation2 + $0x40] sm:$0xff] %vm671_vm0, %v647_v14  ;;  %681 = vst.msk [vmem:[#allocation2 + $0x48] sm:$0xff] %vm671_vm0, %v648_v15  ;;  %4153 = vmatprep.subr.bf16.mxu0 %v4446_v11  ;;  %v4448_v34 = vld [vmem:[%s6898_s1 + $0x30] sm:$0xff]   ;;  %v4449_v35 = vld [vmem:[%s6898_s1 + $0x38] sm:$0xff]  }
  0x27   : > { %682 = vst.msk [vmem:[#allocation2 + $0x50] sm:$0xff] %vm671_vm0, %v649_v16  ;;  %683 = vst.msk [vmem:[#allocation2 + $0x58] sm:$0xff] %vm671_vm0, %v650_v17  ;;  %v663_v36 = vld [vmem:[%s4816_s29 + $0xc0] sm:$0xff]  ;;  %v664_v37 = vld [vmem:[%s4816_s29 + $0xc8] sm:$0xff] }
  0x28   : > { %684 = vst.msk [vmem:[#allocation2 + $0x60] sm:$0xff] %vm671_vm0, %v651_v18  ;;  %685 = vst.msk [vmem:[#allocation2 + $0x68] sm:$0xff] %vm671_vm0, %v652_v19  ;;  %v665_v38 = vld [vmem:[%s4816_s29 + $0xd0] sm:$0xff]  ;;  %v666_v41 = vld [vmem:[%s4816_s29 + $0xd8] sm:$0xff] }
  0x29   : > { %686 = vst.msk [vmem:[#allocation2 + $0x70] sm:$0xff] %vm671_vm0, %v653_v20  ;;  %687 = vst.msk [vmem:[#allocation2 + $0x78] sm:$0xff] %vm671_vm0, %v654_v21  ;;  %v704_v31 = vld [vmem:[#allocation2] sm:$0xff]  ;;  %v705_v32 = vld [vmem:[#allocation2 + $0x8] sm:$0xff]  ;;  %4154 = vmatpush3.bf16.msra.mxu0 %v4446_v11 }
  0x2a   : > { %688 = vst.msk [vmem:[#allocation2 + $0x80] sm:$0xff] %vm671_vm0, %v655_v22  ;;  %689 = vst.msk [vmem:[#allocation2 + $0x88] sm:$0xff] %vm671_vm0, %v656_v23  ;;  %v772_v33 = vpack.c.bf16 %v705_v32, %v704_v31  ;;  %4155 = vmatprep.subr.bf16.mxu0 %v4447_v30  ;;  %v706_v39 = vld [vmem:[#allocation2 + $0x10] sm:$0xff]  ;;  %v707_v40 = vld [vmem:[#allocation2 + $0x18] sm:$0xff] }
  0x2b   : > { %690 = vst.msk [vmem:[#allocation2 + $0x90] sm:$0xff] %vm671_vm0, %v657_v24  ;;  %691 = vst.msk [vmem:[#allocation2 + $0x98] sm:$0xff] %vm671_vm0, %v658_v25  ;;  %v667_v42 = vld [vmem:[%s4816_s29 + $0xe0] sm:$0xff]  ;;  %v668_v43 = vld [vmem:[%s4816_s29 + $0xe8] sm:$0xff]  ;;  %v773_v50 = vpack.c.bf16 %v707_v40, %v706_v39 }
  0x2c   : > { %692 = vst.msk [vmem:[#allocation2 + $0xa0] sm:$0xff] %vm671_vm0, %v659_v26  ;;  %693 = vst.msk [vmem:[#allocation2 + $0xa8] sm:$0xff] %vm671_vm0, %v660_v27  ;;  %4161 = vmatprep.mubr.bf16.mxu0 %v772_v33  ;;  %v708_v44 = vld [vmem:[#allocation2 + $0x20] sm:$0xff]  ;;  %v709_v45 = vld [vmem:[#allocation2 + $0x28] sm:$0xff] }
  0x2d   : > { %694 = vst.msk [vmem:[#allocation2 + $0xb0] sm:$0xff] %vm671_vm0, %v661_v28  ;;  %695 = vst.msk [vmem:[#allocation2 + $0xb8] sm:$0xff] %vm671_vm0, %v662_v29  ;;  %4156 = vmatpush3.bf16.msra.mxu0 %v4447_v30  ;;  %v669_v46 = vld [vmem:[%s4816_s29 + $0xf0] sm:$0xff]  ;;  %v670_v47 = vld [vmem:[%s4816_s29 + $0xf8] sm:$0xff]  ;;  %v774_v51 = vpack.c.bf16 %v709_v45, %v708_v44 }
  0x2e   : > { %4157 = vmatprep.subr.bf16.mxu0 %v4448_v34  ;;  %696 = vst.msk [vmem:[#allocation2 + $0xc0] sm:$0xff] %vm671_vm0, %v663_v36  ;;  %697 = vst.msk [vmem:[#allocation2 + $0xc8] sm:$0xff] %vm671_vm0, %v664_v37  ;;  %v4450_v48 = vld [vmem:[%s6900_s21] sm:$0xff]   ;;  %v4451_v49 = vld [vmem:[%s6900_s21 + $0x8] sm:$0xff]  }
  0x2f   : > { %698 = vst.msk [vmem:[#allocation2 + $0xd0] sm:$0xff] %vm671_vm0, %v665_v38  ;;  %699 = vst.msk [vmem:[#allocation2 + $0xd8] sm:$0xff] %vm671_vm0, %v666_v41  ;;  %4193 = vmatprep.subr.bf16.mxu1 %v4450_v48  ;;  %v4452_v52 = vld [vmem:[%s6900_s21 + $0x10] sm:$0xff]   ;;  %v711_v54 = vld [vmem:[#allocation2 + $0x38] sm:$0xff] }
  0x30   : > { %700 = vst.msk [vmem:[#allocation2 + $0xe0] sm:$0xff] %vm671_vm0, %v667_v42  ;;  %701 = vst.msk [vmem:[#allocation2 + $0xe8] sm:$0xff] %vm671_vm0, %v668_v43  ;;  %4194 = vmatpush3.bf16.msra.mxu1 %v4450_v48  ;;  %v710_v53 = vld [vmem:[#allocation2 + $0x30] sm:$0xff]  ;;  %v712_v55 = vld [vmem:[#allocation2 + $0x40] sm:$0xff] }
  0x31   : > { %4158 = vmatpush3.bf16.msra.mxu0 %v4448_v34  ;;  %702 = vst.msk [vmem:[#allocation2 + $0xf0] sm:$0xff] %vm671_vm0, %v669_v46  ;;  %703 = vst.msk [vmem:[#allocation2 + $0xf8] sm:$0xff] %vm671_vm0, %v670_v47  ;;  %4195 = vmatprep.subr.bf16.mxu1 %v4451_v49  ;;  %v713_v56 = vld [vmem:[#allocation2 + $0x48] sm:$0xff]  ;;  %v4453_v57 = vld [vmem:[%s6900_s21 + $0x18] sm:$0xff]   ;;  %v775_v59 = vpack.c.bf16 %v711_v54, %v710_v53 }
  0x32   : > { %4159 = vmatprep.subr.bf16.mxu0 %v4449_v35  ;;  %v4454_v58 = vld [vmem:[%s6900_s21 + $0x20] sm:$0xff]   ;;  %v776_v60 = vpack.c.bf16 %v713_v56, %v712_v55  ;;  %v714_v61 = vld [vmem:[#allocation2 + $0x50] sm:$0xff]  ;;  %v715_v62 = vld [vmem:[#allocation2 + $0x58] sm:$0xff] }
  0x33   : > { %v4455_v63 = vld [vmem:[%s6900_s21 + $0x28] sm:$0xff]   ;;  %v716_v0 = vld [vmem:[#allocation2 + $0x60] sm:$0xff]  ;;  %v777_v2 = vpack.c.bf16 %v715_v62, %v714_v61  ;;  %v718_v4 = vld [vmem:[#allocation2 + $0x70] sm:$0xff] }
  0x34   : > { %4196 = vmatpush3.bf16.msra.mxu1 %v4451_v49  ;;  %v717_v1 = vld [vmem:[#allocation2 + $0x68] sm:$0xff]  ;;  %v719_v5 = vld [vmem:[#allocation2 + $0x78] sm:$0xff]  ;;  %v720_v6 = vld [vmem:[#allocation2 + $0x80] sm:$0xff] }
  0x35   : > { %4160 = vmatpush3.bf16.msra.mxu0 %v4449_v35  ;;  %4197 = vmatprep.subr.bf16.mxu1 %v4452_v52  ;;  %v778_v3 = vpack.c.bf16 %v717_v1, %v716_v0  ;;  %v721_v7 = vld [vmem:[#allocation2 + $0x88] sm:$0xff]  ;;  %v779_v8 = vpack.c.bf16 %v719_v5, %v718_v4  ;;  %v722_v10 = vld [vmem:[#allocation2 + $0x90] sm:$0xff]  ;;  %v723_v11 = vld [vmem:[#allocation2 + $0x98] sm:$0xff] }
  0x36   : > { %v780_v9 = vpack.c.bf16 %v721_v7, %v720_v6  ;;  %v724_v12 = vld [vmem:[#allocation2 + $0xa0] sm:$0xff]  ;;  %v725_v13 = vld [vmem:[#allocation2 + $0xa8] sm:$0xff]  ;;  %v781_v14 = vpack.c.bf16 %v723_v11, %v722_v10  ;;  %v726_v16 = vld [vmem:[#allocation2 + $0xb0] sm:$0xff] }
  0x37   : > { %v782_v15 = vpack.c.bf16 %v725_v13, %v724_v12  ;;  %v727_v17 = vld [vmem:[#allocation2 + $0xb8] sm:$0xff]  ;;  %v728_v18 = vld [vmem:[#allocation2 + $0xc0] sm:$0xff]  ;;  %v729_v19 = vld [vmem:[#allocation2 + $0xc8] sm:$0xff] }
  0x38   : > { %4162 = vmatmul.mubr.bf16.vlgmr.msra.gmra.mrb[0].mxu0 %v773_v50  ;;  %4198 = vmatpush3.bf16.msra.mxu1 %v4452_v52  ;;  %v783_v20 = vpack.c.bf16 %v727_v17, %v726_v16  ;;  %v784_v21 = vpack.c.bf16 %v729_v19, %v728_v18  ;;  %v730_v22 = vld [vmem:[#allocation2 + $0xd0] sm:$0xff]  ;;  %v731_v23 = vld [vmem:[#allocation2 + $0xd8] sm:$0xff]  ;;  %v732_v24 = vld [vmem:[#allocation2 + $0xe0] sm:$0xff] }
  0x39   : > { %4165 = vmatprep.mubr.bf16.mxu0 %v774_v51  ;;  %4199 = vmatprep.subr.bf16.mxu1 %v4453_v57  ;;  %v733_v25 = vld [vmem:[#allocation2 + $0xe8] sm:$0xff]  ;;  %v785_v26 = vpack.c.bf16 %v731_v23, %v730_v22  ;;  %v734_v28 = vld [vmem:[#allocation2 + $0xf0] sm:$0xff]  ;;  %v735_v29 = vld [vmem:[#allocation2 + $0xf8] sm:$0xff] }
  0x3a   : > { %v786_v27 = vpack.c.bf16 %v733_v25, %v732_v24  ;;  %v787_v30 = vpack.c.bf16 %v735_v29, %v734_v28  ;;  %v4456_v31 = vld [vmem:[%s6900_s21 + $0x30] sm:$0xff]   ;;  %v4457_v32 = vld [vmem:[%s6900_s21 + $0x38] sm:$0xff]   ;;  %v4924_v33 = vld [vmem:[%s6901_s27] ss:$0 sm:$0xff] }
  0x3c   : > { %4200 = vmatpush3.bf16.msra.mxu1 %v4453_v57 }
  0x3d   : > { %4201 = vmatprep.subr.bf16.mxu1 %v4454_v58 }
  0x40   : > { %4166 = vmatmul.mubr.bf16.gmra.mrb[4].mxu0 %v775_v59  ;;  %4202 = vmatpush3.bf16.msra.mxu1 %v4454_v58 }
  0x41   : > { %4169 = vmatprep.mubr.bf16.mxu0 %v776_v60  ;;  %4203 = vmatprep.subr.bf16.mxu1 %v4455_v63 }
  0x44   : > { %4204 = vmatpush3.bf16.msra.mxu1 %v4455_v63 }
  0x45   : > { %4205 = vmatprep.subr.bf16.mxu1 %v4456_v31 }
  0x48   : > { %4170 = vmatmul.mubr.bf16.gmra.mrb[8].mxu0 %v777_v2  ;;  %4206 = vmatpush3.bf16.msra.mxu1 %v4456_v31 }
  0x49   : > { %4173 = vmatprep.mubr.bf16.mxu0 %v778_v3  ;;  %4207 = vmatprep.subr.bf16.mxu1 %v4457_v32 }
  0x4c   : > { %4208 = vmatpush3.bf16.msra.mxu1 %v4457_v32 }
  0x50   : > { %4174 = vmatmul.mubr.bf16.gmra.mrb[12].mxu0 %v779_v8 }
  0x51   : > { %4177 = vmatprep.mubr.bf16.mxu0 %v780_v9 }
  0x58   : > { %4178 = vmatmul.mubr.bf16.gmra.mrb[16].mxu0 %v781_v14 }
  0x59   : > { %4181 = vmatprep.mubr.bf16.mxu0 %v782_v15 }
  0x60   : > { %4182 = vmatmul.mubr.bf16.gmra.mrb[20].mxu0 %v783_v20 }
  0x61   : > { %4185 = vmatprep.mubr.bf16.mxu0 %v784_v21 }
  0x68   : > { %4186 = vmatmul.mubr.bf16.gmra.mrb[24].mxu0 %v785_v26 }
  0x69   : > { %4189 = vmatprep.mubr.bf16.mxu0 %v786_v27 }
  0x70   : > { %4190 = vmatmul.mubr.bf16.gmra.mrb[28].mxu0 %v787_v30 }
 0x10b   : > { %v4163_v34 = vpop.f32.mrb[0].mxu0 }
 0x10c   : > { %v885_v35 = vadd.f32 %v4163_v34, %v4924_v33  ;;  %v876_v36 = vpop.f32.mrb[1].mxu0 }
 0x10d   : > { %v877_v37 = vadd.f32 %v4924_v33, %v876_v36  ;;  %v4164_v38 = vpop.f32.mrb[2].mxu0 }
 0x10e   : > { %v888_v39 = vadd.f32 %v4164_v38, %v4924_v33  ;;  %v879_v40 = vpop.f32.mrb[3].mxu0  ;;  %v1005_v42 = vmax.f32 %v885_v35, 0.0 }
 0x10f   : > { %v880_v41 = vadd.f32 %v4924_v33, %v879_v40  ;;  %v1003_v44 = vmax.f32 %v877_v37, 0.0 }
 0x110   : > { %v1006_v43 = vmax.f32 %v888_v39, 0.0 }
 0x111   : > { %v1004_v45 = vmax.f32 %v880_v41, 0.0 }
 0x112   : > { %v1036_v46 = vpack.c.bf16 %v1006_v43, %v1005_v42 }
 0x113   : > { %v4167_v47 = vpop.f32.mrb[4].mxu0  ;;  %v1035_v48 = vpack.c.bf16 %v1004_v45, %v1003_v44 }
 0x114   : > { %v901_v49 = vadd.f32 %v4167_v47, %v4924_v33  ;;  %v892_v50 = vpop.f32.mrb[5].mxu0 }
 0x115   : > { %v893_v51 = vadd.f32 %v4924_v33, %v892_v50  ;;  %v4168_v52 = vpop.f32.mrb[6].mxu0  ;;  %4209 = vmatprep.mubr.bf16.mxu1 %v1035_v48 }
 0x116   : > { %v1009_v53 = vmax.f32 %v901_v49, 0.0  ;;  %v904_v54 = vadd.f32 %v4168_v52, %v4924_v33  ;;  %v895_v55 = vpop.f32.mrb[7].mxu0  ;;  %4210 = vmatmul.mubr.bf16.vlgmr.msra.gmra.mrb[0].mxu1 %v1036_v46 }
 0x117   : > { %v1007_v56 = vmax.f32 %v893_v51, 0.0  ;;  %v896_v57 = vadd.f32 %v4924_v33, %v895_v55 }
 0x118   : > { %v1010_v58 = vmax.f32 %v904_v54, 0.0 }
 0x119   : > { %v1008_v59 = vmax.f32 %v896_v57, 0.0 }
 0x11a   : > { %v1038_v60 = vpack.c.bf16 %v1010_v58, %v1009_v53 }
 0x11b   : > { %v1037_v61 = vpack.c.bf16 %v1008_v59, %v1007_v56  ;;  %v4171_v62 = vpop.f32.mrb[8].mxu0 }
 0x11c   : > { %v917_v63 = vadd.f32 %v4171_v62, %v4924_v33  ;;  %v908_v0 = vpop.f32.mrb[9].mxu0 }
 0x11d   : > { %v909_v1 = vadd.f32 %v4924_v33, %v908_v0  ;;  %v4172_v2 = vpop.f32.mrb[10].mxu0  ;;  %4213 = vmatprep.mubr.bf16.mxu1 %v1037_v61 }
 0x11e   : > { %v1013_v3 = vmax.f32 %v917_v63, 0.0  ;;  %v920_v4 = vadd.f32 %v4172_v2, %v4924_v33  ;;  %v911_v5 = vpop.f32.mrb[11].mxu0  ;;  %4214 = vmatmul.mubr.bf16.gmra.mrb[4].mxu1 %v1038_v60 }
 0x11f   : > { %v1011_v6 = vmax.f32 %v909_v1, 0.0  ;;  %v912_v7 = vadd.f32 %v4924_v33, %v911_v5 }
 0x120   : > { %v1014_v8 = vmax.f32 %v920_v4, 0.0 }
 0x121   : > { %v1012_v9 = vmax.f32 %v912_v7, 0.0 }
 0x122   : > { %v1040_v10 = vpack.c.bf16 %v1014_v8, %v1013_v3 }
 0x123   : > { %v1039_v11 = vpack.c.bf16 %v1012_v9, %v1011_v6  ;;  %v4175_v12 = vpop.f32.mrb[12].mxu0 }
 0x124   : > { %v933_v13 = vadd.f32 %v4175_v12, %v4924_v33  ;;  %v924_v14 = vpop.f32.mrb[13].mxu0 }
 0x125   : > { %v925_v15 = vadd.f32 %v4924_v33, %v924_v14  ;;  %v4176_v16 = vpop.f32.mrb[14].mxu0  ;;  %4217 = vmatprep.mubr.bf16.mxu1 %v1039_v11 }
 0x126   : > { %v1017_v17 = vmax.f32 %v933_v13, 0.0  ;;  %v936_v18 = vadd.f32 %v4176_v16, %v4924_v33  ;;  %v927_v19 = vpop.f32.mrb[15].mxu0  ;;  %4218 = vmatmul.mubr.bf16.gmra.mrb[8].mxu1 %v1040_v10 }
 0x127   : > { %v1015_v20 = vmax.f32 %v925_v15, 0.0  ;;  %v928_v21 = vadd.f32 %v4924_v33, %v927_v19  ;;  %v4961_v19 = vld [vmem:[%s6823_s4] ss:$0 sm:$0xff] }
 0x128   : > { %v1018_v22 = vmax.f32 %v936_v18, 0.0 }
 0x129   : > { %v1016_v23 = vmax.f32 %v928_v21, 0.0 }
 0x12a   : > { %v1042_v24 = vpack.c.bf16 %v1018_v22, %v1017_v17 }
 0x12b   : > { %v1041_v25 = vpack.c.bf16 %v1016_v23, %v1015_v20  ;;  %v4179_v26 = vpop.f32.mrb[16].mxu0 }
 0x12c   : > { %v949_v27 = vadd.f32 %v4179_v26, %v4924_v33  ;;  %v940_v28 = vpop.f32.mrb[17].mxu0 }
 0x12d   : > { %v941_v29 = vadd.f32 %v4924_v33, %v940_v28  ;;  %v4180_v30 = vpop.f32.mrb[18].mxu0  ;;  %4221 = vmatprep.mubr.bf16.mxu1 %v1041_v25 }
 0x12e   : > { %v1021_v31 = vmax.f32 %v949_v27, 0.0  ;;  %v952_v32 = vadd.f32 %v4180_v30, %v4924_v33  ;;  %v943_v34 = vpop.f32.mrb[19].mxu0  ;;  %4222 = vmatmul.mubr.bf16.gmra.mrb[12].mxu1 %v1042_v24 }
 0x12f   : > { %v1019_v35 = vmax.f32 %v941_v29, 0.0  ;;  %v944_v36 = vadd.f32 %v4924_v33, %v943_v34 }
 0x130   : > { %v1022_v37 = vmax.f32 %v952_v32, 0.0 }
 0x131   : > { %v1020_v38 = vmax.f32 %v944_v36, 0.0 }
 0x132   : > { %v1044_v39 = vpack.c.bf16 %v1022_v37, %v1021_v31 }
 0x133   : > { %v1043_v40 = vpack.c.bf16 %v1020_v38, %v1019_v35  ;;  %v4183_v41 = vpop.f32.mrb[20].mxu0 }
 0x134   : > { %v965_v42 = vadd.f32 %v4183_v41, %v4924_v33  ;;  %v956_v43 = vpop.f32.mrb[21].mxu0 }
 0x135   : > { %v957_v44 = vadd.f32 %v4924_v33, %v956_v43  ;;  %v4184_v45 = vpop.f32.mrb[22].mxu0  ;;  %4225 = vmatprep.mubr.bf16.mxu1 %v1043_v40 }
 0x136   : > { %v1025_v46 = vmax.f32 %v965_v42, 0.0  ;;  %v968_v47 = vadd.f32 %v4184_v45, %v4924_v33  ;;  %v959_v48 = vpop.f32.mrb[23].mxu0  ;;  %4226 = vmatmul.mubr.bf16.gmra.mrb[16].mxu1 %v1044_v39 }
 0x137   : > { %v1023_v49 = vmax.f32 %v957_v44, 0.0  ;;  %v960_v50 = vadd.f32 %v4924_v33, %v959_v48 }
 0x138   : > { %v1026_v51 = vmax.f32 %v968_v47, 0.0 }
 0x139   : > { %v1024_v52 = vmax.f32 %v960_v50, 0.0 }
 0x13a   : > { %v1046_v53 = vpack.c.bf16 %v1026_v51, %v1025_v46 }
 0x13b   : > { %v1045_v54 = vpack.c.bf16 %v1024_v52, %v1023_v49  ;;  %v4187_v55 = vpop.f32.mrb[24].mxu0 }
 0x13c   : > { %v981_v56 = vadd.f32 %v4187_v55, %v4924_v33  ;;  %v972_v57 = vpop.f32.mrb[25].mxu0 }
 0x13d   : > { %v973_v58 = vadd.f32 %v4924_v33, %v972_v57  ;;  %v4188_v59 = vpop.f32.mrb[26].mxu0  ;;  %4229 = vmatprep.mubr.bf16.mxu1 %v1045_v54 }
 0x13e   : > { %v1029_v60 = vmax.f32 %v981_v56, 0.0  ;;  %v984_v61 = vadd.f32 %v4188_v59, %v4924_v33  ;;  %v975_v62 = vpop.f32.mrb[27].mxu0  ;;  %4230 = vmatmul.mubr.bf16.gmra.mrb[20].mxu1 %v1046_v53 }
 0x13f   : > { %v1027_v63 = vmax.f32 %v973_v58, 0.0  ;;  %v976_v0 = vadd.f32 %v4924_v33, %v975_v62 }
 0x140   : > { %v1030_v1 = vmax.f32 %v984_v61, 0.0 }
 0x141   : > { %v1028_v2 = vmax.f32 %v976_v0, 0.0 }
 0x142   : > { %v1048_v3 = vpack.c.bf16 %v1030_v1, %v1029_v60 }
 0x143   : > { %v1047_v4 = vpack.c.bf16 %v1028_v2, %v1027_v63  ;;  %v4191_v5 = vpop.f32.mrb[28].mxu0 }
 0x144   : > { %v997_v6 = vadd.f32 %v4191_v5, %v4924_v33  ;;  %v988_v7 = vpop.f32.mrb[29].mxu0 }
 0x145   : > { %v989_v8 = vadd.f32 %v4924_v33, %v988_v7  ;;  %v4192_v9 = vpop.f32.mrb[30].mxu0  ;;  %4233 = vmatprep.mubr.bf16.mxu1 %v1047_v4 }
 0x146   : > { %v1033_v10 = vmax.f32 %v997_v6, 0.0  ;;  %v1000_v11 = vadd.f32 %v4192_v9, %v4924_v33  ;;  %v991_v12 = vpop.f32.mrb[31].mxu0  ;;  %4234 = vmatmul.mubr.bf16.gmra.mrb[24].mxu1 %v1048_v3 }
 0x147   : > { %v1031_v13 = vmax.f32 %v989_v8, 0.0  ;;  %v992_v14 = vadd.f32 %v4924_v33, %v991_v12 }
 0x148   : > { %v1034_v15 = vmax.f32 %v1000_v11, 0.0 }
 0x149   : > { %v1032_v16 = vmax.f32 %v992_v14, 0.0 }
 0x14a   : > { %v1050_v17 = vpack.c.bf16 %v1034_v15, %v1033_v10 }
 0x14b   : > { %v1049_v18 = vpack.c.bf16 %v1032_v16, %v1031_v13 }
 0x14d   : > { %4237 = vmatprep.mubr.bf16.mxu1 %v1049_v18 }
 0x14e   : > { %4238 = vmatmul.mubr.bf16.gmra.mrb[28].mxu1 %v1050_v17 }
 0x1e9   : > { %v4211_v20 = vpop.f32.mrb[0].mxu1 }
 0x1ea   : > { %v4964_v21 = vadd.f32 %v4211_v20, %v4961_v19  ;;  %v1139_v22 = vpop.f32.mrb[1].mxu1 }
 0x1eb   : > { %v4967_v23 = vadd.f32 %v4961_v19, %v1139_v22  ;;  %v4212_v33 = vpop.f32.mrb[2].mxu1  ;;  %v4458_v22 = vld [vmem:[%s6826_s7] sm:$0xff]  }
 0x1ec   : > { %1270 = vadd.xlane.f32.xlu1 %v4964_v21  ;;  %v1142_v24 = vpop.f32.mrb[3].mxu1  ;;  %v4972_v25 = vadd.f32 %v4212_v33, %v4961_v19  ;;  %v4459_v33 = vld [vmem:[%s6826_s7 + $0x8] sm:$0xff]   ;;  %4241 = vmatprep.subr.bf16.mxu0 %v4458_v22 }
 0x1ed   : > { %1266 = vadd.xlane.f32.xlu0 %v4967_v23  ;;  %v4975_v26 = vadd.f32 %v4961_v19, %v1142_v24  ;;  %4242 = vmatpush3.bf16.msra.mxu0 %v4458_v22  ;;  %v4461_v24 = vld [vmem:[%s6826_s7 + $0x18] sm:$0xff]  }
 0x1ee   : > { %4243 = vmatprep.subr.bf16.mxu0 %v4459_v33 }
 0x1f0   : > { %1272 = vadd.xlane.f32.xlu1 %v4972_v25 }
 0x1f1   : > { %v4215_v27 = vpop.f32.mrb[4].mxu1  ;;  %1268 = vadd.xlane.f32.xlu0 %v4975_v26  ;;  %4244 = vmatpush3.bf16.msra.mxu0 %v4459_v33 }
 0x1f2   : > { %v1155_v28 = vpop.f32.mrb[5].mxu1  ;;  %v4987_v34 = vadd.f32 %v4215_v27, %v4961_v19  ;;  %v1394_v27 = vlaneseq }
 0x1f3   : > { %v4980_v29 = vadd.f32 %v4961_v19, %v1155_v28  ;;  %v4216_v30 = vpop.f32.mrb[6].mxu1 }
 0x1f4   : > { %v1158_v31 = vpop.f32.mrb[7].mxu1  ;;  %v4991_v35 = vadd.f32 %v4216_v30, %v4961_v19  ;;  %v5103_v28 = vand.u32 127, %v1394_v27 }
 0x1f5   : > { %v4983_v32 = vadd.f32 %v4961_v19, %v1158_v31  ;;  %1274 = vadd.xlane.f32.xlu0 %v4980_v29 }
 0x1f6   : > { %6902 = vst [vmem:[#allocation3_spill] sm:$0xff] %v5103_v28  ;;  %vm1396_vm1 = vcmp.lt.s32.totalorder %v5103_v28, 64 }
 0x1f7   : > { %1276 = vadd.xlane.f32.xlu1 %v4983_v32 }
 0x1f9   : > { %v4219_v36 = vpop.f32.mrb[8].mxu1  ;;  %1278 = vadd.xlane.f32.xlu0 %v4987_v34 }
 0x1fa   : > { %v1171_v37 = vpop.f32.mrb[9].mxu1  ;;  %v5003_v42 = vadd.f32 %v4219_v36, %v4961_v19 }
 0x1fb   : > { %v4995_v38 = vadd.f32 %v4961_v19, %v1171_v37  ;;  %v4220_v39 = vpop.f32.mrb[10].mxu1  ;;  %1280 = vadd.xlane.f32.xlu1 %v4991_v35 }
 0x1fc   : > { %v1174_v40 = vpop.f32.mrb[11].mxu1  ;;  %v5007_v43 = vadd.f32 %v4220_v39, %v4961_v19 }
 0x1fd   : > { %v4999_v41 = vadd.f32 %v4961_v19, %v1174_v40  ;;  %1282 = vadd.xlane.f32.xlu0 %v4995_v38 }
 0x1ff   : > { %1284 = vadd.xlane.f32.xlu1 %v4999_v41 }
 0x201   : > { %v4223_v44 = vpop.f32.mrb[12].mxu1  ;;  %1286 = vadd.xlane.f32.xlu0 %v5003_v42 }
 0x202   : > { %v1187_v45 = vpop.f32.mrb[13].mxu1  ;;  %v5019_v50 = vadd.f32 %v4223_v44, %v4961_v19 }
 0x203   : > { %v5011_v46 = vadd.f32 %v4961_v19, %v1187_v45  ;;  %v4224_v47 = vpop.f32.mrb[14].mxu1  ;;  %1288 = vadd.xlane.f32.xlu1 %v5007_v43 }
 0x204   : > { %v1190_v48 = vpop.f32.mrb[15].mxu1  ;;  %v5023_v51 = vadd.f32 %v4224_v47, %v4961_v19 }
 0x205   : > { %v5015_v49 = vadd.f32 %v4961_v19, %v1190_v48  ;;  %1290 = vadd.xlane.f32.xlu0 %v5011_v46 }
 0x207   : > { %1292 = vadd.xlane.f32.xlu1 %v5015_v49 }
 0x209   : > { %v4227_v52 = vpop.f32.mrb[16].mxu1  ;;  %1294 = vadd.xlane.f32.xlu0 %v5019_v50 }
 0x20a   : > { %v1203_v53 = vpop.f32.mrb[17].mxu1  ;;  %v5035_v58 = vadd.f32 %v4227_v52, %v4961_v19 }
 0x20b   : > { %v5027_v54 = vadd.f32 %v4961_v19, %v1203_v53  ;;  %v4228_v55 = vpop.f32.mrb[18].mxu1  ;;  %1296 = vadd.xlane.f32.xlu1 %v5023_v51 }
 0x20c   : > { %v1206_v56 = vpop.f32.mrb[19].mxu1  ;;  %v5039_v59 = vadd.f32 %v4228_v55, %v4961_v19 }
 0x20d   : > { %v5031_v57 = vadd.f32 %v4961_v19, %v1206_v56  ;;  %1298 = vadd.xlane.f32.xlu0 %v5027_v54 }
 0x20f   : > { %1300 = vadd.xlane.f32.xlu1 %v5031_v57 }
 0x211   : > { %v4231_v60 = vpop.f32.mrb[20].mxu1  ;;  %1302 = vadd.xlane.f32.xlu0 %v5035_v58 }
 0x212   : > { %v1219_v61 = vpop.f32.mrb[21].mxu1  ;;  %v5051_v2 = vadd.f32 %v4231_v60, %v4961_v19 }
 0x213   : > { %v5043_v62 = vadd.f32 %v4961_v19, %v1219_v61  ;;  %v4232_v63 = vpop.f32.mrb[22].mxu1  ;;  %1304 = vadd.xlane.f32.xlu1 %v5039_v59 }
 0x214   : > { %v1222_v0 = vpop.f32.mrb[23].mxu1  ;;  %v5055_v3 = vadd.f32 %v4232_v63, %v4961_v19 }
 0x215   : > { %v5047_v1 = vadd.f32 %v4961_v19, %v1222_v0  ;;  %1306 = vadd.xlane.f32.xlu0 %v5043_v62 }
 0x217   : > { %1308 = vadd.xlane.f32.xlu1 %v5047_v1 }
 0x219   : > { %v4235_v4 = vpop.f32.mrb[24].mxu1  ;;  %1310 = vadd.xlane.f32.xlu0 %v5051_v2 }
 0x21a   : > { %v1235_v5 = vpop.f32.mrb[25].mxu1  ;;  %v5067_v10 = vadd.f32 %v4235_v4, %v4961_v19 }
 0x21b   : > { %v5059_v6 = vadd.f32 %v4961_v19, %v1235_v5  ;;  %v4236_v7 = vpop.f32.mrb[26].mxu1  ;;  %1312 = vadd.xlane.f32.xlu1 %v5055_v3 }
 0x21c   : > { %v1238_v8 = vpop.f32.mrb[27].mxu1  ;;  %v5071_v11 = vadd.f32 %v4236_v7, %v4961_v19 }
 0x21d   : > { %v5063_v9 = vadd.f32 %v4961_v19, %v1238_v8  ;;  %1314 = vadd.xlane.f32.xlu0 %v5059_v6 }
 0x21f   : > { %1316 = vadd.xlane.f32.xlu1 %v5063_v9 }
 0x221   : > { %v4239_v12 = vpop.f32.mrb[28].mxu1  ;;  %1318 = vadd.xlane.f32.xlu0 %v5067_v10 }
 0x222   : > { %v1251_v13 = vpop.f32.mrb[29].mxu1  ;;  %v5083_v18 = vadd.f32 %v4239_v12, %v4961_v19 }
 0x223   : > { %v5075_v14 = vadd.f32 %v4961_v19, %v1251_v13  ;;  %v4240_v15 = vpop.f32.mrb[30].mxu1  ;;  %1320 = vadd.xlane.f32.xlu1 %v5071_v11 }
 0x224   : > { %v1254_v16 = vpop.f32.mrb[31].mxu1  ;;  %v5087_v20 = vadd.f32 %v4240_v15, %v4961_v19 }
 0x225   : > { %v5079_v17 = vadd.f32 %v4961_v19, %v1254_v16  ;;  %1322 = vadd.xlane.f32.xlu0 %v5075_v14  ;;  %v4460_v19 = vld [vmem:[%s6826_s7 + $0x10] sm:$0xff]  }
 0x226   : > { %4245 = vmatprep.subr.bf16.mxu0 %v4460_v19 }
 0x227   : > { %1324 = vadd.xlane.f32.xlu1 %v5079_v17  ;;  %4246 = vmatpush3.bf16.msra.mxu0 %v4460_v19 }
 0x228   : > { %4247 = vmatprep.subr.bf16.mxu0 %v4461_v24 }
 0x229   : > { %1326 = vadd.xlane.f32.xlu0 %v5083_v18 }
 0x22b   : > { %1328 = vadd.xlane.f32.xlu1 %v5087_v20  ;;  %4248 = vmatpush3.bf16.msra.mxu0 %v4461_v24 }
 0x279   : > { %v1271_v30 = vpop.xlane.xlu1 %1270 }
 0x27a   : > { %v1332_v31 = vmul.f32 0.015625, %v1271_v30  ;;  %v1267_v36 = vpop.xlane.xlu0 %1266 }
 0x27b   : > { %v1330_v37 = vmul.f32 0.015625, %v1267_v36 }
 0x27c   : > { %v1364_v39 = vsub.f32 %v4964_v21, %v1332_v31 }
 0x27d   : > { %v1362_v40 = vsub.f32 %v4967_v23, %v1330_v37  ;;  %v1273_v44 = vpop.xlane.xlu1 %1272 }
 0x27e   : > { %v1333_v45 = vmul.f32 0.015625, %v1273_v44  ;;  %v1269_v47 = vpop.xlane.xlu0 %1268  ;;  %v5118_v21 = vsel %vm1396_vm1, %v1364_v39, 0.0 }
 0x27f   : > { %v1331_v48 = vmul.f32 0.015625, %v1269_v47  ;;  %v5110_v52 = vsel %vm1396_vm1, %v1362_v40, 0.0  ;;  %v1433_v0 = vmul.f32 %v5118_v21, %v5118_v21 }
 0x280   : > { %v1431_v53 = vmul.f32 %v5110_v52, %v5110_v52  ;;  %v1365_v55 = vsub.f32 %v4972_v25, %v1333_v45 }
 0x281   : > { %v1363_v56 = vsub.f32 %v4975_v26, %v1331_v48 }
 0x282   : > { %1463 = vadd.xlane.f32.xlu0 %v1431_v53  ;;  %v1275_v23 = vpop.xlane.xlu0 %1274  ;;  %v5131_v5 = vsel %vm1396_vm1, %v1365_v55, 0.0 }
 0x283   : > { %v1334_v60 = vmul.f32 0.015625, %v1275_v23  ;;  %v5122_v61 = vsel %vm1396_vm1, %v1363_v56, 0.0  ;;  %v1434_v16 = vmul.f32 %v5131_v5, %v5131_v5 }
 0x284   : > { %v1277_v63 = vpop.xlane.xlu1 %1276  ;;  %v1432_v25 = vmul.f32 %v5122_v61, %v5122_v61 }
 0x285   : > { %v1366_v26 = vsub.f32 %v4980_v29, %v1334_v60  ;;  %v1335_v4 = vmul.f32 0.015625, %v1277_v63 }
 0x286   : > { %1467 = vadd.xlane.f32.xlu0 %v1433_v0  ;;  %1465 = vadd.xlane.f32.xlu1 %v1432_v25  ;;  %v1279_v7 = vpop.xlane.xlu0 %1278 }
 0x287   : > { %v1367_v8 = vsub.f32 %v4983_v32, %v1335_v4  ;;  %v1336_v12 = vmul.f32 0.015625, %v1279_v7  ;;  %v5136_v13 = vsel %vm1396_vm1, %v1366_v26, 0.0  ;;  %v4462_v4 = vld [vmem:[%s6826_s7 + $0x20] sm:$0xff]  }
 0x288   : > { %v1281_v15 = vpop.xlane.xlu1 %1280  ;;  %v1435_v29 = vmul.f32 %v5136_v13, %v5136_v13  ;;  %4249 = vmatprep.subr.bf16.mxu0 %v4462_v4 }
 0x289   : > { %v1368_v22 = vsub.f32 %v4987_v34, %v1336_v12  ;;  %v1337_v33 = vmul.f32 0.015625, %v1281_v15  ;;  %v5145_v19 = vsel %vm1396_vm1, %v1367_v8, 0.0  ;;  %4250 = vmatpush3.bf16.msra.mxu0 %v4462_v4 }
 0x28a   : > { %1469 = vadd.xlane.f32.xlu1 %v1434_v16  ;;  %1471 = vadd.xlane.f32.xlu0 %v1435_v29  ;;  %v1283_v32 = vpop.xlane.xlu0 %1282  ;;  %v1436_v36 = vmul.f32 %v5145_v19, %v5145_v19 }
 0x28b   : > { %v1369_v24 = vsub.f32 %v4991_v35, %v1337_v33  ;;  %v1338_v27 = vmul.f32 0.015625, %v1283_v32  ;;  %v5150_v30 = vsel %vm1396_vm1, %v1368_v22, 0.0 }
 0x28c   : > { %v1285_v31 = vpop.xlane.xlu1 %1284  ;;  %v1437_v34 = vmul.f32 %v5150_v30, %v5150_v30 }
 0x28d   : > { %v1370_v37 = vsub.f32 %v4995_v38, %v1338_v27  ;;  %v1339_v39 = vmul.f32 0.015625, %v1285_v31  ;;  %v5159_v40 = vsel %vm1396_vm1, %v1369_v24, 0.0 }
 0x28e   : > { %1473 = vadd.xlane.f32.xlu1 %v1436_v36  ;;  %1475 = vadd.xlane.f32.xlu0 %v1437_v34  ;;  %v1287_v35 = vpop.xlane.xlu0 %1286  ;;  %v1438_v53 = vmul.f32 %v5159_v40, %v5159_v40 }
 0x28f   : > { %v1371_v44 = vsub.f32 %v4999_v41, %v1339_v39  ;;  %v1340_v45 = vmul.f32 0.015625, %v1287_v35  ;;  %v5164_v47 = vsel %vm1396_vm1, %v1370_v37, 0.0 }
 0x290   : > { %v1289_v48 = vpop.xlane.xlu1 %1288  ;;  %v1439_v38 = vmul.f32 %v5164_v47, %v5164_v47 }
 0x291   : > { %v1372_v55 = vsub.f32 %v5003_v42, %v1340_v45  ;;  %v1341_v56 = vmul.f32 0.015625, %v1289_v48  ;;  %v5173_v23 = vsel %vm1396_vm1, %v1371_v44, 0.0 }
 0x292   : > { %1477 = vadd.xlane.f32.xlu1 %v1438_v53  ;;  %1479 = vadd.xlane.f32.xlu0 %v1439_v38  ;;  %v1291_v41 = vpop.xlane.xlu0 %1290  ;;  %v1440_v26 = vmul.f32 %v5173_v23, %v5173_v23 }
 0x293   : > { %v1373_v60 = vsub.f32 %v5007_v43, %v1341_v56  ;;  %v1342_v63 = vmul.f32 0.015625, %v1291_v41  ;;  %v5178_v0 = vsel %vm1396_vm1, %v1372_v55, 0.0 }
 0x294   : > { %v1293_v25 = vpop.xlane.xlu1 %1292  ;;  %v1441_v42 = vmul.f32 %v5178_v0, %v5178_v0 }
 0x295   : > { %v1374_v7 = vsub.f32 %v5011_v46, %v1342_v63  ;;  %v1343_v8 = vmul.f32 0.015625, %v1293_v25  ;;  %v5190_v43 = vsel %vm1396_vm1, %v1373_v60, 0.0 }
 0x296   : > { %1481 = vadd.xlane.f32.xlu1 %v1440_v26  ;;  %1483 = vadd.xlane.f32.xlu0 %v1441_v42  ;;  %v1295_v12 = vpop.xlane.xlu0 %1294  ;;  %v1442_v46 = vmul.f32 %v5190_v43, %v5190_v43 }
 0x297   : > { %v1375_v15 = vsub.f32 %v5015_v49, %v1343_v8  ;;  %v1344_v16 = vmul.f32 0.015625, %v1295_v12  ;;  %v5195_v29 = vsel %vm1396_vm1, %v1374_v7, 0.0  ;;  %v4463_v8 = vld [vmem:[%s6826_s7 + $0x28] sm:$0xff]  }
 0x298   : > { %v1297_v22 = vpop.xlane.xlu1 %1296  ;;  %v1443_v33 = vmul.f32 %v5195_v29, %v5195_v29  ;;  %4251 = vmatprep.subr.bf16.mxu0 %v4463_v8 }
 0x299   : > { %v1376_v32 = vsub.f32 %v5019_v50, %v1344_v16  ;;  %v1345_v24 = vmul.f32 0.015625, %v1297_v22  ;;  %v5204_v49 = vsel %vm1396_vm1, %v1375_v15, 0.0  ;;  %4252 = vmatpush3.bf16.msra.mxu0 %v4463_v8 }
 0x29a   : > { %1485 = vadd.xlane.f32.xlu1 %v1442_v46  ;;  %1487 = vadd.xlane.f32.xlu0 %v1443_v33  ;;  %v1299_v27 = vpop.xlane.xlu0 %1298  ;;  %v1444_v39 = vmul.f32 %v5204_v49, %v5204_v49 }
 0x29b   : > { %v1377_v31 = vsub.f32 %v5023_v51, %v1345_v24  ;;  %v1346_v36 = vmul.f32 0.015625, %v1299_v27  ;;  %v5209_v34 = vsel %vm1396_vm1, %v1376_v32, 0.0  ;;  %v4464_v27 = vld [vmem:[%s6826_s7 + $0x30] sm:$0xff]  }
 0x29c   : > { %v1301_v37 = vpop.xlane.xlu1 %1300  ;;  %v1445_v50 = vmul.f32 %v5209_v34, %v5209_v34  ;;  %4253 = vmatprep.subr.bf16.mxu0 %v4464_v27 }
 0x29d   : > { %v1378_v35 = vsub.f32 %v5027_v54, %v1346_v36  ;;  %v1347_v44 = vmul.f32 0.015625, %v1301_v37  ;;  %v5218_v45 = vsel %vm1396_vm1, %v1377_v31, 0.0  ;;  %4254 = vmatpush3.bf16.msra.mxu0 %v4464_v27 }
 0x29e   : > { %1489 = vadd.xlane.f32.xlu1 %v1444_v39  ;;  %1491 = vadd.xlane.f32.xlu0 %v1445_v50  ;;  %v1303_v51 = vpop.xlane.xlu0 %1302  ;;  %v1446_v56 = vmul.f32 %v5218_v45, %v5218_v45 }
 0x29f   : > { %v1379_v48 = vsub.f32 %v5031_v57, %v1347_v44  ;;  %v1348_v53 = vmul.f32 0.015625, %v1303_v51  ;;  %v5223_v38 = vsel %vm1396_vm1, %v1378_v35, 0.0 }
 0x2a0   : > { %v1305_v55 = vpop.xlane.xlu1 %1304  ;;  %v1447_v54 = vmul.f32 %v5223_v38, %v5223_v38 }
 0x2a1   : > { %v1380_v41 = vsub.f32 %v5035_v58, %v1348_v53  ;;  %v1349_v60 = vmul.f32 0.015625, %v1305_v55  ;;  %v5232_v63 = vsel %vm1396_vm1, %v1379_v48, 0.0  ;;  %v4465_v48 = vld [vmem:[%s6826_s7 + $0x38] sm:$0xff]  }
 0x2a2   : > { %1493 = vadd.xlane.f32.xlu1 %v1446_v56  ;;  %1495 = vadd.xlane.f32.xlu0 %v1447_v54  ;;  %v1307_v57 = vpop.xlane.xlu0 %1306  ;;  %v1448_v7 = vmul.f32 %v5232_v63, %v5232_v63 }
 0x2a3   : > { %v1381_v25 = vsub.f32 %v5039_v59, %v1349_v60  ;;  %v1350_v26 = vmul.f32 0.015625, %v1307_v57  ;;  %v5237_v42 = vsel %vm1396_vm1, %v1380_v41, 0.0  ;;  %4255 = vmatprep.subr.bf16.mxu0 %v4465_v48 }
 0x2a4   : > { %v1309_v4 = vpop.xlane.xlu1 %1308  ;;  %v1449_v58 = vmul.f32 %v5237_v42, %v5237_v42  ;;  %4256 = vmatpush3.bf16.msra.mxu0 %v4465_v48 }
 0x2a5   : > { %v1382_v12 = vsub.f32 %v5043_v62, %v1350_v26  ;;  %v1351_v15 = vmul.f32 0.015625, %v1309_v4  ;;  %v5249_v59 = vsel %vm1396_vm1, %v1381_v25, 0.0 }
 0x2a6   : > { %1497 = vadd.xlane.f32.xlu1 %v1448_v7  ;;  %1499 = vadd.xlane.f32.xlu0 %v1449_v58  ;;  %v1311_v16 = vpop.xlane.xlu0 %1310  ;;  %v1450_v62 = vmul.f32 %v5249_v59, %v5249_v59 }
 0x2a7   : > { %v1383_v22 = vsub.f32 %v5047_v1, %v1351_v15  ;;  %v1352_v46 = vmul.f32 0.015625, %v1311_v16  ;;  %v5254_v33 = vsel %vm1396_vm1, %v1382_v12, 0.0 }
 0x2a8   : > { %v1313_v32 = vpop.xlane.xlu1 %1312  ;;  %v1451_v24 = vmul.f32 %v5254_v33, %v5254_v33 }
 0x2a9   : > { %v1384_v1 = vsub.f32 %v5051_v2, %v1352_v46  ;;  %v1353_v31 = vmul.f32 0.015625, %v1313_v32  ;;  %v5266_v36 = vsel %vm1396_vm1, %v1383_v22, 0.0 }
 0x2aa   : > { %1501 = vadd.xlane.f32.xlu1 %v1450_v62  ;;  %1503 = vadd.xlane.f32.xlu0 %v1451_v24  ;;  %v1315_v37 = vpop.xlane.xlu0 %1314  ;;  %v1452_v2 = vmul.f32 %v5266_v36, %v5266_v36 }
 0x2ab   : > { %v1385_v39 = vsub.f32 %v5055_v3, %v1353_v31  ;;  %v1354_v50 = vmul.f32 0.015625, %v1315_v37  ;;  %v5271_v35 = vsel %vm1396_vm1, %v1384_v1, 0.0 }
 0x2ac   : > { %v1317_v44 = vpop.xlane.xlu1 %1316  ;;  %v1453_v51 = vmul.f32 %v5271_v35, %v5271_v35 }
 0x2ad   : > { %v1386_v3 = vsub.f32 %v5059_v6, %v1354_v50  ;;  %v1355_v53 = vmul.f32 0.015625, %v1317_v44  ;;  %v5283_v55 = vsel %vm1396_vm1, %v1385_v39, 0.0 }
 0x2ae   : > { %1505 = vadd.xlane.f32.xlu1 %v1452_v2  ;;  %1507 = vadd.xlane.f32.xlu0 %v1453_v51  ;;  %v1319_v56 = vpop.xlane.xlu0 %1318  ;;  %v1454_v6 = vmul.f32 %v5283_v55, %v5283_v55 }
 0x2af   : > { %v1387_v54 = vsub.f32 %v5063_v9, %v1355_v53  ;;  %v1356_v41 = vmul.f32 0.015625, %v1319_v56  ;;  %v5288_v60 = vsel %vm1396_vm1, %v1386_v3, 0.0  ;;  %v4467_v3 = vld [vmem:[%s6828_s9 + $0x8] sm:$0xff]   ;;  %v4468_v53 = vld [vmem:[%s6828_s9 + $0x10] sm:$0xff]   ;;  %v4469_v56 = vld [vmem:[%s6828_s9 + $0x18] sm:$0xff]  }
 0x2b0   : > { %v1321_v57 = vpop.xlane.xlu1 %1320  ;;  %v1455_v25 = vmul.f32 %v5288_v60, %v5288_v60 }
 0x2b1   : > { %v1388_v26 = vsub.f32 %v5067_v10, %v1356_v41  ;;  %v1357_v4 = vmul.f32 0.015625, %v1321_v57  ;;  %v5297_v9 = vsel %vm1396_vm1, %v1387_v54, 0.0  ;;  %v4470_v54 = vld [vmem:[%s6828_s9 + $0x20] sm:$0xff]   ;;  %v4471_v41 = vld [vmem:[%s6828_s9 + $0x28] sm:$0xff]   ;;  %v4472_v57 = vld [vmem:[%s6828_s9 + $0x30] sm:$0xff]  }
 0x2b2   : > { %1509 = vadd.xlane.f32.xlu1 %v1454_v6  ;;  %1511 = vadd.xlane.f32.xlu0 %v1455_v25  ;;  %v1323_v7 = vpop.xlane.xlu0 %1322  ;;  %v1456_v16 = vmul.f32 %v5297_v9, %v5297_v9 }
 0x2b3   : > { %v1389_v58 = vsub.f32 %v5071_v11, %v1357_v4  ;;  %v1358_v8 = vmul.f32 0.015625, %v1323_v7  ;;  %v5302_v12 = vsel %vm1396_vm1, %v1388_v26, 0.0 }
 0x2b4   : > { %v1325_v15 = vpop.xlane.xlu1 %1324  ;;  %v1457_v10 = vmul.f32 %v5302_v12, %v5302_v12 }
 0x2b5   : > { %v1390_v22 = vsub.f32 %v5075_v14, %v1358_v8  ;;  %v1359_v46 = vmul.f32 0.015625, %v1325_v15  ;;  %v5311_v32 = vsel %vm1396_vm1, %v1389_v58, 0.0 }
 0x2b6   : > { %1513 = vadd.xlane.f32.xlu1 %v1456_v16  ;;  %1515 = vadd.xlane.f32.xlu0 %v1457_v10  ;;  %v1327_v11 = vpop.xlane.xlu0 %1326  ;;  %v1458_v31 = vmul.f32 %v5311_v32, %v5311_v32 }
 0x2b7   : > { %v1391_v62 = vsub.f32 %v5079_v17, %v1359_v46  ;;  %v1360_v24 = vmul.f32 0.015625, %v1327_v11  ;;  %v5316_v27 = vsel %vm1396_vm1, %v1390_v22, 0.0 }
 0x2b8   : > { %v1329_v1 = vpop.xlane.xlu1 %1328  ;;  %v1459_v14 = vmul.f32 %v5316_v27, %v5316_v27 }
 0x2b9   : > { %v1392_v37 = vsub.f32 %v5083_v18, %v1360_v24  ;;  %v1361_v39 = vmul.f32 0.015625, %v1329_v1  ;;  %v5325_v50 = vsel %vm1396_vm1, %v1391_v62, 0.0 }
 0x2ba   : > { %1517 = vadd.xlane.f32.xlu1 %v1458_v31  ;;  %1519 = vadd.xlane.f32.xlu0 %v1459_v14  ;;  %v1460_v2 = vmul.f32 %v5325_v50, %v5325_v50 }
 0x2bb   : > { %v1393_v17 = vsub.f32 %v5087_v20, %v1361_v39  ;;  %v5330_v44 = vsel %vm1396_vm1, %v1392_v37, 0.0  ;;  %v4466_v20 = vld [vmem:[%s6828_s9] sm:$0xff]  }
 0x2bc   : > { %v1461_v51 = vmul.f32 %v5330_v44, %v5330_v44  ;;  %4289 = vmatprep.subr.bf16.mxu1 %v4466_v20 }
 0x2bd   : > { %v5338_v18 = vsel %vm1396_vm1, %v1393_v17, 0.0  ;;  %4290 = vmatpush3.bf16.msra.mxu1 %v4466_v20  ;;  %v5366_v17 = vld [vmem:[%s6824_s5] ss:$0 sm:$0xff] }
 0x2be   : > { %1521 = vadd.xlane.f32.xlu1 %v1460_v2  ;;  %1523 = vadd.xlane.f32.xlu0 %v1461_v51  ;;  %v1462_v48 = vmul.f32 %v5338_v18, %v5338_v18 }
 0x2bf   : > { %4291 = vmatprep.subr.bf16.mxu1 %v4467_v3 }
 0x2c1   : > { %4292 = vmatpush3.bf16.msra.mxu1 %v4467_v3 }
 0x2c2   : > { %1525 = vadd.xlane.f32.xlu1 %v1462_v48  ;;  %4293 = vmatprep.subr.bf16.mxu1 %v4468_v53 }
 0x2c5   : > { %4294 = vmatpush3.bf16.msra.mxu1 %v4468_v53 }
 0x2c6   : > { %4295 = vmatprep.subr.bf16.mxu1 %v4469_v56 }
 0x2c9   : > { %4296 = vmatpush3.bf16.msra.mxu1 %v4469_v56 }
 0x2ca   : > { %4297 = vmatprep.subr.bf16.mxu1 %v4470_v54 }
 0x2cd   : > { %4298 = vmatpush3.bf16.msra.mxu1 %v4470_v54  ;;  %v5372_v54 = vld [vmem:[%s6825_s6] ss:$0 sm:$0xff] }
 0x2ce   : > { %4299 = vmatprep.subr.bf16.mxu1 %v4471_v41 }
 0x2d1   : > { %4300 = vmatpush3.bf16.msra.mxu1 %v4471_v41 }
 0x2d2   : > { %4301 = vmatprep.subr.bf16.mxu1 %v4472_v57 }
 0x2d5   : > { %4302 = vmatpush3.bf16.msra.mxu1 %v4472_v57 }
 0x30f   : > { %v1464_v6 = vpop.xlane.xlu0 %1463 }
 0x310   : > { %v1527_v25 = vmul.f32 0.015625, %v1464_v6 }
 0x312   : > { %v1559_v26 = vadd.f32 1e-05, %v1527_v25 }
 0x313   : > { %v1466_v4 = vpop.xlane.xlu1 %1465  ;;  %v1468_v7 = vpop.xlane.xlu0 %1467 }
 0x314   : > { %4490 = vrsqrt.f32 %v1559_v26  ;;  %v1528_v58 = vmul.f32 0.015625, %v1466_v4  ;;  %v1529_v8 = vmul.f32 0.015625, %v1468_v7 }
 0x316   : > { %v1560_v15 = vadd.f32 1e-05, %v1528_v58  ;;  %v1561_v16 = vadd.f32 1e-05, %v1529_v8 }
 0x317   : > { %v1470_v10 = vpop.xlane.xlu1 %1469  ;;  %v1472_v22 = vpop.xlane.xlu0 %1471 }
 0x318   : > { %4492 = vrsqrt.f32 %v1560_v15  ;;  %v1530_v46 = vmul.f32 0.015625, %v1470_v10  ;;  %v1531_v11 = vmul.f32 0.015625, %v1472_v22 }
 0x319   : > { %4494 = vrsqrt.f32 %v1561_v16 }
 0x31a   : > { %v1562_v62 = vadd.f32 1e-05, %v1530_v46  ;;  %v1563_v24 = vadd.f32 1e-05, %v1531_v11 }
 0x31b   : > { %v1474_v1 = vpop.xlane.xlu1 %1473  ;;  %v1476_v31 = vpop.xlane.xlu0 %1475 }
 0x31c   : > { %4496 = vrsqrt.f32 %v1562_v62  ;;  %v1532_v14 = vmul.f32 0.015625, %v1474_v1  ;;  %v1533_v37 = vmul.f32 0.015625, %v1476_v31 }
 0x31d   : > { %4498 = vrsqrt.f32 %v1563_v24 }
 0x31e   : > { %v4491_v39 = vpop.eup %4490  ;;  %v1564_v2 = vadd.f32 1e-05, %v1532_v14  ;;  %v1565_v51 = vadd.f32 1e-05, %v1533_v37 }
 0x31f   : > { %v1478_v48 = vpop.xlane.xlu1 %1477  ;;  %v1480_v20 = vpop.xlane.xlu0 %1479  ;;  %v1623_v3 = vmul.f32 %v4491_v39, %v5110_v52 }
 0x320   : > { %4500 = vrsqrt.f32 %v1564_v2  ;;  %v1534_v53 = vmul.f32 0.015625, %v1478_v48  ;;  %v1535_v56 = vmul.f32 0.015625, %v1480_v20 }
 0x321   : > { %4502 = vrsqrt.f32 %v1565_v51  ;;  %v1661_v41 = vmul.f32 %v5366_v17, %v1623_v3 }
 0x322   : > { %v4493_v57 = vpop.eup %4492  ;;  %v1566_v6 = vadd.f32 1e-05, %v1534_v53  ;;  %v1567_v25 = vadd.f32 1e-05, %v1535_v56 }
 0x323   : > { %v4495_v26 = vpop.eup %4494  ;;  %v1482_v4 = vpop.xlane.xlu1 %1481  ;;  %v1624_v58 = vmul.f32 %v4493_v57, %v5122_v61  ;;  %v5377_v52 = vadd.f32 %v5372_v54, %v1661_v41 }
 0x324   : > { %v1484_v7 = vpop.xlane.xlu0 %1483  ;;  %v1625_v8 = vmul.f32 %v4495_v26, %v5118_v21  ;;  %4504 = vrsqrt.f32 %v1566_v6  ;;  %v1536_v15 = vmul.f32 0.015625, %v1482_v4 }
 0x325   : > { %v1537_v16 = vmul.f32 0.015625, %v1484_v7  ;;  %4506 = vrsqrt.f32 %v1567_v25  ;;  %v1662_v10 = vmul.f32 %v5366_v17, %v1624_v58  ;;  %v6872_v21 = vmax.f32 %v5377_v52, 0.0 }
 0x326   : > { %v4497_v22 = vpop.eup %4496  ;;  %v1663_v46 = vmul.f32 %v5366_v17, %v1625_v8  ;;  %v1568_v11 = vadd.f32 1e-05, %v1536_v15 }
 0x327   : > { %v1569_v62 = vadd.f32 1e-05, %v1537_v16  ;;  %v4499_v24 = vpop.eup %4498  ;;  %v1626_v1 = vmul.f32 %v4497_v22, %v5131_v5  ;;  %v1486_v61 = vpop.xlane.xlu1 %1485  ;;  %v5384_v14 = vadd.f32 %v5372_v54, %v1662_v10 }
 0x328   : > { %v1488_v31 = vpop.xlane.xlu0 %1487  ;;  %4508 = vrsqrt.f32 %v1568_v11  ;;  %v1538_v37 = vmul.f32 0.015625, %v1486_v61  ;;  %v5388_v2 = vadd.f32 %v5372_v54, %v1663_v46  ;;  %v1627_v5 = vmul.f32 %v4499_v24, %v5136_v13 }
 0x329   : > { %v1539_v39 = vmul.f32 0.015625, %v1488_v31  ;;  %v1664_v51 = vmul.f32 %v5366_v17, %v1626_v1  ;;  %4510 = vrsqrt.f32 %v1569_v62  ;;  %v6871_v48 = vmax.f32 %v5384_v14, 0.0 }
 0x32a   : > { %v4501_v20 = vpop.eup %4500  ;;  %v1570_v3 = vadd.f32 1e-05, %v1538_v37  ;;  %v6870_v56 = vmax.f32 %v5388_v2, 0.0  ;;  %v1665_v13 = vmul.f32 %v5366_v17, %v1627_v5 }
 0x32b   : > { %v1571_v53 = vadd.f32 1e-05, %v1539_v39  ;;  %v4503_v41 = vpop.eup %4502  ;;  %v1490_v57 = vpop.xlane.xlu1 %1489  ;;  %v1799_v25 = vpack.c.bf16 %v6871_v48, %v6872_v21  ;;  %v5399_v26 = vadd.f32 %v5372_v54, %v1664_v51  ;;  %v1628_v4 = vmul.f32 %v4501_v20, %v5145_v19 }
 0x32c   : > { %v1492_v6 = vpop.xlane.xlu0 %1491  ;;  %4512 = vrsqrt.f32 %v1570_v3  ;;  %v1540_v7 = vmul.f32 0.015625, %v1490_v57  ;;  %v1629_v8 = vmul.f32 %v4503_v41, %v5150_v30  ;;  %v5407_v10 = vadd.f32 %v5372_v54, %v1665_v13 }
 0x32d   : > { %v1541_v58 = vmul.f32 0.015625, %v1492_v6  ;;  %4514 = vrsqrt.f32 %v1571_v53  ;;  %4257 = vmatprep.mubr.bf16.mxu0 %v1799_v25  ;;  %v6869_v15 = vmax.f32 %v5399_v26, 0.0  ;;  %v1666_v16 = vmul.f32 %v5366_v17, %v1628_v4 }
 0x32e   : > { %v4505_v22 = vpop.eup %4504  ;;  %v1572_v46 = vadd.f32 1e-05, %v1540_v7  ;;  %v1667_v19 = vmul.f32 %v5366_v17, %v1629_v8  ;;  %v6868_v31 = vmax.f32 %v5407_v10, 0.0 }
 0x32f   : > { %v1573_v11 = vadd.f32 1e-05, %v1541_v58  ;;  %v4507_v62 = vpop.eup %4506  ;;  %v1494_v24 = vpop.xlane.xlu1 %1493  ;;  %v1800_v30 = vpack.c.bf16 %v6869_v15, %v6870_v56  ;;  %v5415_v61 = vadd.f32 %v5372_v54, %v1666_v16  ;;  %v1630_v37 = vmul.f32 %v4505_v22, %v5159_v40 }
 0x330   : > { %v1496_v1 = vpop.xlane.xlu0 %1495  ;;  %4516 = vrsqrt.f32 %v1572_v46  ;;  %v1542_v39 = vmul.f32 0.015625, %v1494_v24  ;;  %v5420_v5 = vadd.f32 %v5372_v54, %v1667_v19  ;;  %v1631_v53 = vmul.f32 %v4507_v62, %v5164_v47 }
 0x331   : > { %v1543_v51 = vmul.f32 0.015625, %v1496_v1  ;;  %4518 = vrsqrt.f32 %v1573_v11  ;;  %4258 = vmatmul.mubr.bf16.vlgmr.msra.gmra.mrb[32].mxu0 %v1800_v30  ;;  %v6867_v20 = vmax.f32 %v5415_v61, 0.0  ;;  %v1668_v3 = vmul.f32 %v5366_v17, %v1630_v37 }
 0x332   : > { %v4509_v41 = vpop.eup %4508  ;;  %v1574_v57 = vadd.f32 1e-05, %v1542_v39  ;;  %v6866_v25 = vmax.f32 %v5420_v5, 0.0  ;;  %v1669_v47 = vmul.f32 %v5366_v17, %v1631_v53 }
 0x333   : > { %v1575_v6 = vadd.f32 1e-05, %v1543_v51  ;;  %v4511_v40 = vpop.eup %4510  ;;  %v1498_v4 = vpop.xlane.xlu1 %1497  ;;  %v1801_v7 = vpack.c.bf16 %v6867_v20, %v6868_v31  ;;  %v5431_v58 = vadd.f32 %v5372_v54, %v1668_v3  ;;  %v1632_v8 = vmul.f32 %v4509_v41, %v5173_v23 }
 0x334   : > { %v1500_v13 = vpop.xlane.xlu0 %1499  ;;  %4520 = vrsqrt.f32 %v1574_v57  ;;  %v1544_v16 = vmul.f32 0.015625, %v1498_v4  ;;  %v1633_v46 = vmul.f32 %v4511_v40, %v5178_v0  ;;  %v5439_v62 = vadd.f32 %v5372_v54, %v1669_v47 }
 0x335   : > { %v1545_v22 = vmul.f32 0.015625, %v1500_v13  ;;  %4522 = vrsqrt.f32 %v1575_v6  ;;  %4261 = vmatprep.mubr.bf16.mxu0 %v1801_v7  ;;  %v6865_v11 = vmax.f32 %v5431_v58, 0.0  ;;  %v1670_v19 = vmul.f32 %v5366_v17, %v1632_v8 }
 0x336   : > { %v4513_v24 = vpop.eup %4512  ;;  %v1576_v1 = vadd.f32 1e-05, %v1544_v16  ;;  %v1671_v23 = vmul.f32 %v5366_v17, %v1633_v46  ;;  %v6864_v53 = vmax.f32 %v5439_v62, 0.0 }
 0x337   : > { %v1577_v30 = vadd.f32 1e-05, %v1545_v22  ;;  %v4515_v37 = vpop.eup %4514  ;;  %v1502_v39 = vpop.xlane.xlu1 %1501  ;;  %v1802_v0 = vpack.c.bf16 %v6865_v11, %v6866_v25  ;;  %v5447_v3 = vadd.f32 %v5372_v54, %v1670_v19  ;;  %v1634_v41 = vmul.f32 %v4513_v24, %v5190_v43 }
 0x338   : > { %v1504_v51 = vpop.xlane.xlu0 %1503  ;;  %4524 = vrsqrt.f32 %v1576_v1  ;;  %v1546_v57 = vmul.f32 0.015625, %v1502_v39  ;;  %v5452_v40 = vadd.f32 %v5372_v54, %v1671_v23  ;;  %v1635_v7 = vmul.f32 %v4515_v37, %v5195_v29 }
 0x339   : > { %v1547_v6 = vmul.f32 0.015625, %v1504_v51  ;;  %4526 = vrsqrt.f32 %v1577_v30  ;;  %4262 = vmatmul.mubr.bf16.gmra.mrb[36].mxu0 %v1802_v0  ;;  %v6863_v4 = vmax.f32 %v5447_v3, 0.0  ;;  %v1672_v13 = vmul.f32 %v5366_v17, %v1634_v41 }
 0x33a   : > { %v4517_v8 = vpop.eup %4516  ;;  %v1578_v47 = vadd.f32 1e-05, %v1546_v57  ;;  %v6842_v22 = vmax.f32 %v5452_v40, 0.0  ;;  %v1673_v29 = vmul.f32 %v5366_v17, %v1635_v7 }
 0x33b   : > { %v1579_v16 = vadd.f32 1e-05, %v1547_v6  ;;  %v4519_v43 = vpop.eup %4518  ;;  %v1506_v46 = vpop.xlane.xlu1 %1505  ;;  %v1803_v24 = vpack.c.bf16 %v6863_v4, %v6864_v53  ;;  %v5463_v1 = vadd.f32 %v5372_v54, %v1672_v13  ;;  %v1636_v30 = vmul.f32 %v4517_v8, %v5204_v49 }
 0x33c   : > { %v1508_v19 = vpop.xlane.xlu0 %1507  ;;  %4528 = vrsqrt.f32 %v1578_v47  ;;  %v1548_v23 = vmul.f32 0.015625, %v1506_v46  ;;  %v1637_v39 = vmul.f32 %v4519_v43, %v5209_v34  ;;  %v5471_v41 = vadd.f32 %v5372_v54, %v1673_v29 }
 0x33d   : > { %v1549_v37 = vmul.f32 0.015625, %v1508_v19  ;;  %4530 = vrsqrt.f32 %v1579_v16  ;;  %4265 = vmatprep.mubr.bf16.mxu0 %v1803_v24  ;;  %v6841_v51 = vmax.f32 %v5463_v1, 0.0  ;;  %v1674_v0 = vmul.f32 %v5366_v17, %v1636_v30 }
 0x33e   : > { %v4521_v57 = vpop.eup %4520  ;;  %v1580_v6 = vadd.f32 1e-05, %v1548_v23  ;;  %v1675_v49 = vmul.f32 %v5366_v17, %v1637_v39  ;;  %v6844_v43 = vmax.f32 %v5471_v41, 0.0 }
 0x33f   : > { %v1581_v13 = vadd.f32 1e-05, %v1549_v37  ;;  %v4523_v7 = vpop.eup %4522  ;;  %v1510_v8 = vpop.xlane.xlu1 %1509  ;;  %v1804_v34 = vpack.c.bf16 %v6841_v51, %v6842_v22  ;;  %v5479_v16 = vadd.f32 %v5372_v54, %v1674_v0  ;;  %v1638_v46 = vmul.f32 %v4521_v57, %v5218_v45 }
 0x340   : > { %v1512_v47 = vpop.xlane.xlu0 %1511  ;;  %4532 = vrsqrt.f32 %v1580_v6  ;;  %v1550_v19 = vmul.f32 0.015625, %v1510_v8  ;;  %v5484_v30 = vadd.f32 %v5372_v54, %v1675_v49  ;;  %v1639_v37 = vmul.f32 %v4523_v7, %v5223_v38 }
 0x341   : > { %v1551_v24 = vmul.f32 0.015625, %v1512_v47  ;;  %4534 = vrsqrt.f32 %v1581_v13  ;;  %4266 = vmatmul.mubr.bf16.gmra.mrb[40].mxu0 %v1804_v34  ;;  %v6843_v29 = vmax.f32 %v5479_v16, 0.0  ;;  %v1676_v23 = vmul.f32 %v5366_v17, %v1638_v46 }
 0x342   : > { %v4525_v39 = vpop.eup %4524  ;;  %v1582_v0 = vadd.f32 1e-05, %v1550_v19  ;;  %v6846_v22 = vmax.f32 %v5484_v30, 0.0  ;;  %v1677_v38 = vmul.f32 %v5366_v17, %v1639_v37 }
 0x343   : > { %v1583_v51 = vadd.f32 1e-05, %v1551_v24  ;;  %v4527_v45 = vpop.eup %4526  ;;  %v1514_v57 = vpop.xlane.xlu1 %1513  ;;  %v1805_v13 = vpack.c.bf16 %v6843_v29, %v6844_v43  ;;  %v5495_v49 = vadd.f32 %v5372_v54, %v1676_v23  ;;  %v1640_v8 = vmul.f32 %v4525_v39, %v5232_v63 }
 0x344   : > { %v1516_v6 = vpop.xlane.xlu0 %1515  ;;  %4536 = vrsqrt.f32 %v1582_v0  ;;  %v1552_v7 = vmul.f32 0.015625, %v1514_v57  ;;  %v1641_v34 = vmul.f32 %v4527_v45, %v5237_v42  ;;  %v5503_v24 = vadd.f32 %v5372_v54, %v1677_v38 }
 0x345   : > { %v1553_v47 = vmul.f32 0.015625, %v1516_v6  ;;  %4538 = vrsqrt.f32 %v1583_v51  ;;  %4269 = vmatprep.mubr.bf16.mxu0 %v1805_v13  ;;  %v6845_v46 = vmax.f32 %v5495_v49, 0.0  ;;  %v1678_v19 = vmul.f32 %v5366_v17, %v1640_v8 }
 0x346   : > { %v4529_v23 = vpop.eup %4528  ;;  %v1584_v29 = vadd.f32 1e-05, %v1552_v7  ;;  %v1679_v63 = vmul.f32 %v5366_v17, %v1641_v34  ;;  %v6848_v45 = vmax.f32 %v5503_v24, 0.0 }
 0x347   : > { %v1585_v43 = vadd.f32 1e-05, %v1553_v47  ;;  %v4531_v37 = vpop.eup %4530  ;;  %v1518_v39 = vpop.xlane.xlu1 %1517  ;;  %v1806_v42 = vpack.c.bf16 %v6845_v46, %v6846_v22  ;;  %v5511_v51 = vadd.f32 %v5372_v54, %v1678_v19  ;;  %v1642_v57 = vmul.f32 %v4529_v23, %v5249_v59 }
 0x348   : > { %v1520_v0 = vpop.xlane.xlu0 %1519  ;;  %4540 = vrsqrt.f32 %v1584_v29  ;;  %v1554_v6 = vmul.f32 0.015625, %v1518_v39  ;;  %v5516_v8 = vadd.f32 %v5372_v54, %v1679_v63  ;;  %v1643_v47 = vmul.f32 %v4531_v37, %v5254_v33 }
 0x349   : > { %v1555_v13 = vmul.f32 0.015625, %v1520_v0  ;;  %4542 = vrsqrt.f32 %v1585_v43  ;;  %4270 = vmatmul.mubr.bf16.gmra.mrb[44].mxu0 %v1806_v42  ;;  %v6847_v38 = vmax.f32 %v5511_v51, 0.0  ;;  %v1680_v7 = vmul.f32 %v5366_v17, %v1642_v57 }
 0x34a   : > { %6903 = vst [vmem:[#allocation4_spill] sm:$0xff] %v5516_v8  ;;  %v4533_v34 = vpop.eup %4532  ;;  %v1586_v19 = vadd.f32 1e-05, %v1554_v6  ;;  %v6862_v22 = vmax.f32 %v5516_v8, 0.0  ;;  %v1681_v33 = vmul.f32 %v5366_v17, %v1643_v47 }
 0x34b   : > { %v1587_v46 = vadd.f32 1e-05, %v1555_v13  ;;  %v4535_v59 = vpop.eup %4534  ;;  %v1522_v29 = vpop.xlane.xlu1 %1521  ;;  %v1807_v43 = vpack.c.bf16 %v6847_v38, %v6848_v45  ;;  %v5527_v63 = vadd.f32 %v5372_v54, %v1680_v7  ;;  %v1644_v39 = vmul.f32 %v4533_v34, %v5266_v36 }
 0x34c   : > { %v1524_v23 = vpop.xlane.xlu0 %1523  ;;  %4544 = vrsqrt.f32 %v1586_v19  ;;  %v1556_v37 = vmul.f32 0.015625, %v1522_v29  ;;  %v1645_v42 = vmul.f32 %v4535_v59, %v5271_v35  ;;  %v5535_v13 = vadd.f32 %v5372_v54, %v1681_v33 }
 0x34d   : > { %6904 = vst [vmem:[#allocation5_spill] sm:$0xff] %v5527_v63  ;;  %v1557_v0 = vmul.f32 0.015625, %v1524_v23  ;;  %4546 = vrsqrt.f32 %v1587_v46  ;;  %4273 = vmatprep.mubr.bf16.mxu0 %v1807_v43  ;;  %v6861_v57 = vmax.f32 %v5527_v63, 0.0  ;;  %v1682_v6 = vmul.f32 %v5366_v17, %v1644_v39 }
 0x34e   : > { %6905 = vst [vmem:[#allocation6_spill] sm:$0xff] %v5535_v13  ;;  %v4537_v7 = vpop.eup %4536  ;;  %v1588_v38 = vadd.f32 1e-05, %v1556_v37  ;;  %v1683_v36 = vmul.f32 %v5366_v17, %v1645_v42  ;;  %v6860_v29 = vmax.f32 %v5535_v13, 0.0 }
 0x34f   : > { %v1589_v45 = vadd.f32 1e-05, %v1557_v0  ;;  %v4539_v47 = vpop.eup %4538  ;;  %v1526_v34 = vpop.xlane.xlu1 %1525  ;;  %v1808_v35 = vpack.c.bf16 %v6861_v57, %v6862_v22  ;;  %v5543_v46 = vadd.f32 %v5372_v54, %v1682_v6  ;;  %v1646_v19 = vmul.f32 %v4537_v7, %v5283_v55 }
 0x350   : > { %4548 = vrsqrt.f32 %v1588_v38  ;;  %v1558_v59 = vmul.f32 0.015625, %v1526_v34  ;;  %v1647_v23 = vmul.f32 %v4539_v47, %v5288_v60  ;;  %v5551_v33 = vadd.f32 %v5372_v54, %v1683_v36 }
 0x351   : > { %6906 = vst [vmem:[#allocation7_spill] sm:$0xff] %v5543_v46  ;;  %4550 = vrsqrt.f32 %v1589_v45  ;;  %4274 = vmatmul.mubr.bf16.gmra.mrb[48].mxu0 %v1808_v35  ;;  %v6859_v43 = vmax.f32 %v5543_v46, 0.0  ;;  %v1684_v39 = vmul.f32 %v5366_v17, %v1646_v19 }
 0x352   : > { %6907 = vst [vmem:[#allocation8_spill] sm:$0xff] %v5551_v33  ;;  %v4541_v37 = vpop.eup %4540  ;;  %v1590_v0 = vadd.f32 1e-05, %v1558_v59  ;;  %v1685_v42 = vmul.f32 %v5366_v17, %v1647_v23  ;;  %v6858_v7 = vmax.f32 %v5551_v33, 0.0 }
 0x353   : > { %v4543_v55 = vpop.eup %4542  ;;  %v1809_v38 = vpack.c.bf16 %v6859_v43, %v6860_v29  ;;  %v5559_v60 = vadd.f32 %v5372_v54, %v1684_v39  ;;  %v1648_v45 = vmul.f32 %v4541_v37, %v5297_v9 }
 0x354   : > { %4552 = vrsqrt.f32 %v1590_v0  ;;  %v1649_v6 = vmul.f32 %v4543_v55, %v5302_v12  ;;  %v5567_v34 = vadd.f32 %v5372_v54, %v1685_v42 }
 0x355   : > { %6908 = vst [vmem:[#allocation9_spill] sm:$0xff] %v5559_v60  ;;  %4277 = vmatprep.mubr.bf16.mxu0 %v1809_v38  ;;  %v6857_v36 = vmax.f32 %v5559_v60, 0.0  ;;  %v1686_v47 = vmul.f32 %v5366_v17, %v1648_v45 }
 0x356   : > { %6909 = vst [vmem:[#allocation10_spill] sm:$0xff] %v5567_v34  ;;  %v4545_v35 = vpop.eup %4544  ;;  %v1687_v19 = vmul.f32 %v5366_v17, %v1649_v6  ;;  %v6856_v37 = vmax.f32 %v5567_v34, 0.0 }
 0x357   : > { %v4547_v59 = vpop.eup %4546  ;;  %v1810_v9 = vpack.c.bf16 %v6857_v36, %v6858_v7  ;;  %v5575_v12 = vadd.f32 %v5372_v54, %v1686_v47  ;;  %v1650_v23 = vmul.f32 %v4545_v35, %v5311_v32 }
 0x358   : > { %v1651_v39 = vmul.f32 %v4547_v59, %v5316_v27  ;;  %v5583_v55 = vadd.f32 %v5372_v54, %v1687_v19 }
 0x359   : > { %6910 = vst [vmem:[#allocation11_spill] sm:$0xff] %v5575_v12  ;;  %4278 = vmatmul.mubr.bf16.gmra.mrb[52].mxu0 %v1810_v9  ;;  %v6849_v0 = vmax.f32 %v5575_v12, 0.0  ;;  %v1688_v42 = vmul.f32 %v5366_v17, %v1650_v23 }
 0x35a   : > { %6911 = vst [vmem:[#allocation12_spill] sm:$0xff] %v5583_v55  ;;  %v4549_v38 = vpop.eup %4548  ;;  %v1689_v45 = vmul.f32 %v5366_v17, %v1651_v39  ;;  %v6855_v19 = vmax.f32 %v5583_v55, 0.0 }
 0x35b   : > { %v4551_v6 = vpop.eup %4550  ;;  %v1811_v32 = vpack.c.bf16 %v6849_v0, %v6856_v37  ;;  %v5591_v27 = vadd.f32 %v5372_v54, %v1688_v42  ;;  %v1652_v47 = vmul.f32 %v4549_v38, %v5325_v50 }
 0x35c   : > { %v1653_v35 = vmul.f32 %v4551_v6, %v5330_v44  ;;  %v5599_v23 = vadd.f32 %v5372_v54, %v1689_v45 }
 0x35d   : > { %6912 = vst [vmem:[#allocation13_spill] sm:$0xff] %v5591_v27  ;;  %4281 = vmatprep.mubr.bf16.mxu0 %v1811_v32  ;;  %v6854_v59 = vmax.f32 %v5591_v27, 0.0  ;;  %v1690_v9 = vmul.f32 %v5366_v17, %v1652_v47 }
 0x35e   : > { %6913 = vst [vmem:[#allocation14_spill] sm:$0xff] %v5599_v23  ;;  %v4553_v39 = vpop.eup %4552  ;;  %v1691_v0 = vmul.f32 %v5366_v17, %v1653_v35  ;;  %v6853_v38 = vmax.f32 %v5599_v23, 0.0 }
 0x35f   : > { %v1812_v50 = vpack.c.bf16 %v6854_v59, %v6855_v19  ;;  %v5607_v44 = vadd.f32 %v5372_v54, %v1690_v9  ;;  %v1654_v42 = vmul.f32 %v4553_v39, %v5338_v18 }
 0x360   : > { %v5614_v32 = vadd.f32 %v5372_v54, %v1691_v0  ;;  %v4473_v0 = vld [vmem:[%s6828_s9 + $0x38] sm:$0xff]  }
 0x361   : > { %6914 = vst [vmem:[#allocation15_spill] sm:$0xff] %v5607_v44  ;;  %4282 = vmatmul.mubr.bf16.gmra.mrb[56].mxu0 %v1812_v50  ;;  %v6852_v6 = vmax.f32 %v5607_v44, 0.0  ;;  %v1692_v45 = vmul.f32 %v5366_v17, %v1654_v42  ;;  %4303 = vmatprep.subr.bf16.mxu1 %v4473_v0 }
 0x362   : > { %6915 = vst [vmem:[#allocation16_spill] sm:$0xff] %v5614_v32  ;;  %v6851_v18 = vmax.f32 %v5614_v32, 0.0  ;;  %4304 = vmatpush3.bf16.msra.mxu1 %v4473_v0 }
 0x363   : > { %v1813_v47 = vpack.c.bf16 %v6852_v6, %v6853_v38  ;;  %v5621_v35 = vadd.f32 %v5372_v54, %v1692_v45  ;;  %v5635_v54 = vld [vmem:[%s6827_s8] ss:$0 sm:$0xff] }
 0x365   : > { %6916 = vst [vmem:[#allocation17_spill] sm:$0xff] %v5621_v35  ;;  %4285 = vmatprep.mubr.bf16.mxu0 %v1813_v47  ;;  %v6850_v9 = vmax.f32 %v5621_v35, 0.0 }
 0x367   : > { %v1814_v17 = vpack.c.bf16 %v6850_v9, %v6851_v18 }
 0x369   : > { %4286 = vmatmul.mubr.bf16.gmra.mrb[60].mxu0 %v1814_v17 }
 0x404   : > { %v4259_v39 = vpop.f32.mrb[32].mxu0 }
 0x405   : > { %v1912_v50 = vadd.f32 %v4259_v39, %v5635_v54  ;;  %v1903_v42 = vpop.f32.mrb[33].mxu0 }
 0x406   : > { %v1904_v45 = vadd.f32 %v5635_v54, %v1903_v42  ;;  %v4260_v47 = vpop.f32.mrb[34].mxu0 }
 0x407   : > { %v1915_v17 = vadd.f32 %v4260_v47, %v5635_v54  ;;  %v1906_v9 = vpop.f32.mrb[35].mxu0  ;;  %v2032_v6 = vmax.f32 %v1912_v50, 0.0 }
 0x408   : > { %v1907_v18 = vadd.f32 %v5635_v54, %v1906_v9  ;;  %v2030_v0 = vmax.f32 %v1904_v45, 0.0 }
 0x409   : > { %v2033_v38 = vmax.f32 %v1915_v17, 0.0 }
 0x40a   : > { %v2031_v59 = vmax.f32 %v1907_v18, 0.0 }
 0x40b   : > { %v2063_v19 = vpack.c.bf16 %v2033_v38, %v2032_v6 }
 0x40c   : > { %v2062_v37 = vpack.c.bf16 %v2031_v59, %v2030_v0  ;;  %v4263_v36 = vpop.f32.mrb[36].mxu0 }
 0x40d   : > { %v1928_v7 = vadd.f32 %v4263_v36, %v5635_v54  ;;  %v1919_v43 = vpop.f32.mrb[37].mxu0 }
 0x40e   : > { %v1920_v39 = vadd.f32 %v5635_v54, %v1919_v43  ;;  %v4264_v29 = vpop.f32.mrb[38].mxu0  ;;  %4305 = vmatprep.mubr.bf16.mxu1 %v2062_v37 }
 0x40f   : > { %v1931_v42 = vadd.f32 %v4264_v29, %v5635_v54  ;;  %v1922_v47 = vpop.f32.mrb[39].mxu0  ;;  %4306 = vmatmul.mubr.bf16.vlgmr.msra.gmra.mrb[32].mxu1 %v2063_v19  ;;  %v2036_v50 = vmax.f32 %v1928_v7, 0.0 }
 0x410   : > { %v1923_v9 = vadd.f32 %v5635_v54, %v1922_v47  ;;  %v2034_v45 = vmax.f32 %v1920_v39, 0.0 }
 0x411   : > { %v2037_v17 = vmax.f32 %v1931_v42, 0.0 }
 0x412   : > { %v2035_v18 = vmax.f32 %v1923_v9, 0.0 }
 0x413   : > { %v2065_v38 = vpack.c.bf16 %v2037_v17, %v2036_v50 }
 0x414   : > { %v2064_v59 = vpack.c.bf16 %v2035_v18, %v2034_v45  ;;  %v4267_v6 = vpop.f32.mrb[40].mxu0 }
 0x415   : > { %v1944_v36 = vadd.f32 %v4267_v6, %v5635_v54  ;;  %v1935_v0 = vpop.f32.mrb[41].mxu0 }
 0x416   : > { %v1936_v43 = vadd.f32 %v5635_v54, %v1935_v0  ;;  %v4268_v57 = vpop.f32.mrb[42].mxu0  ;;  %4309 = vmatprep.mubr.bf16.mxu1 %v2064_v59 }
 0x417   : > { %v1947_v29 = vadd.f32 %v4268_v57, %v5635_v54  ;;  %v1938_v37 = vpop.f32.mrb[43].mxu0  ;;  %4310 = vmatmul.mubr.bf16.gmra.mrb[36].mxu1 %v2065_v38  ;;  %v2040_v7 = vmax.f32 %v1944_v36, 0.0 }
 0x418   : > { %v1939_v19 = vadd.f32 %v5635_v54, %v1938_v37  ;;  %v2038_v39 = vmax.f32 %v1936_v43, 0.0 }
 0x419   : > { %v2041_v42 = vmax.f32 %v1947_v29, 0.0 }
 0x41a   : > { %v2039_v47 = vmax.f32 %v1939_v19, 0.0 }
 0x41b   : > { %v2067_v9 = vpack.c.bf16 %v2041_v42, %v2040_v7 }
 0x41c   : > { %v2066_v50 = vpack.c.bf16 %v2039_v47, %v2038_v39  ;;  %v4271_v17 = vpop.f32.mrb[44].mxu0 }
 0x41d   : > { %v1960_v45 = vadd.f32 %v4271_v17, %v5635_v54  ;;  %v1951_v18 = vpop.f32.mrb[45].mxu0 }
 0x41e   : > { %v1952_v6 = vadd.f32 %v5635_v54, %v1951_v18  ;;  %v4272_v0 = vpop.f32.mrb[46].mxu0  ;;  %4313 = vmatprep.mubr.bf16.mxu1 %v2066_v50 }
 0x41f   : > { %v1963_v57 = vadd.f32 %v4272_v0, %v5635_v54  ;;  %v1954_v59 = vpop.f32.mrb[47].mxu0  ;;  %4314 = vmatmul.mubr.bf16.gmra.mrb[40].mxu1 %v2067_v9  ;;  %v2044_v36 = vmax.f32 %v1960_v45, 0.0 }
 0x420   : > { %v1955_v38 = vadd.f32 %v5635_v54, %v1954_v59  ;;  %v2042_v43 = vmax.f32 %v1952_v6, 0.0 }
 0x421   : > { %v2045_v29 = vmax.f32 %v1963_v57, 0.0 }
 0x422   : > { %v2043_v37 = vmax.f32 %v1955_v38, 0.0 }
 0x423   : > { %v2069_v19 = vpack.c.bf16 %v2045_v29, %v2044_v36 }
 0x424   : > { %v2068_v7 = vpack.c.bf16 %v2043_v37, %v2042_v43  ;;  %v4275_v42 = vpop.f32.mrb[48].mxu0 }
 0x425   : > { %v1976_v39 = vadd.f32 %v4275_v42, %v5635_v54  ;;  %v1967_v47 = vpop.f32.mrb[49].mxu0 }
 0x426   : > { %v1968_v17 = vadd.f32 %v5635_v54, %v1967_v47  ;;  %v4276_v18 = vpop.f32.mrb[50].mxu0  ;;  %4317 = vmatprep.mubr.bf16.mxu1 %v2068_v7 }
 0x427   : > { %v1979_v50 = vadd.f32 %v4276_v18, %v5635_v54  ;;  %v1970_v0 = vpop.f32.mrb[51].mxu0  ;;  %4318 = vmatmul.mubr.bf16.gmra.mrb[44].mxu1 %v2069_v19  ;;  %v2048_v45 = vmax.f32 %v1976_v39, 0.0 }
 0x428   : > { %v1971_v9 = vadd.f32 %v5635_v54, %v1970_v0  ;;  %v2046_v6 = vmax.f32 %v1968_v17, 0.0 }
 0x429   : > { %v2049_v57 = vmax.f32 %v1979_v50, 0.0 }
 0x42a   : > { %v2047_v59 = vmax.f32 %v1971_v9, 0.0 }
 0x42b   : > { %v2071_v38 = vpack.c.bf16 %v2049_v57, %v2048_v45 }
 0x42c   : > { %v2070_v36 = vpack.c.bf16 %v2047_v59, %v2046_v6  ;;  %v4279_v29 = vpop.f32.mrb[52].mxu0 }
 0x42d   : > { %v1992_v43 = vadd.f32 %v4279_v29, %v5635_v54  ;;  %v1983_v37 = vpop.f32.mrb[53].mxu0 }
 0x42e   : > { %v1984_v42 = vadd.f32 %v5635_v54, %v1983_v37  ;;  %v4280_v47 = vpop.f32.mrb[54].mxu0  ;;  %4321 = vmatprep.mubr.bf16.mxu1 %v2070_v36 }
 0x42f   : > { %v1995_v7 = vadd.f32 %v4280_v47, %v5635_v54  ;;  %v1986_v18 = vpop.f32.mrb[55].mxu0  ;;  %4322 = vmatmul.mubr.bf16.gmra.mrb[48].mxu1 %v2071_v38  ;;  %v2052_v39 = vmax.f32 %v1992_v43, 0.0 }
 0x430   : > { %v1987_v19 = vadd.f32 %v5635_v54, %v1986_v18  ;;  %v2050_v17 = vmax.f32 %v1984_v42, 0.0 }
 0x431   : > { %v2053_v50 = vmax.f32 %v1995_v7, 0.0 }
 0x432   : > { %v2051_v0 = vmax.f32 %v1987_v19, 0.0 }
 0x433   : > { %v2073_v9 = vpack.c.bf16 %v2053_v50, %v2052_v39 }
 0x434   : > { %v2072_v45 = vpack.c.bf16 %v2051_v0, %v2050_v17  ;;  %v4283_v57 = vpop.f32.mrb[56].mxu0 }
 0x435   : > { %v2008_v6 = vadd.f32 %v4283_v57, %v5635_v54  ;;  %v1999_v59 = vpop.f32.mrb[57].mxu0 }
 0x436   : > { %v2000_v29 = vadd.f32 %v5635_v54, %v1999_v59  ;;  %v4284_v37 = vpop.f32.mrb[58].mxu0  ;;  %4325 = vmatprep.mubr.bf16.mxu1 %v2072_v45 }
 0x437   : > { %v2011_v36 = vadd.f32 %v4284_v37, %v5635_v54  ;;  %v2002_v47 = vpop.f32.mrb[59].mxu0  ;;  %4326 = vmatmul.mubr.bf16.gmra.mrb[52].mxu1 %v2073_v9  ;;  %v2056_v43 = vmax.f32 %v2008_v6, 0.0 }
 0x438   : > { %v2003_v38 = vadd.f32 %v5635_v54, %v2002_v47  ;;  %v2054_v42 = vmax.f32 %v2000_v29, 0.0 }
 0x439   : > { %v2057_v7 = vmax.f32 %v2011_v36, 0.0 }
 0x43a   : > { %v2055_v18 = vmax.f32 %v2003_v38, 0.0 }
 0x43b   : > { %v2075_v19 = vpack.c.bf16 %v2057_v7, %v2056_v43  ;;  %v5672_v7 = vld [vmem:[%s6829_s10] ss:$0 sm:$0xff] }
 0x43c   : > { %v2074_v39 = vpack.c.bf16 %v2055_v18, %v2054_v42  ;;  %v4287_v50 = vpop.f32.mrb[60].mxu0 }
 0x43d   : > { %v2024_v17 = vadd.f32 %v4287_v50, %v5635_v54  ;;  %v2015_v0 = vpop.f32.mrb[61].mxu0 }
 0x43e   : > { %v2016_v57 = vadd.f32 %v5635_v54, %v2015_v0  ;;  %v4288_v59 = vpop.f32.mrb[62].mxu0  ;;  %4329 = vmatprep.mubr.bf16.mxu1 %v2074_v39 }
 0x43f   : > { %v2027_v45 = vadd.f32 %v4288_v59, %v5635_v54  ;;  %v2018_v37 = vpop.f32.mrb[63].mxu0  ;;  %4330 = vmatmul.mubr.bf16.gmra.mrb[56].mxu1 %v2075_v19  ;;  %v2060_v6 = vmax.f32 %v2024_v17, 0.0 }
 0x440   : > { %v2019_v9 = vadd.f32 %v5635_v54, %v2018_v37  ;;  %v2058_v29 = vmax.f32 %v2016_v57, 0.0 }
 0x441   : > { %v2061_v36 = vmax.f32 %v2027_v45, 0.0 }
 0x442   : > { %v2059_v47 = vmax.f32 %v2019_v9, 0.0 }
 0x443   : > { %v2077_v38 = vpack.c.bf16 %v2061_v36, %v2060_v6 }
 0x444   : > { %v2076_v43 = vpack.c.bf16 %v2059_v47, %v2058_v29 }
 0x446   : > { %4333 = vmatprep.mubr.bf16.mxu1 %v2076_v43 }
 0x447   : > { %4334 = vmatmul.mubr.bf16.gmra.mrb[60].mxu1 %v2077_v38 }
 0x4e2   : > { %v4307_v42 = vpop.f32.mrb[32].mxu1 }
 0x4e3   : > { %v2166_v18 = vpop.f32.mrb[33].mxu1  ;;  %v5682_v17 = vadd.f32 %v4307_v42, %v5672_v7 }
 0x4e4   : > { %v5675_v39 = vadd.f32 %v5672_v7, %v2166_v18  ;;  %v4308_v19 = vpop.f32.mrb[34].mxu1 }
 0x4e5   : > { %v2169_v54 = vpop.f32.mrb[35].mxu1  ;;  %v5686_v0 = vadd.f32 %v4308_v19, %v5672_v7 }
 0x4e6   : > { %v5678_v50 = vadd.f32 %v5672_v7, %v2169_v54  ;;  %2293 = vadd.xlane.f32.xlu0 %v5675_v39 }
 0x4e8   : > { %2295 = vadd.xlane.f32.xlu1 %v5678_v50 }
 0x4ea   : > { %2297 = vadd.xlane.f32.xlu0 %v5682_v17  ;;  %v4311_v57 = vpop.f32.mrb[36].mxu1 }
 0x4eb   : > { %v2182_v59 = vpop.f32.mrb[37].mxu1  ;;  %v5698_v36 = vadd.f32 %v4311_v57, %v5672_v7 }
 0x4ec   : > { %v5690_v45 = vadd.f32 %v5672_v7, %v2182_v59  ;;  %2299 = vadd.xlane.f32.xlu1 %v5686_v0  ;;  %v4312_v37 = vpop.f32.mrb[38].mxu1 }
 0x4ed   : > { %v2185_v9 = vpop.f32.mrb[39].mxu1  ;;  %v5702_v29 = vadd.f32 %v4312_v37, %v5672_v7 }
 0x4ee   : > { %v5694_v6 = vadd.f32 %v5672_v7, %v2185_v9  ;;  %2301 = vadd.xlane.f32.xlu0 %v5690_v45 }
 0x4f0   : > { %2303 = vadd.xlane.f32.xlu1 %v5694_v6 }
 0x4f2   : > { %2305 = vadd.xlane.f32.xlu0 %v5698_v36  ;;  %v4315_v47 = vpop.f32.mrb[40].mxu1 }
 0x4f3   : > { %v2198_v38 = vpop.f32.mrb[41].mxu1  ;;  %v5714_v54 = vadd.f32 %v4315_v47, %v5672_v7 }
 0x4f4   : > { %v5706_v43 = vadd.f32 %v5672_v7, %v2198_v38  ;;  %2307 = vadd.xlane.f32.xlu1 %v5702_v29  ;;  %v4316_v42 = vpop.f32.mrb[42].mxu1 }
 0x4f5   : > { %v2201_v18 = vpop.f32.mrb[43].mxu1  ;;  %v5718_v57 = vadd.f32 %v4316_v42, %v5672_v7 }
 0x4f6   : > { %v5710_v19 = vadd.f32 %v5672_v7, %v2201_v18  ;;  %2309 = vadd.xlane.f32.xlu0 %v5706_v43 }
 0x4f8   : > { %2311 = vadd.xlane.f32.xlu1 %v5710_v19 }
 0x4fa   : > { %2313 = vadd.xlane.f32.xlu0 %v5714_v54  ;;  %v4319_v59 = vpop.f32.mrb[44].mxu1 }
 0x4fb   : > { %v2214_v37 = vpop.f32.mrb[45].mxu1  ;;  %v5730_v47 = vadd.f32 %v4319_v59, %v5672_v7 }
 0x4fc   : > { %v5722_v9 = vadd.f32 %v5672_v7, %v2214_v37  ;;  %2315 = vadd.xlane.f32.xlu1 %v5718_v57  ;;  %v4320_v38 = vpop.f32.mrb[46].mxu1 }
 0x4fd   : > { %v2217_v18 = vpop.f32.mrb[47].mxu1  ;;  %v5734_v42 = vadd.f32 %v4320_v38, %v5672_v7 }
 0x4fe   : > { %v5726_v22 = vadd.f32 %v5672_v7, %v2217_v18  ;;  %2317 = vadd.xlane.f32.xlu0 %v5722_v9 }
 0x500   : > { %2319 = vadd.xlane.f32.xlu1 %v5726_v22 }
 0x502   : > { %2321 = vadd.xlane.f32.xlu0 %v5730_v47  ;;  %v4323_v37 = vpop.f32.mrb[48].mxu1 }
 0x503   : > { %v2230_v4 = vpop.f32.mrb[49].mxu1  ;;  %v5746_v59 = vadd.f32 %v4323_v37, %v5672_v7 }
 0x504   : > { %v5738_v53 = vadd.f32 %v5672_v7, %v2230_v4  ;;  %2323 = vadd.xlane.f32.xlu1 %v5734_v42  ;;  %v4324_v18 = vpop.f32.mrb[50].mxu1 }
 0x505   : > { %v2233_v11 = vpop.f32.mrb[51].mxu1  ;;  %v5750_v38 = vadd.f32 %v4324_v18, %v5672_v7 }
 0x506   : > { %v5742_v25 = vadd.f32 %v5672_v7, %v2233_v11  ;;  %2325 = vadd.xlane.f32.xlu0 %v5738_v53 }
 0x508   : > { %2327 = vadd.xlane.f32.xlu1 %v5742_v25 }
 0x50a   : > { %2329 = vadd.xlane.f32.xlu0 %v5746_v59  ;;  %v4327_v4 = vpop.f32.mrb[52].mxu1 }
 0x50b   : > { %v2246_v20 = vpop.f32.mrb[53].mxu1  ;;  %v5762_v37 = vadd.f32 %v4327_v4, %v5672_v7 }
 0x50c   : > { %v5754_v31 = vadd.f32 %v5672_v7, %v2246_v20  ;;  %2331 = vadd.xlane.f32.xlu1 %v5750_v38  ;;  %v4328_v11 = vpop.f32.mrb[54].mxu1 }
 0x50d   : > { %v2249_v15 = vpop.f32.mrb[55].mxu1  ;;  %v5766_v18 = vadd.f32 %v4328_v11, %v5672_v7 }
 0x50e   : > { %v5758_v56 = vadd.f32 %v5672_v7, %v2249_v15  ;;  %2333 = vadd.xlane.f32.xlu0 %v5754_v31 }
 0x510   : > { %2335 = vadd.xlane.f32.xlu1 %v5758_v56 }
 0x512   : > { %2337 = vadd.xlane.f32.xlu0 %v5762_v37  ;;  %v4331_v20 = vpop.f32.mrb[56].mxu1 }
 0x513   : > { %v2262_v48 = vpop.f32.mrb[57].mxu1  ;;  %v5778_v4 = vadd.f32 %v4331_v20, %v5672_v7 }
 0x514   : > { %v5770_v21 = vadd.f32 %v5672_v7, %v2262_v48  ;;  %2339 = vadd.xlane.f32.xlu1 %v5766_v18  ;;  %v4332_v15 = vpop.f32.mrb[58].mxu1 }
 0x515   : > { %v2265_v35 = vpop.f32.mrb[59].mxu1  ;;  %v5782_v11 = vadd.f32 %v4332_v15, %v5672_v7 }
 0x516   : > { %v5774_v32 = vadd.f32 %v5672_v7, %v2265_v35  ;;  %2341 = vadd.xlane.f32.xlu0 %v5770_v21 }
 0x518   : > { %2343 = vadd.xlane.f32.xlu1 %v5774_v32 }
 0x51a   : > { %2345 = vadd.xlane.f32.xlu0 %v5778_v4  ;;  %v4335_v48 = vpop.f32.mrb[60].mxu1 }
 0x51b   : > { %v2278_v44 = vpop.f32.mrb[61].mxu1  ;;  %v5794_v20 = vadd.f32 %v4335_v48, %v5672_v7  ;;  %v4477_v48 = vld [vmem:[%s6832_s13 + $0x18] sm:$0xff]  }
 0x51c   : > { %v5786_v23 = vadd.f32 %v5672_v7, %v2278_v44  ;;  %2347 = vadd.xlane.f32.xlu1 %v5782_v11  ;;  %v4336_v35 = vpop.f32.mrb[62].mxu1  ;;  %v4474_v44 = vld [vmem:[%s6832_s13] sm:$0xff]  }
 0x51d   : > { %v2281_v27 = vpop.f32.mrb[63].mxu1  ;;  %v5798_v15 = vadd.f32 %v4336_v35, %v5672_v7  ;;  %4337 = vmatprep.subr.bf16.mxu0 %v4474_v44 }
 0x51e   : > { %v5790_v55 = vadd.f32 %v5672_v7, %v2281_v27  ;;  %2349 = vadd.xlane.f32.xlu0 %v5786_v23  ;;  %v4475_v27 = vld [vmem:[%s6832_s13 + $0x8] sm:$0xff]   ;;  %4338 = vmatpush3.bf16.msra.mxu0 %v4474_v44  ;;  %v4476_v7 = vld [vmem:[%s6832_s13 + $0x10] sm:$0xff]  }
 0x51f   : > { %4339 = vmatprep.subr.bf16.mxu0 %v4475_v27 }
 0x520   : > { %2351 = vadd.xlane.f32.xlu1 %v5790_v55 }
 0x522   : > { %2353 = vadd.xlane.f32.xlu0 %v5794_v20  ;;  %4340 = vmatpush3.bf16.msra.mxu0 %v4475_v27 }
 0x523   : > { %4341 = vmatprep.subr.bf16.mxu0 %v4476_v7 }
 0x524   : > { %2355 = vadd.xlane.f32.xlu1 %v5798_v15 }
 0x526   : > { %4342 = vmatpush3.bf16.msra.mxu0 %v4476_v7 }
 0x527   : > { %4343 = vmatprep.subr.bf16.mxu0 %v4477_v48 }
 0x52a   : > { %4344 = vmatpush3.bf16.msra.mxu0 %v4477_v48 }
 0x573   : > { %v2294_v35 = vpop.xlane.xlu0 %2293 }
 0x574   : > { %v2357_v12 = vmul.f32 0.015625, %v2294_v35 }
 0x575   : > { %v2296_v34 = vpop.xlane.xlu1 %2295 }
 0x576   : > { %v2389_v60 = vsub.f32 %v5675_v39, %v2357_v12  ;;  %v2358_v44 = vmul.f32 0.015625, %v2296_v34 }
 0x577   : > { %v2298_v33 = vpop.xlane.xlu0 %2297 }
 0x578   : > { %v2390_v46 = vsub.f32 %v5678_v50, %v2358_v44  ;;  %v2359_v13 = vmul.f32 0.015625, %v2298_v33  ;;  %v5818_v27 = vsel %vm1396_vm1, %v2389_v60, 0.0 }
 0x579   : > { %v2300_v63 = vpop.xlane.xlu1 %2299  ;;  %v2453_v7 = vmul.f32 %v5818_v27, %v5818_v27 }
 0x57a   : > { %v2391_v48 = vsub.f32 %v5682_v17, %v2359_v13  ;;  %v2360_v8 = vmul.f32 0.015625, %v2300_v63  ;;  %v5825_v35 = vsel %vm1396_vm1, %v2390_v46, 0.0 }
 0x57b   : > { %2485 = vadd.xlane.f32.xlu0 %v2453_v7  ;;  %v2302_v34 = vpop.xlane.xlu0 %2301  ;;  %v2454_v33 = vmul.f32 %v5825_v35, %v5825_v35 }
 0x57c   : > { %v2392_v12 = vsub.f32 %v5686_v0, %v2360_v8  ;;  %v2361_v60 = vmul.f32 0.015625, %v2302_v34  ;;  %v5832_v39 = vsel %vm1396_vm1, %v2391_v48, 0.0 }
 0x57d   : > { %v2304_v50 = vpop.xlane.xlu1 %2303  ;;  %2487 = vadd.xlane.f32.xlu1 %v2454_v33  ;;  %v2455_v63 = vmul.f32 %v5832_v39, %v5832_v39 }
 0x57e   : > { %v2393_v13 = vsub.f32 %v5690_v45, %v2361_v60  ;;  %v2362_v46 = vmul.f32 0.015625, %v2304_v50  ;;  %v5839_v17 = vsel %vm1396_vm1, %v2392_v12, 0.0 }
 0x57f   : > { %2489 = vadd.xlane.f32.xlu0 %v2455_v63  ;;  %v2306_v44 = vpop.xlane.xlu0 %2305  ;;  %v2456_v8 = vmul.f32 %v5839_v17, %v5839_v17 }
 0x580   : > { %v2394_v0 = vsub.f32 %v5694_v6, %v2362_v46  ;;  %v2363_v7 = vmul.f32 0.015625, %v2306_v44  ;;  %v5846_v48 = vsel %vm1396_vm1, %v2393_v13, 0.0 }
 0x581   : > { %v2308_v34 = vpop.xlane.xlu1 %2307  ;;  %2491 = vadd.xlane.f32.xlu1 %v2456_v8  ;;  %v2457_v45 = vmul.f32 %v5846_v48, %v5846_v48 }
 0x582   : > { %v2395_v33 = vsub.f32 %v5698_v36, %v2363_v7  ;;  %v2364_v12 = vmul.f32 0.015625, %v2308_v34  ;;  %v5853_v60 = vsel %vm1396_vm1, %v2394_v0, 0.0 }
 0x583   : > { %2493 = vadd.xlane.f32.xlu0 %v2457_v45  ;;  %v2310_v50 = vpop.xlane.xlu0 %2309  ;;  %v2458_v6 = vmul.f32 %v5853_v60, %v5853_v60 }
 0x584   : > { %v2396_v63 = vsub.f32 %v5702_v29, %v2364_v12  ;;  %v2365_v13 = vmul.f32 0.015625, %v2310_v50  ;;  %v5860_v46 = vsel %vm1396_vm1, %v2395_v33, 0.0 }
 0x585   : > { %v2312_v44 = vpop.xlane.xlu1 %2311  ;;  %2495 = vadd.xlane.f32.xlu1 %v2458_v6  ;;  %v2459_v36 = vmul.f32 %v5860_v46, %v5860_v46 }
 0x586   : > { %v2397_v8 = vsub.f32 %v5706_v43, %v2365_v13  ;;  %v2366_v0 = vmul.f32 0.015625, %v2312_v44  ;;  %v5867_v7 = vsel %vm1396_vm1, %v2396_v63, 0.0 }
 0x587   : > { %2497 = vadd.xlane.f32.xlu0 %v2459_v36  ;;  %v2314_v34 = vpop.xlane.xlu0 %2313  ;;  %v2460_v29 = vmul.f32 %v5867_v7, %v5867_v7 }
 0x588   : > { %v2398_v45 = vsub.f32 %v5710_v19, %v2366_v0  ;;  %v2367_v33 = vmul.f32 0.015625, %v2314_v34  ;;  %v5874_v12 = vsel %vm1396_vm1, %v2397_v8, 0.0 }
 0x589   : > { %v2316_v50 = vpop.xlane.xlu1 %2315  ;;  %2499 = vadd.xlane.f32.xlu1 %v2460_v29  ;;  %v2461_v43 = vmul.f32 %v5874_v12, %v5874_v12  ;;  %v4478_v29 = vld [vmem:[%s6832_s13 + $0x20] sm:$0xff]  }
 0x58a   : > { %v2399_v6 = vsub.f32 %v5714_v54, %v2367_v33  ;;  %v2368_v63 = vmul.f32 0.015625, %v2316_v50  ;;  %v5881_v13 = vsel %vm1396_vm1, %v2398_v45, 0.0  ;;  %4345 = vmatprep.subr.bf16.mxu0 %v4478_v29 }
 0x58b   : > { %2501 = vadd.xlane.f32.xlu0 %v2461_v43  ;;  %v2318_v44 = vpop.xlane.xlu0 %2317  ;;  %v2462_v19 = vmul.f32 %v5881_v13, %v5881_v13  ;;  %4346 = vmatpush3.bf16.msra.mxu0 %v4478_v29 }
 0x58c   : > { %v2400_v36 = vsub.f32 %v5718_v57, %v2368_v63  ;;  %v2369_v8 = vmul.f32 0.015625, %v2318_v44  ;;  %v5888_v0 = vsel %vm1396_vm1, %v2399_v6, 0.0 }
 0x58d   : > { %v2320_v34 = vpop.xlane.xlu1 %2319  ;;  %2503 = vadd.xlane.f32.xlu1 %v2462_v19  ;;  %v2463_v54 = vmul.f32 %v5888_v0, %v5888_v0 }
 0x58e   : > { %v2401_v45 = vsub.f32 %v5722_v9, %v2369_v8  ;;  %v2370_v33 = vmul.f32 0.015625, %v2320_v34  ;;  %v5898_v57 = vsel %vm1396_vm1, %v2400_v36, 0.0 }
 0x58f   : > { %2505 = vadd.xlane.f32.xlu0 %v2463_v54  ;;  %v2322_v50 = vpop.xlane.xlu0 %2321  ;;  %v2464_v43 = vmul.f32 %v5898_v57, %v5898_v57 }
 0x590   : > { %v2402_v6 = vsub.f32 %v5726_v22, %v2370_v33  ;;  %v2371_v63 = vmul.f32 0.015625, %v2322_v50  ;;  %v5905_v44 = vsel %vm1396_vm1, %v2401_v45, 0.0 }
 0x591   : > { %v2324_v9 = vpop.xlane.xlu1 %2323  ;;  %2507 = vadd.xlane.f32.xlu1 %v2464_v43  ;;  %v2465_v19 = vmul.f32 %v5905_v44, %v5905_v44 }
 0x592   : > { %v2403_v36 = vsub.f32 %v5730_v47, %v2371_v63  ;;  %v2372_v8 = vmul.f32 0.015625, %v2324_v9  ;;  %v5912_v34 = vsel %vm1396_vm1, %v2402_v6, 0.0 }
 0x593   : > { %2509 = vadd.xlane.f32.xlu0 %v2465_v19  ;;  %v2326_v22 = vpop.xlane.xlu0 %2325  ;;  %v2466_v54 = vmul.f32 %v5912_v34, %v5912_v34 }
 0x594   : > { %v2404_v45 = vsub.f32 %v5734_v42, %v2372_v8  ;;  %v2373_v29 = vmul.f32 0.015625, %v2326_v22  ;;  %v5919_v33 = vsel %vm1396_vm1, %v2403_v36, 0.0 }
 0x595   : > { %v2328_v50 = vpop.xlane.xlu1 %2327  ;;  %2511 = vadd.xlane.f32.xlu1 %v2466_v54  ;;  %v2467_v47 = vmul.f32 %v5919_v33, %v5919_v33 }
 0x596   : > { %v2405_v43 = vsub.f32 %v5738_v53, %v2373_v29  ;;  %v2374_v6 = vmul.f32 0.015625, %v2328_v50  ;;  %v5926_v63 = vsel %vm1396_vm1, %v2404_v45, 0.0 }
 0x597   : > { %2513 = vadd.xlane.f32.xlu0 %v2467_v47  ;;  %v2330_v9 = vpop.xlane.xlu0 %2329  ;;  %v2468_v42 = vmul.f32 %v5926_v63, %v5926_v63 }
 0x598   : > { %v2406_v19 = vsub.f32 %v5742_v25, %v2374_v6  ;;  %v2375_v36 = vmul.f32 0.015625, %v2330_v9  ;;  %v5933_v8 = vsel %vm1396_vm1, %v2405_v43, 0.0 }
 0x599   : > { %v2332_v22 = vpop.xlane.xlu1 %2331  ;;  %2515 = vadd.xlane.f32.xlu1 %v2468_v42  ;;  %v2469_v53 = vmul.f32 %v5933_v8, %v5933_v8 }
 0x59a   : > { %v2407_v54 = vsub.f32 %v5746_v59, %v2375_v36  ;;  %v2376_v45 = vmul.f32 0.015625, %v2332_v22  ;;  %v5940_v29 = vsel %vm1396_vm1, %v2406_v19, 0.0 }
 0x59b   : > { %2517 = vadd.xlane.f32.xlu0 %v2469_v53  ;;  %v2334_v50 = vpop.xlane.xlu0 %2333  ;;  %v2470_v25 = vmul.f32 %v5940_v29, %v5940_v29 }
 0x59c   : > { %v2408_v47 = vsub.f32 %v5750_v38, %v2376_v45  ;;  %v2377_v43 = vmul.f32 0.015625, %v2334_v50  ;;  %v5947_v6 = vsel %vm1396_vm1, %v2407_v54, 0.0  ;;  %v4479_v38 = vld [vmem:[%s6832_s13 + $0x28] sm:$0xff]   ;;  %v4480_v50 = vld [vmem:[%s6832_s13 + $0x30] sm:$0xff]  }
 0x59d   : > { %v2336_v9 = vpop.xlane.xlu1 %2335  ;;  %2519 = vadd.xlane.f32.xlu1 %v2470_v25  ;;  %v2471_v59 = vmul.f32 %v5947_v6, %v5947_v6  ;;  %4347 = vmatprep.subr.bf16.mxu0 %v4479_v38 }
 0x59e   : > { %v2409_v42 = vsub.f32 %v5754_v31, %v2377_v43  ;;  %v2378_v19 = vmul.f32 0.015625, %v2336_v9  ;;  %v5954_v36 = vsel %vm1396_vm1, %v2408_v47, 0.0  ;;  %4348 = vmatpush3.bf16.msra.mxu0 %v4479_v38 }
 0x59f   : > { %2521 = vadd.xlane.f32.xlu0 %v2471_v59  ;;  %v2338_v22 = vpop.xlane.xlu0 %2337  ;;  %v2472_v53 = vmul.f32 %v5954_v36, %v5954_v36  ;;  %4349 = vmatprep.subr.bf16.mxu0 %v4480_v50 }
 0x5a0   : > { %v2410_v54 = vsub.f32 %v5758_v56, %v2378_v19  ;;  %v2379_v45 = vmul.f32 0.015625, %v2338_v22  ;;  %v5964_v31 = vsel %vm1396_vm1, %v2409_v42, 0.0 }
 0x5a1   : > { %v2340_v25 = vpop.xlane.xlu1 %2339  ;;  %2523 = vadd.xlane.f32.xlu1 %v2472_v53  ;;  %v2473_v47 = vmul.f32 %v5964_v31, %v5964_v31 }
 0x5a2   : > { %v2411_v43 = vsub.f32 %v5762_v37, %v2379_v45  ;;  %v2380_v9 = vmul.f32 0.015625, %v2340_v25  ;;  %v5974_v56 = vsel %vm1396_vm1, %v2410_v54, 0.0  ;;  %4350 = vmatpush3.bf16.msra.mxu0 %v4480_v50  ;;  %v4481_v54 = vld [vmem:[%s6832_s13 + $0x38] sm:$0xff]  }
 0x5a3   : > { %2525 = vadd.xlane.f32.xlu0 %v2473_v47  ;;  %v2342_v59 = vpop.xlane.xlu0 %2341  ;;  %v2474_v42 = vmul.f32 %v5974_v56, %v5974_v56  ;;  %4351 = vmatprep.subr.bf16.mxu0 %v4481_v54 }
 0x5a4   : > { %v2412_v19 = vsub.f32 %v5766_v18, %v2380_v9  ;;  %v2381_v22 = vmul.f32 0.015625, %v2342_v59  ;;  %v5981_v53 = vsel %vm1396_vm1, %v2411_v43, 0.0 }
 0x5a5   : > { %v2344_v38 = vpop.xlane.xlu1 %2343  ;;  %2527 = vadd.xlane.f32.xlu1 %v2474_v42  ;;  %v2475_v37 = vmul.f32 %v5981_v53, %v5981_v53 }
 0x5a6   : > { %v2413_v45 = vsub.f32 %v5770_v21, %v2381_v22  ;;  %v2382_v25 = vmul.f32 0.015625, %v2344_v38  ;;  %v5991_v18 = vsel %vm1396_vm1, %v2412_v19, 0.0  ;;  %4352 = vmatpush3.bf16.msra.mxu0 %v4481_v54 }
 0x5a7   : > { %2529 = vadd.xlane.f32.xlu0 %v2475_v37  ;;  %v2346_v47 = vpop.xlane.xlu0 %2345  ;;  %v2476_v43 = vmul.f32 %v5991_v18, %v5991_v18 }
 0x5a8   : > { %v2414_v9 = vsub.f32 %v5774_v32, %v2382_v25  ;;  %v2383_v50 = vmul.f32 0.015625, %v2346_v47  ;;  %v5998_v59 = vsel %vm1396_vm1, %v2413_v45, 0.0 }
 0x5a9   : > { %v2348_v42 = vpop.xlane.xlu1 %2347  ;;  %2531 = vadd.xlane.f32.xlu1 %v2476_v43  ;;  %v2477_v21 = vmul.f32 %v5998_v59, %v5998_v59 }
 0x5aa   : > { %v2415_v19 = vsub.f32 %v5778_v4, %v2383_v50  ;;  %v2384_v22 = vmul.f32 0.015625, %v2348_v42  ;;  %v6005_v38 = vsel %vm1396_vm1, %v2414_v9, 0.0 }
 0x5ab   : > { %2533 = vadd.xlane.f32.xlu0 %v2477_v21  ;;  %v2350_v32 = vpop.xlane.xlu0 %2349  ;;  %v2478_v37 = vmul.f32 %v6005_v38, %v6005_v38 }
 0x5ac   : > { %v2416_v45 = vsub.f32 %v5782_v11, %v2384_v22  ;;  %v2385_v25 = vmul.f32 0.015625, %v2350_v32  ;;  %v6012_v47 = vsel %vm1396_vm1, %v2415_v19, 0.0 }
 0x5ad   : > { %2535 = vadd.xlane.f32.xlu1 %v2478_v37  ;;  %v2352_v54 = vpop.xlane.xlu1 %2351  ;;  %v2479_v4 = vmul.f32 %v6012_v47, %v6012_v47 }
 0x5ae   : > { %v2417_v43 = vsub.f32 %v5786_v23, %v2385_v25  ;;  %v2386_v9 = vmul.f32 0.015625, %v2352_v54  ;;  %v6019_v50 = vsel %vm1396_vm1, %v2416_v45, 0.0 }
 0x5af   : > { %6917 = vst [vmem:[#allocation18_spill] sm:$0xff] %v6019_v50  ;;  %2537 = vadd.xlane.f32.xlu0 %v2479_v4  ;;  %v2354_v42 = vpop.xlane.xlu0 %2353  ;;  %v2480_v11 = vmul.f32 %v6019_v50, %v6019_v50 }
 0x5b0   : > { %v2418_v21 = vsub.f32 %v5790_v55, %v2386_v9  ;;  %v2387_v19 = vmul.f32 0.015625, %v2354_v42  ;;  %v6026_v22 = vsel %vm1396_vm1, %v2417_v43, 0.0  ;;  %v4482_v42 = vld [vmem:[%s6834_s15] sm:$0xff]  }
 0x5b1   : > { %6918 = vst [vmem:[#allocation19_spill] sm:$0xff] %v6026_v22  ;;  %2539 = vadd.xlane.f32.xlu1 %v2480_v11  ;;  %v2356_v32 = vpop.xlane.xlu1 %2355  ;;  %v2481_v23 = vmul.f32 %v6026_v22, %v6026_v22  ;;  %4385 = vmatprep.subr.bf16.mxu1 %v4482_v42  ;;  %v4484_v11 = vld [vmem:[%s6834_s15 + $0x10] sm:$0xff]  }
 0x5b2   : > { %v2419_v37 = vsub.f32 %v5794_v20, %v2387_v19  ;;  %v2388_v45 = vmul.f32 0.015625, %v2356_v32  ;;  %v6033_v25 = vsel %vm1396_vm1, %v2418_v21, 0.0  ;;  %4386 = vmatpush3.bf16.msra.mxu1 %v4482_v42  ;;  %v4485_v21 = vld [vmem:[%s6834_s15 + $0x18] sm:$0xff]   ;;  %v4486_v19 = vld [vmem:[%s6834_s15 + $0x20] sm:$0xff]   ;;  %v4487_v32 = vld [vmem:[%s6834_s15 + $0x28] sm:$0xff]  }
 0x5b3   : > { %6919 = vst [vmem:[#allocation20_spill] sm:$0xff] %v6033_v25  ;;  %2541 = vadd.xlane.f32.xlu0 %v2481_v23  ;;  %v2482_v55 = vmul.f32 %v6033_v25, %v6033_v25  ;;  %v4488_v23 = vld [vmem:[%s6834_s15 + $0x30] sm:$0xff]  }
 0x5b4   : > { %v6039_v54 = vsel %vm1396_vm1, %v2419_v37, 0.0  ;;  %v2420_v4 = vsub.f32 %v5798_v15, %v2388_v45  ;;  %v4483_v15 = vld [vmem:[%s6834_s15 + $0x8] sm:$0xff]  }
 0x5b5   : > { %6920 = vst [vmem:[#allocation21_spill] sm:$0xff] %v6039_v54  ;;  %2543 = vadd.xlane.f32.xlu1 %v2482_v55  ;;  %v2483_v43 = vmul.f32 %v6039_v54, %v6039_v54  ;;  %4387 = vmatprep.subr.bf16.mxu1 %v4483_v15 }
 0x5b6   : > { %v6046_v20 = vsel %vm1396_vm1, %v2420_v4, 0.0  ;;  %4388 = vmatpush3.bf16.msra.mxu1 %v4483_v15 }
 0x5b7   : > { %6921 = vst [vmem:[#allocation22_spill] sm:$0xff] %v6046_v20  ;;  %2545 = vadd.xlane.f32.xlu0 %v2483_v43  ;;  %v2484_v9 = vmul.f32 %v6046_v20, %v6046_v20  ;;  %4389 = vmatprep.subr.bf16.mxu1 %v4484_v11 }
 0x5b9   : > { %2547 = vadd.xlane.f32.xlu1 %v2484_v9 }
 0x5ba   : > { %4390 = vmatpush3.bf16.msra.mxu1 %v4484_v11 }
 0x5bb   : > { %4391 = vmatprep.subr.bf16.mxu1 %v4485_v21 }
 0x5be   : > { %4392 = vmatpush3.bf16.msra.mxu1 %v4485_v21 }
 0x5bf   : > { %4393 = vmatprep.subr.bf16.mxu1 %v4486_v19 }
 0x5c2   : > { %4394 = vmatpush3.bf16.msra.mxu1 %v4486_v19 }
 0x5c3   : > { %4395 = vmatprep.subr.bf16.mxu1 %v4487_v32 }
 0x5c6   : > { %4396 = vmatpush3.bf16.msra.mxu1 %v4487_v32 }
 0x5c7   : > { %4397 = vmatprep.subr.bf16.mxu1 %v4488_v23 }
 0x5ca   : > { %4398 = vmatpush3.bf16.msra.mxu1 %v4488_v23 }
 0x608   : > { %v2486_v37 = vpop.xlane.xlu0 %2485 }
 0x609   : > { %v2549_v45 = vmul.f32 0.015625, %v2486_v37 }
 0x60a   : > { %v2488_v55 = vpop.xlane.xlu1 %2487 }
 0x60b   : > { %v2581_v4 = vadd.f32 1e-05, %v2549_v45  ;;  %v2550_v43 = vmul.f32 0.015625, %v2488_v55 }
 0x60c   : > { %v2490_v9 = vpop.xlane.xlu0 %2489 }
 0x60d   : > { %4554 = vrsqrt.f32 %v2581_v4  ;;  %v2582_v42 = vadd.f32 1e-05, %v2550_v43  ;;  %v2551_v15 = vmul.f32 0.015625, %v2490_v9  ;;  %v6074_v43 = vld [vmem:[%s6830_s11] ss:$0 sm:$0xff] }
 0x60e   : > { %v2492_v11 = vpop.xlane.xlu1 %2491 }
 0x60f   : > { %4556 = vrsqrt.f32 %v2582_v42  ;;  %v2583_v21 = vadd.f32 1e-05, %v2551_v15  ;;  %v2552_v19 = vmul.f32 0.015625, %v2492_v11 }
 0x610   : > { %v2494_v28 = vpop.xlane.xlu0 %2493 }
 0x611   : > { %4558 = vrsqrt.f32 %v2583_v21  ;;  %v2584_v20 = vadd.f32 1e-05, %v2552_v19  ;;  %v2553_v54 = vmul.f32 0.015625, %v2494_v28 }
 0x612   : > { %v2496_v32 = vpop.xlane.xlu1 %2495 }
 0x613   : > { %4560 = vrsqrt.f32 %v2584_v20  ;;  %v2585_v23 = vadd.f32 1e-05, %v2553_v54  ;;  %v2554_v25 = vmul.f32 0.015625, %v2496_v32 }
 0x614   : > { %v2498_v37 = vpop.xlane.xlu0 %2497 }
 0x615   : > { %4562 = vrsqrt.f32 %v2585_v23  ;;  %v2586_v45 = vadd.f32 1e-05, %v2554_v25  ;;  %v2555_v55 = vmul.f32 0.015625, %v2498_v37  ;;  %v6080_v25 = vld [vmem:[%s6831_s12] ss:$0 sm:$0xff] }
 0x616   : > { %v2500_v22 = vpop.xlane.xlu1 %2499 }
 0x617   : > { %v4555_v4 = vpop.eup %4554  ;;  %4564 = vrsqrt.f32 %v2586_v45  ;;  %v2587_v9 = vadd.f32 1e-05, %v2555_v55  ;;  %v2556_v42 = vmul.f32 0.015625, %v2500_v22 }
 0x618   : > { %v2502_v15 = vpop.xlane.xlu0 %2501  ;;  %v2645_v28 = vmul.f32 %v4555_v4, %v5818_v27 }
 0x619   : > { %v4557_v20 = vpop.eup %4556  ;;  %4566 = vrsqrt.f32 %v2587_v9  ;;  %v2588_v54 = vadd.f32 1e-05, %v2556_v42  ;;  %v2557_v11 = vmul.f32 0.015625, %v2502_v15 }
 0x61a   : > { %v2504_v21 = vpop.xlane.xlu1 %2503  ;;  %v2646_v19 = vmul.f32 %v4557_v20, %v5825_v35  ;;  %v2683_v32 = vmul.f32 %v6074_v43, %v2645_v28 }
 0x61b   : > { %v4559_v23 = vpop.eup %4558  ;;  %4568 = vrsqrt.f32 %v2588_v54  ;;  %v2589_v22 = vadd.f32 1e-05, %v2557_v11  ;;  %v2558_v37 = vmul.f32 0.015625, %v2504_v21  ;;  %v6922_v54 = vmax.f32 %v5377_v52, 0.0 }
 0x61c   : > { %v2647_v27 = vmul.f32 %v4559_v23, %v5832_v39  ;;  %v2506_v45 = vpop.xlane.xlu0 %2505  ;;  %v2684_v55 = vmul.f32 %v6074_v43, %v2646_v19  ;;  %v2721_v4 = vadd.f32 %v6080_v25, %v2683_v32 }
 0x61d   : > { %v4561_v9 = vpop.eup %4560  ;;  %4570 = vrsqrt.f32 %v2589_v22  ;;  %v2590_v42 = vadd.f32 1e-05, %v2558_v37  ;;  %v2559_v15 = vmul.f32 0.015625, %v2506_v45  ;;  %v6923_v22 = vmax.f32 %v5384_v14, 0.0 }
 0x61e   : > { %v2685_v50 = vmul.f32 %v6074_v43, %v2647_v27  ;;  %v2648_v35 = vmul.f32 %v4561_v9, %v5839_v17  ;;  %v2508_v28 = vpop.xlane.xlu1 %2507  ;;  %v2722_v20 = vadd.f32 %v6080_v25, %v2684_v55  ;;  %v2753_v11 = vadd.f32 %v2721_v4, %v6922_v54 }
 0x61f   : > { %v4563_v39 = vpop.eup %4562  ;;  %4572 = vrsqrt.f32 %v2590_v42  ;;  %v2591_v21 = vadd.f32 1e-05, %v2559_v15  ;;  %v2560_v19 = vmul.f32 0.015625, %v2508_v28  ;;  %v6924_v15 = vmax.f32 %v5388_v2, 0.0 }
 0x620   : > { %v2686_v32 = vmul.f32 %v6074_v43, %v2648_v35  ;;  %v2510_v23 = vpop.xlane.xlu0 %2509  ;;  %v2754_v37 = vadd.f32 %v2722_v20, %v6923_v22  ;;  %v2785_v45 = vmax.f32 %v2753_v11, 0.0  ;;  %v2723_v27 = vadd.f32 %v6080_v25, %v2685_v50 }
 0x621   : > { %v4565_v17 = vpop.eup %4564  ;;  %4574 = vrsqrt.f32 %v2591_v21  ;;  %v2592_v9 = vadd.f32 1e-05, %v2560_v19  ;;  %v2561_v55 = vmul.f32 0.015625, %v2510_v23  ;;  %v2649_v52 = vmul.f32 %v4563_v39, %v5846_v48 }
 0x622   : > { %v2512_v4 = vpop.xlane.xlu1 %2511  ;;  %v2786_v54 = vmax.f32 %v2754_v37, 0.0  ;;  %v2724_v42 = vadd.f32 %v6080_v25, %v2686_v32  ;;  %v2755_v35 = vadd.f32 %v2723_v27, %v6924_v15  ;;  %v2650_v28 = vmul.f32 %v4565_v17, %v5853_v60 }
 0x623   : > { %v4567_v14 = vpop.eup %4566  ;;  %4576 = vrsqrt.f32 %v2592_v9  ;;  %v2593_v20 = vadd.f32 1e-05, %v2561_v55  ;;  %v2562_v11 = vmul.f32 0.015625, %v2512_v4  ;;  %v2687_v50 = vmul.f32 %v6074_v43, %v2649_v52 }
 0x624   : > { %v2514_v21 = vpop.xlane.xlu0 %2513  ;;  %v2853_v19 = vpack.c.bf16 %v2786_v54, %v2785_v45  ;;  %v6925_v23 = vmax.f32 %v5399_v26, 0.0  ;;  %v2787_v39 = vmax.f32 %v2755_v35, 0.0  ;;  %v2688_v22 = vmul.f32 %v6074_v43, %v2650_v28 }
 0x625   : > { %v4569_v32 = vpop.eup %4568  ;;  %4578 = vrsqrt.f32 %v2593_v20  ;;  %v2594_v2 = vadd.f32 1e-05, %v2562_v11  ;;  %v2563_v37 = vmul.f32 0.015625, %v2514_v21  ;;  %v2725_v60 = vadd.f32 %v6080_v25, %v2687_v50 }
 0x626   : > { %v2756_v48 = vadd.f32 %v2724_v42, %v6925_v23  ;;  %v2516_v27 = vpop.xlane.xlu1 %2515  ;;  %4353 = vmatprep.mubr.bf16.mxu0 %v2853_v19  ;;  %v2726_v9 = vadd.f32 %v6080_v25, %v2688_v22  ;;  %v2651_v55 = vmul.f32 %v4567_v14, %v5860_v46  ;;  %v2652_v45 = vmul.f32 %v4569_v32, %v5867_v7 }
 0x627   : > { %v4571_v26 = vpop.eup %4570  ;;  %4580 = vrsqrt.f32 %v2594_v2  ;;  %v2595_v52 = vadd.f32 1e-05, %v2563_v37  ;;  %v2564_v4 = vmul.f32 0.015625, %v2516_v27  ;;  %v6926_v54 = vmax.f32 %v5407_v10, 0.0 }
 0x628   : > { %v2788_v17 = vmax.f32 %v2756_v48, 0.0  ;;  %v2518_v15 = vpop.xlane.xlu0 %2517  ;;  %v6927_v28 = vmax.f32 %v5415_v61, 0.0  ;;  %v2689_v11 = vmul.f32 %v6074_v43, %v2651_v55  ;;  %v2690_v50 = vmul.f32 %v6074_v43, %v2652_v45 }
 0x629   : > { %v2757_v42 = vadd.f32 %v2725_v60, %v6926_v54  ;;  %v4573_v21 = vpop.eup %4572  ;;  %4582 = vrsqrt.f32 %v2595_v52  ;;  %v2596_v46 = vadd.f32 1e-05, %v2564_v4  ;;  %v2565_v7 = vmul.f32 0.015625, %v2518_v15 }
 0x62a   : > { %v2854_v35 = vpack.c.bf16 %v2788_v17, %v2787_v39  ;;  %v2758_v20 = vadd.f32 %v2726_v9, %v6927_v28  ;;  %v2520_v19 = vpop.xlane.xlu1 %2519  ;;  %v2727_v10 = vadd.f32 %v6080_v25, %v2689_v11  ;;  %v2728_v48 = vadd.f32 %v6080_v25, %v2690_v50 }
 0x62b   : > { %v2789_v14 = vmax.f32 %v2757_v42, 0.0  ;;  %v2653_v39 = vmul.f32 %v4571_v26, %v5874_v12  ;;  %v4575_v61 = vpop.eup %4574  ;;  %4584 = vrsqrt.f32 %v2596_v46  ;;  %v2597_v22 = vadd.f32 1e-05, %v2565_v7 }
 0x62c   : > { %4354 = vmatmul.mubr.bf16.vlgmr.msra.gmra.mrb[64].mxu0 %v2854_v35  ;;  %v2790_v23 = vmax.f32 %v2758_v20, 0.0  ;;  %v2566_v32 = vmul.f32 0.015625, %v2520_v19  ;;  %v2654_v2 = vmul.f32 %v4573_v21, %v5881_v13  ;;  %v2522_v37 = vpop.xlane.xlu0 %2521  ;;  %v6928_v27 = vmax.f32 %v5420_v5, 0.0 }
 0x62d   : > { %v6929_v9 = vmax.f32 %v5431_v58, 0.0  ;;  %v2691_v45 = vmul.f32 %v6074_v43, %v2653_v39  ;;  %v4577_v52 = vpop.eup %4576  ;;  %4586 = vrsqrt.f32 %v2597_v22  ;;  %v2567_v12 = vmul.f32 0.015625, %v2522_v37 }
 0x62e   : > { %v2855_v60 = vpack.c.bf16 %v2790_v23, %v2789_v14  ;;  %v2759_v17 = vadd.f32 %v2727_v10, %v6928_v27  ;;  %v2598_v4 = vadd.f32 1e-05, %v2566_v32  ;;  %v2692_v26 = vmul.f32 %v6074_v43, %v2654_v2  ;;  %v2524_v54 = vpop.xlane.xlu1 %2523 }
 0x62f   : > { %v2760_v55 = vadd.f32 %v2728_v48, %v6929_v9  ;;  %v2729_v15 = vadd.f32 %v6080_v25, %v2691_v45  ;;  %v2655_v5 = vmul.f32 %v4575_v61, %v5888_v0  ;;  %v4579_v35 = vpop.eup %4578  ;;  %v2599_v58 = vadd.f32 1e-05, %v2567_v12 }
 0x630   : > { %4357 = vmatprep.mubr.bf16.mxu0 %v2855_v60  ;;  %v2791_v42 = vmax.f32 %v2759_v17, 0.0  ;;  %4588 = vrsqrt.f32 %v2598_v4  ;;  %v2568_v28 = vmul.f32 0.015625, %v2524_v54  ;;  %v2730_v20 = vadd.f32 %v6080_v25, %v2692_v26  ;;  %v2526_v11 = vpop.xlane.xlu0 %2525 }
 0x631   : > { %v2792_v13 = vmax.f32 %v2760_v55, 0.0  ;;  %v6930_v21 = vmax.f32 %v5439_v62, 0.0  ;;  %v2656_v7 = vmul.f32 %v4577_v52, %v5898_v57  ;;  %v2693_v14 = vmul.f32 %v6074_v43, %v2655_v5  ;;  %v4581_v19 = vpop.eup %4580 }
 0x632   : > { %4590 = vrsqrt.f32 %v2599_v58  ;;  %v2600_v23 = vadd.f32 1e-05, %v2568_v28  ;;  %v2569_v10 = vmul.f32 0.015625, %v2526_v11  ;;  %v6931_v0 = vmax.f32 %v5447_v3, 0.0  ;;  %v2528_v39 = vpop.xlane.xlu1 %2527 }
 0x633   : > { %v2856_v50 = vpack.c.bf16 %v2792_v13, %v2791_v42  ;;  %v2761_v46 = vadd.f32 %v2729_v15, %v6930_v21  ;;  %v2694_v22 = vmul.f32 %v6074_v43, %v2656_v7  ;;  %v2731_v32 = vadd.f32 %v6080_v25, %v2693_v14  ;;  %v4583_v2 = vpop.eup %4582 }
 0x634   : > { %v2762_v48 = vadd.f32 %v2730_v20, %v6931_v0  ;;  %v2657_v62 = vmul.f32 %v4579_v35, %v5905_v44  ;;  %4592 = vrsqrt.f32 %v2600_v23  ;;  %v2601_v57 = vadd.f32 1e-05, %v2569_v10  ;;  %v2530_v27 = vpop.xlane.xlu0 %2529 }
 0x635   : > { %4358 = vmatmul.mubr.bf16.gmra.mrb[68].mxu0 %v2856_v50  ;;  %v2793_v61 = vmax.f32 %v2761_v46, 0.0  ;;  %v2570_v37 = vmul.f32 0.015625, %v2528_v39  ;;  %v2732_v17 = vadd.f32 %v6080_v25, %v2694_v22  ;;  %v6932_v3 = vmax.f32 %v5452_v40, 0.0  ;;  %v4585_v52 = vpop.eup %4584 }
 0x636   : > { %v2794_v60 = vmax.f32 %v2762_v48, 0.0  ;;  %v2658_v55 = vmul.f32 %v4581_v19, %v5912_v34  ;;  %v2695_v45 = vmul.f32 %v6074_v43, %v2657_v62  ;;  %4594 = vrsqrt.f32 %v2601_v57  ;;  %v2532_v26 = vpop.xlane.xlu1 %2531 }
 0x637   : > { %v2763_v9 = vadd.f32 %v2731_v32, %v6932_v3  ;;  %v2602_v4 = vadd.f32 1e-05, %v2570_v37  ;;  %v2571_v12 = vmul.f32 0.015625, %v2530_v27  ;;  %v6933_v54 = vmax.f32 %v5463_v1, 0.0  ;;  %v4587_v40 = vpop.eup %4586 }
 0x638   : > { %v2857_v44 = vpack.c.bf16 %v2794_v60, %v2793_v61  ;;  %v2696_v15 = vmul.f32 %v6074_v43, %v2658_v55  ;;  %v2733_v5 = vadd.f32 %v6080_v25, %v2695_v45  ;;  %v2572_v34 = vmul.f32 0.015625, %v2532_v26  ;;  %v2534_v28 = vpop.xlane.xlu0 %2533 }
 0x639   : > { %v2764_v42 = vadd.f32 %v2732_v17, %v6933_v54  ;;  %v2795_v13 = vmax.f32 %v2763_v9, 0.0  ;;  %4596 = vrsqrt.f32 %v2602_v4  ;;  %v2603_v35 = vadd.f32 1e-05, %v2571_v12 }
 0x63a   : > { %4361 = vmatprep.mubr.bf16.mxu0 %v2857_v44  ;;  %v2659_v58 = vmul.f32 %v4583_v2, %v5919_v33  ;;  %v2734_v11 = vadd.f32 %v6080_v25, %v2696_v15  ;;  %v6934_v50 = vmax.f32 %v5471_v41, 0.0  ;;  %v2660_v21 = vmul.f32 %v4585_v52, %v5926_v63  ;;  %v4589_v46 = vpop.eup %4588  ;;  %v2536_v23 = vpop.xlane.xlu1 %2535 }
 0x63b   : > { %v2796_v20 = vmax.f32 %v2764_v42, 0.0  ;;  %4598 = vrsqrt.f32 %v2603_v35  ;;  %v2604_v7 = vadd.f32 1e-05, %v2572_v34  ;;  %v2573_v14 = vmul.f32 0.015625, %v2534_v28 }
 0x63c   : > { %v2765_v1 = vadd.f32 %v2733_v5, %v6934_v50  ;;  %v2697_v19 = vmul.f32 %v6074_v43, %v2659_v58  ;;  %v6935_v0 = vmax.f32 %v5479_v16, 0.0  ;;  %v2698_v39 = vmul.f32 %v6074_v43, %v2660_v21  ;;  %v4591_v61 = vpop.eup %4590  ;;  %v2538_v32 = vpop.xlane.xlu0 %2537 }
 0x63d   : > { %v2858_v10 = vpack.c.bf16 %v2796_v20, %v2795_v13  ;;  %4600 = vrsqrt.f32 %v2604_v7  ;;  %v2605_v41 = vadd.f32 1e-05, %v2573_v14  ;;  %v2574_v22 = vmul.f32 0.015625, %v2536_v23 }
 0x63e   : > { %v2766_v33 = vadd.f32 %v2734_v11, %v6935_v0  ;;  %v2797_v48 = vmax.f32 %v2765_v1, 0.0  ;;  %v2735_v63 = vadd.f32 %v6080_v25, %v2697_v19  ;;  %v2736_v2 = vadd.f32 %v6080_v25, %v2698_v39  ;;  %v4593_v16 = vpop.eup %4592  ;;  %v2540_v9 = vpop.xlane.xlu1 %2539 }
 0x63f   : > { %4362 = vmatmul.mubr.bf16.gmra.mrb[72].mxu0 %v2858_v10  ;;  %v2661_v57 = vmul.f32 %v4587_v40, %v5933_v8  ;;  %v2662_v37 = vmul.f32 %v4589_v46, %v5940_v29  ;;  %4602 = vrsqrt.f32 %v2605_v41  ;;  %v2606_v60 = vadd.f32 1e-05, %v2574_v22 }
 0x640   : > { %v2798_v62 = vmax.f32 %v2766_v33, 0.0  ;;  %v2575_v27 = vmul.f32 0.015625, %v2538_v32  ;;  %v6936_v17 = vmax.f32 %v5484_v30, 0.0  ;;  %v6937_v45 = vmax.f32 %v5495_v49, 0.0  ;;  %v4595_v44 = vpop.eup %4594  ;;  %v2542_v54 = vpop.xlane.xlu0 %2541 }
 0x641   : > { %v2699_v4 = vmul.f32 %v6074_v43, %v2661_v57  ;;  %v2700_v12 = vmul.f32 %v6074_v43, %v2662_v37  ;;  %4604 = vrsqrt.f32 %v2606_v60  ;;  %v2576_v29 = vmul.f32 0.015625, %v2540_v9 }
 0x642   : > { %v2767_v3 = vadd.f32 %v2735_v63, %v6936_v17  ;;  %v2859_v55 = vpack.c.bf16 %v2798_v62, %v2797_v48  ;;  %v2768_v52 = vadd.f32 %v2736_v2, %v6937_v45  ;;  %v2607_v8 = vadd.f32 1e-05, %v2575_v27  ;;  %v2544_v34 = vpop.xlane.xlu1 %2543 }
 0x643   : > { %v2737_v30 = vadd.f32 %v6080_v25, %v2699_v4  ;;  %v2738_v13 = vadd.f32 %v6080_v25, %v2700_v12  ;;  %v2663_v15 = vmul.f32 %v4591_v61, %v5947_v6  ;;  %v4597_v49 = vpop.eup %4596  ;;  %v2608_v5 = vadd.f32 1e-05, %v2576_v29  ;;  %v6940_v61 = vld [vmem:[#allocation4_spill] sm:$0xff]  ;;  %v6944_v4 = vld [vmem:[#allocation6_spill] sm:$0xff] }
 0x644   : > { %v2799_v26 = vmax.f32 %v2767_v3, 0.0  ;;  %4365 = vmatprep.mubr.bf16.mxu0 %v2859_v55  ;;  %v2800_v42 = vmax.f32 %v2768_v52, 0.0  ;;  %4606 = vrsqrt.f32 %v2607_v8  ;;  %v2577_v40 = vmul.f32 0.015625, %v2542_v54  ;;  %v2546_v14 = vpop.xlane.xlu0 %2545 }
 0x645   : > { %v2664_v35 = vmul.f32 %v4593_v16, %v5954_v36  ;;  %v6938_v28 = vmax.f32 %v5503_v24, 0.0  ;;  %v6939_v11 = vmax.f32 %v5511_v51, 0.0  ;;  %v2701_v1 = vmul.f32 %v6074_v43, %v2663_v15  ;;  %v4599_v21 = vpop.eup %4598 }
 0x646   : > { %v2860_v58 = vpack.c.bf16 %v2800_v42, %v2799_v26  ;;  %4608 = vrsqrt.f32 %v2608_v5  ;;  %v2609_v46 = vadd.f32 1e-05, %v2577_v40  ;;  %v2578_v6 = vmul.f32 0.015625, %v2544_v34  ;;  %v2548_v48 = vpop.xlane.xlu1 %2547 }
 0x647   : > { %v2769_v20 = vadd.f32 %v2737_v30, %v6938_v28  ;;  %v2770_v50 = vadd.f32 %v2738_v13, %v6939_v11  ;;  %v2702_v7 = vmul.f32 %v6074_v43, %v2664_v35  ;;  %v2739_v23 = vadd.f32 %v6080_v25, %v2701_v1  ;;  %v4601_v10 = vpop.eup %4600  ;;  %v6946_v30 = vld [vmem:[#allocation7_spill] sm:$0xff]  ;;  %v6948_v28 = vld [vmem:[#allocation8_spill] sm:$0xff] }
 0x648   : > { %4366 = vmatmul.mubr.bf16.gmra.mrb[76].mxu0 %v2860_v58  ;;  %v2665_v24 = vmul.f32 %v4595_v44, %v5964_v31  ;;  %4610 = vrsqrt.f32 %v2609_v46  ;;  %v2610_v51 = vadd.f32 1e-05, %v2578_v6  ;;  %v2579_v0 = vmul.f32 0.015625, %v2546_v14  ;;  %v6942_v31 = vld [vmem:[#allocation5_spill] sm:$0xff] }
 0x649   : > { %v2801_v19 = vmax.f32 %v2769_v20, 0.0  ;;  %v2802_v36 = vmax.f32 %v2770_v50, 0.0  ;;  %v2740_v33 = vadd.f32 %v6080_v25, %v2702_v7  ;;  %v6941_v41 = vmax.f32 %v6940_v61, 0.0  ;;  %v4603_v62 = vpop.eup %4602  ;;  %v6950_v50 = vld [vmem:[#allocation18_spill] sm:$0xff]  ;;  %v6951_v46 = vld [vmem:[#allocation9_spill] sm:$0xff] }
 0x64a   : > { %v2666_v63 = vmul.f32 %v4597_v49, %v5974_v56  ;;  %v2703_v32 = vmul.f32 %v6074_v43, %v2665_v24  ;;  %4612 = vrsqrt.f32 %v2610_v51  ;;  %v2611_v2 = vadd.f32 1e-05, %v2579_v0  ;;  %v6953_v24 = vld [vmem:[#allocation10_spill] sm:$0xff] }
 0x64b   : > { %v2861_v39 = vpack.c.bf16 %v2802_v36, %v2801_v19  ;;  %v2771_v22 = vadd.f32 %v2739_v23, %v6941_v41  ;;  %v2580_v57 = vmul.f32 0.015625, %v2548_v48  ;;  %v6943_v37 = vmax.f32 %v6942_v31, 0.0  ;;  %v4605_v9 = vpop.eup %4604  ;;  %v6955_v48 = vld [vmem:[#allocation11_spill] sm:$0xff] }
 0x64c   : > { %v2704_v27 = vmul.f32 %v6074_v43, %v2666_v63  ;;  %v2741_v17 = vadd.f32 %v6080_v25, %v2703_v32  ;;  %v2667_v3 = vmul.f32 %v4599_v21, %v5981_v53  ;;  %4614 = vrsqrt.f32 %v2611_v2  ;;  %v6958_v2 = vld [vmem:[#allocation20_spill] sm:$0xff] }
 0x64d   : > { %v2772_v16 = vadd.f32 %v2740_v33, %v6943_v37  ;;  %4369 = vmatprep.mubr.bf16.mxu0 %v2861_v39  ;;  %v2803_v60 = vmax.f32 %v2771_v22, 0.0  ;;  %v2612_v56 = vadd.f32 1e-05, %v2580_v57  ;;  %v2668_v45 = vmul.f32 %v4601_v10, %v5991_v18  ;;  %v6957_v22 = vld [vmem:[#allocation19_spill] sm:$0xff] }
 0x64e   : > { %v2742_v52 = vadd.f32 %v6080_v25, %v2704_v27  ;;  %v6945_v12 = vmax.f32 %v6944_v4, 0.0  ;;  %v2705_v8 = vmul.f32 %v6074_v43, %v2667_v3  ;;  %v2669_v29 = vmul.f32 %v4603_v62, %v5998_v59  ;;  %v4607_v26 = vpop.eup %4606 }
 0x64f   : > { %v2804_v55 = vmax.f32 %v2772_v16, 0.0  ;;  %4616 = vrsqrt.f32 %v2612_v56  ;;  %v2706_v53 = vmul.f32 %v6074_v43, %v2668_v45  ;;  %v2670_v42 = vmul.f32 %v4605_v9, %v6005_v38  ;;  %v6961_v9 = vld [vmem:[#allocation13_spill] sm:$0xff] }
 0x650   : > { %v2773_v44 = vadd.f32 %v2741_v17, %v6945_v12  ;;  %v6947_v13 = vmax.f32 %v6946_v30, 0.0  ;;  %v2743_v18 = vadd.f32 %v6080_v25, %v2705_v8  ;;  %v2707_v49 = vmul.f32 %v6074_v43, %v2669_v29  ;;  %v4609_v5 = vpop.eup %4608 }
 0x651   : > { %v2862_v54 = vpack.c.bf16 %v2804_v55, %v2803_v60  ;;  %v2744_v35 = vadd.f32 %v6080_v25, %v2706_v53  ;;  %v2708_v59 = vmul.f32 %v6074_v43, %v2670_v42  ;;  %v2671_v34 = vmul.f32 %v4607_v26, %v6012_v47  ;;  %v6959_v60 = vld [vmem:[#allocation12_spill] sm:$0xff] }
 0x652   : > { %v2774_v15 = vadd.f32 %v2742_v52, %v6947_v13  ;;  %v2805_v40 = vmax.f32 %v2773_v44, 0.0  ;;  %v6949_v20 = vmax.f32 %v6948_v28, 0.0  ;;  %v2745_v11 = vadd.f32 %v6080_v25, %v2707_v49  ;;  %v4611_v21 = vpop.eup %4610  ;;  %v6963_v52 = vld [vmem:[#allocation21_spill] sm:$0xff]  ;;  %v6965_v13 = vld [vmem:[#allocation14_spill] sm:$0xff]  ;;  %v6967_v49 = vld [vmem:[#allocation15_spill] sm:$0xff] }
 0x653   : > { %4370 = vmatmul.mubr.bf16.gmra.mrb[80].mxu0 %v2862_v54  ;;  %v2672_v1 = vmul.f32 %v4609_v5, %v6950_v50  ;;  %v6952_v6 = vmax.f32 %v6951_v46, 0.0  ;;  %v2746_v14 = vadd.f32 %v6080_v25, %v2708_v59  ;;  %v2709_v19 = vmul.f32 %v6074_v43, %v2671_v34  ;;  %v6964_v54 = vld [vmem:[#allocation22_spill] sm:$0xff] }
 0x654   : > { %v2806_v58 = vmax.f32 %v2774_v15, 0.0  ;;  %v2775_v38 = vadd.f32 %v2743_v18, %v6949_v20  ;;  %v6954_v47 = vmax.f32 %v6953_v24, 0.0  ;;  %v4613_v0 = vpop.eup %4612  ;;  %v6956_v39 = vmax.f32 %v6955_v48, 0.0 }
 0x655   : > { %v2776_v7 = vadd.f32 %v2744_v35, %v6952_v6  ;;  %v2710_v51 = vmul.f32 %v6074_v43, %v2672_v1  ;;  %v2747_v41 = vadd.f32 %v6080_v25, %v2709_v19  ;;  %v2673_v63 = vmul.f32 %v4611_v21, %v6957_v22  ;;  %v6971_v21 = vld [vmem:[#allocation17_spill] sm:$0xff] }
 0x656   : > { %v2863_v36 = vpack.c.bf16 %v2806_v58, %v2805_v40  ;;  %v2807_v23 = vmax.f32 %v2775_v38, 0.0  ;;  %v2777_v10 = vadd.f32 %v2745_v11, %v6954_v47  ;;  %v2778_v61 = vadd.f32 %v2746_v14, %v6956_v39  ;;  %v4615_v31 = vpop.eup %4614  ;;  %v6969_v38 = vld [vmem:[#allocation16_spill] sm:$0xff] }
 0x657   : > { %v2808_v33 = vmax.f32 %v2776_v7, 0.0  ;;  %v2748_v62 = vadd.f32 %v6080_v25, %v2710_v51  ;;  %v2674_v57 = vmul.f32 %v4613_v0, %v6958_v2  ;;  %v6960_v27 = vmax.f32 %v6959_v60, 0.0 }
 0x658   : > { %4373 = vmatprep.mubr.bf16.mxu0 %v2863_v36  ;;  %v2809_v32 = vmax.f32 %v2777_v10, 0.0  ;;  %v2810_v16 = vmax.f32 %v2778_v61, 0.0  ;;  %v2711_v3 = vmul.f32 %v6074_v43, %v2673_v63  ;;  %v6962_v56 = vmax.f32 %v6961_v9, 0.0 }
 0x659   : > { %v2864_v37 = vpack.c.bf16 %v2808_v33, %v2807_v23  ;;  %v2779_v17 = vadd.f32 %v2747_v41, %v6960_v27  ;;  %v2712_v45 = vmul.f32 %v6074_v43, %v2674_v57  ;;  %v2675_v4 = vmul.f32 %v4615_v31, %v6963_v52  ;;  %v4617_v12 = vpop.eup %4616 }
 0x65a   : > { %v2780_v55 = vadd.f32 %v2748_v62, %v6962_v56  ;;  %v2865_v44 = vpack.c.bf16 %v2810_v16, %v2809_v32  ;;  %v2749_v8 = vadd.f32 %v6080_v25, %v2711_v3  ;;  %v2676_v53 = vmul.f32 %v4617_v12, %v6964_v54 }
 0x65b   : > { %4374 = vmatmul.mubr.bf16.gmra.mrb[84].mxu0 %v2864_v37  ;;  %v2750_v26 = vadd.f32 %v6080_v25, %v2712_v45  ;;  %v2713_v42 = vmul.f32 %v6074_v43, %v2675_v4  ;;  %v2811_v30 = vmax.f32 %v2779_v17, 0.0  ;;  %v6966_v15 = vmax.f32 %v6965_v13, 0.0 }
 0x65c   : > { %v2812_v29 = vmax.f32 %v2780_v55, 0.0  ;;  %4377 = vmatprep.mubr.bf16.mxu0 %v2865_v44  ;;  %v6968_v5 = vmax.f32 %v6967_v49, 0.0  ;;  %v2714_v35 = vmul.f32 %v6074_v43, %v2676_v53  ;;  %v6970_v11 = vmax.f32 %v6969_v38, 0.0  ;;  %v4489_v43 = vld [vmem:[%s6834_s15 + $0x38] sm:$0xff]  }
 0x65d   : > { %v2781_v18 = vadd.f32 %v2749_v8, %v6966_v15  ;;  %v2751_v59 = vadd.f32 %v6080_v25, %v2713_v42  ;;  %v6972_v46 = vmax.f32 %v6971_v21, 0.0  ;;  %4399 = vmatprep.subr.bf16.mxu1 %v4489_v43 }
 0x65e   : > { %v2782_v40 = vadd.f32 %v2750_v26, %v6968_v5  ;;  %v2866_v34 = vpack.c.bf16 %v2812_v29, %v2811_v30  ;;  %v2752_v20 = vadd.f32 %v6080_v25, %v2714_v35  ;;  %4400 = vmatpush3.bf16.msra.mxu1 %v4489_v43  ;;  %v6247_v25 = vld [vmem:[%s6833_s14] ss:$0 sm:$0xff] }
 0x65f   : > { %v2813_v58 = vmax.f32 %v2781_v18, 0.0  ;;  %v2783_v50 = vadd.f32 %v2751_v59, %v6970_v11 }
 0x660   : > { %v2814_v28 = vmax.f32 %v2782_v40, 0.0  ;;  %v2784_v6 = vadd.f32 %v2752_v20, %v6972_v46 }
 0x661   : > { %v2815_v14 = vmax.f32 %v2783_v50, 0.0 }
 0x662   : > { %v2867_v1 = vpack.c.bf16 %v2814_v28, %v2813_v58  ;;  %v2816_v7 = vmax.f32 %v2784_v6, 0.0 }
 0x663   : > { %4378 = vmatmul.mubr.bf16.gmra.mrb[88].mxu0 %v2866_v34 }
 0x664   : > { %4381 = vmatprep.mubr.bf16.mxu0 %v2867_v1  ;;  %v2868_v19 = vpack.c.bf16 %v2816_v7, %v2815_v14 }
 0x66b   : > { %4382 = vmatmul.mubr.bf16.gmra.mrb[92].mxu0 %v2868_v19 }
 0x6ff   : > { %v4355_v36 = vpop.f32.mrb[64].mxu0 }
 0x700   : > { %v2966_v23 = vadd.f32 %v4355_v36, %v6247_v25  ;;  %v2957_v24 = vpop.f32.mrb[65].mxu0 }
 0x701   : > { %v2958_v47 = vadd.f32 %v6247_v25, %v2957_v24  ;;  %v4356_v10 = vpop.f32.mrb[66].mxu0 }
 0x702   : > { %v2969_v51 = vadd.f32 %v4356_v10, %v6247_v25  ;;  %v2960_v0 = vpop.f32.mrb[67].mxu0  ;;  %v3086_v48 = vmax.f32 %v2966_v23, 0.0 }
 0x703   : > { %v2961_v33 = vadd.f32 %v6247_v25, %v2960_v0  ;;  %v3084_v61 = vmax.f32 %v2958_v47, 0.0 }
 0x704   : > { %v3087_v39 = vmax.f32 %v2969_v51, 0.0 }
 0x705   : > { %v3085_v41 = vmax.f32 %v2961_v33, 0.0 }
 0x706   : > { %v3117_v22 = vpack.c.bf16 %v3087_v39, %v3086_v48 }
 0x707   : > { %v3116_v63 = vpack.c.bf16 %v3085_v41, %v3084_v61 }
 0x708   : > { %v4359_v32 = vpop.f32.mrb[68].mxu0 }
 0x709   : > { %v2982_v62 = vadd.f32 %v4359_v32, %v6247_v25  ;;  %v2973_v2 = vpop.f32.mrb[69].mxu0  ;;  %4401 = vmatprep.mubr.bf16.mxu1 %v3116_v63 }
 0x70a   : > { %v2974_v57 = vadd.f32 %v6247_v25, %v2973_v2  ;;  %v4360_v31 = vpop.f32.mrb[70].mxu0  ;;  %4402 = vmatmul.mubr.bf16.vlgmr.msra.gmra.mrb[64].mxu1 %v3117_v22 }
 0x70b   : > { %v2985_v37 = vadd.f32 %v4360_v31, %v6247_v25  ;;  %v2976_v16 = vpop.f32.mrb[71].mxu0  ;;  %v3090_v27 = vmax.f32 %v2982_v62, 0.0 }
 0x70c   : > { %v2977_v60 = vadd.f32 %v6247_v25, %v2976_v16  ;;  %v3088_v3 = vmax.f32 %v2974_v57, 0.0 }
 0x70d   : > { %v3091_v17 = vmax.f32 %v2985_v37, 0.0 }
 0x70e   : > { %v3089_v9 = vmax.f32 %v2977_v60, 0.0 }
 0x70f   : > { %v3119_v56 = vpack.c.bf16 %v3091_v17, %v3090_v27 }
 0x710   : > { %v3118_v55 = vpack.c.bf16 %v3089_v9, %v3088_v3 }
 0x712   : > { %v4363_v45 = vpop.f32.mrb[72].mxu0  ;;  %4405 = vmatprep.mubr.bf16.mxu1 %v3118_v55 }
 0x713   : > { %v2998_v52 = vadd.f32 %v4363_v45, %v6247_v25  ;;  %v2989_v4 = vpop.f32.mrb[73].mxu0  ;;  %4406 = vmatmul.mubr.bf16.gmra.mrb[68].mxu1 %v3119_v56 }
 0x714   : > { %v2990_v12 = vadd.f32 %v6247_v25, %v2989_v4  ;;  %v4364_v44 = vpop.f32.mrb[74].mxu0 }
 0x715   : > { %v3001_v8 = vadd.f32 %v4364_v44, %v6247_v25  ;;  %v2992_v29 = vpop.f32.mrb[75].mxu0  ;;  %v3094_v54 = vmax.f32 %v2998_v52, 0.0 }
 0x716   : > { %v2993_v26 = vadd.f32 %v6247_v25, %v2992_v29  ;;  %v3092_v42 = vmax.f32 %v2990_v12, 0.0 }
 0x717   : > { %v3095_v53 = vmax.f32 %v3001_v8, 0.0 }
 0x718   : > { %v3093_v30 = vmax.f32 %v2993_v26, 0.0 }
 0x719   : > { %v3121_v13 = vpack.c.bf16 %v3095_v53, %v3094_v54 }
 0x71a   : > { %v3120_v15 = vpack.c.bf16 %v3093_v30, %v3092_v42 }
 0x71b   : > { %v4367_v18 = vpop.f32.mrb[76].mxu0 }
 0x71c   : > { %v3014_v49 = vadd.f32 %v4367_v18, %v6247_v25  ;;  %v3005_v5 = vpop.f32.mrb[77].mxu0  ;;  %4409 = vmatprep.mubr.bf16.mxu1 %v3120_v15 }
 0x71d   : > { %v3006_v40 = vadd.f32 %v6247_v25, %v3005_v5  ;;  %v4368_v35 = vpop.f32.mrb[78].mxu0  ;;  %4410 = vmatmul.mubr.bf16.gmra.mrb[72].mxu1 %v3121_v13 }
 0x71e   : > { %v3017_v59 = vadd.f32 %v4368_v35, %v6247_v25  ;;  %v3008_v34 = vpop.f32.mrb[79].mxu0  ;;  %v3098_v28 = vmax.f32 %v3014_v49, 0.0 }
 0x71f   : > { %v3009_v58 = vadd.f32 %v6247_v25, %v3008_v34  ;;  %v3096_v38 = vmax.f32 %v3006_v40, 0.0 }
 0x720   : > { %v3099_v20 = vmax.f32 %v3017_v59, 0.0 }
 0x721   : > { %v3097_v11 = vmax.f32 %v3009_v58, 0.0  ;;  %v6284_v58 = vld [vmem:[%s6835_s16] ss:$0 sm:$0xff] }
 0x722   : > { %v3123_v50 = vpack.c.bf16 %v3099_v20, %v3098_v28 }
 0x723   : > { %v3122_v1 = vpack.c.bf16 %v3097_v11, %v3096_v38 }
 0x725   : > { %4413 = vmatprep.mubr.bf16.mxu1 %v3122_v1 }
 0x726   : > { %v4371_v21 = vpop.f32.mrb[80].mxu0  ;;  %4414 = vmatmul.mubr.bf16.gmra.mrb[76].mxu1 %v3123_v50 }
 0x727   : > { %v3030_v46 = vadd.f32 %v4371_v21, %v6247_v25  ;;  %v3021_v6 = vpop.f32.mrb[81].mxu0 }
 0x728   : > { %v3022_v7 = vadd.f32 %v6247_v25, %v3021_v6  ;;  %v4372_v14 = vpop.f32.mrb[82].mxu0 }
 0x729   : > { %v3033_v19 = vadd.f32 %v4372_v14, %v6247_v25  ;;  %v3024_v43 = vpop.f32.mrb[83].mxu0  ;;  %v3102_v23 = vmax.f32 %v3030_v46, 0.0 }
 0x72a   : > { %v3025_v36 = vadd.f32 %v6247_v25, %v3024_v43  ;;  %v3100_v47 = vmax.f32 %v3022_v7, 0.0 }
 0x72b   : > { %v3103_v24 = vmax.f32 %v3033_v19, 0.0 }
 0x72c   : > { %v3101_v10 = vmax.f32 %v3025_v36, 0.0 }
 0x72d   : > { %v3125_v51 = vpack.c.bf16 %v3103_v24, %v3102_v23 }
 0x72e   : > { %v3124_v0 = vpack.c.bf16 %v3101_v10, %v3100_v47  ;;  %v4375_v33 = vpop.f32.mrb[84].mxu0 }
 0x72f   : > { %v3046_v48 = vadd.f32 %v4375_v33, %v6247_v25  ;;  %v3037_v39 = vpop.f32.mrb[85].mxu0 }
 0x730   : > { %v3038_v61 = vadd.f32 %v6247_v25, %v3037_v39  ;;  %v4376_v41 = vpop.f32.mrb[86].mxu0  ;;  %4417 = vmatprep.mubr.bf16.mxu1 %v3124_v0 }
 0x731   : > { %v3049_v22 = vadd.f32 %v4376_v41, %v6247_v25  ;;  %v3040_v63 = vpop.f32.mrb[87].mxu0  ;;  %4418 = vmatmul.mubr.bf16.gmra.mrb[80].mxu1 %v3125_v51  ;;  %v3106_v62 = vmax.f32 %v3046_v48, 0.0 }
 0x732   : > { %v3041_v32 = vadd.f32 %v6247_v25, %v3040_v63  ;;  %v3104_v57 = vmax.f32 %v3038_v61, 0.0 }
 0x733   : > { %v3107_v2 = vmax.f32 %v3049_v22, 0.0 }
 0x734   : > { %v3105_v31 = vmax.f32 %v3041_v32, 0.0 }
 0x735   : > { %v3127_v37 = vpack.c.bf16 %v3107_v2, %v3106_v62 }
 0x736   : > { %v3126_v16 = vpack.c.bf16 %v3105_v31, %v3104_v57  ;;  %v4379_v60 = vpop.f32.mrb[88].mxu0 }
 0x737   : > { %v3062_v27 = vadd.f32 %v4379_v60, %v6247_v25  ;;  %v3053_v17 = vpop.f32.mrb[89].mxu0 }
 0x738   : > { %v3054_v3 = vadd.f32 %v6247_v25, %v3053_v17  ;;  %v4380_v9 = vpop.f32.mrb[90].mxu0  ;;  %4421 = vmatprep.mubr.bf16.mxu1 %v3126_v16 }
 0x739   : > { %v3065_v56 = vadd.f32 %v4380_v9, %v6247_v25  ;;  %v3056_v55 = vpop.f32.mrb[91].mxu0  ;;  %4422 = vmatmul.mubr.bf16.gmra.mrb[84].mxu1 %v3127_v37  ;;  %v3110_v52 = vmax.f32 %v3062_v27, 0.0 }
 0x73a   : > { %v3057_v45 = vadd.f32 %v6247_v25, %v3056_v55  ;;  %v3108_v12 = vmax.f32 %v3054_v3, 0.0 }
 0x73b   : > { %v3111_v4 = vmax.f32 %v3065_v56, 0.0 }
 0x73c   : > { %v3109_v44 = vmax.f32 %v3057_v45, 0.0 }
 0x73d   : > { %v3129_v8 = vpack.c.bf16 %v3111_v4, %v3110_v52 }
 0x73e   : > { %v3128_v29 = vpack.c.bf16 %v3109_v44, %v3108_v12  ;;  %v4383_v26 = vpop.f32.mrb[92].mxu0 }
 0x73f   : > { %v3078_v54 = vadd.f32 %v4383_v26, %v6247_v25  ;;  %v3069_v53 = vpop.f32.mrb[93].mxu0 }
 0x740   : > { %v3070_v42 = vadd.f32 %v6247_v25, %v3069_v53  ;;  %v4384_v30 = vpop.f32.mrb[94].mxu0  ;;  %4425 = vmatprep.mubr.bf16.mxu1 %v3128_v29 }
 0x741   : > { %v3081_v13 = vadd.f32 %v4384_v30, %v6247_v25  ;;  %v3072_v15 = vpop.f32.mrb[95].mxu0  ;;  %4426 = vmatmul.mubr.bf16.gmra.mrb[88].mxu1 %v3129_v8  ;;  %v3114_v49 = vmax.f32 %v3078_v54, 0.0 }
 0x742   : > { %v3073_v18 = vadd.f32 %v6247_v25, %v3072_v15  ;;  %v3112_v40 = vmax.f32 %v3070_v42, 0.0 }
 0x743   : > { %v3115_v5 = vmax.f32 %v3081_v13, 0.0 }
 0x744   : > { %v3113_v35 = vmax.f32 %v3073_v18, 0.0 }
 0x745   : > { %v3131_v59 = vpack.c.bf16 %v3115_v5, %v3114_v49 }
 0x746   : > { %v3130_v34 = vpack.c.bf16 %v3113_v35, %v3112_v40 }
 0x748   : > { %4429 = vmatprep.mubr.bf16.mxu1 %v3130_v34 }
 0x749   : > { %4430 = vmatmul.mubr.bf16.gmra.mrb[92].mxu1 %v3131_v59 }
 0x7dd   : > { %v4403_v28 = vpop.f32.mrb[64].mxu1 }
 0x7de   : > { %v6287_v20 = vadd.f32 %v4403_v28, %v6284_v58  ;;  %v3220_v38 = vpop.f32.mrb[65].mxu1 }
 0x7df   : > { %v4404_v11 = vpop.f32.mrb[66].mxu1  ;;  %v6294_v1 = vadd.f32 %v6284_v58, %v3220_v38 }
 0x7e0   : > { %v6290_v25 = vadd.f32 %v4404_v11, %v6284_v58  ;;  %3351 = vadd.xlane.f32.xlu0 %v6287_v20  ;;  %v3223_v50 = vpop.f32.mrb[67].mxu1 }
 0x7e1   : > { %v6298_v21 = vadd.f32 %v6284_v58, %v3223_v50  ;;  %v6973_v50 = vld [vmem:[#allocation3_spill] sm:$0xff] }
 0x7e2   : > { %3353 = vadd.xlane.f32.xlu1 %v6290_v25  ;;  %vm3475_vm2 = vcmp.lt.s32.totalorder %v6973_v50, 32 }
 0x7e4   : > { %3347 = vadd.xlane.f32.xlu0 %v6294_v1 }
 0x7e6   : > { %v4407_v46 = vpop.f32.mrb[68].mxu1  ;;  %3349 = vadd.xlane.f32.xlu1 %v6298_v21 }
 0x7e7   : > { %v6302_v6 = vadd.f32 %v4407_v46, %v6284_v58  ;;  %v3236_v7 = vpop.f32.mrb[69].mxu1 }
 0x7e8   : > { %v4408_v14 = vpop.f32.mrb[70].mxu1  ;;  %v6310_v36 = vadd.f32 %v6284_v58, %v3236_v7 }
 0x7e9   : > { %v6306_v19 = vadd.f32 %v4408_v14, %v6284_v58  ;;  %3359 = vadd.xlane.f32.xlu0 %v6302_v6  ;;  %v3239_v43 = vpop.f32.mrb[71].mxu1 }
 0x7ea   : > { %v6314_v23 = vadd.f32 %v6284_v58, %v3239_v43 }
 0x7eb   : > { %3361 = vadd.xlane.f32.xlu1 %v6306_v19 }
 0x7ed   : > { %3355 = vadd.xlane.f32.xlu0 %v6310_v36 }
 0x7ef   : > { %3357 = vadd.xlane.f32.xlu1 %v6314_v23 }
 0x7f0   : > { %v4411_v24 = vpop.f32.mrb[72].mxu1 }
 0x7f1   : > { %v6319_v47 = vadd.f32 %v4411_v24, %v6284_v58  ;;  %v3252_v10 = vpop.f32.mrb[73].mxu1 }
 0x7f2   : > { %v4412_v51 = vpop.f32.mrb[74].mxu1  ;;  %v6326_v48 = vadd.f32 %v6284_v58, %v3252_v10 }
 0x7f3   : > { %v6322_v0 = vadd.f32 %v4412_v51, %v6284_v58  ;;  %3367 = vadd.xlane.f32.xlu0 %v6319_v47  ;;  %v3255_v33 = vpop.f32.mrb[75].mxu1 }
 0x7f4   : > { %v6330_v39 = vadd.f32 %v6284_v58, %v3255_v33 }
 0x7f5   : > { %3369 = vadd.xlane.f32.xlu1 %v6322_v0 }
 0x7f7   : > { %3363 = vadd.xlane.f32.xlu0 %v6326_v48 }
 0x7f9   : > { %v4415_v61 = vpop.f32.mrb[76].mxu1  ;;  %3365 = vadd.xlane.f32.xlu1 %v6330_v39 }
 0x7fa   : > { %v6334_v41 = vadd.f32 %v4415_v61, %v6284_v58  ;;  %v3268_v22 = vpop.f32.mrb[77].mxu1 }
 0x7fb   : > { %v4416_v63 = vpop.f32.mrb[78].mxu1  ;;  %v6342_v2 = vadd.f32 %v6284_v58, %v3268_v22 }
 0x7fc   : > { %v6338_v32 = vadd.f32 %v4416_v63, %v6284_v58  ;;  %3375 = vadd.xlane.f32.xlu0 %v6334_v41  ;;  %v3271_v62 = vpop.f32.mrb[79].mxu1 }
 0x7fd   : > { %v6346_v57 = vadd.f32 %v6284_v58, %v3271_v62 }
 0x7fe   : > { %3377 = vadd.xlane.f32.xlu1 %v6338_v32 }
 0x800   : > { %3371 = vadd.xlane.f32.xlu0 %v6342_v2 }
 0x802   : > { %3373 = vadd.xlane.f32.xlu1 %v6346_v57 }
 0x804   : > { %v4419_v31 = vpop.f32.mrb[80].mxu1 }
 0x805   : > { %v6351_v37 = vadd.f32 %v4419_v31, %v6284_v58  ;;  %v3284_v16 = vpop.f32.mrb[81].mxu1 }
 0x806   : > { %v4420_v60 = vpop.f32.mrb[82].mxu1  ;;  %v6358_v3 = vadd.f32 %v6284_v58, %v3284_v16 }
 0x807   : > { %v6354_v27 = vadd.f32 %v4420_v60, %v6284_v58  ;;  %3383 = vadd.xlane.f32.xlu0 %v6351_v37  ;;  %v3287_v17 = vpop.f32.mrb[83].mxu1 }
 0x808   : > { %v6362_v9 = vadd.f32 %v6284_v58, %v3287_v17 }
 0x809   : > { %3385 = vadd.xlane.f32.xlu1 %v6354_v27 }
 0x80b   : > { %3379 = vadd.xlane.f32.xlu0 %v6358_v3 }
 0x80c   : > { %v4423_v56 = vpop.f32.mrb[84].mxu1 }
 0x80d   : > { %v6366_v55 = vadd.f32 %v4423_v56, %v6284_v58  ;;  %3381 = vadd.xlane.f32.xlu1 %v6362_v9  ;;  %v3300_v45 = vpop.f32.mrb[85].mxu1 }
 0x80e   : > { %v4424_v52 = vpop.f32.mrb[86].mxu1  ;;  %v6374_v44 = vadd.f32 %v6284_v58, %v3300_v45 }
 0x80f   : > { %v6370_v4 = vadd.f32 %v4424_v52, %v6284_v58  ;;  %3391 = vadd.xlane.f32.xlu0 %v6366_v55  ;;  %v3303_v12 = vpop.f32.mrb[87].mxu1 }
 0x810   : > { %v6378_v8 = vadd.f32 %v6284_v58, %v3303_v12 }
 0x811   : > { %3393 = vadd.xlane.f32.xlu1 %v6370_v4 }
 0x813   : > { %3387 = vadd.xlane.f32.xlu0 %v6374_v44 }
 0x814   : > { %v4427_v29 = vpop.f32.mrb[88].mxu1 }
 0x815   : > { %v6382_v26 = vadd.f32 %v4427_v29, %v6284_v58  ;;  %3389 = vadd.xlane.f32.xlu1 %v6378_v8  ;;  %v3316_v54 = vpop.f32.mrb[89].mxu1 }
 0x816   : > { %v4428_v53 = vpop.f32.mrb[90].mxu1  ;;  %v6390_v13 = vadd.f32 %v6284_v58, %v3316_v54 }
 0x817   : > { %v6386_v42 = vadd.f32 %v4428_v53, %v6284_v58  ;;  %3399 = vadd.xlane.f32.xlu0 %v6382_v26  ;;  %v3319_v30 = vpop.f32.mrb[91].mxu1 }
 0x818   : > { %v6394_v15 = vadd.f32 %v6284_v58, %v3319_v30 }
 0x819   : > { %3401 = vadd.xlane.f32.xlu1 %v6386_v42 }
 0x81b   : > { %3395 = vadd.xlane.f32.xlu0 %v6390_v13 }
 0x81c   : > { %v4431_v18 = vpop.f32.mrb[92].mxu1 }
 0x81d   : > { %v6398_v49 = vadd.f32 %v4431_v18, %v6284_v58  ;;  %3397 = vadd.xlane.f32.xlu1 %v6394_v15  ;;  %v3332_v5 = vpop.f32.mrb[93].mxu1 }
 0x81e   : > { %v6402_v40 = vadd.f32 %v6284_v58, %v3332_v5  ;;  %v4432_v35 = vpop.f32.mrb[94].mxu1 }
 0x81f   : > { %v6405_v59 = vadd.f32 %v4432_v35, %v6284_v58  ;;  %v3335_v34 = vpop.f32.mrb[95].mxu1 }
 0x820   : > { %v6408_v28 = vadd.f32 %v6284_v58, %v3335_v34  ;;  %3403 = vadd.xlane.f32.xlu0 %v6402_v40 }
 0x822   : > { %3405 = vadd.xlane.f32.xlu1 %v6408_v28 }
 0x824   : > { %3407 = vadd.xlane.f32.xlu0 %v6398_v49 }
 0x826   : > { %3409 = vadd.xlane.f32.xlu1 %v6405_v59 }
 0x86d   : > { %v3352_v38 = vpop.xlane.xlu0 %3351 }
 0x86e   : > { %v3413_v11 = vmul.f32 0.03125, %v3352_v38 }
 0x86f   : > { %v3354_v46 = vpop.xlane.xlu1 %3353 }
 0x870   : > { %v3445_v7 = vsub.f32 %v6287_v20, %v3413_v11  ;;  %v3414_v14 = vmul.f32 0.03125, %v3354_v46 }
 0x871   : > { %v3348_v43 = vpop.xlane.xlu0 %3347 }
 0x872   : > { %v6418_v58 = vsel %vm3475_vm2, %v3445_v7, 0.0  ;;  %v3446_v24 = vsub.f32 %v6290_v25, %v3414_v14  ;;  %v3411_v10 = vmul.f32 0.03125, %v3348_v43 }
 0x873   : > { %v3350_v51 = vpop.xlane.xlu1 %3349  ;;  %v3512_v33 = vmul.f32 %v6418_v58, %v6418_v58 }
 0x874   : > { %v6425_v61 = vsel %vm3475_vm2, %v3446_v24, 0.0  ;;  %v3443_v22 = vsub.f32 %v6294_v1, %v3411_v10  ;;  %v3412_v20 = vmul.f32 0.03125, %v3350_v51 }
 0x875   : > { %3546 = vadd.xlane.f32.xlu0 %v3512_v33  ;;  %v3513_v62 = vmul.f32 %v6425_v61, %v6425_v61 }
 0x876   : > { %v3360_v63 = vpop.xlane.xlu0 %3359  ;;  %v6432_v25 = vsel %vm3475_vm2, %v3443_v22, 0.0  ;;  %v3444_v31 = vsub.f32 %v6298_v21, %v3412_v20 }
 0x877   : > { %v3417_v16 = vmul.f32 0.03125, %v3360_v63  ;;  %3548 = vadd.xlane.f32.xlu1 %v3513_v62  ;;  %v3510_v17 = vmul.f32 %v6432_v25, %v6432_v25 }
 0x878   : > { %v3362_v60 = vpop.xlane.xlu1 %3361  ;;  %v6439_v1 = vsel %vm3475_vm2, %v3444_v31, 0.0 }
 0x879   : > { %v3449_v56 = vsub.f32 %v6302_v6, %v3417_v16  ;;  %v3418_v45 = vmul.f32 0.03125, %v3362_v60  ;;  %3542 = vadd.xlane.f32.xlu0 %v3510_v17  ;;  %v3511_v12 = vmul.f32 %v6439_v1, %v6439_v1 }
 0x87a   : > { %v3356_v52 = vpop.xlane.xlu0 %3355 }
 0x87b   : > { %v6446_v21 = vsel %vm3475_vm2, %v3449_v56, 0.0  ;;  %v3450_v29 = vsub.f32 %v6306_v19, %v3418_v45  ;;  %v3415_v54 = vmul.f32 0.03125, %v3356_v52  ;;  %3544 = vadd.xlane.f32.xlu1 %v3511_v12 }
 0x87c   : > { %v3358_v53 = vpop.xlane.xlu1 %3357  ;;  %v3516_v30 = vmul.f32 %v6446_v21, %v6446_v21 }
 0x87d   : > { %v6453_v6 = vsel %vm3475_vm2, %v3450_v29, 0.0  ;;  %v3447_v18 = vsub.f32 %v6310_v36, %v3415_v54  ;;  %v3416_v5 = vmul.f32 0.03125, %v3358_v53 }
 0x87e   : > { %3554 = vadd.xlane.f32.xlu0 %v3516_v30  ;;  %v3517_v35 = vmul.f32 %v6453_v6, %v6453_v6 }
 0x87f   : > { %v6460_v19 = vsel %vm3475_vm2, %v3447_v18, 0.0  ;;  %v3448_v34 = vsub.f32 %v6314_v23, %v3416_v5 }
 0x880   : > { %v3368_v38 = vpop.xlane.xlu0 %3367  ;;  %3556 = vadd.xlane.f32.xlu1 %v3517_v35  ;;  %v3514_v11 = vmul.f32 %v6460_v19, %v6460_v19 }
 0x881   : > { %v6467_v46 = vsel %vm3475_vm2, %v3448_v34, 0.0  ;;  %v3421_v36 = vmul.f32 0.03125, %v3368_v38 }
 0x882   : > { %v3370_v7 = vpop.xlane.xlu1 %3369  ;;  %3550 = vadd.xlane.f32.xlu0 %v3514_v11  ;;  %v3515_v14 = vmul.f32 %v6467_v46, %v6467_v46 }
 0x883   : > { %v3453_v43 = vsub.f32 %v6319_v47, %v3421_v36  ;;  %v3422_v24 = vmul.f32 0.03125, %v3370_v7 }
 0x884   : > { %v3364_v10 = vpop.xlane.xlu0 %3363  ;;  %3552 = vadd.xlane.f32.xlu1 %v3515_v14 }
 0x885   : > { %v6474_v23 = vsel %vm3475_vm2, %v3453_v43, 0.0  ;;  %v3454_v51 = vsub.f32 %v6322_v0, %v3422_v24  ;;  %v3419_v33 = vmul.f32 0.03125, %v3364_v10 }
 0x886   : > { %v3366_v22 = vpop.xlane.xlu1 %3365  ;;  %v3520_v20 = vmul.f32 %v6474_v23, %v6474_v23 }
 0x887   : > { %v6481_v63 = vsel %vm3475_vm2, %v3454_v51, 0.0  ;;  %v3451_v47 = vsub.f32 %v6326_v48, %v3419_v33  ;;  %v3420_v62 = vmul.f32 0.03125, %v3366_v22 }
 0x888   : > { %3562 = vadd.xlane.f32.xlu0 %v3520_v20  ;;  %v3521_v16 = vmul.f32 %v6481_v63, %v6481_v63 }
 0x889   : > { %v3376_v31 = vpop.xlane.xlu0 %3375  ;;  %v6488_v0 = vsel %vm3475_vm2, %v3451_v47, 0.0  ;;  %v3452_v60 = vsub.f32 %v6330_v39, %v3420_v62 }
 0x88a   : > { %v3425_v17 = vmul.f32 0.03125, %v3376_v31  ;;  %3564 = vadd.xlane.f32.xlu1 %v3521_v16  ;;  %v3518_v45 = vmul.f32 %v6488_v0, %v6488_v0 }
 0x88b   : > { %v3378_v56 = vpop.xlane.xlu1 %3377  ;;  %v6495_v48 = vsel %vm3475_vm2, %v3452_v60, 0.0 }
 0x88c   : > { %v3457_v52 = vsub.f32 %v6334_v41, %v3425_v17  ;;  %v3426_v12 = vmul.f32 0.03125, %v3378_v56  ;;  %3558 = vadd.xlane.f32.xlu0 %v3518_v45  ;;  %v3519_v54 = vmul.f32 %v6495_v48, %v6495_v48 }
 0x88d   : > { %v3372_v29 = vpop.xlane.xlu0 %3371 }
 0x88e   : > { %v6502_v39 = vsel %vm3475_vm2, %v3457_v52, 0.0  ;;  %v3458_v53 = vsub.f32 %v6338_v32, %v3426_v12  ;;  %v3423_v30 = vmul.f32 0.03125, %v3372_v29  ;;  %3560 = vadd.xlane.f32.xlu1 %v3519_v54 }
 0x88f   : > { %v3374_v18 = vpop.xlane.xlu1 %3373  ;;  %v3524_v5 = vmul.f32 %v6502_v39, %v6502_v39 }
 0x890   : > { %v6509_v41 = vsel %vm3475_vm2, %v3458_v53, 0.0  ;;  %v3455_v35 = vsub.f32 %v6342_v2, %v3423_v30  ;;  %v3424_v34 = vmul.f32 0.03125, %v3374_v18 }
 0x891   : > { %3570 = vadd.xlane.f32.xlu0 %v3524_v5  ;;  %v3525_v38 = vmul.f32 %v6509_v41, %v6509_v41 }
 0x892   : > { %v6516_v32 = vsel %vm3475_vm2, %v3455_v35, 0.0  ;;  %v3456_v11 = vsub.f32 %v6346_v57, %v3424_v34 }
 0x893   : > { %3572 = vadd.xlane.f32.xlu1 %v3525_v38  ;;  %v3522_v14 = vmul.f32 %v6516_v32, %v6516_v32 }
 0x894   : > { %v3384_v36 = vpop.xlane.xlu0 %3383  ;;  %v6523_v2 = vsel %vm3475_vm2, %v3456_v11, 0.0 }
 0x895   : > { %v3429_v7 = vmul.f32 0.03125, %v3384_v36  ;;  %3566 = vadd.xlane.f32.xlu0 %v3522_v14  ;;  %v3523_v51 = vmul.f32 %v6523_v2, %v6523_v2 }
 0x896   : > { %v3386_v43 = vpop.xlane.xlu1 %3385 }
 0x897   : > { %v3461_v24 = vsub.f32 %v6351_v37, %v3429_v7  ;;  %v3430_v10 = vmul.f32 0.03125, %v3386_v43  ;;  %3568 = vadd.xlane.f32.xlu1 %v3523_v51 }
 0x898   : > { %v3380_v33 = vpop.xlane.xlu0 %3379 }
 0x899   : > { %v6530_v57 = vsel %vm3475_vm2, %v3461_v24, 0.0  ;;  %v3462_v22 = vsub.f32 %v6354_v27, %v3430_v10  ;;  %v3427_v20 = vmul.f32 0.03125, %v3380_v33 }
 0x89a   : > { %v3382_v47 = vpop.xlane.xlu1 %3381  ;;  %v3528_v62 = vmul.f32 %v6530_v57, %v6530_v57 }
 0x89b   : > { %v6537_v37 = vsel %vm3475_vm2, %v3462_v22, 0.0  ;;  %v3459_v31 = vsub.f32 %v6358_v3, %v3427_v20  ;;  %v3428_v16 = vmul.f32 0.03125, %v3382_v47 }
 0x89c   : > { %3578 = vadd.xlane.f32.xlu0 %v3528_v62  ;;  %v3392_v60 = vpop.xlane.xlu0 %3391  ;;  %v3529_v17 = vmul.f32 %v6537_v37, %v6537_v37 }
 0x89d   : > { %v6544_v27 = vsel %vm3475_vm2, %v3459_v31, 0.0  ;;  %v3460_v56 = vsub.f32 %v6362_v9, %v3428_v16  ;;  %v3433_v45 = vmul.f32 0.03125, %v3392_v60 }
 0x89e   : > { %v3394_v52 = vpop.xlane.xlu1 %3393  ;;  %3580 = vadd.xlane.f32.xlu1 %v3529_v17  ;;  %v3526_v12 = vmul.f32 %v6544_v27, %v6544_v27 }
 0x89f   : > { %v6551_v3 = vsel %vm3475_vm2, %v3460_v56, 0.0  ;;  %v3465_v29 = vsub.f32 %v6366_v55, %v3433_v45  ;;  %v3434_v54 = vmul.f32 0.03125, %v3394_v52 }
 0x8a0   : > { %3574 = vadd.xlane.f32.xlu0 %v3526_v12  ;;  %v3388_v53 = vpop.xlane.xlu0 %3387  ;;  %v3527_v30 = vmul.f32 %v6551_v3, %v6551_v3 }
 0x8a1   : > { %v6558_v9 = vsel %vm3475_vm2, %v3465_v29, 0.0  ;;  %v3466_v18 = vsub.f32 %v6370_v4, %v3434_v54  ;;  %v3431_v5 = vmul.f32 0.03125, %v3388_v53 }
 0x8a2   : > { %v3390_v35 = vpop.xlane.xlu1 %3389  ;;  %3576 = vadd.xlane.f32.xlu1 %v3527_v30  ;;  %v3532_v34 = vmul.f32 %v6558_v9, %v6558_v9 }
 0x8a3   : > { %v6565_v55 = vsel %vm3475_vm2, %v3466_v18, 0.0  ;;  %v3463_v38 = vsub.f32 %v6374_v44, %v3431_v5  ;;  %v3432_v11 = vmul.f32 0.03125, %v3390_v35 }
 0x8a4   : > { %3586 = vadd.xlane.f32.xlu0 %v3532_v34  ;;  %v3400_v36 = vpop.xlane.xlu0 %3399  ;;  %v3533_v7 = vmul.f32 %v6565_v55, %v6565_v55 }
 0x8a5   : > { %v6572_v4 = vsel %vm3475_vm2, %v3463_v38, 0.0  ;;  %v3464_v14 = vsub.f32 %v6378_v8, %v3432_v11  ;;  %v3437_v43 = vmul.f32 0.03125, %v3400_v36 }
 0x8a6   : > { %v3402_v24 = vpop.xlane.xlu1 %3401  ;;  %3588 = vadd.xlane.f32.xlu1 %v3533_v7  ;;  %v3530_v10 = vmul.f32 %v6572_v4, %v6572_v4 }
 0x8a7   : > { %v6579_v44 = vsel %vm3475_vm2, %v3464_v14, 0.0  ;;  %v3469_v51 = vsub.f32 %v6382_v26, %v3437_v43  ;;  %v3438_v33 = vmul.f32 0.03125, %v3402_v24 }
 0x8a8   : > { %3582 = vadd.xlane.f32.xlu0 %v3530_v10  ;;  %v3396_v22 = vpop.xlane.xlu0 %3395  ;;  %v3531_v20 = vmul.f32 %v6579_v44, %v6579_v44 }
 0x8a9   : > { %v6586_v8 = vsel %vm3475_vm2, %v3469_v51, 0.0  ;;  %v3470_v47 = vsub.f32 %v6386_v42, %v3438_v33  ;;  %v3435_v62 = vmul.f32 0.03125, %v3396_v22 }
 0x8aa   : > { %v3398_v31 = vpop.xlane.xlu1 %3397  ;;  %3584 = vadd.xlane.f32.xlu1 %v3531_v20  ;;  %v3536_v16 = vmul.f32 %v6586_v8, %v6586_v8 }
 0x8ab   : > { %v6593_v26 = vsel %vm3475_vm2, %v3470_v47, 0.0  ;;  %v3467_v60 = vsub.f32 %v6390_v13, %v3435_v62  ;;  %v3436_v17 = vmul.f32 0.03125, %v3398_v31 }
 0x8ac   : > { %3594 = vadd.xlane.f32.xlu0 %v3536_v16  ;;  %v3537_v56 = vmul.f32 %v6593_v26, %v6593_v26 }
 0x8ad   : > { %v6600_v42 = vsel %vm3475_vm2, %v3467_v60, 0.0  ;;  %v3468_v45 = vsub.f32 %v6394_v15, %v3436_v17  ;;  %v3404_v52 = vpop.xlane.xlu0 %3403 }
 0x8ae   : > { %v3439_v12 = vmul.f32 0.03125, %v3404_v52  ;;  %3596 = vadd.xlane.f32.xlu1 %v3537_v56  ;;  %v3534_v29 = vmul.f32 %v6600_v42, %v6600_v42 }
 0x8af   : > { %v6607_v13 = vsel %vm3475_vm2, %v3468_v45, 0.0  ;;  %v3406_v54 = vpop.xlane.xlu1 %3405 }
 0x8b0   : > { %v3471_v53 = vsub.f32 %v6402_v40, %v3439_v12  ;;  %v3440_v30 = vmul.f32 0.03125, %v3406_v54  ;;  %3590 = vadd.xlane.f32.xlu0 %v3534_v29  ;;  %v3535_v18 = vmul.f32 %v6607_v13, %v6607_v13 }
 0x8b1   : > { %v3408_v5 = vpop.xlane.xlu0 %3407 }
 0x8b2   : > { %v6614_v15 = vsel %vm3475_vm2, %v3471_v53, 0.0  ;;  %v3472_v35 = vsub.f32 %v6408_v28, %v3440_v30  ;;  %v3441_v34 = vmul.f32 0.03125, %v3408_v5  ;;  %3592 = vadd.xlane.f32.xlu1 %v3535_v18 }
 0x8b3   : > { %v3410_v38 = vpop.xlane.xlu1 %3409  ;;  %v3538_v11 = vmul.f32 %v6614_v15, %v6614_v15 }
 0x8b4   : > { %v6621_v40 = vsel %vm3475_vm2, %v3472_v35, 0.0  ;;  %v3473_v36 = vsub.f32 %v6398_v49, %v3441_v34  ;;  %v3442_v7 = vmul.f32 0.03125, %v3410_v38  ;;  %v6642_v35 = vld [vmem:[%s6836_s17] ss:$0 sm:$0xff] }
 0x8b5   : > { %3598 = vadd.xlane.f32.xlu0 %v3538_v11  ;;  %v3539_v14 = vmul.f32 %v6621_v40, %v6621_v40 }
 0x8b6   : > { %v6628_v28 = vsel %vm3475_vm2, %v3473_v36, 0.0  ;;  %v3474_v43 = vsub.f32 %v6405_v59, %v3442_v7  ;;  %v6648_v7 = vld [vmem:[%s6837_s18] ss:$0 sm:$0xff] }
 0x8b7   : > { %3600 = vadd.xlane.f32.xlu1 %v3539_v14  ;;  %v3540_v24 = vmul.f32 %v6628_v28, %v6628_v28 }
 0x8b8   : > { %v6635_v10 = vsel %vm3475_vm2, %v3474_v43, 0.0 }
 0x8b9   : > { %3602 = vadd.xlane.f32.xlu0 %v3540_v24  ;;  %v3541_v49 = vmul.f32 %v6635_v10, %v6635_v10 }
 0x8bb   : > { %3604 = vadd.xlane.f32.xlu1 %v3541_v49 }
 0x902   : > { %v3547_v51 = vpop.xlane.xlu0 %3546 }
 0x903   : > { %v3608_v33 = vmul.f32 0.03125, %v3547_v51 }
 0x904   : > { %v3549_v22 = vpop.xlane.xlu1 %3548 }
 0x905   : > { %v3640_v20 = vadd.f32 1e-05, %v3608_v33  ;;  %v3609_v47 = vmul.f32 0.03125, %v3549_v22 }
 0x906   : > { %v3543_v62 = vpop.xlane.xlu0 %3542 }
 0x907   : > { %4618 = vrsqrt.f32 %v3640_v20  ;;  %v3641_v59 = vadd.f32 1e-05, %v3609_v47  ;;  %v3606_v31 = vmul.f32 0.03125, %v3543_v62 }
 0x908   : > { %v3545_v16 = vpop.xlane.xlu1 %3544 }
 0x909   : > { %4620 = vrsqrt.f32 %v3641_v59  ;;  %v3638_v60 = vadd.f32 1e-05, %v3606_v31  ;;  %v3607_v50 = vmul.f32 0.03125, %v3545_v16 }
 0x90b   : > { %v3555_v17 = vpop.xlane.xlu0 %3554  ;;  %4622 = vrsqrt.f32 %v3638_v60  ;;  %v3639_v56 = vadd.f32 1e-05, %v3607_v50 }
 0x90c   : > { %v3612_v45 = vmul.f32 0.03125, %v3555_v17 }
 0x90d   : > { %v3557_v52 = vpop.xlane.xlu1 %3556  ;;  %4624 = vrsqrt.f32 %v3639_v56 }
 0x90e   : > { %v3644_v12 = vadd.f32 1e-05, %v3612_v45  ;;  %v3613_v29 = vmul.f32 0.03125, %v3557_v52 }
 0x90f   : > { %v3551_v54 = vpop.xlane.xlu0 %3550 }
 0x910   : > { %4626 = vrsqrt.f32 %v3644_v12  ;;  %v3645_v53 = vadd.f32 1e-05, %v3613_v29  ;;  %v3610_v30 = vmul.f32 0.03125, %v3551_v54 }
 0x911   : > { %v3553_v18 = vpop.xlane.xlu1 %3552  ;;  %v4619_v5 = vpop.eup %4618 }
 0x912   : > { %4628 = vrsqrt.f32 %v3645_v53  ;;  %v3642_v34 = vadd.f32 1e-05, %v3610_v30  ;;  %v3611_v38 = vmul.f32 0.03125, %v3553_v18  ;;  %v3704_v11 = vmul.f32 %v4619_v5, %v6418_v58 }
 0x913   : > { %v4621_v36 = vpop.eup %4620 }
 0x914   : > { %4630 = vrsqrt.f32 %v3642_v34  ;;  %v3643_v14 = vadd.f32 1e-05, %v3611_v38  ;;  %v3742_v43 = vmul.f32 %v6642_v35, %v3704_v11  ;;  %v3705_v24 = vmul.f32 %v4621_v36, %v6425_v61 }
 0x915   : > { %v3563_v49 = vpop.xlane.xlu0 %3562  ;;  %v4623_v51 = vpop.eup %4622 }
 0x916   : > { %4632 = vrsqrt.f32 %v3643_v14  ;;  %v3616_v33 = vmul.f32 0.03125, %v3563_v49  ;;  %v3780_v22 = vadd.f32 %v6648_v7, %v3742_v43  ;;  %v3743_v58 = vmul.f32 %v6642_v35, %v3705_v24 }
 0x917   : > { %v3702_v20 = vmul.f32 %v4623_v51, %v6432_v25  ;;  %v3565_v47 = vpop.xlane.xlu1 %3564  ;;  %v4625_v62 = vpop.eup %4624 }
 0x918   : > { %v3648_v61 = vadd.f32 1e-05, %v3616_v33  ;;  %v3617_v59 = vmul.f32 0.03125, %v3565_v47  ;;  %v3812_v31 = vmax.f32 %v3780_v22, 0.0  ;;  %v3781_v16 = vadd.f32 %v6648_v7, %v3743_v58 }
 0x919   : > { %v3740_v60 = vmul.f32 %v6642_v35, %v3702_v20  ;;  %v3703_v50 = vmul.f32 %v4625_v62, %v6439_v1  ;;  %v3559_v25 = vpop.xlane.xlu0 %3558 }
 0x91a   : > { %v4627_v17 = vpop.eup %4626  ;;  %4634 = vrsqrt.f32 %v3648_v61  ;;  %v3649_v56 = vadd.f32 1e-05, %v3617_v59  ;;  %v3614_v45 = vmul.f32 0.03125, %v3559_v25  ;;  %3844 = vst.msk [vmem:[%s6660_s26 + $0x10] sm:$0xff] %vm671_vm0, %v3812_v31  ;;  %v3813_v52 = vmax.f32 %v3781_v16, 0.0 }
 0x91b   : > { %v3778_v12 = vadd.f32 %v6648_v7, %v3740_v60  ;;  %v3741_v29 = vmul.f32 %v6642_v35, %v3703_v50  ;;  %v3708_v54 = vmul.f32 %v4627_v17, %v6446_v21  ;;  %v3561_v53 = vpop.xlane.xlu1 %3560 }
 0x91c   : > { %v4629_v30 = vpop.eup %4628  ;;  %4636 = vrsqrt.f32 %v3649_v56  ;;  %v3646_v1 = vadd.f32 1e-05, %v3614_v45  ;;  %v3615_v18 = vmul.f32 0.03125, %v3561_v53  ;;  %3845 = vst.msk [vmem:[%s6660_s26 + $0x18] sm:$0xff] %vm671_vm0, %v3813_v52 }
 0x91d   : > { %v3810_v5 = vmax.f32 %v3778_v12, 0.0  ;;  %v3779_v34 = vadd.f32 %v6648_v7, %v3741_v29  ;;  %v3746_v38 = vmul.f32 %v6642_v35, %v3708_v54  ;;  %v3709_v11 = vmul.f32 %v4629_v30, %v6453_v6 }
 0x91e   : > { %v3571_v36 = vpop.xlane.xlu0 %3570  ;;  %v4631_v14 = vpop.eup %4630  ;;  %4638 = vrsqrt.f32 %v3646_v1  ;;  %v3647_v21 = vadd.f32 1e-05, %v3615_v18 }
 0x91f   : > { %v3620_v43 = vmul.f32 0.03125, %v3571_v36  ;;  %3842 = vst.msk [vmem:[%s6660_s26] sm:$0xff] %vm671_vm0, %v3810_v5  ;;  %v3811_v24 = vmax.f32 %v3779_v34, 0.0  ;;  %v3784_v49 = vadd.f32 %v6648_v7, %v3746_v38  ;;  %v3747_v51 = vmul.f32 %v6642_v35, %v3709_v11 }
 0x920   : > { %v3706_v33 = vmul.f32 %v4631_v14, %v6460_v19  ;;  %v3573_v22 = vpop.xlane.xlu1 %3572  ;;  %v4633_v58 = vpop.eup %4632  ;;  %4640 = vrsqrt.f32 %v3647_v21 }
 0x921   : > { %v3652_v6 = vadd.f32 1e-05, %v3620_v43  ;;  %v3621_v20 = vmul.f32 0.03125, %v3573_v22  ;;  %3843 = vst.msk [vmem:[%s6660_s26 + $0x8] sm:$0xff] %vm671_vm0, %v3811_v24  ;;  %v3816_v47 = vmax.f32 %v3784_v49, 0.0  ;;  %v3785_v62 = vadd.f32 %v6648_v7, %v3747_v51 }
 0x922   : > { %v3744_v61 = vmul.f32 %v6642_v35, %v3706_v33  ;;  %v3707_v59 = vmul.f32 %v4633_v58, %v6467_v46  ;;  %v3567_v31 = vpop.xlane.xlu0 %3566 }
 0x923   : > { %4642 = vrsqrt.f32 %v3652_v6  ;;  %v3653_v16 = vadd.f32 1e-05, %v3621_v20  ;;  %v3618_v60 = vmul.f32 0.03125, %v3567_v31  ;;  %3848 = vst.msk [vmem:[%s6660_s26 + $0x30] sm:$0xff] %vm671_vm0, %v3816_v47  ;;  %v3817_v19 = vmax.f32 %v3785_v62, 0.0 }
 0x924   : > { %v3782_v50 = vadd.f32 %v6648_v7, %v3744_v61  ;;  %v3745_v25 = vmul.f32 %v6642_v35, %v3707_v59  ;;  %v3569_v17 = vpop.xlane.xlu1 %3568  ;;  %v4635_v56 = vpop.eup %4634 }
 0x925   : > { %4644 = vrsqrt.f32 %v3653_v16  ;;  %v3650_v45 = vadd.f32 1e-05, %v3618_v60  ;;  %v3619_v52 = vmul.f32 0.03125, %v3569_v17  ;;  %3849 = vst.msk [vmem:[%s6660_s26 + $0x38] sm:$0xff] %vm671_vm0, %v3817_v19  ;;  %v3712_v29 = vmul.f32 %v4635_v56, %v6474_v23 }
 0x926   : > { %v3814_v46 = vmax.f32 %v3782_v50, 0.0  ;;  %v3783_v12 = vadd.f32 %v6648_v7, %v3745_v25  ;;  %v4637_v54 = vpop.eup %4636 }
 0x927   : > { %4646 = vrsqrt.f32 %v3650_v45  ;;  %v3651_v53 = vadd.f32 1e-05, %v3619_v52  ;;  %v3750_v18 = vmul.f32 %v6642_v35, %v3712_v29  ;;  %v3713_v5 = vmul.f32 %v4637_v54, %v6481_v63 }
 0x928   : > { %3846 = vst.msk [vmem:[%s6660_s26 + $0x20] sm:$0xff] %vm671_vm0, %v3814_v46  ;;  %v3815_v1 = vmax.f32 %v3783_v12, 0.0  ;;  %v4639_v38 = vpop.eup %4638 }
 0x929   : > { %v3579_v30 = vpop.xlane.xlu0 %3578  ;;  %4648 = vrsqrt.f32 %v3651_v53  ;;  %v3788_v36 = vadd.f32 %v6648_v7, %v3750_v18  ;;  %v3751_v23 = vmul.f32 %v6642_v35, %v3713_v5  ;;  %v3710_v14 = vmul.f32 %v4639_v38, %v6488_v0 }
 0x92a   : > { %v3624_v34 = vmul.f32 0.03125, %v3579_v30  ;;  %3847 = vst.msk [vmem:[%s6660_s26 + $0x28] sm:$0xff] %vm671_vm0, %v3815_v1  ;;  %v4641_v43 = vpop.eup %4640 }
 0x92b   : > { %v3581_v11 = vpop.xlane.xlu1 %3580  ;;  %v3820_v51 = vmax.f32 %v3788_v36, 0.0  ;;  %v3789_v63 = vadd.f32 %v6648_v7, %v3751_v23  ;;  %v3748_v33 = vmul.f32 %v6642_v35, %v3710_v14  ;;  %v3711_v22 = vmul.f32 %v4641_v43, %v6495_v48 }
 0x92c   : > { %v3656_v21 = vadd.f32 1e-05, %v3624_v34  ;;  %v3625_v24 = vmul.f32 0.03125, %v3581_v11 }
 0x92d   : > { %v3575_v49 = vpop.xlane.xlu0 %3574  ;;  %v4643_v58 = vpop.eup %4642  ;;  %3852 = vst.msk [vmem:[%s6660_s26 + $0x50] sm:$0xff] %vm671_vm0, %v3820_v51  ;;  %v3821_v0 = vmax.f32 %v3789_v63, 0.0  ;;  %v3786_v62 = vadd.f32 %v6648_v7, %v3748_v33  ;;  %v3749_v61 = vmul.f32 %v6642_v35, %v3711_v22 }
 0x92e   : > { %4650 = vrsqrt.f32 %v3656_v21  ;;  %v3657_v6 = vadd.f32 1e-05, %v3625_v24  ;;  %v3622_v20 = vmul.f32 0.03125, %v3575_v49  ;;  %v3716_v59 = vmul.f32 %v4643_v58, %v6502_v39 }
 0x92f   : > { %v3577_v47 = vpop.xlane.xlu1 %3576  ;;  %v4645_v31 = vpop.eup %4644  ;;  %3853 = vst.msk [vmem:[%s6660_s26 + $0x58] sm:$0xff] %vm671_vm0, %v3821_v0  ;;  %v3818_v19 = vmax.f32 %v3786_v62, 0.0  ;;  %v3787_v50 = vadd.f32 %v6648_v7, %v3749_v61 }
 0x930   : > { %4652 = vrsqrt.f32 %v3657_v6  ;;  %v3654_v16 = vadd.f32 1e-05, %v3622_v20  ;;  %v3623_v48 = vmul.f32 0.03125, %v3577_v47  ;;  %v3754_v25 = vmul.f32 %v6642_v35, %v3716_v59 }
 0x931   : > { %v3587_v60 = vpop.xlane.xlu0 %3586  ;;  %v3717_v17 = vmul.f32 %v4645_v31, %v6509_v41  ;;  %v4647_v56 = vpop.eup %4646  ;;  %3850 = vst.msk [vmem:[%s6660_s26 + $0x40] sm:$0xff] %vm671_vm0, %v3818_v19  ;;  %v3819_v46 = vmax.f32 %v3787_v50, 0.0 }
 0x932   : > { %4654 = vrsqrt.f32 %v3654_v16  ;;  %v3655_v45 = vadd.f32 1e-05, %v3623_v48  ;;  %v3628_v39 = vmul.f32 0.03125, %v3587_v60  ;;  %v3792_v12 = vadd.f32 %v6648_v7, %v3754_v25 }
 0x933   : > { %v3589_v52 = vpop.xlane.xlu1 %3588  ;;  %v3755_v29 = vmul.f32 %v6642_v35, %v3717_v17  ;;  %v3714_v54 = vmul.f32 %v4647_v56, %v6516_v32  ;;  %v4649_v53 = vpop.eup %4648  ;;  %3851 = vst.msk [vmem:[%s6660_s26 + $0x48] sm:$0xff] %vm671_vm0, %v3819_v46 }
 0x934   : > { %4656 = vrsqrt.f32 %v3655_v45  ;;  %v3660_v30 = vadd.f32 1e-05, %v3628_v39  ;;  %v3629_v41 = vmul.f32 0.03125, %v3589_v52  ;;  %v3824_v18 = vmax.f32 %v3792_v12, 0.0 }
 0x935   : > { %v3583_v1 = vpop.xlane.xlu0 %3582  ;;  %v3793_v5 = vadd.f32 %v6648_v7, %v3755_v29  ;;  %v3752_v34 = vmul.f32 %v6642_v35, %v3714_v54  ;;  %v3715_v38 = vmul.f32 %v4649_v53, %v6523_v2 }
 0x936   : > { %4658 = vrsqrt.f32 %v3660_v30  ;;  %v3661_v11 = vadd.f32 1e-05, %v3629_v41  ;;  %v3626_v36 = vmul.f32 0.03125, %v3583_v1  ;;  %3856 = vst.msk [vmem:[%s6660_s26 + $0x70] sm:$0xff] %vm671_vm0, %v3824_v18 }
 0x937   : > { %v3585_v23 = vpop.xlane.xlu1 %3584  ;;  %v3825_v32 = vmax.f32 %v3793_v5, 0.0  ;;  %v3790_v14 = vadd.f32 %v6648_v7, %v3752_v34  ;;  %v3753_v21 = vmul.f32 %v6642_v35, %v3715_v38 }
 0x938   : > { %v3627_v43 = vmul.f32 0.03125, %v3585_v23  ;;  %v4651_v24 = vpop.eup %4650  ;;  %4660 = vrsqrt.f32 %v3661_v11  ;;  %v3658_v49 = vadd.f32 1e-05, %v3626_v36 }
 0x939   : > { %v3595_v51 = vpop.xlane.xlu0 %3594  ;;  %3857 = vst.msk [vmem:[%s6660_s26 + $0x78] sm:$0xff] %vm671_vm0, %v3825_v32  ;;  %v3822_v2 = vmax.f32 %v3790_v14, 0.0  ;;  %v3791_v63 = vadd.f32 %v6648_v7, %v3753_v21  ;;  %v3720_v33 = vmul.f32 %v4651_v24, %v6530_v57 }
 0x93a   : > { %v3659_v22 = vadd.f32 1e-05, %v3627_v43  ;;  %v4653_v58 = vpop.eup %4652  ;;  %4662 = vrsqrt.f32 %v3658_v49  ;;  %v3632_v6 = vmul.f32 0.03125, %v3595_v51 }
 0x93b   : > { %v3597_v20 = vpop.xlane.xlu1 %3596  ;;  %3854 = vst.msk [vmem:[%s6660_s26 + $0x60] sm:$0xff] %vm671_vm0, %v3822_v2  ;;  %v3823_v47 = vmax.f32 %v3791_v63, 0.0  ;;  %v3758_v0 = vmul.f32 %v6642_v35, %v3720_v33  ;;  %v3721_v62 = vmul.f32 %v4653_v58, %v6537_v37 }
 0x93c   : > { %4664 = vrsqrt.f32 %v3659_v22  ;;  %v4655_v61 = vpop.eup %4654  ;;  %v3664_v59 = vadd.f32 1e-05, %v3632_v6  ;;  %v3633_v31 = vmul.f32 0.03125, %v3597_v20 }
 0x93d   : > { %v3591_v16 = vpop.xlane.xlu0 %3590  ;;  %3855 = vst.msk [vmem:[%s6660_s26 + $0x68] sm:$0xff] %vm671_vm0, %v3823_v47  ;;  %v3796_v57 = vadd.f32 %v6648_v7, %v3758_v0  ;;  %v3759_v48 = vmul.f32 %v6642_v35, %v3721_v62  ;;  %v3718_v60 = vmul.f32 %v4655_v61, %v6544_v27 }
 0x93e   : > { %v3630_v19 = vmul.f32 0.03125, %v3591_v16  ;;  %v4657_v50 = vpop.eup %4656  ;;  %4666 = vrsqrt.f32 %v3664_v59  ;;  %v3665_v25 = vadd.f32 1e-05, %v3633_v31 }
 0x93f   : > { %v3593_v17 = vpop.xlane.xlu1 %3592  ;;  %v3828_v37 = vmax.f32 %v3796_v57, 0.0  ;;  %v3797_v56 = vadd.f32 %v6648_v7, %v3759_v48  ;;  %v3756_v45 = vmul.f32 %v6642_v35, %v3718_v60  ;;  %v3719_v39 = vmul.f32 %v4657_v50, %v6551_v3 }
 0x940   : > { %v4659_v52 = vpop.eup %4658  ;;  %4668 = vrsqrt.f32 %v3665_v25  ;;  %v3662_v46 = vadd.f32 1e-05, %v3630_v19  ;;  %v3631_v12 = vmul.f32 0.03125, %v3593_v17 }
 0x941   : > { %3860 = vst.msk [vmem:[%s6660_s26 + $0x90] sm:$0xff] %vm671_vm0, %v3828_v37  ;;  %v3829_v27 = vmax.f32 %v3797_v56, 0.0  ;;  %v3794_v29 = vadd.f32 %v6648_v7, %v3756_v45  ;;  %v3757_v54 = vmul.f32 %v6642_v35, %v3719_v39  ;;  %v3724_v53 = vmul.f32 %v4659_v52, %v6558_v9 }
 0x942   : > { %v3599_v30 = vpop.xlane.xlu0 %3598  ;;  %v4661_v41 = vpop.eup %4660  ;;  %4670 = vrsqrt.f32 %v3662_v46  ;;  %v3663_v1 = vadd.f32 1e-05, %v3631_v12 }
 0x943   : > { %v3634_v18 = vmul.f32 0.03125, %v3599_v30  ;;  %3861 = vst.msk [vmem:[%s6660_s26 + $0x98] sm:$0xff] %vm671_vm0, %v3829_v27  ;;  %v3826_v3 = vmax.f32 %v3794_v29, 0.0  ;;  %v3795_v5 = vadd.f32 %v6648_v7, %v3757_v54  ;;  %v3762_v34 = vmul.f32 %v6642_v35, %v3724_v53 }
 0x944   : > { %v3725_v38 = vmul.f32 %v4661_v41, %v6565_v55  ;;  %v3601_v11 = vpop.xlane.xlu1 %3600  ;;  %v4663_v36 = vpop.eup %4662  ;;  %4672 = vrsqrt.f32 %v3663_v1 }
 0x945   : > { %v3666_v9 = vadd.f32 1e-05, %v3634_v18  ;;  %v3635_v23 = vmul.f32 0.03125, %v3601_v11  ;;  %3858 = vst.msk [vmem:[%s6660_s26 + $0x80] sm:$0xff] %vm671_vm0, %v3826_v3  ;;  %v3827_v14 = vmax.f32 %v3795_v5, 0.0  ;;  %v3800_v21 = vadd.f32 %v6648_v7, %v3762_v34 }
 0x946   : > { %v4665_v32 = vpop.eup %4664  ;;  %v3763_v43 = vmul.f32 %v6642_v35, %v3725_v38  ;;  %v3722_v24 = vmul.f32 %v4663_v36, %v6572_v4  ;;  %v3603_v49 = vpop.xlane.xlu0 %3602 }
 0x947   : > { %v3723_v55 = vmul.f32 %v4665_v32, %v6579_v44  ;;  %4674 = vrsqrt.f32 %v3666_v9  ;;  %v3667_v51 = vadd.f32 1e-05, %v3635_v23  ;;  %v3636_v2 = vmul.f32 0.03125, %v3603_v49  ;;  %3859 = vst.msk [vmem:[%s6660_s26 + $0x88] sm:$0xff] %vm671_vm0, %v3827_v14 }
 0x948   : > { %v3832_v63 = vmax.f32 %v3800_v21, 0.0  ;;  %v3801_v33 = vadd.f32 %v6648_v7, %v3763_v43  ;;  %v3760_v22 = vmul.f32 %v6642_v35, %v3722_v24  ;;  %v3605_v58 = vpop.xlane.xlu1 %3604  ;;  %v4667_v6 = vpop.eup %4666 }
 0x949   : > { %v3761_v20 = vmul.f32 %v6642_v35, %v3723_v55  ;;  %4676 = vrsqrt.f32 %v3667_v51  ;;  %v3668_v4 = vadd.f32 1e-05, %v3636_v2  ;;  %v3637_v47 = vmul.f32 0.03125, %v3605_v58 }
 0x94a   : > { %3864 = vst.msk [vmem:[%s6660_s26 + $0xb0] sm:$0xff] %vm671_vm0, %v3832_v63  ;;  %v3833_v44 = vmax.f32 %v3801_v33, 0.0  ;;  %v3798_v0 = vadd.f32 %v6648_v7, %v3760_v22  ;;  %v3728_v62 = vmul.f32 %v4667_v6, %v6586_v8  ;;  %v4669_v61 = vpop.eup %4668 }
 0x94b   : > { %v3799_v59 = vadd.f32 %v6648_v7, %v3761_v20  ;;  %4678 = vrsqrt.f32 %v3668_v4  ;;  %v3669_v31 = vadd.f32 1e-05, %v3637_v47  ;;  %v3729_v48 = vmul.f32 %v4669_v61, %v6593_v26 }
 0x94c   : > { %3865 = vst.msk [vmem:[%s6660_s26 + $0xb8] sm:$0xff] %vm671_vm0, %v3833_v44  ;;  %v3830_v16 = vmax.f32 %v3798_v0, 0.0  ;;  %v3766_v57 = vmul.f32 %v6642_v35, %v3728_v62  ;;  %v4671_v60 = vpop.eup %4670 }
 0x94d   : > { %v3831_v19 = vmax.f32 %v3799_v59, 0.0  ;;  %4680 = vrsqrt.f32 %v3669_v31  ;;  %v3767_v50 = vmul.f32 %v6642_v35, %v3729_v48  ;;  %v3726_v25 = vmul.f32 %v4671_v60, %v6600_v42 }
 0x94e   : > { %3862 = vst.msk [vmem:[%s6660_s26 + $0xa0] sm:$0xff] %vm671_vm0, %v3830_v16  ;;  %v3804_v8 = vadd.f32 %v6648_v7, %v3766_v57  ;;  %v4673_v17 = vpop.eup %4672 }
 0x94f   : > { %3863 = vst.msk [vmem:[%s6660_s26 + $0xa8] sm:$0xff] %vm671_vm0, %v3831_v19  ;;  %v3805_v56 = vadd.f32 %v6648_v7, %v3767_v50  ;;  %v3764_v26 = vmul.f32 %v6642_v35, %v3726_v25  ;;  %v3727_v45 = vmul.f32 %v4673_v17, %v6607_v13 }
 0x950   : > { %v3836_v37 = vmax.f32 %v3804_v8, 0.0 }
 0x951   : > { %v4675_v39 = vpop.eup %4674  ;;  %v3837_v52 = vmax.f32 %v3805_v56, 0.0  ;;  %v3802_v46 = vadd.f32 %v6648_v7, %v3764_v26  ;;  %v3765_v42 = vmul.f32 %v6642_v35, %v3727_v45 }
 0x952   : > { %3868 = vst.msk [vmem:[%s6660_s26 + $0xd0] sm:$0xff] %vm671_vm0, %v3836_v37  ;;  %v3730_v12 = vmul.f32 %v4675_v39, %v6614_v15 }
 0x953   : > { %v4677_v27 = vpop.eup %4676  ;;  %3869 = vst.msk [vmem:[%s6660_s26 + $0xd8] sm:$0xff] %vm671_vm0, %v3837_v52  ;;  %v3834_v29 = vmax.f32 %v3802_v46, 0.0  ;;  %v3803_v54 = vadd.f32 %v6648_v7, %v3765_v42 }
 0x954   : > { %v3768_v13 = vmul.f32 %v6642_v35, %v3730_v12  ;;  %v3731_v53 = vmul.f32 %v4677_v27, %v6621_v40 }
 0x955   : > { %v4679_v30 = vpop.eup %4678  ;;  %3866 = vst.msk [vmem:[%s6660_s26 + $0xc0] sm:$0xff] %vm671_vm0, %v3834_v29  ;;  %v3835_v41 = vmax.f32 %v3803_v54, 0.0 }
 0x956   : > { %v3806_v1 = vadd.f32 %v6648_v7, %v3768_v13  ;;  %v3769_v15 = vmul.f32 %v6642_v35, %v3731_v53  ;;  %v3732_v18 = vmul.f32 %v4679_v30, %v6628_v28 }
 0x957   : > { %v4681_v3 = vpop.eup %4680  ;;  %3867 = vst.msk [vmem:[%s6660_s26 + $0xc8] sm:$0xff] %vm671_vm0, %v3835_v41 }
 0x958   : > { %v3838_v5 = vmax.f32 %v3806_v1, 0.0  ;;  %v3807_v34 = vadd.f32 %v6648_v7, %v3769_v15  ;;  %v3770_v40 = vmul.f32 %v6642_v35, %v3732_v18  ;;  %v3733_v38 = vmul.f32 %v4681_v3, %v6635_v10 }
 0x95a   : > { %3870 = vst.msk [vmem:[%s6660_s26 + $0xe0] sm:$0xff] %vm671_vm0, %v3838_v5  ;;  %v3839_v11 = vmax.f32 %v3807_v34, 0.0  ;;  %v3808_v36 = vadd.f32 %v6648_v7, %v3770_v40  ;;  %v3771_v9 = vmul.f32 %v6642_v35, %v3733_v38 }
 0x95c   : > { %3871 = vst.msk [vmem:[%s6660_s26 + $0xe8] sm:$0xff] %vm671_vm0, %v3839_v11  ;;  %v3840_v28 = vmax.f32 %v3808_v36, 0.0  ;;  %v3809_v23 = vadd.f32 %v6648_v7, %v3771_v9 }
 0x95e   : > { %3872 = vst.msk [vmem:[%s6660_s26 + $0xf0] sm:$0xff] %vm671_vm0, %v3840_v28  ;;  %v3841_v32 = vmax.f32 %v3809_v23, 0.0 }
 0x960   : > { %3873 = vst.msk [vmem:[%s6660_s26 + $0xf8] sm:$0xff] %vm671_vm0, %v3841_v32 }
 0x961 PF: > { %s29_s0 = sadd.s32 1, %s4688_s0  }
 0x962   : > { %p26_p4 = scmp.ge.s32.totalorder %s29_s0, 4  }
 0x964   :  { %28 = sbr.rel (!%p26_p4) target bundleno = 5 (0x5), region = 126 }

// kernel: feature_resnet_forward.1
= control target key start
LH: loop header
LB: loop body
LE: loop exit
PB: predicated region body
PF: predicated region fallthrough
CT: control target
= control target key end

     0   :  { %s6819_s0 = inlined_call_operand.vmem [shape: f32[512,32], index: 0, kind: input, shape index: {}]   ;;  %s6820_s1 = inlined_call_operand.vmem [shape: bf16[128,128], index: 1, kind: input, shape index: {}]   ;;  %s6821_s2 = inlined_call_operand.vmem [shape: f32[1,128], index: 2, kind: input, shape index: {}]   ;;  %s6822_s3 = inlined_call_operand.vmem [shape: bf16[128,128], index: 3, kind: input, shape index: {}]   ;;  %s6823_s4 = inlined_call_operand.vmem [shape: f32[1,128], index: 4, kind: input, shape index: {}]   ;;  %s6824_s5 = inlined_call_operand.vmem [shape: f32[1,128], index: 5, kind: input, shape index: {}]   ;;  %s6825_s6 = inlined_call_operand.vmem [shape: f32[1,128], index: 6, kind: input, shape index: {}]   ;;  %s6826_s7 = inlined_call_operand.vmem [shape: bf16[128,128], index: 7, kind: input, shape index: {}]   ;;  %s6827_s8 = inlined_call_operand.vmem [shape: f32[1,128], index: 8, kind: input, shape index: {}]   ;;  %s6828_s9 = inlined_call_operand.vmem [shape: bf16[128,128], index: 9, kind: input, shape index: {}]   ;;  %s6829_s10 = inlined_call_operand.vmem [shape: f32[1,128], index: 10, kind: input, shape index: {}]   ;;  %s6830_s11 = inlined_call_operand.vmem [shape: f32[1,128], index: 11, kind: input, shape index: {}]   ;;  %s6831_s12 = inlined_call_operand.vmem [shape: f32[1,128], index: 12, kind: input, shape index: {}]   ;;  %s6832_s13 = inlined_call_operand.vmem [shape: bf16[128,128], index: 13, kind: input, shape index: {}]   ;;  %s6833_s14 = inlined_call_operand.vmem [shape: f32[1,128], index: 14, kind: input, shape index: {}]   ;;  %s6834_s15 = inlined_call_operand.vmem [shape: bf16[128,128], index: 15, kind: input, shape index: {}]   ;;  %s6835_s16 = inlined_call_operand.vmem [shape: f32[1,128], index: 16, kind: input, shape index: {}]   ;;  %s6836_s17 = inlined_call_operand.vmem [shape: f32[1,128], index: 17, kind: input, shape index: {}]   ;;  %s6837_s18 = inlined_call_operand.vmem [shape: f32[1,128], index: 18, kind: input, shape index: {}]   ;;  %s6838_s19 = inlined_call_operand.vmem [shape: f32[512,32], index: 19, kind: output, shape index: {}]  }
   0x1   :  { %6894 = sst [smem:[#allocation23_spill]] %s6819_s0  ;;  %s4791_s0 = smov 0  }
   0x2   :  { %6895 = sst [smem:[#allocation24_spill]] %s6820_s1 }
   0x3   :  { %6896 = sst [smem:[#allocation25_spill]] %s6821_s2 }
   0x4   :  { %6897 = sst [smem:[#allocation26_spill]] %s6822_s3 }
   0x5 LB: > { %s3930_s30 = sadd.s32 4294967295, %s4688_s0   ;;  %p3934_p0 = scmp.ge.s32.totalorder %s4688_s0, 1  ;;  %s4688_s0 = sphi %s4791_s0, %s29_s0  }
   0x6   : > { %p538_p1 = scmp.lt.s32.totalorder %s4688_s0, 3 }
   0x8   : > { %p539_p2 = pnand %p3934_p0, %p538_p1 }
   0xa   : > { %542 = sbr.rel (%p539_p2) target bundleno = 2401 (0x961), region = 96 }
  0x11   : > { %s6898_s1 = sld [smem:[#allocation24_spill]]  ;;  %s3935_s22 = sshll.u32 %s3930_s30, 5  ;;  %v4690_v2 = vmov 0.0   ;;  %vm671_vm0 = vcmask 261120  }
  0x12   : > { %p595_p3 = scmp.lt.s32.totalorder %s3935_s22, 63  ;;  %607 = vst [vmem:[#allocation2] sm:$0xff] %v4690_v2  ;;  %608 = vst [vmem:[#allocation2 + $0x8] sm:$0xff] %v4690_v2  ;;  %s6899_s28 = sld [smem:[#allocation23_spill]] }
  0x13   : > { %609 = vst [vmem:[#allocation2 + $0x10] sm:$0xff] %v4690_v2  ;;  %610 = vst [vmem:[#allocation2 + $0x18] sm:$0xff] %v4690_v2  ;;  %s6900_s21 = sld [smem:[#allocation26_spill]]  ;;  %s6901_s27 = sld [smem:[#allocation25_spill]] }
  0x14   : > { %s6975_s22 = smov (!%p595_p3, %s3935_s22), 63  ;;  %611 = vst [vmem:[#allocation2 + $0x20] sm:$0xff] %v4690_v2  ;;  %612 = vst [vmem:[#allocation2 + $0x28] sm:$0xff] %v4690_v2 }
  0x15   : > { %613 = vst [vmem:[#allocation2 + $0x30] sm:$0xff] %v4690_v2  ;;  %614 = vst [vmem:[#allocation2 + $0x38] sm:$0xff] %v4690_v2  ;;  %s3936_s3 = sshll.u32 %s6975_s22, 3 }
  0x16   : > { %615 = vst [vmem:[#allocation2 + $0x40] sm:$0xff] %v4690_v2  ;;  %616 = vst [vmem:[#allocation2 + $0x48] sm:$0xff] %v4690_v2  ;;  %s6660_s26 = scalar_lea.vmem %s6838_s19, %s3936_s3 }
  0x17   : > { %v4442_v0 = vld [vmem:[%s6898_s1] sm:$0xff]   ;;  %v4443_v1 = vld [vmem:[%s6898_s1 + $0x8] sm:$0xff]   ;;  %617 = vst [vmem:[#allocation2 + $0x50] sm:$0xff] %v4690_v2  ;;  %618 = vst [vmem:[#allocation2 + $0x58] sm:$0xff] %v4690_v2 }
  0x18   : > { %4145 = vmatprep.subr.bf16.mxu0 %v4442_v0  ;;  %619 = vst [vmem:[#allocation2 + $0x60] sm:$0xff] %v4690_v2  ;;  %620 = vst [vmem:[#allocation2 + $0x68] sm:$0xff] %v4690_v2  ;;  %v4444_v3 = vld [vmem:[%s6898_s1 + $0x10] sm:$0xff]   ;;  %s4816_s29 = scalar_lea.vmem %s6899_s28, %s3936_s3  ;;  %v4445_v4 = vld [vmem:[%s6898_s1 + $0x18] sm:$0xff]  }
  0x19   : > { %4146 = vmatpush3.bf16.msra.mxu0 %v4442_v0  ;;  %621 = vst [vmem:[#allocation2 + $0x70] sm:$0xff] %v4690_v2  ;;  %622 = vst [vmem:[#allocation2 + $0x78] sm:$0xff] %v4690_v2  ;;  %v639_v5 = vld [vmem:[%s4816_s29] sm:$0xff]  ;;  %v640_v6 = vld [vmem:[%s4816_s29 + $0x8] sm:$0xff] }
  0x1a   : > { %623 = vst [vmem:[#allocation2 + $0x80] sm:$0xff] %v4690_v2  ;;  %624 = vst [vmem:[#allocation2 + $0x88] sm:$0xff] %v4690_v2  ;;  %4147 = vmatprep.subr.bf16.mxu0 %v4443_v1  ;;  %v641_v7 = vld [vmem:[%s4816_s29 + $0x10] sm:$0xff]  ;;  %v642_v8 = vld [vmem:[%s4816_s29 + $0x18] sm:$0xff] }
  0x1b   : > { %625 = vst [vmem:[#allocation2 + $0x90] sm:$0xff] %v4690_v2  ;;  %626 = vst [vmem:[#allocation2 + $0x98] sm:$0xff] %v4690_v2  ;;  %v643_v9 = vld [vmem:[%s4816_s29 + $0x20] sm:$0xff]  ;;  %v644_v10 = vld [vmem:[%s4816_s29 + $0x28] sm:$0xff] }
  0x1c   : > { %627 = vst [vmem:[#allocation2 + $0xa0] sm:$0xff] %v4690_v2  ;;  %628 = vst [vmem:[#allocation2 + $0xa8] sm:$0xff] %v4690_v2  ;;  %v4446_v11 = vld [vmem:[%s6898_s1 + $0x20] sm:$0xff]   ;;  %v645_v12 = vld [vmem:[%s4816_s29 + $0x30] sm:$0xff] }
  0x1d   : > { %629 = vst [vmem:[#allocation2 + $0xb0] sm:$0xff] %v4690_v2  ;;  %630 = vst [vmem:[#allocation2 + $0xb8] sm:$0xff] %v4690_v2  ;;  %4148 = vmatpush3.bf16.msra.mxu0 %v4443_v1  ;;  %v646_v13 = vld [vmem:[%s4816_s29 + $0x38] sm:$0xff]  ;;  %v647_v14 = vld [vmem:[%s4816_s29 + $0x40] sm:$0xff] }
  0x1e   : > { %631 = vst [vmem:[#allocation2 + $0xc0] sm:$0xff] %v4690_v2  ;;  %632 = vst [vmem:[#allocation2 + $0xc8] sm:$0xff] %v4690_v2  ;;  %4149 = vmatprep.subr.bf16.mxu0 %v4444_v3  ;;  %v648_v15 = vld [vmem:[%s4816_s29 + $0x48] sm:$0xff]  ;;  %v649_v16 = vld [vmem:[%s4816_s29 + $0x50] sm:$0xff] }
  0x1f   : > { %633 = vst [vmem:[#allocation2 + $0xd0] sm:$0xff] %v4690_v2  ;;  %634 = vst [vmem:[#allocation2 + $0xd8] sm:$0xff] %v4690_v2  ;;  %v650_v17 = vld [vmem:[%s4816_s29 + $0x58] sm:$0xff]  ;;  %v651_v18 = vld [vmem:[%s4816_s29 + $0x60] sm:$0xff] }
  0x20   : > { %635 = vst [vmem:[#allocation2 + $0xe0] sm:$0xff] %v4690_v2  ;;  %636 = vst [vmem:[#allocation2 + $0xe8] sm:$0xff] %v4690_v2  ;;  %v652_v19 = vld [vmem:[%s4816_s29 + $0x68] sm:$0xff]  ;;  %v653_v20 = vld [vmem:[%s4816_s29 + $0x70] sm:$0xff] }
  0x21   : > { %637 = vst [vmem:[#allocation2 + $0xf0] sm:$0xff] %v4690_v2  ;;  %638 = vst [vmem:[#allocation2 + $0xf8] sm:$0xff] %v4690_v2  ;;  %4150 = vmatpush3.bf16.msra.mxu0 %v4444_v3  ;;  %v654_v21 = vld [vmem:[%s4816_s29 + $0x78] sm:$0xff]  ;;  %v655_v22 = vld [vmem:[%s4816_s29 + $0x80] sm:$0xff] }
  0x22   : > { %672 = vst.msk [vmem:[#allocation2] sm:$0xff] %vm671_vm0, %v639_v5  ;;  %673 = vst.msk [vmem:[#allocation2 + $0x8] sm:$0xff] %vm671_vm0, %v640_v6  ;;  %4151 = vmatprep.subr.bf16.mxu0 %v4445_v4  ;;  %v656_v23 = vld [vmem:[%s4816_s29 + $0x88] sm:$0xff]  ;;  %v657_v24 = vld [vmem:[%s4816_s29 + $0x90] sm:$0xff] }
  0x23   : > { %674 = vst.msk [vmem:[#allocation2 + $0x10] sm:$0xff] %vm671_vm0, %v641_v7  ;;  %675 = vst.msk [vmem:[#allocation2 + $0x18] sm:$0xff] %vm671_vm0, %v642_v8  ;;  %v658_v25 = vld [vmem:[%s4816_s29 + $0x98] sm:$0xff]  ;;  %v659_v26 = vld [vmem:[%s4816_s29 + $0xa0] sm:$0xff] }
  0x24   : > { %676 = vst.msk [vmem:[#allocation2 + $0x20] sm:$0xff] %vm671_vm0, %v643_v9  ;;  %677 = vst.msk [vmem:[#allocation2 + $0x28] sm:$0xff] %vm671_vm0, %v644_v10  ;;  %v660_v27 = vld [vmem:[%s4816_s29 + $0xa8] sm:$0xff]  ;;  %v661_v28 = vld [vmem:[%s4816_s29 + $0xb0] sm:$0xff] }
  0x25   : > { %678 = vst.msk [vmem:[#allocation2 + $0x30] sm:$0xff] %vm671_vm0, %v645_v12  ;;  %679 = vst.msk [vmem:[#allocation2 + $0x38] sm:$0xff] %vm671_vm0, %v646_v13  ;;  %4152 = vmatpush3.bf16.msra.mxu0 %v4445_v4  ;;  %v662_v29 = vld [vmem:[%s4816_s29 + $0xb8] sm:$0xff]  ;;  %v4447_v30 = vld [vmem:[%s6898_s1 + $0x28] sm:$0xff]  }
  0x26   : > { %680 = vst.msk [vmem:[#allocation2 + $0x40] sm:$0xff] %vm671_vm0, %v647_v14  ;;  %681 = vst.msk [vmem:[#allocation2 + $0x48] sm:$0xff] %vm671_vm0, %v648_v15  ;;  %4153 = vmatprep.subr.bf16.mxu0 %v4446_v11  ;;  %v4448_v34 = vld [vmem:[%s6898_s1 + $0x30] sm:$0xff]   ;;  %v4449_v35 = vld [vmem:[%s6898_s1 + $0x38] sm:$0xff]  }
  0x27   : > { %682 = vst.msk [vmem:[#allocation2 + $0x50] sm:$0xff] %vm671_vm0, %v649_v16  ;;  %683 = vst.msk [vmem:[#allocation2 + $0x58] sm:$0xff] %vm671_vm0, %v650_v17  ;;  %v663_v36 = vld [vmem:[%s4816_s29 + $0xc0] sm:$0xff]  ;;  %v664_v37 = vld [vmem:[%s4816_s29 + $0xc8] sm:$0xff] }
  0x28   : > { %684 = vst.msk [vmem:[#allocation2 + $0x60] sm:$0xff] %vm671_vm0, %v651_v18  ;;  %685 = vst.msk [vmem:[#allocation2 + $0x68] sm:$0xff] %vm671_vm0, %v652_v19  ;;  %v665_v38 = vld [vmem:[%s4816_s29 + $0xd0] sm:$0xff]  ;;  %v666_v41 = vld [vmem:[%s4816_s29 + $0xd8] sm:$0xff] }
  0x29   : > { %686 = vst.msk [vmem:[#allocation2 + $0x70] sm:$0xff] %vm671_vm0, %v653_v20  ;;  %687 = vst.msk [vmem:[#allocation2 + $0x78] sm:$0xff] %vm671_vm0, %v654_v21  ;;  %v704_v31 = vld [vmem:[#allocation2] sm:$0xff]  ;;  %v705_v32 = vld [vmem:[#allocation2 + $0x8] sm:$0xff]  ;;  %4154 = vmatpush3.bf16.msra.mxu0 %v4446_v11 }
  0x2a   : > { %688 = vst.msk [vmem:[#allocation2 + $0x80] sm:$0xff] %vm671_vm0, %v655_v22  ;;  %689 = vst.msk [vmem:[#allocation2 + $0x88] sm:$0xff] %vm671_vm0, %v656_v23  ;;  %v772_v33 = vpack.c.bf16 %v705_v32, %v704_v31  ;;  %4155 = vmatprep.subr.bf16.mxu0 %v4447_v30  ;;  %v706_v39 = vld [vmem:[#allocation2 + $0x10] sm:$0xff]  ;;  %v707_v40 = vld [vmem:[#allocation2 + $0x18] sm:$0xff] }
  0x2b   : > { %690 = vst.msk [vmem:[#allocation2 + $0x90] sm:$0xff] %vm671_vm0, %v657_v24  ;;  %691 = vst.msk [vmem:[#allocation2 + $0x98] sm:$0xff] %vm671_vm0, %v658_v25  ;;  %v667_v42 = vld [vmem:[%s4816_s29 + $0xe0] sm:$0xff]  ;;  %v668_v43 = vld [vmem:[%s4816_s29 + $0xe8] sm:$0xff]  ;;  %v773_v50 = vpack.c.bf16 %v707_v40, %v706_v39 }
  0x2c   : > { %692 = vst.msk [vmem:[#allocation2 + $0xa0] sm:$0xff] %vm671_vm0, %v659_v26  ;;  %693 = vst.msk [vmem:[#allocation2 + $0xa8] sm:$0xff] %vm671_vm0, %v660_v27  ;;  %4161 = vmatprep.mubr.bf16.mxu0 %v772_v33  ;;  %v708_v44 = vld [vmem:[#allocation2 + $0x20] sm:$0xff]  ;;  %v709_v45 = vld [vmem:[#allocation2 + $0x28] sm:$0xff] }
  0x2d   : > { %694 = vst.msk [vmem:[#allocation2 + $0xb0] sm:$0xff] %vm671_vm0, %v661_v28  ;;  %695 = vst.msk [vmem:[#allocation2 + $0xb8] sm:$0xff] %vm671_vm0, %v662_v29  ;;  %4156 = vmatpush3.bf16.msra.mxu0 %v4447_v30  ;;  %v669_v46 = vld [vmem:[%s4816_s29 + $0xf0] sm:$0xff]  ;;  %v670_v47 = vld [vmem:[%s4816_s29 + $0xf8] sm:$0xff]  ;;  %v774_v51 = vpack.c.bf16 %v709_v45, %v708_v44 }
  0x2e   : > { %4157 = vmatprep.subr.bf16.mxu0 %v4448_v34  ;;  %696 = vst.msk [vmem:[#allocation2 + $0xc0] sm:$0xff] %vm671_vm0, %v663_v36  ;;  %697 = vst.msk [vmem:[#allocation2 + $0xc8] sm:$0xff] %vm671_vm0, %v664_v37  ;;  %v4450_v48 = vld [vmem:[%s6900_s21] sm:$0xff]   ;;  %v4451_v49 = vld [vmem:[%s6900_s21 + $0x8] sm:$0xff]  }
  0x2f   : > { %698 = vst.msk [vmem:[#allocation2 + $0xd0] sm:$0xff] %vm671_vm0, %v665_v38  ;;  %699 = vst.msk [vmem:[#allocation2 + $0xd8] sm:$0xff] %vm671_vm0, %v666_v41  ;;  %4193 = vmatprep.subr.bf16.mxu1 %v4450_v48  ;;  %v4452_v52 = vld [vmem:[%s6900_s21 + $0x10] sm:$0xff]   ;;  %v711_v54 = vld [vmem:[#allocation2 + $0x38] sm:$0xff] }
  0x30   : > { %700 = vst.msk [vmem:[#allocation2 + $0xe0] sm:$0xff] %vm671_vm0, %v667_v42  ;;  %701 = vst.msk [vmem:[#allocation2 + $0xe8] sm:$0xff] %vm671_vm0, %v668_v43  ;;  %4194 = vmatpush3.bf16.msra.mxu1 %v4450_v48  ;;  %v710_v53 = vld [vmem:[#allocation2 + $0x30] sm:$0xff]  ;;  %v712_v55 = vld [vmem:[#allocation2 + $0x40] sm:$0xff] }
  0x31   : > { %4158 = vmatpush3.bf16.msra.mxu0 %v4448_v34  ;;  %702 = vst.msk [vmem:[#allocation2 + $0xf0] sm:$0xff] %vm671_vm0, %v669_v46  ;;  %703 = vst.msk [vmem:[#allocation2 + $0xf8] sm:$0xff] %vm671_vm0, %v670_v47  ;;  %4195 = vmatprep.subr.bf16.mxu1 %v4451_v49  ;;  %v713_v56 = vld [vmem:[#allocation2 + $0x48] sm:$0xff]  ;;  %v4453_v57 = vld [vmem:[%s6900_s21 + $0x18] sm:$0xff]   ;;  %v775_v59 = vpack.c.bf16 %v711_v54, %v710_v53 }
  0x32   : > { %4159 = vmatprep.subr.bf16.mxu0 %v4449_v35  ;;  %v4454_v58 = vld [vmem:[%s6900_s21 + $0x20] sm:$0xff]   ;;  %v776_v60 = vpack.c.bf16 %v713_v56, %v712_v55  ;;  %v714_v61 = vld [vmem:[#allocation2 + $0x50] sm:$0xff]  ;;  %v715_v62 = vld [vmem:[#allocation2 + $0x58] sm:$0xff] }
  0x33   : > { %v4455_v63 = vld [vmem:[%s6900_s21 + $0x28] sm:$0xff]   ;;  %v716_v0 = vld [vmem:[#allocation2 + $0x60] sm:$0xff]  ;;  %v777_v2 = vpack.c.bf16 %v715_v62, %v714_v61  ;;  %v718_v4 = vld [vmem:[#allocation2 + $0x70] sm:$0xff] }
  0x34   : > { %4196 = vmatpush3.bf16.msra.mxu1 %v4451_v49  ;;  %v717_v1 = vld [vmem:[#allocation2 + $0x68] sm:$0xff]  ;;  %v719_v5 = vld [vmem:[#allocation2 + $0x78] sm:$0xff]  ;;  %v720_v6 = vld [vmem:[#allocation2 + $0x80] sm:$0xff] }
  0x35   : > { %4160 = vmatpush3.bf16.msra.mxu0 %v4449_v35  ;;  %4197 = vmatprep.subr.bf16.mxu1 %v4452_v52  ;;  %v778_v3 = vpack.c.bf16 %v717_v1, %v716_v0  ;;  %v721_v7 = vld [vmem:[#allocation2 + $0x88] sm:$0xff]  ;;  %v779_v8 = vpack.c.bf16 %v719_v5, %v718_v4  ;;  %v722_v10 = vld [vmem:[#allocation2 + $0x90] sm:$0xff]  ;;  %v723_v11 = vld [vmem:[#allocation2 + $0x98] sm:$0xff] }
  0x36   : > { %v780_v9 = vpack.c.bf16 %v721_v7, %v720_v6  ;;  %v724_v12 = vld [vmem:[#allocation2 + $0xa0] sm:$0xff]  ;;  %v725_v13 = vld [vmem:[#allocation2 + $0xa8] sm:$0xff]  ;;  %v781_v14 = vpack.c.bf16 %v723_v11, %v722_v10  ;;  %v726_v16 = vld [vmem:[#allocation2 + $0xb0] sm:$0xff] }
  0x37   : > { %v782_v15 = vpack.c.bf16 %v725_v13, %v724_v12  ;;  %v727_v17 = vld [vmem:[#allocation2 + $0xb8] sm:$0xff]  ;;  %v728_v18 = vld [vmem:[#allocation2 + $0xc0] sm:$0xff]  ;;  %v729_v19 = vld [vmem:[#allocation2 + $0xc8] sm:$0xff] }
  0x38   : > { %4162 = vmatmul.mubr.bf16.vlgmr.msra.gmra.mrb[0].mxu0 %v773_v50  ;;  %4198 = vmatpush3.bf16.msra.mxu1 %v4452_v52  ;;  %v783_v20 = vpack.c.bf16 %v727_v17, %v726_v16  ;;  %v784_v21 = vpack.c.bf16 %v729_v19, %v728_v18  ;;  %v730_v22 = vld [vmem:[#allocation2 + $0xd0] sm:$0xff]  ;;  %v731_v23 = vld [vmem:[#allocation2 + $0xd8] sm:$0xff]  ;;  %v732_v24 = vld [vmem:[#allocation2 + $0xe0] sm:$0xff] }
  0x39   : > { %4165 = vmatprep.mubr.bf16.mxu0 %v774_v51  ;;  %4199 = vmatprep.subr.bf16.mxu1 %v4453_v57  ;;  %v733_v25 = vld [vmem:[#allocation2 + $0xe8] sm:$0xff]  ;;  %v785_v26 = vpack.c.bf16 %v731_v23, %v730_v22  ;;  %v734_v28 = vld [vmem:[#allocation2 + $0xf0] sm:$0xff]  ;;  %v735_v29 = vld [vmem:[#allocation2 + $0xf8] sm:$0xff] }
  0x3a   : > { %v786_v27 = vpack.c.bf16 %v733_v25, %v732_v24  ;;  %v787_v30 = vpack.c.bf16 %v735_v29, %v734_v28  ;;  %v4456_v31 = vld [vmem:[%s6900_s21 + $0x30] sm:$0xff]   ;;  %v4457_v32 = vld [vmem:[%s6900_s21 + $0x38] sm:$0xff]   ;;  %v4924_v33 = vld [vmem:[%s6901_s27] ss:$0 sm:$0xff] }
  0x3c   : > { %4200 = vmatpush3.bf16.msra.mxu1 %v4453_v57 }
  0x3d   : > { %4201 = vmatprep.subr.bf16.mxu1 %v4454_v58 }
  0x40   : > { %4166 = vmatmul.mubr.bf16.gmra.mrb[4].mxu0 %v775_v59  ;;  %4202 = vmatpush3.bf16.msra.mxu1 %v4454_v58 }
  0x41   : > { %4169 = vmatprep.mubr.bf16.mxu0 %v776_v60  ;;  %4203 = vmatprep.subr.bf16.mxu1 %v4455_v63 }
  0x44   : > { %4204 = vmatpush3.bf16.msra.mxu1 %v4455_v63 }
  0x45   : > { %4205 = vmatprep.subr.bf16.mxu1 %v4456_v31 }
  0x48   : > { %4170 = vmatmul.mubr.bf16.gmra.mrb[8].mxu0 %v777_v2  ;;  %4206 = vmatpush3.bf16.msra.mxu1 %v4456_v31 }
  0x49   : > { %4173 = vmatprep.mubr.bf16.mxu0 %v778_v3  ;;  %4207 = vmatprep.subr.bf16.mxu1 %v4457_v32 }
  0x4c   : > { %4208 = vmatpush3.bf16.msra.mxu1 %v4457_v32 }
  0x50   : > { %4174 = vmatmul.mubr.bf16.gmra.mrb[12].mxu0 %v779_v8 }
  0x51   : > { %4177 = vmatprep.mubr.bf16.mxu0 %v780_v9 }
  0x58   : > { %4178 = vmatmul.mubr.bf16.gmra.mrb[16].mxu0 %v781_v14 }
  0x59   : > { %4181 = vmatprep.mubr.bf16.mxu0 %v782_v15 }
  0x60   : > { %4182 = vmatmul.mubr.bf16.gmra.mrb[20].mxu0 %v783_v20 }
  0x61   : > { %4185 = vmatprep.mubr.bf16.mxu0 %v784_v21 }
  0x68   : > { %4186 = vmatmul.mubr.bf16.gmra.mrb[24].mxu0 %v785_v26 }
  0x69   : > { %4189 = vmatprep.mubr.bf16.mxu0 %v786_v27 }
  0x70   : > { %4190 = vmatmul.mubr.bf16.gmra.mrb[28].mxu0 %v787_v30 }
 0x10b   : > { %v4163_v34 = vpop.f32.mrb[0].mxu0 }
 0x10c   : > { %v885_v35 = vadd.f32 %v4163_v34, %v4924_v33  ;;  %v876_v36 = vpop.f32.mrb[1].mxu0 }
 0x10d   : > { %v877_v37 = vadd.f32 %v4924_v33, %v876_v36  ;;  %v4164_v38 = vpop.f32.mrb[2].mxu0 }
 0x10e   : > { %v888_v39 = vadd.f32 %v4164_v38, %v4924_v33  ;;  %v879_v40 = vpop.f32.mrb[3].mxu0  ;;  %v1005_v42 = vmax.f32 %v885_v35, 0.0 }
 0x10f   : > { %v880_v41 = vadd.f32 %v4924_v33, %v879_v40  ;;  %v1003_v44 = vmax.f32 %v877_v37, 0.0 }
 0x110   : > { %v1006_v43 = vmax.f32 %v888_v39, 0.0 }
 0x111   : > { %v1004_v45 = vmax.f32 %v880_v41, 0.0 }
 0x112   : > { %v1036_v46 = vpack.c.bf16 %v1006_v43, %v1005_v42 }
 0x113   : > { %v4167_v47 = vpop.f32.mrb[4].mxu0  ;;  %v1035_v48 = vpack.c.bf16 %v1004_v45, %v1003_v44 }
 0x114   : > { %v901_v49 = vadd.f32 %v4167_v47, %v4924_v33  ;;  %v892_v50 = vpop.f32.mrb[5].mxu0 }
 0x115   : > { %v893_v51 = vadd.f32 %v4924_v33, %v892_v50  ;;  %v4168_v52 = vpop.f32.mrb[6].mxu0  ;;  %4209 = vmatprep.mubr.bf16.mxu1 %v1035_v48 }
 0x116   : > { %v1009_v53 = vmax.f32 %v901_v49, 0.0  ;;  %v904_v54 = vadd.f32 %v4168_v52, %v4924_v33  ;;  %v895_v55 = vpop.f32.mrb[7].mxu0  ;;  %4210 = vmatmul.mubr.bf16.vlgmr.msra.gmra.mrb[0].mxu1 %v1036_v46 }
 0x117   : > { %v1007_v56 = vmax.f32 %v893_v51, 0.0  ;;  %v896_v57 = vadd.f32 %v4924_v33, %v895_v55 }
 0x118   : > { %v1010_v58 = vmax.f32 %v904_v54, 0.0 }
 0x119   : > { %v1008_v59 = vmax.f32 %v896_v57, 0.0 }
 0x11a   : > { %v1038_v60 = vpack.c.bf16 %v1010_v58, %v1009_v53 }
 0x11b   : > { %v1037_v61 = vpack.c.bf16 %v1008_v59, %v1007_v56  ;;  %v4171_v62 = vpop.f32.mrb[8].mxu0 }
 0x11c   : > { %v917_v63 = vadd.f32 %v4171_v62, %v4924_v33  ;;  %v908_v0 = vpop.f32.mrb[9].mxu0 }
 0x11d   : > { %v909_v1 = vadd.f32 %v4924_v33, %v908_v0  ;;  %v4172_v2 = vpop.f32.mrb[10].mxu0  ;;  %4213 = vmatprep.mubr.bf16.mxu1 %v1037_v61 }
 0x11e   : > { %v1013_v3 = vmax.f32 %v917_v63, 0.0  ;;  %v920_v4 = vadd.f32 %v4172_v2, %v4924_v33  ;;  %v911_v5 = vpop.f32.mrb[11].mxu0  ;;  %4214 = vmatmul.mubr.bf16.gmra.mrb[4].mxu1 %v1038_v60 }
 0x11f   : > { %v1011_v6 = vmax.f32 %v909_v1, 0.0  ;;  %v912_v7 = vadd.f32 %v4924_v33, %v911_v5 }
 0x120   : > { %v1014_v8 = vmax.f32 %v920_v4, 0.0 }
 0x121   : > { %v1012_v9 = vmax.f32 %v912_v7, 0.0 }
 0x122   : > { %v1040_v10 = vpack.c.bf16 %v1014_v8, %v1013_v3 }
 0x123   : > { %v1039_v11 = vpack.c.bf16 %v1012_v9, %v1011_v6  ;;  %v4175_v12 = vpop.f32.mrb[12].mxu0 }
 0x124   : > { %v933_v13 = vadd.f32 %v4175_v12, %v4924_v33  ;;  %v924_v14 = vpop.f32.mrb[13].mxu0 }
 0x125   : > { %v925_v15 = vadd.f32 %v4924_v33, %v924_v14  ;;  %v4176_v16 = vpop.f32.mrb[14].mxu0  ;;  %4217 = vmatprep.mubr.bf16.mxu1 %v1039_v11 }
 0x126   : > { %v1017_v17 = vmax.f32 %v933_v13, 0.0  ;;  %v936_v18 = vadd.f32 %v4176_v16, %v4924_v33  ;;  %v927_v19 = vpop.f32.mrb[15].mxu0  ;;  %4218 = vmatmul.mubr.bf16.gmra.mrb[8].mxu1 %v1040_v10 }
 0x127   : > { %v1015_v20 = vmax.f32 %v925_v15, 0.0  ;;  %v928_v21 = vadd.f32 %v4924_v33, %v927_v19  ;;  %v4961_v19 = vld [vmem:[%s6823_s4] ss:$0 sm:$0xff] }
 0x128   : > { %v1018_v22 = vmax.f32 %v936_v18, 0.0 }
 0x129   : > { %v1016_v23 = vmax.f32 %v928_v21, 0.0 }
 0x12a   : > { %v1042_v24 = vpack.c.bf16 %v1018_v22, %v1017_v17 }
 0x12b   : > { %v1041_v25 = vpack.c.bf16 %v1016_v23, %v1015_v20  ;;  %v4179_v26 = vpop.f32.mrb[16].mxu0 }
 0x12c   : > { %v949_v27 = vadd.f32 %v4179_v26, %v4924_v33  ;;  %v940_v28 = vpop.f32.mrb[17].mxu0 }
 0x12d   : > { %v941_v29 = vadd.f32 %v4924_v33, %v940_v28  ;;  %v4180_v30 = vpop.f32.mrb[18].mxu0  ;;  %4221 = vmatprep.mubr.bf16.mxu1 %v1041_v25 }
 0x12e   : > { %v1021_v31 = vmax.f32 %v949_v27, 0.0  ;;  %v952_v32 = vadd.f32 %v4180_v30, %v4924_v33  ;;  %v943_v34 = vpop.f32.mrb[19].mxu0  ;;  %4222 = vmatmul.mubr.bf16.gmra.mrb[12].mxu1 %v1042_v24 }
 0x12f   : > { %v1019_v35 = vmax.f32 %v941_v29, 0.0  ;;  %v944_v36 = vadd.f32 %v4924_v33, %v943_v34 }
 0x130   : > { %v1022_v37 = vmax.f32 %v952_v32, 0.0 }
 0x131   : > { %v1020_v38 = vmax.f32 %v944_v36, 0.0 }
 0x132   : > { %v1044_v39 = vpack.c.bf16 %v1022_v37, %v1021_v31 }
 0x133   : > { %v1043_v40 = vpack.c.bf16 %v1020_v38, %v1019_v35  ;;  %v4183_v41 = vpop.f32.mrb[20].mxu0 }
 0x134   : > { %v965_v42 = vadd.f32 %v4183_v41, %v4924_v33  ;;  %v956_v43 = vpop.f32.mrb[21].mxu0 }
 0x135   : > { %v957_v44 = vadd.f32 %v4924_v33, %v956_v43  ;;  %v4184_v45 = vpop.f32.mrb[22].mxu0  ;;  %4225 = vmatprep.mubr.bf16.mxu1 %v1043_v40 }
 0x136   : > { %v1025_v46 = vmax.f32 %v965_v42, 0.0  ;;  %v968_v47 = vadd.f32 %v4184_v45, %v4924_v33  ;;  %v959_v48 = vpop.f32.mrb[23].mxu0  ;;  %4226 = vmatmul.mubr.bf16.gmra.mrb[16].mxu1 %v1044_v39 }
 0x137   : > { %v1023_v49 = vmax.f32 %v957_v44, 0.0  ;;  %v960_v50 = vadd.f32 %v4924_v33, %v959_v48 }
 0x138   : > { %v1026_v51 = vmax.f32 %v968_v47, 0.0 }
 0x139   : > { %v1024_v52 = vmax.f32 %v960_v50, 0.0 }
 0x13a   : > { %v1046_v53 = vpack.c.bf16 %v1026_v51, %v1025_v46 }
 0x13b   : > { %v1045_v54 = vpack.c.bf16 %v1024_v52, %v1023_v49  ;;  %v4187_v55 = vpop.f32.mrb[24].mxu0 }
 0x13c   : > { %v981_v56 = vadd.f32 %v4187_v55, %v4924_v33  ;;  %v972_v57 = vpop.f32.mrb[25].mxu0 }
 0x13d   : > { %v973_v58 = vadd.f32 %v4924_v33, %v972_v57  ;;  %v4188_v59 = vpop.f32.mrb[26].mxu0  ;;  %4229 = vmatprep.mubr.bf16.mxu1 %v1045_v54 }
 0x13e   : > { %v1029_v60 = vmax.f32 %v981_v56, 0.0  ;;  %v984_v61 = vadd.f32 %v4188_v59, %v4924_v33  ;;  %v975_v62 = vpop.f32.mrb[27].mxu0  ;;  %4230 = vmatmul.mubr.bf16.gmra.mrb[20].mxu1 %v1046_v53 }
 0x13f   : > { %v1027_v63 = vmax.f32 %v973_v58, 0.0  ;;  %v976_v0 = vadd.f32 %v4924_v33, %v975_v62 }
 0x140   : > { %v1030_v1 = vmax.f32 %v984_v61, 0.0 }
 0x141   : > { %v1028_v2 = vmax.f32 %v976_v0, 0.0 }
 0x142   : > { %v1048_v3 = vpack.c.bf16 %v1030_v1, %v1029_v60 }
 0x143   : > { %v1047_v4 = vpack.c.bf16 %v1028_v2, %v1027_v63  ;;  %v4191_v5 = vpop.f32.mrb[28].mxu0 }
 0x144   : > { %v997_v6 = vadd.f32 %v4191_v5, %v4924_v33  ;;  %v988_v7 = vpop.f32.mrb[29].mxu0 }
 0x145   : > { %v989_v8 = vadd.f32 %v4924_v33, %v988_v7  ;;  %v4192_v9 = vpop.f32.mrb[30].mxu0  ;;  %4233 = vmatprep.mubr.bf16.mxu1 %v1047_v4 }
 0x146   : > { %v1033_v10 = vmax.f32 %v997_v6, 0.0  ;;  %v1000_v11 = vadd.f32 %v4192_v9, %v4924_v33  ;;  %v991_v12 = vpop.f32.mrb[31].mxu0  ;;  %4234 = vmatmul.mubr.bf16.gmra.mrb[24].mxu1 %v1048_v3 }
 0x147   : > { %v1031_v13 = vmax.f32 %v989_v8, 0.0  ;;  %v992_v14 = vadd.f32 %v4924_v33, %v991_v12 }
 0x148   : > { %v1034_v15 = vmax.f32 %v1000_v11, 0.0 }
 0x149   : > { %v1032_v16 = vmax.f32 %v992_v14, 0.0 }
 0x14a   : > { %v1050_v17 = vpack.c.bf16 %v1034_v15, %v1033_v10 }
 0x14b   : > { %v1049_v18 = vpack.c.bf16 %v1032_v16, %v1031_v13 }
 0x14d   : > { %4237 = vmatprep.mubr.bf16.mxu1 %v1049_v18 }
 0x14e   : > { %4238 = vmatmul.mubr.bf16.gmra.mrb[28].mxu1 %v1050_v17 }
 0x1e9   : > { %v4211_v20 = vpop.f32.mrb[0].mxu1 }
 0x1ea   : > { %v4964_v21 = vadd.f32 %v4211_v20, %v4961_v19  ;;  %v1139_v22 = vpop.f32.mrb[1].mxu1 }
 0x1eb   : > { %v4967_v23 = vadd.f32 %v4961_v19, %v1139_v22  ;;  %v4212_v33 = vpop.f32.mrb[2].mxu1  ;;  %v4458_v22 = vld [vmem:[%s6826_s7] sm:$0xff]  }
 0x1ec   : > { %1270 = vadd.xlane.f32.xlu1 %v4964_v21  ;;  %v1142_v24 = vpop.f32.mrb[3].mxu1  ;;  %v4972_v25 = vadd.f32 %v4212_v33, %v4961_v19  ;;  %v4459_v33 = vld [vmem:[%s6826_s7 + $0x8] sm:$0xff]   ;;  %4241 = vmatprep.subr.bf16.mxu0 %v4458_v22 }
 0x1ed   : > { %1266 = vadd.xlane.f32.xlu0 %v4967_v23  ;;  %v4975_v26 = vadd.f32 %v4961_v19, %v1142_v24  ;;  %4242 = vmatpush3.bf16.msra.mxu0 %v4458_v22  ;;  %v4461_v24 = vld [vmem:[%s6826_s7 + $0x18] sm:$0xff]  }
 0x1ee   : > { %4243 = vmatprep.subr.bf16.mxu0 %v4459_v33 }
 0x1f0   : > { %1272 = vadd.xlane.f32.xlu1 %v4972_v25 }
 0x1f1   : > { %v4215_v27 = vpop.f32.mrb[4].mxu1  ;;  %1268 = vadd.xlane.f32.xlu0 %v4975_v26  ;;  %4244 = vmatpush3.bf16.msra.mxu0 %v4459_v33 }
 0x1f2   : > { %v1155_v28 = vpop.f32.mrb[5].mxu1  ;;  %v4987_v34 = vadd.f32 %v4215_v27, %v4961_v19  ;;  %v1394_v27 = vlaneseq }
 0x1f3   : > { %v4980_v29 = vadd.f32 %v4961_v19, %v1155_v28  ;;  %v4216_v30 = vpop.f32.mrb[6].mxu1 }
 0x1f4   : > { %v1158_v31 = vpop.f32.mrb[7].mxu1  ;;  %v4991_v35 = vadd.f32 %v4216_v30, %v4961_v19  ;;  %v5103_v28 = vand.u32 127, %v1394_v27 }
 0x1f5   : > { %v4983_v32 = vadd.f32 %v4961_v19, %v1158_v31  ;;  %1274 = vadd.xlane.f32.xlu0 %v4980_v29 }
 0x1f6   : > { %6902 = vst [vmem:[#allocation3_spill] sm:$0xff] %v5103_v28  ;;  %vm1396_vm1 = vcmp.lt.s32.totalorder %v5103_v28, 64 }
 0x1f7   : > { %1276 = vadd.xlane.f32.xlu1 %v4983_v32 }
 0x1f9   : > { %v4219_v36 = vpop.f32.mrb[8].mxu1  ;;  %1278 = vadd.xlane.f32.xlu0 %v4987_v34 }
 0x1fa   : > { %v1171_v37 = vpop.f32.mrb[9].mxu1  ;;  %v5003_v42 = vadd.f32 %v4219_v36, %v4961_v19 }
 0x1fb   : > { %v4995_v38 = vadd.f32 %v4961_v19, %v1171_v37  ;;  %v4220_v39 = vpop.f32.mrb[10].mxu1  ;;  %1280 = vadd.xlane.f32.xlu1 %v4991_v35 }
 0x1fc   : > { %v1174_v40 = vpop.f32.mrb[11].mxu1  ;;  %v5007_v43 = vadd.f32 %v4220_v39, %v4961_v19 }
 0x1fd   : > { %v4999_v41 = vadd.f32 %v4961_v19, %v1174_v40  ;;  %1282 = vadd.xlane.f32.xlu0 %v4995_v38 }
 0x1ff   : > { %1284 = vadd.xlane.f32.xlu1 %v4999_v41 }
 0x201   : > { %v4223_v44 = vpop.f32.mrb[12].mxu1  ;;  %1286 = vadd.xlane.f32.xlu0 %v5003_v42 }
 0x202   : > { %v1187_v45 = vpop.f32.mrb[13].mxu1  ;;  %v5019_v50 = vadd.f32 %v4223_v44, %v4961_v19 }
 0x203   : > { %v5011_v46 = vadd.f32 %v4961_v19, %v1187_v45  ;;  %v4224_v47 = vpop.f32.mrb[14].mxu1  ;;  %1288 = vadd.xlane.f32.xlu1 %v5007_v43 }
 0x204   : > { %v1190_v48 = vpop.f32.mrb[15].mxu1  ;;  %v5023_v51 = vadd.f32 %v4224_v47, %v4961_v19 }
 0x205   : > { %v5015_v49 = vadd.f32 %v4961_v19, %v1190_v48  ;;  %1290 = vadd.xlane.f32.xlu0 %v5011_v46 }
 0x207   : > { %1292 = vadd.xlane.f32.xlu1 %v5015_v49 }
 0x209   : > { %v4227_v52 = vpop.f32.mrb[16].mxu1  ;;  %1294 = vadd.xlane.f32.xlu0 %v5019_v50 }
 0x20a   : > { %v1203_v53 = vpop.f32.mrb[17].mxu1  ;;  %v5035_v58 = vadd.f32 %v4227_v52, %v4961_v19 }
 0x20b   : > { %v5027_v54 = vadd.f32 %v4961_v19, %v1203_v53  ;;  %v4228_v55 = vpop.f32.mrb[18].mxu1  ;;  %1296 = vadd.xlane.f32.xlu1 %v5023_v51 }
 0x20c   : > { %v1206_v56 = vpop.f32.mrb[19].mxu1  ;;  %v5039_v59 = vadd.f32 %v4228_v55, %v4961_v19 }
 0x20d   : > { %v5031_v57 = vadd.f32 %v4961_v19, %v1206_v56  ;;  %1298 = vadd.xlane.f32.xlu0 %v5027_v54 }
 0x20f   : > { %1300 = vadd.xlane.f32.xlu1 %v5031_v57 }
 0x211   : > { %v4231_v60 = vpop.f32.mrb[20].mxu1  ;;  %1302 = vadd.xlane.f32.xlu0 %v5035_v58 }
 0x212   : > { %v1219_v61 = vpop.f32.mrb[21].mxu1  ;;  %v5051_v2 = vadd.f32 %v4231_v60, %v4961_v19 }
 0x213   : > { %v5043_v62 = vadd.f32 %v4961_v19, %v1219_v61  ;;  %v4232_v63 = vpop.f32.mrb[22].mxu1  ;;  %1304 = vadd.xlane.f32.xlu1 %v5039_v59 }
 0x214   : > { %v1222_v0 = vpop.f32.mrb[23].mxu1  ;;  %v5055_v3 = vadd.f32 %v4232_v63, %v4961_v19 }
 0x215   : > { %v5047_v1 = vadd.f32 %v4961_v19, %v1222_v0  ;;  %1306 = vadd.xlane.f32.xlu0 %v5043_v62 }
 0x217   : > { %1308 = vadd.xlane.f32.xlu1 %v5047_v1 }
 0x219   : > { %v4235_v4 = vpop.f32.mrb[24].mxu1  ;;  %1310 = vadd.xlane.f32.xlu0 %v5051_v2 }
 0x21a   : > { %v1235_v5 = vpop.f32.mrb[25].mxu1  ;;  %v5067_v10 = vadd.f32 %v4235_v4, %v4961_v19 }
 0x21b   : > { %v5059_v6 = vadd.f32 %v4961_v19, %v1235_v5  ;;  %v4236_v7 = vpop.f32.mrb[26].mxu1  ;;  %1312 = vadd.xlane.f32.xlu1 %v5055_v3 }
 0x21c   : > { %v1238_v8 = vpop.f32.mrb[27].mxu1  ;;  %v5071_v11 = vadd.f32 %v4236_v7, %v4961_v19 }
 0x21d   : > { %v5063_v9 = vadd.f32 %v4961_v19, %v1238_v8  ;;  %1314 = vadd.xlane.f32.xlu0 %v5059_v6 }
 0x21f   : > { %1316 = vadd.xlane.f32.xlu1 %v5063_v9 }
 0x221   : > { %v4239_v12 = vpop.f32.mrb[28].mxu1  ;;  %1318 = vadd.xlane.f32.xlu0 %v5067_v10 }
 0x222   : > { %v1251_v13 = vpop.f32.mrb[29].mxu1  ;;  %v5083_v18 = vadd.f32 %v4239_v12, %v4961_v19 }
 0x223   : > { %v5075_v14 = vadd.f32 %v4961_v19, %v1251_v13  ;;  %v4240_v15 = vpop.f32.mrb[30].mxu1  ;;  %1320 = vadd.xlane.f32.xlu1 %v5071_v11 }
 0x224   : > { %v1254_v16 = vpop.f32.mrb[31].mxu1  ;;  %v5087_v20 = vadd.f32 %v4240_v15, %v4961_v19 }
 0x225   : > { %v5079_v17 = vadd.f32 %v4961_v19, %v1254_v16  ;;  %1322 = vadd.xlane.f32.xlu0 %v5075_v14  ;;  %v4460_v19 = vld [vmem:[%s6826_s7 + $0x10] sm:$0xff]  }
 0x226   : > { %4245 = vmatprep.subr.bf16.mxu0 %v4460_v19 }
 0x227   : > { %1324 = vadd.xlane.f32.xlu1 %v5079_v17  ;;  %4246 = vmatpush3.bf16.msra.mxu0 %v4460_v19 }
 0x228   : > { %4247 = vmatprep.subr.bf16.mxu0 %v4461_v24 }
 0x229   : > { %1326 = vadd.xlane.f32.xlu0 %v5083_v18 }
 0x22b   : > { %1328 = vadd.xlane.f32.xlu1 %v5087_v20  ;;  %4248 = vmatpush3.bf16.msra.mxu0 %v4461_v24 }
 0x279   : > { %v1271_v30 = vpop.xlane.xlu1 %1270 }
 0x27a   : > { %v1332_v31 = vmul.f32 0.015625, %v1271_v30  ;;  %v1267_v36 = vpop.xlane.xlu0 %1266 }
 0x27b   : > { %v1330_v37 = vmul.f32 0.015625, %v1267_v36 }
 0x27c   : > { %v1364_v39 = vsub.f32 %v4964_v21, %v1332_v31 }
 0x27d   : > { %v1362_v40 = vsub.f32 %v4967_v23, %v1330_v37  ;;  %v1273_v44 = vpop.xlane.xlu1 %1272 }
 0x27e   : > { %v1333_v45 = vmul.f32 0.015625, %v1273_v44  ;;  %v1269_v47 = vpop.xlane.xlu0 %1268  ;;  %v5118_v21 = vsel %vm1396_vm1, %v1364_v39, 0.0 }
 0x27f   : > { %v1331_v48 = vmul.f32 0.015625, %v1269_v47  ;;  %v5110_v52 = vsel %vm1396_vm1, %v1362_v40, 0.0  ;;  %v1433_v0 = vmul.f32 %v5118_v21, %v5118_v21 }
 0x280   : > { %v1431_v53 = vmul.f32 %v5110_v52, %v5110_v52  ;;  %v1365_v55 = vsub.f32 %v4972_v25, %v1333_v45 }
 0x281   : > { %v1363_v56 = vsub.f32 %v4975_v26, %v1331_v48 }
 0x282   : > { %1463 = vadd.xlane.f32.xlu0 %v1431_v53  ;;  %v1275_v23 = vpop.xlane.xlu0 %1274  ;;  %v5131_v5 = vsel %vm1396_vm1, %v1365_v55, 0.0 }
 0x283   : > { %v1334_v60 = vmul.f32 0.015625, %v1275_v23  ;;  %v5122_v61 = vsel %vm1396_vm1, %v1363_v56, 0.0  ;;  %v1434_v16 = vmul.f32 %v5131_v5, %v5131_v5 }
 0x284   : > { %v1277_v63 = vpop.xlane.xlu1 %1276  ;;  %v1432_v25 = vmul.f32 %v5122_v61, %v5122_v61 }
 0x285   : > { %v1366_v26 = vsub.f32 %v4980_v29, %v1334_v60  ;;  %v1335_v4 = vmul.f32 0.015625, %v1277_v63 }
 0x286   : > { %1467 = vadd.xlane.f32.xlu0 %v1433_v0  ;;  %1465 = vadd.xlane.f32.xlu1 %v1432_v25  ;;  %v1279_v7 = vpop.xlane.xlu0 %1278 }
 0x287   : > { %v1367_v8 = vsub.f32 %v4983_v32, %v1335_v4  ;;  %v1336_v12 = vmul.f32 0.015625, %v1279_v7  ;;  %v5136_v13 = vsel %vm1396_vm1, %v1366_v26, 0.0  ;;  %v4462_v4 = vld [vmem:[%s6826_s7 + $0x20] sm:$0xff]  }
 0x288   : > { %v1281_v15 = vpop.xlane.xlu1 %1280  ;;  %v1435_v29 = vmul.f32 %v5136_v13, %v5136_v13  ;;  %4249 = vmatprep.subr.bf16.mxu0 %v4462_v4 }
 0x289   : > { %v1368_v22 = vsub.f32 %v4987_v34, %v1336_v12  ;;  %v1337_v33 = vmul.f32 0.015625, %v1281_v15  ;;  %v5145_v19 = vsel %vm1396_vm1, %v1367_v8, 0.0  ;;  %4250 = vmatpush3.bf16.msra.mxu0 %v4462_v4 }
 0x28a   : > { %1469 = vadd.xlane.f32.xlu1 %v1434_v16  ;;  %1471 = vadd.xlane.f32.xlu0 %v1435_v29  ;;  %v1283_v32 = vpop.xlane.xlu0 %1282  ;;  %v1436_v36 = vmul.f32 %v5145_v19, %v5145_v19 }
 0x28b   : > { %v1369_v24 = vsub.f32 %v4991_v35, %v1337_v33  ;;  %v1338_v27 = vmul.f32 0.015625, %v1283_v32  ;;  %v5150_v30 = vsel %vm1396_vm1, %v1368_v22, 0.0 }
 0x28c   : > { %v1285_v31 = vpop.xlane.xlu1 %1284  ;;  %v1437_v34 = vmul.f32 %v5150_v30, %v5150_v30 }
 0x28d   : > { %v1370_v37 = vsub.f32 %v4995_v38, %v1338_v27  ;;  %v1339_v39 = vmul.f32 0.015625, %v1285_v31  ;;  %v5159_v40 = vsel %vm1396_vm1, %v1369_v24, 0.0 }
 0x28e   : > { %1473 = vadd.xlane.f32.xlu1 %v1436_v36  ;;  %1475 = vadd.xlane.f32.xlu0 %v1437_v34  ;;  %v1287_v35 = vpop.xlane.xlu0 %1286  ;;  %v1438_v53 = vmul.f32 %v5159_v40, %v5159_v40 }
 0x28f   : > { %v1371_v44 = vsub.f32 %v4999_v41, %v1339_v39  ;;  %v1340_v45 = vmul.f32 0.015625, %v1287_v35  ;;  %v5164_v47 = vsel %vm1396_vm1, %v1370_v37, 0.0 }
 0x290   : > { %v1289_v48 = vpop.xlane.xlu1 %1288  ;;  %v1439_v38 = vmul.f32 %v5164_v47, %v5164_v47 }
 0x291   : > { %v1372_v55 = vsub.f32 %v5003_v42, %v1340_v45  ;;  %v1341_v56 = vmul.f32 0.015625, %v1289_v48  ;;  %v5173_v23 = vsel %vm1396_vm1, %v1371_v44, 0.0 }
 0x292   : > { %1477 = vadd.xlane.f32.xlu1 %v1438_v53  ;;  %1479 = vadd.xlane.f32.xlu0 %v1439_v38  ;;  %v1291_v41 = vpop.xlane.xlu0 %1290  ;;  %v1440_v26 = vmul.f32 %v5173_v23, %v5173_v23 }
 0x293   : > { %v1373_v60 = vsub.f32 %v5007_v43, %v1341_v56  ;;  %v1342_v63 = vmul.f32 0.015625, %v1291_v41  ;;  %v5178_v0 = vsel %vm1396_vm1, %v1372_v55, 0.0 }
 0x294   : > { %v1293_v25 = vpop.xlane.xlu1 %1292  ;;  %v1441_v42 = vmul.f32 %v5178_v0, %v5178_v0 }
 0x295   : > { %v1374_v7 = vsub.f32 %v5011_v46, %v1342_v63  ;;  %v1343_v8 = vmul.f32 0.015625, %v1293_v25  ;;  %v5190_v43 = vsel %vm1396_vm1, %v1373_v60, 0.0 }
 0x296   : > { %1481 = vadd.xlane.f32.xlu1 %v1440_v26  ;;  %1483 = vadd.xlane.f32.xlu0 %v1441_v42  ;;  %v1295_v12 = vpop.xlane.xlu0 %1294  ;;  %v1442_v46 = vmul.f32 %v5190_v43, %v5190_v43 }
 0x297   : > { %v1375_v15 = vsub.f32 %v5015_v49, %v1343_v8  ;;  %v1344_v16 = vmul.f32 0.015625, %v1295_v12  ;;  %v5195_v29 = vsel %vm1396_vm1, %v1374_v7, 0.0  ;;  %v4463_v8 = vld [vmem:[%s6826_s7 + $0x28] sm:$0xff]  }
 0x298   : > { %v1297_v22 = vpop.xlane.xlu1 %1296  ;;  %v1443_v33 = vmul.f32 %v5195_v29, %v5195_v29  ;;  %4251 = vmatprep.subr.bf16.mxu0 %v4463_v8 }
 0x299   : > { %v1376_v32 = vsub.f32 %v5019_v50, %v1344_v16  ;;  %v1345_v24 = vmul.f32 0.015625, %v1297_v22  ;;  %v5204_v49 = vsel %vm1396_vm1, %v1375_v15, 0.0  ;;  %4252 = vmatpush3.bf16.msra.mxu0 %v4463_v8 }
 0x29a   : > { %1485 = vadd.xlane.f32.xlu1 %v1442_v46  ;;  %1487 = vadd.xlane.f32.xlu0 %v1443_v33  ;;  %v1299_v27 = vpop.xlane.xlu0 %1298  ;;  %v1444_v39 = vmul.f32 %v5204_v49, %v5204_v49 }
 0x29b   : > { %v1377_v31 = vsub.f32 %v5023_v51, %v1345_v24  ;;  %v1346_v36 = vmul.f32 0.015625, %v1299_v27  ;;  %v5209_v34 = vsel %vm1396_vm1, %v1376_v32, 0.0  ;;  %v4464_v27 = vld [vmem:[%s6826_s7 + $0x30] sm:$0xff]  }
 0x29c   : > { %v1301_v37 = vpop.xlane.xlu1 %1300  ;;  %v1445_v50 = vmul.f32 %v5209_v34, %v5209_v34  ;;  %4253 = vmatprep.subr.bf16.mxu0 %v4464_v27 }
 0x29d   : > { %v1378_v35 = vsub.f32 %v5027_v54, %v1346_v36  ;;  %v1347_v44 = vmul.f32 0.015625, %v1301_v37  ;;  %v5218_v45 = vsel %vm1396_vm1, %v1377_v31, 0.0  ;;  %4254 = vmatpush3.bf16.msra.mxu0 %v4464_v27 }
 0x29e   : > { %1489 = vadd.xlane.f32.xlu1 %v1444_v39  ;;  %1491 = vadd.xlane.f32.xlu0 %v1445_v50  ;;  %v1303_v51 = vpop.xlane.xlu0 %1302  ;;  %v1446_v56 = vmul.f32 %v5218_v45, %v5218_v45 }
 0x29f   : > { %v1379_v48 = vsub.f32 %v5031_v57, %v1347_v44  ;;  %v1348_v53 = vmul.f32 0.015625, %v1303_v51  ;;  %v5223_v38 = vsel %vm1396_vm1, %v1378_v35, 0.0 }
 0x2a0   : > { %v1305_v55 = vpop.xlane.xlu1 %1304  ;;  %v1447_v54 = vmul.f32 %v5223_v38, %v5223_v38 }
 0x2a1   : > { %v1380_v41 = vsub.f32 %v5035_v58, %v1348_v53  ;;  %v1349_v60 = vmul.f32 0.015625, %v1305_v55  ;;  %v5232_v63 = vsel %vm1396_vm1, %v1379_v48, 0.0  ;;  %v4465_v48 = vld [vmem:[%s6826_s7 + $0x38] sm:$0xff]  }
 0x2a2   : > { %1493 = vadd.xlane.f32.xlu1 %v1446_v56  ;;  %1495 = vadd.xlane.f32.xlu0 %v1447_v54  ;;  %v1307_v57 = vpop.xlane.xlu0 %1306  ;;  %v1448_v7 = vmul.f32 %v5232_v63, %v5232_v63 }
 0x2a3   : > { %v1381_v25 = vsub.f32 %v5039_v59, %v1349_v60  ;;  %v1350_v26 = vmul.f32 0.015625, %v1307_v57  ;;  %v5237_v42 = vsel %vm1396_vm1, %v1380_v41, 0.0  ;;  %4255 = vmatprep.subr.bf16.mxu0 %v4465_v48 }
 0x2a4   : > { %v1309_v4 = vpop.xlane.xlu1 %1308  ;;  %v1449_v58 = vmul.f32 %v5237_v42, %v5237_v42  ;;  %4256 = vmatpush3.bf16.msra.mxu0 %v4465_v48 }
 0x2a5   : > { %v1382_v12 = vsub.f32 %v5043_v62, %v1350_v26  ;;  %v1351_v15 = vmul.f32 0.015625, %v1309_v4  ;;  %v5249_v59 = vsel %vm1396_vm1, %v1381_v25, 0.0 }
 0x2a6   : > { %1497 = vadd.xlane.f32.xlu1 %v1448_v7  ;;  %1499 = vadd.xlane.f32.xlu0 %v1449_v58  ;;  %v1311_v16 = vpop.xlane.xlu0 %1310  ;;  %v1450_v62 = vmul.f32 %v5249_v59, %v5249_v59 }
 0x2a7   : > { %v1383_v22 = vsub.f32 %v5047_v1, %v1351_v15  ;;  %v1352_v46 = vmul.f32 0.015625, %v1311_v16  ;;  %v5254_v33 = vsel %vm1396_vm1, %v1382_v12, 0.0 }
 0x2a8   : > { %v1313_v32 = vpop.xlane.xlu1 %1312  ;;  %v1451_v24 = vmul.f32 %v5254_v33, %v5254_v33 }
 0x2a9   : > { %v1384_v1 = vsub.f32 %v5051_v2, %v1352_v46  ;;  %v1353_v31 = vmul.f32 0.015625, %v1313_v32  ;;  %v5266_v36 = vsel %vm1396_vm1, %v1383_v22, 0.0 }
 0x2aa   : > { %1501 = vadd.xlane.f32.xlu1 %v1450_v62  ;;  %1503 = vadd.xlane.f32.xlu0 %v1451_v24  ;;  %v1315_v37 = vpop.xlane.xlu0 %1314  ;;  %v1452_v2 = vmul.f32 %v5266_v36, %v5266_v36 }
 0x2ab   : > { %v1385_v39 = vsub.f32 %v5055_v3, %v1353_v31  ;;  %v1354_v50 = vmul.f32 0.015625, %v1315_v37  ;;  %v5271_v35 = vsel %vm1396_vm1, %v1384_v1, 0.0 }
 0x2ac   : > { %v1317_v44 = vpop.xlane.xlu1 %1316  ;;  %v1453_v51 = vmul.f32 %v5271_v35, %v5271_v35 }
 0x2ad   : > { %v1386_v3 = vsub.f32 %v5059_v6, %v1354_v50  ;;  %v1355_v53 = vmul.f32 0.015625, %v1317_v44  ;;  %v5283_v55 = vsel %vm1396_vm1, %v1385_v39, 0.0 }
 0x2ae   : > { %1505 = vadd.xlane.f32.xlu1 %v1452_v2  ;;  %1507 = vadd.xlane.f32.xlu0 %v1453_v51  ;;  %v1319_v56 = vpop.xlane.xlu0 %1318  ;;  %v1454_v6 = vmul.f32 %v5283_v55, %v5283_v55 }
 0x2af   : > { %v1387_v54 = vsub.f32 %v5063_v9, %v1355_v53  ;;  %v1356_v41 = vmul.f32 0.015625, %v1319_v56  ;;  %v5288_v60 = vsel %vm1396_vm1, %v1386_v3, 0.0  ;;  %v4467_v3 = vld [vmem:[%s6828_s9 + $0x8] sm:$0xff]   ;;  %v4468_v53 = vld [vmem:[%s6828_s9 + $0x10] sm:$0xff]   ;;  %v4469_v56 = vld [vmem:[%s6828_s9 + $0x18] sm:$0xff]  }
 0x2b0   : > { %v1321_v57 = vpop.xlane.xlu1 %1320  ;;  %v1455_v25 = vmul.f32 %v5288_v60, %v5288_v60 }
 0x2b1   : > { %v1388_v26 = vsub.f32 %v5067_v10, %v1356_v41  ;;  %v1357_v4 = vmul.f32 0.015625, %v1321_v57  ;;  %v5297_v9 = vsel %vm1396_vm1, %v1387_v54, 0.0  ;;  %v4470_v54 = vld [vmem:[%s6828_s9 + $0x20] sm:$0xff]   ;;  %v4471_v41 = vld [vmem:[%s6828_s9 + $0x28] sm:$0xff]   ;;  %v4472_v57 = vld [vmem:[%s6828_s9 + $0x30] sm:$0xff]  }
 0x2b2   : > { %1509 = vadd.xlane.f32.xlu1 %v1454_v6  ;;  %1511 = vadd.xlane.f32.xlu0 %v1455_v25  ;;  %v1323_v7 = vpop.xlane.xlu0 %1322  ;;  %v1456_v16 = vmul.f32 %v5297_v9, %v5297_v9 }
 0x2b3   : > { %v1389_v58 = vsub.f32 %v5071_v11, %v1357_v4  ;;  %v1358_v8 = vmul.f32 0.015625, %v1323_v7  ;;  %v5302_v12 = vsel %vm1396_vm1, %v1388_v26, 0.0 }
 0x2b4   : > { %v1325_v15 = vpop.xlane.xlu1 %1324  ;;  %v1457_v10 = vmul.f32 %v5302_v12, %v5302_v12 }
 0x2b5   : > { %v1390_v22 = vsub.f32 %v5075_v14, %v1358_v8  ;;  %v1359_v46 = vmul.f32 0.015625, %v1325_v15  ;;  %v5311_v32 = vsel %vm1396_vm1, %v1389_v58, 0.0 }
 0x2b6   : > { %1513 = vadd.xlane.f32.xlu1 %v1456_v16  ;;  %1515 = vadd.xlane.f32.xlu0 %v1457_v10  ;;  %v1327_v11 = vpop.xlane.xlu0 %1326  ;;  %v1458_v31 = vmul.f32 %v5311_v32, %v5311_v32 }
 0x2b7   : > { %v1391_v62 = vsub.f32 %v5079_v17, %v1359_v46  ;;  %v1360_v24 = vmul.f32 0.015625, %v1327_v11  ;;  %v5316_v27 = vsel %vm1396_vm1, %v1390_v22, 0.0 }
 0x2b8   : > { %v1329_v1 = vpop.xlane.xlu1 %1328  ;;  %v1459_v14 = vmul.f32 %v5316_v27, %v5316_v27 }
 0x2b9   : > { %v1392_v37 = vsub.f32 %v5083_v18, %v1360_v24  ;;  %v1361_v39 = vmul.f32 0.015625, %v1329_v1  ;;  %v5325_v50 = vsel %vm1396_vm1, %v1391_v62, 0.0 }
 0x2ba   : > { %1517 = vadd.xlane.f32.xlu1 %v1458_v31  ;;  %1519 = vadd.xlane.f32.xlu0 %v1459_v14  ;;  %v1460_v2 = vmul.f32 %v5325_v50, %v5325_v50 }
 0x2bb   : > { %v1393_v17 = vsub.f32 %v5087_v20, %v1361_v39  ;;  %v5330_v44 = vsel %vm1396_vm1, %v1392_v37, 0.0  ;;  %v4466_v20 = vld [vmem:[%s6828_s9] sm:$0xff]  }
 0x2bc   : > { %v1461_v51 = vmul.f32 %v5330_v44, %v5330_v44  ;;  %4289 = vmatprep.subr.bf16.mxu1 %v4466_v20 }
 0x2bd   : > { %v5338_v18 = vsel %vm1396_vm1, %v1393_v17, 0.0  ;;  %4290 = vmatpush3.bf16.msra.mxu1 %v4466_v20  ;;  %v5366_v17 = vld [vmem:[%s6824_s5] ss:$0 sm:$0xff] }
 0x2be   : > { %1521 = vadd.xlane.f32.xlu1 %v1460_v2  ;;  %1523 = vadd.xlane.f32.xlu0 %v1461_v51  ;;  %v1462_v48 = vmul.f32 %v5338_v18, %v5338_v18 }
 0x2bf   : > { %4291 = vmatprep.subr.bf16.mxu1 %v4467_v3 }
 0x2c1   : > { %4292 = vmatpush3.bf16.msra.mxu1 %v4467_v3 }
 0x2c2   : > { %1525 = vadd.xlane.f32.xlu1 %v1462_v48  ;;  %4293 = vmatprep.subr.bf16.mxu1 %v4468_v53 }
 0x2c5   : > { %4294 = vmatpush3.bf16.msra.mxu1 %v4468_v53 }
 0x2c6   : > { %4295 = vmatprep.subr.bf16.mxu1 %v4469_v56 }
 0x2c9   : > { %4296 = vmatpush3.bf16.msra.mxu1 %v4469_v56 }
 0x2ca   : > { %4297 = vmatprep.subr.bf16.mxu1 %v4470_v54 }
 0x2cd   : > { %4298 = vmatpush3.bf16.msra.mxu1 %v4470_v54  ;;  %v5372_v54 = vld [vmem:[%s6825_s6] ss:$0 sm:$0xff] }
 0x2ce   : > { %4299 = vmatprep.subr.bf16.mxu1 %v4471_v41 }
 0x2d1   : > { %4300 = vmatpush3.bf16.msra.mxu1 %v4471_v41 }
 0x2d2   : > { %4301 = vmatprep.subr.bf16.mxu1 %v4472_v57 }
 0x2d5   : > { %4302 = vmatpush3.bf16.msra.mxu1 %v4472_v57 }
 0x30f   : > { %v1464_v6 = vpop.xlane.xlu0 %1463 }
 0x310   : > { %v1527_v25 = vmul.f32 0.015625, %v1464_v6 }
 0x312   : > { %v1559_v26 = vadd.f32 1e-05, %v1527_v25 }
 0x313   : > { %v1466_v4 = vpop.xlane.xlu1 %1465  ;;  %v1468_v7 = vpop.xlane.xlu0 %1467 }
 0x314   : > { %4490 = vrsqrt.f32 %v1559_v26  ;;  %v1528_v58 = vmul.f32 0.015625, %v1466_v4  ;;  %v1529_v8 = vmul.f32 0.015625, %v1468_v7 }
 0x316   : > { %v1560_v15 = vadd.f32 1e-05, %v1528_v58  ;;  %v1561_v16 = vadd.f32 1e-05, %v1529_v8 }
 0x317   : > { %v1470_v10 = vpop.xlane.xlu1 %1469  ;;  %v1472_v22 = vpop.xlane.xlu0 %1471 }
 0x318   : > { %4492 = vrsqrt.f32 %v1560_v15  ;;  %v1530_v46 = vmul.f32 0.015625, %v1470_v10  ;;  %v1531_v11 = vmul.f32 0.015625, %v1472_v22 }
 0x319   : > { %4494 = vrsqrt.f32 %v1561_v16 }
 0x31a   : > { %v1562_v62 = vadd.f32 1e-05, %v1530_v46  ;;  %v1563_v24 = vadd.f32 1e-05, %v1531_v11 }
 0x31b   : > { %v1474_v1 = vpop.xlane.xlu1 %1473  ;;  %v1476_v31 = vpop.xlane.xlu0 %1475 }
 0x31c   : > { %4496 = vrsqrt.f32 %v1562_v62  ;;  %v1532_v14 = vmul.f32 0.015625, %v1474_v1  ;;  %v1533_v37 = vmul.f32 0.015625, %v1476_v31 }
 0x31d   : > { %4498 = vrsqrt.f32 %v1563_v24 }
 0x31e   : > { %v4491_v39 = vpop.eup %4490  ;;  %v1564_v2 = vadd.f32 1e-05, %v1532_v14  ;;  %v1565_v51 = vadd.f32 1e-05, %v1533_v37 }
 0x31f   : > { %v1478_v48 = vpop.xlane.xlu1 %1477  ;;  %v1480_v20 = vpop.xlane.xlu0 %1479  ;;  %v1623_v3 = vmul.f32 %v4491_v39, %v5110_v52 }
 0x320   : > { %4500 = vrsqrt.f32 %v1564_v2  ;;  %v1534_v53 = vmul.f32 0.015625, %v1478_v48  ;;  %v1535_v56 = vmul.f32 0.015625, %v1480_v20 }
 0x321   : > { %4502 = vrsqrt.f32 %v1565_v51  ;;  %v1661_v41 = vmul.f32 %v5366_v17, %v1623_v3 }
 0x322   : > { %v4493_v57 = vpop.eup %4492  ;;  %v1566_v6 = vadd.f32 1e-05, %v1534_v53  ;;  %v1567_v25 = vadd.f32 1e-05, %v1535_v56 }
 0x323   : > { %v4495_v26 = vpop.eup %4494  ;;  %v1482_v4 = vpop.xlane.xlu1 %1481  ;;  %v1624_v58 = vmul.f32 %v4493_v57, %v5122_v61  ;;  %v5377_v52 = vadd.f32 %v5372_v54, %v1661_v41 }
 0x324   : > { %v1484_v7 = vpop.xlane.xlu0 %1483  ;;  %v1625_v8 = vmul.f32 %v4495_v26, %v5118_v21  ;;  %4504 = vrsqrt.f32 %v1566_v6  ;;  %v1536_v15 = vmul.f32 0.015625, %v1482_v4 }
 0x325   : > { %v1537_v16 = vmul.f32 0.015625, %v1484_v7  ;;  %4506 = vrsqrt.f32 %v1567_v25  ;;  %v1662_v10 = vmul.f32 %v5366_v17, %v1624_v58  ;;  %v6872_v21 = vmax.f32 %v5377_v52, 0.0 }
 0x326   : > { %v4497_v22 = vpop.eup %4496  ;;  %v1663_v46 = vmul.f32 %v5366_v17, %v1625_v8  ;;  %v1568_v11 = vadd.f32 1e-05, %v1536_v15 }
 0x327   : > { %v1569_v62 = vadd.f32 1e-05, %v1537_v16  ;;  %v4499_v24 = vpop.eup %4498  ;;  %v1626_v1 = vmul.f32 %v4497_v22, %v5131_v5  ;;  %v1486_v61 = vpop.xlane.xlu1 %1485  ;;  %v5384_v14 = vadd.f32 %v5372_v54, %v1662_v10 }
 0x328   : > { %v1488_v31 = vpop.xlane.xlu0 %1487  ;;  %4508 = vrsqrt.f32 %v1568_v11  ;;  %v1538_v37 = vmul.f32 0.015625, %v1486_v61  ;;  %v5388_v2 = vadd.f32 %v5372_v54, %v1663_v46  ;;  %v1627_v5 = vmul.f32 %v4499_v24, %v5136_v13 }
 0x329   : > { %v1539_v39 = vmul.f32 0.015625, %v1488_v31  ;;  %v1664_v51 = vmul.f32 %v5366_v17, %v1626_v1  ;;  %4510 = vrsqrt.f32 %v1569_v62  ;;  %v6871_v48 = vmax.f32 %v5384_v14, 0.0 }
 0x32a   : > { %v4501_v20 = vpop.eup %4500  ;;  %v1570_v3 = vadd.f32 1e-05, %v1538_v37  ;;  %v6870_v56 = vmax.f32 %v5388_v2, 0.0  ;;  %v1665_v13 = vmul.f32 %v5366_v17, %v1627_v5 }
 0x32b   : > { %v1571_v53 = vadd.f32 1e-05, %v1539_v39  ;;  %v4503_v41 = vpop.eup %4502  ;;  %v1490_v57 = vpop.xlane.xlu1 %1489  ;;  %v1799_v25 = vpack.c.bf16 %v6871_v48, %v6872_v21  ;;  %v5399_v26 = vadd.f32 %v5372_v54, %v1664_v51  ;;  %v1628_v4 = vmul.f32 %v4501_v20, %v5145_v19 }
 0x32c   : > { %v1492_v6 = vpop.xlane.xlu0 %1491  ;;  %4512 = vrsqrt.f32 %v1570_v3  ;;  %v1540_v7 = vmul.f32 0.015625, %v1490_v57  ;;  %v1629_v8 = vmul.f32 %v4503_v41, %v5150_v30  ;;  %v5407_v10 = vadd.f32 %v5372_v54, %v1665_v13 }
 0x32d   : > { %v1541_v58 = vmul.f32 0.015625, %v1492_v6  ;;  %4514 = vrsqrt.f32 %v1571_v53  ;;  %4257 = vmatprep.mubr.bf16.mxu0 %v1799_v25  ;;  %v6869_v15 = vmax.f32 %v5399_v26, 0.0  ;;  %v1666_v16 = vmul.f32 %v5366_v17, %v1628_v4 }
 0x32e   : > { %v4505_v22 = vpop.eup %4504  ;;  %v1572_v46 = vadd.f32 1e-05, %v1540_v7  ;;  %v1667_v19 = vmul.f32 %v5366_v17, %v1629_v8  ;;  %v6868_v31 = vmax.f32 %v5407_v10, 0.0 }
 0x32f   : > { %v1573_v11 = vadd.f32 1e-05, %v1541_v58  ;;  %v4507_v62 = vpop.eup %4506  ;;  %v1494_v24 = vpop.xlane.xlu1 %1493  ;;  %v1800_v30 = vpack.c.bf16 %v6869_v15, %v6870_v56  ;;  %v5415_v61 = vadd.f32 %v5372_v54, %v1666_v16  ;;  %v1630_v37 = vmul.f32 %v4505_v22, %v5159_v40 }
 0x330   : > { %v1496_v1 = vpop.xlane.xlu0 %1495  ;;  %4516 = vrsqrt.f32 %v1572_v46  ;;  %v1542_v39 = vmul.f32 0.015625, %v1494_v24  ;;  %v5420_v5 = vadd.f32 %v5372_v54, %v1667_v19  ;;  %v1631_v53 = vmul.f32 %v4507_v62, %v5164_v47 }
 0x331   : > { %v1543_v51 = vmul.f32 0.015625, %v1496_v1  ;;  %4518 = vrsqrt.f32 %v1573_v11  ;;  %4258 = vmatmul.mubr.bf16.vlgmr.msra.gmra.mrb[32].mxu0 %v1800_v30  ;;  %v6867_v20 = vmax.f32 %v5415_v61, 0.0  ;;  %v1668_v3 = vmul.f32 %v5366_v17, %v1630_v37 }
 0x332   : > { %v4509_v41 = vpop.eup %4508  ;;  %v1574_v57 = vadd.f32 1e-05, %v1542_v39  ;;  %v6866_v25 = vmax.f32 %v5420_v5, 0.0  ;;  %v1669_v47 = vmul.f32 %v5366_v17, %v1631_v53 }
 0x333   : > { %v1575_v6 = vadd.f32 1e-05, %v1543_v51  ;;  %v4511_v40 = vpop.eup %4510  ;;  %v1498_v4 = vpop.xlane.xlu1 %1497  ;;  %v1801_v7 = vpack.c.bf16 %v6867_v20, %v6868_v31  ;;  %v5431_v58 = vadd.f32 %v5372_v54, %v1668_v3  ;;  %v1632_v8 = vmul.f32 %v4509_v41, %v5173_v23 }
 0x334   : > { %v1500_v13 = vpop.xlane.xlu0 %1499  ;;  %4520 = vrsqrt.f32 %v1574_v57  ;;  %v1544_v16 = vmul.f32 0.015625, %v1498_v4  ;;  %v1633_v46 = vmul.f32 %v4511_v40, %v5178_v0  ;;  %v5439_v62 = vadd.f32 %v5372_v54, %v1669_v47 }
 0x335   : > { %v1545_v22 = vmul.f32 0.015625, %v1500_v13  ;;  %4522 = vrsqrt.f32 %v1575_v6  ;;  %4261 = vmatprep.mubr.bf16.mxu0 %v1801_v7  ;;  %v6865_v11 = vmax.f32 %v5431_v58, 0.0  ;;  %v1670_v19 = vmul.f32 %v5366_v17, %v1632_v8 }
 0x336   : > { %v4513_v24 = vpop.eup %4512  ;;  %v1576_v1 = vadd.f32 1e-05, %v1544_v16  ;;  %v1671_v23 = vmul.f32 %v5366_v17, %v1633_v46  ;;  %v6864_v53 = vmax.f32 %v5439_v62, 0.0 }
 0x337   : > { %v1577_v30 = vadd.f32 1e-05, %v1545_v22  ;;  %v4515_v37 = vpop.eup %4514  ;;  %v1502_v39 = vpop.xlane.xlu1 %1501  ;;  %v1802_v0 = vpack.c.bf16 %v6865_v11, %v6866_v25  ;;  %v5447_v3 = vadd.f32 %v5372_v54, %v1670_v19  ;;  %v1634_v41 = vmul.f32 %v4513_v24, %v5190_v43 }
 0x338   : > { %v1504_v51 = vpop.xlane.xlu0 %1503  ;;  %4524 = vrsqrt.f32 %v1576_v1  ;;  %v1546_v57 = vmul.f32 0.015625, %v1502_v39  ;;  %v5452_v40 = vadd.f32 %v5372_v54, %v1671_v23  ;;  %v1635_v7 = vmul.f32 %v4515_v37, %v5195_v29 }
 0x339   : > { %v1547_v6 = vmul.f32 0.015625, %v1504_v51  ;;  %4526 = vrsqrt.f32 %v1577_v30  ;;  %4262 = vmatmul.mubr.bf16.gmra.mrb[36].mxu0 %v1802_v0  ;;  %v6863_v4 = vmax.f32 %v5447_v3, 0.0  ;;  %v1672_v13 = vmul.f32 %v5366_v17, %v1634_v41 }
 0x33a   : > { %v4517_v8 = vpop.eup %4516  ;;  %v1578_v47 = vadd.f32 1e-05, %v1546_v57  ;;  %v6842_v22 = vmax.f32 %v5452_v40, 0.0  ;;  %v1673_v29 = vmul.f32 %v5366_v17, %v1635_v7 }
 0x33b   : > { %v1579_v16 = vadd.f32 1e-05, %v1547_v6  ;;  %v4519_v43 = vpop.eup %4518  ;;  %v1506_v46 = vpop.xlane.xlu1 %1505  ;;  %v1803_v24 = vpack.c.bf16 %v6863_v4, %v6864_v53  ;;  %v5463_v1 = vadd.f32 %v5372_v54, %v1672_v13  ;;  %v1636_v30 = vmul.f32 %v4517_v8, %v5204_v49 }
 0x33c   : > { %v1508_v19 = vpop.xlane.xlu0 %1507  ;;  %4528 = vrsqrt.f32 %v1578_v47  ;;  %v1548_v23 = vmul.f32 0.015625, %v1506_v46  ;;  %v1637_v39 = vmul.f32 %v4519_v43, %v5209_v34  ;;  %v5471_v41 = vadd.f32 %v5372_v54, %v1673_v29 }
 0x33d   : > { %v1549_v37 = vmul.f32 0.015625, %v1508_v19  ;;  %4530 = vrsqrt.f32 %v1579_v16  ;;  %4265 = vmatprep.mubr.bf16.mxu0 %v1803_v24  ;;  %v6841_v51 = vmax.f32 %v5463_v1, 0.0  ;;  %v1674_v0 = vmul.f32 %v5366_v17, %v1636_v30 }
 0x33e   : > { %v4521_v57 = vpop.eup %4520  ;;  %v1580_v6 = vadd.f32 1e-05, %v1548_v23  ;;  %v1675_v49 = vmul.f32 %v5366_v17, %v1637_v39  ;;  %v6844_v43 = vmax.f32 %v5471_v41, 0.0 }
 0x33f   : > { %v1581_v13 = vadd.f32 1e-05, %v1549_v37  ;;  %v4523_v7 = vpop.eup %4522  ;;  %v1510_v8 = vpop.xlane.xlu1 %1509  ;;  %v1804_v34 = vpack.c.bf16 %v6841_v51, %v6842_v22  ;;  %v5479_v16 = vadd.f32 %v5372_v54, %v1674_v0  ;;  %v1638_v46 = vmul.f32 %v4521_v57, %v5218_v45 }
 0x340   : > { %v1512_v47 = vpop.xlane.xlu0 %1511  ;;  %4532 = vrsqrt.f32 %v1580_v6  ;;  %v1550_v19 = vmul.f32 0.015625, %v1510_v8  ;;  %v5484_v30 = vadd.f32 %v5372_v54, %v1675_v49  ;;  %v1639_v37 = vmul.f32 %v4523_v7, %v5223_v38 }
 0x341   : > { %v1551_v24 = vmul.f32 0.015625, %v1512_v47  ;;  %4534 = vrsqrt.f32 %v1581_v13  ;;  %4266 = vmatmul.mubr.bf16.gmra.mrb[40].mxu0 %v1804_v34  ;;  %v6843_v29 = vmax.f32 %v5479_v16, 0.0  ;;  %v1676_v23 = vmul.f32 %v5366_v17, %v1638_v46 }
 0x342   : > { %v4525_v39 = vpop.eup %4524  ;;  %v1582_v0 = vadd.f32 1e-05, %v1550_v19  ;;  %v6846_v22 = vmax.f32 %v5484_v30, 0.0  ;;  %v1677_v38 = vmul.f32 %v5366_v17, %v1639_v37 }
 0x343   : > { %v1583_v51 = vadd.f32 1e-05, %v1551_v24  ;;  %v4527_v45 = vpop.eup %4526  ;;  %v1514_v57 = vpop.xlane.xlu1 %1513  ;;  %v1805_v13 = vpack.c.bf16 %v6843_v29, %v6844_v43  ;;  %v5495_v49 = vadd.f32 %v5372_v54, %v1676_v23  ;;  %v1640_v8 = vmul.f32 %v4525_v39, %v5232_v63 }
 0x344   : > { %v1516_v6 = vpop.xlane.xlu0 %1515  ;;  %4536 = vrsqrt.f32 %v1582_v0  ;;  %v1552_v7 = vmul.f32 0.015625, %v1514_v57  ;;  %v1641_v34 = vmul.f32 %v4527_v45, %v5237_v42  ;;  %v5503_v24 = vadd.f32 %v5372_v54, %v1677_v38 }
 0x345   : > { %v1553_v47 = vmul.f32 0.015625, %v1516_v6  ;;  %4538 = vrsqrt.f32 %v1583_v51  ;;  %4269 = vmatprep.mubr.bf16.mxu0 %v1805_v13  ;;  %v6845_v46 = vmax.f32 %v5495_v49, 0.0  ;;  %v1678_v19 = vmul.f32 %v5366_v17, %v1640_v8 }
 0x346   : > { %v4529_v23 = vpop.eup %4528  ;;  %v1584_v29 = vadd.f32 1e-05, %v1552_v7  ;;  %v1679_v63 = vmul.f32 %v5366_v17, %v1641_v34  ;;  %v6848_v45 = vmax.f32 %v5503_v24, 0.0 }
 0x347   : > { %v1585_v43 = vadd.f32 1e-05, %v1553_v47  ;;  %v4531_v37 = vpop.eup %4530  ;;  %v1518_v39 = vpop.xlane.xlu1 %1517  ;;  %v1806_v42 = vpack.c.bf16 %v6845_v46, %v6846_v22  ;;  %v5511_v51 = vadd.f32 %v5372_v54, %v1678_v19  ;;  %v1642_v57 = vmul.f32 %v4529_v23, %v5249_v59 }
 0x348   : > { %v1520_v0 = vpop.xlane.xlu0 %1519  ;;  %4540 = vrsqrt.f32 %v1584_v29  ;;  %v1554_v6 = vmul.f32 0.015625, %v1518_v39  ;;  %v5516_v8 = vadd.f32 %v5372_v54, %v1679_v63  ;;  %v1643_v47 = vmul.f32 %v4531_v37, %v5254_v33 }
 0x349   : > { %v1555_v13 = vmul.f32 0.015625, %v1520_v0  ;;  %4542 = vrsqrt.f32 %v1585_v43  ;;  %4270 = vmatmul.mubr.bf16.gmra.mrb[44].mxu0 %v1806_v42  ;;  %v6847_v38 = vmax.f32 %v5511_v51, 0.0  ;;  %v1680_v7 = vmul.f32 %v5366_v17, %v1642_v57 }
 0x34a   : > { %6903 = vst [vmem:[#allocation4_spill] sm:$0xff] %v5516_v8  ;;  %v4533_v34 = vpop.eup %4532  ;;  %v1586_v19 = vadd.f32 1e-05, %v1554_v6  ;;  %v6862_v22 = vmax.f32 %v5516_v8, 0.0  ;;  %v1681_v33 = vmul.f32 %v5366_v17, %v1643_v47 }
 0x34b   : > { %v1587_v46 = vadd.f32 1e-05, %v1555_v13  ;;  %v4535_v59 = vpop.eup %4534  ;;  %v1522_v29 = vpop.xlane.xlu1 %1521  ;;  %v1807_v43 = vpack.c.bf16 %v6847_v38, %v6848_v45  ;;  %v5527_v63 = vadd.f32 %v5372_v54, %v1680_v7  ;;  %v1644_v39 = vmul.f32 %v4533_v34, %v5266_v36 }
 0x34c   : > { %v1524_v23 = vpop.xlane.xlu0 %1523  ;;  %4544 = vrsqrt.f32 %v1586_v19  ;;  %v1556_v37 = vmul.f32 0.015625, %v1522_v29  ;;  %v1645_v42 = vmul.f32 %v4535_v59, %v5271_v35  ;;  %v5535_v13 = vadd.f32 %v5372_v54, %v1681_v33 }
 0x34d   : > { %6904 = vst [vmem:[#allocation5_spill] sm:$0xff] %v5527_v63  ;;  %v1557_v0 = vmul.f32 0.015625, %v1524_v23  ;;  %4546 = vrsqrt.f32 %v1587_v46  ;;  %4273 = vmatprep.mubr.bf16.mxu0 %v1807_v43  ;;  %v6861_v57 = vmax.f32 %v5527_v63, 0.0  ;;  %v1682_v6 = vmul.f32 %v5366_v17, %v1644_v39 }
 0x34e   : > { %6905 = vst [vmem:[#allocation6_spill] sm:$0xff] %v5535_v13  ;;  %v4537_v7 = vpop.eup %4536  ;;  %v1588_v38 = vadd.f32 1e-05, %v1556_v37  ;;  %v1683_v36 = vmul.f32 %v5366_v17, %v1645_v42  ;;  %v6860_v29 = vmax.f32 %v5535_v13, 0.0 }
 0x34f   : > { %v1589_v45 = vadd.f32 1e-05, %v1557_v0  ;;  %v4539_v47 = vpop.eup %4538  ;;  %v1526_v34 = vpop.xlane.xlu1 %1525  ;;  %v1808_v35 = vpack.c.bf16 %v6861_v57, %v6862_v22  ;;  %v5543_v46 = vadd.f32 %v5372_v54, %v1682_v6  ;;  %v1646_v19 = vmul.f32 %v4537_v7, %v5283_v55 }
 0x350   : > { %4548 = vrsqrt.f32 %v1588_v38  ;;  %v1558_v59 = vmul.f32 0.015625, %v1526_v34  ;;  %v1647_v23 = vmul.f32 %v4539_v47, %v5288_v60  ;;  %v5551_v33 = vadd.f32 %v5372_v54, %v1683_v36 }
 0x351   : > { %6906 = vst [vmem:[#allocation7_spill] sm:$0xff] %v5543_v46  ;;  %4550 = vrsqrt.f32 %v1589_v45  ;;  %4274 = vmatmul.mubr.bf16.gmra.mrb[48].mxu0 %v1808_v35  ;;  %v6859_v43 = vmax.f32 %v5543_v46, 0.0  ;;  %v1684_v39 = vmul.f32 %v5366_v17, %v1646_v19 }
 0x352   : > { %6907 = vst [vmem:[#allocation8_spill] sm:$0xff] %v5551_v33  ;;  %v4541_v37 = vpop.eup %4540  ;;  %v1590_v0 = vadd.f32 1e-05, %v1558_v59  ;;  %v1685_v42 = vmul.f32 %v5366_v17, %v1647_v23  ;;  %v6858_v7 = vmax.f32 %v5551_v33, 0.0 }
 0x353   : > { %v4543_v55 = vpop.eup %4542  ;;  %v1809_v38 = vpack.c.bf16 %v6859_v43, %v6860_v29  ;;  %v5559_v60 = vadd.f32 %v5372_v54, %v1684_v39  ;;  %v1648_v45 = vmul.f32 %v4541_v37, %v5297_v9 }
 0x354   : > { %4552 = vrsqrt.f32 %v1590_v0  ;;  %v1649_v6 = vmul.f32 %v4543_v55, %v5302_v12  ;;  %v5567_v34 = vadd.f32 %v5372_v54, %v1685_v42 }
 0x355   : > { %6908 = vst [vmem:[#allocation9_spill] sm:$0xff] %v5559_v60  ;;  %4277 = vmatprep.mubr.bf16.mxu0 %v1809_v38  ;;  %v6857_v36 = vmax.f32 %v5559_v60, 0.0  ;;  %v1686_v47 = vmul.f32 %v5366_v17, %v1648_v45 }
 0x356   : > { %6909 = vst [vmem:[#allocation10_spill] sm:$0xff] %v5567_v34  ;;  %v4545_v35 = vpop.eup %4544  ;;  %v1687_v19 = vmul.f32 %v5366_v17, %v1649_v6  ;;  %v6856_v37 = vmax.f32 %v5567_v34, 0.0 }
 0x357   : > { %v4547_v59 = vpop.eup %4546  ;;  %v1810_v9 = vpack.c.bf16 %v6857_v36, %v6858_v7  ;;  %v5575_v12 = vadd.f32 %v5372_v54, %v1686_v47  ;;  %v1650_v23 = vmul.f32 %v4545_v35, %v5311_v32 }
 0x358   : > { %v1651_v39 = vmul.f32 %v4547_v59, %v5316_v27  ;;  %v5583_v55 = vadd.f32 %v5372_v54, %v1687_v19 }
 0x359   : > { %6910 = vst [vmem:[#allocation11_spill] sm:$0xff] %v5575_v12  ;;  %4278 = vmatmul.mubr.bf16.gmra.mrb[52].mxu0 %v1810_v9  ;;  %v6849_v0 = vmax.f32 %v5575_v12, 0.0  ;;  %v1688_v42 = vmul.f32 %v5366_v17, %v1650_v23 }
 0x35a   : > { %6911 = vst [vmem:[#allocation12_spill] sm:$0xff] %v5583_v55  ;;  %v4549_v38 = vpop.eup %4548  ;;  %v1689_v45 = vmul.f32 %v5366_v17, %v1651_v39  ;;  %v6855_v19 = vmax.f32 %v5583_v55, 0.0 }
 0x35b   : > { %v4551_v6 = vpop.eup %4550  ;;  %v1811_v32 = vpack.c.bf16 %v6849_v0, %v6856_v37  ;;  %v5591_v27 = vadd.f32 %v5372_v54, %v1688_v42  ;;  %v1652_v47 = vmul.f32 %v4549_v38, %v5325_v50 }
 0x35c   : > { %v1653_v35 = vmul.f32 %v4551_v6, %v5330_v44  ;;  %v5599_v23 = vadd.f32 %v5372_v54, %v1689_v45 }
 0x35d   : > { %6912 = vst [vmem:[#allocation13_spill] sm:$0xff] %v5591_v27  ;;  %4281 = vmatprep.mubr.bf16.mxu0 %v1811_v32  ;;  %v6854_v59 = vmax.f32 %v5591_v27, 0.0  ;;  %v1690_v9 = vmul.f32 %v5366_v17, %v1652_v47 }
 0x35e   : > { %6913 = vst [vmem:[#allocation14_spill] sm:$0xff] %v5599_v23  ;;  %v4553_v39 = vpop.eup %4552  ;;  %v1691_v0 = vmul.f32 %v5366_v17, %v1653_v35  ;;  %v6853_v38 = vmax.f32 %v5599_v23, 0.0 }
 0x35f   : > { %v1812_v50 = vpack.c.bf16 %v6854_v59, %v6855_v19  ;;  %v5607_v44 = vadd.f32 %v5372_v54, %v1690_v9  ;;  %v1654_v42 = vmul.f32 %v4553_v39, %v5338_v18 }
 0x360   : > { %v5614_v32 = vadd.f32 %v5372_v54, %v1691_v0  ;;  %v4473_v0 = vld [vmem:[%s6828_s9 + $0x38] sm:$0xff]  }
 0x361   : > { %6914 = vst [vmem:[#allocation15_spill] sm:$0xff] %v5607_v44  ;;  %4282 = vmatmul.mubr.bf16.gmra.mrb[56].mxu0 %v1812_v50  ;;  %v6852_v6 = vmax.f32 %v5607_v44, 0.0  ;;  %v1692_v45 = vmul.f32 %v5366_v17, %v1654_v42  ;;  %4303 = vmatprep.subr.bf16.mxu1 %v4473_v0 }
 0x362   : > { %6915 = vst [vmem:[#allocation16_spill] sm:$0xff] %v5614_v32  ;;  %v6851_v18 = vmax.f32 %v5614_v32, 0.0  ;;  %4304 = vmatpush3.bf16.msra.mxu1 %v4473_v0 }
 0x363   : > { %v1813_v47 = vpack.c.bf16 %v6852_v6, %v6853_v38  ;;  %v5621_v35 = vadd.f32 %v5372_v54, %v1692_v45  ;;  %v5635_v54 = vld [vmem:[%s6827_s8] ss:$0 sm:$0xff] }
 0x365   : > { %6916 = vst [vmem:[#allocation17_spill] sm:$0xff] %v5621_v35  ;;  %4285 = vmatprep.mubr.bf16.mxu0 %v1813_v47  ;;  %v6850_v9 = vmax.f32 %v5621_v35, 0.0 }
 0x367   : > { %v1814_v17 = vpack.c.bf16 %v6850_v9, %v6851_v18 }
 0x369   : > { %4286 = vmatmul.mubr.bf16.gmra.mrb[60].mxu0 %v1814_v17 }
 0x404   : > { %v4259_v39 = vpop.f32.mrb[32].mxu0 }
 0x405   : > { %v1912_v50 = vadd.f32 %v4259_v39, %v5635_v54  ;;  %v1903_v42 = vpop.f32.mrb[33].mxu0 }
 0x406   : > { %v1904_v45 = vadd.f32 %v5635_v54, %v1903_v42  ;;  %v4260_v47 = vpop.f32.mrb[34].mxu0 }
 0x407   : > { %v1915_v17 = vadd.f32 %v4260_v47, %v5635_v54  ;;  %v1906_v9 = vpop.f32.mrb[35].mxu0  ;;  %v2032_v6 = vmax.f32 %v1912_v50, 0.0 }
 0x408   : > { %v1907_v18 = vadd.f32 %v5635_v54, %v1906_v9  ;;  %v2030_v0 = vmax.f32 %v1904_v45, 0.0 }
 0x409   : > { %v2033_v38 = vmax.f32 %v1915_v17, 0.0 }
 0x40a   : > { %v2031_v59 = vmax.f32 %v1907_v18, 0.0 }
 0x40b   : > { %v2063_v19 = vpack.c.bf16 %v2033_v38, %v2032_v6 }
 0x40c   : > { %v2062_v37 = vpack.c.bf16 %v2031_v59, %v2030_v0  ;;  %v4263_v36 = vpop.f32.mrb[36].mxu0 }
 0x40d   : > { %v1928_v7 = vadd.f32 %v4263_v36, %v5635_v54  ;;  %v1919_v43 = vpop.f32.mrb[37].mxu0 }
 0x40e   : > { %v1920_v39 = vadd.f32 %v5635_v54, %v1919_v43  ;;  %v4264_v29 = vpop.f32.mrb[38].mxu0  ;;  %4305 = vmatprep.mubr.bf16.mxu1 %v2062_v37 }
 0x40f   : > { %v1931_v42 = vadd.f32 %v4264_v29, %v5635_v54  ;;  %v1922_v47 = vpop.f32.mrb[39].mxu0  ;;  %4306 = vmatmul.mubr.bf16.vlgmr.msra.gmra.mrb[32].mxu1 %v2063_v19  ;;  %v2036_v50 = vmax.f32 %v1928_v7, 0.0 }
 0x410   : > { %v1923_v9 = vadd.f32 %v5635_v54, %v1922_v47  ;;  %v2034_v45 = vmax.f32 %v1920_v39, 0.0 }
 0x411   : > { %v2037_v17 = vmax.f32 %v1931_v42, 0.0 }
 0x412   : > { %v2035_v18 = vmax.f32 %v1923_v9, 0.0 }
 0x413   : > { %v2065_v38 = vpack.c.bf16 %v2037_v17, %v2036_v50 }
 0x414   : > { %v2064_v59 = vpack.c.bf16 %v2035_v18, %v2034_v45  ;;  %v4267_v6 = vpop.f32.mrb[40].mxu0 }
 0x415   : > { %v1944_v36 = vadd.f32 %v4267_v6, %v5635_v54  ;;  %v1935_v0 = vpop.f32.mrb[41].mxu0 }
 0x416   : > { %v1936_v43 = vadd.f32 %v5635_v54, %v1935_v0  ;;  %v4268_v57 = vpop.f32.mrb[42].mxu0  ;;  %4309 = vmatprep.mubr.bf16.mxu1 %v2064_v59 }
 0x417   : > { %v1947_v29 = vadd.f32 %v4268_v57, %v5635_v54  ;;  %v1938_v37 = vpop.f32.mrb[43].mxu0  ;;  %4310 = vmatmul.mubr.bf16.gmra.mrb[36].mxu1 %v2065_v38  ;;  %v2040_v7 = vmax.f32 %v1944_v36, 0.0 }
 0x418   : > { %v1939_v19 = vadd.f32 %v5635_v54, %v1938_v37  ;;  %v2038_v39 = vmax.f32 %v1936_v43, 0.0 }
 0x419   : > { %v2041_v42 = vmax.f32 %v1947_v29, 0.0 }
 0x41a   : > { %v2039_v47 = vmax.f32 %v1939_v19, 0.0 }
 0x41b   : > { %v2067_v9 = vpack.c.bf16 %v2041_v42, %v2040_v7 }
 0x41c   : > { %v2066_v50 = vpack.c.bf16 %v2039_v47, %v2038_v39  ;;  %v4271_v17 = vpop.f32.mrb[44].mxu0 }
 0x41d   : > { %v1960_v45 = vadd.f32 %v4271_v17, %v5635_v54  ;;  %v1951_v18 = vpop.f32.mrb[45].mxu0 }
 0x41e   : > { %v1952_v6 = vadd.f32 %v5635_v54, %v1951_v18  ;;  %v4272_v0 = vpop.f32.mrb[46].mxu0  ;;  %4313 = vmatprep.mubr.bf16.mxu1 %v2066_v50 }
 0x41f   : > { %v1963_v57 = vadd.f32 %v4272_v0, %v5635_v54  ;;  %v1954_v59 = vpop.f32.mrb[47].mxu0  ;;  %4314 = vmatmul.mubr.bf16.gmra.mrb[40].mxu1 %v2067_v9  ;;  %v2044_v36 = vmax.f32 %v1960_v45, 0.0 }
 0x420   : > { %v1955_v38 = vadd.f32 %v5635_v54, %v1954_v59  ;;  %v2042_v43 = vmax.f32 %v1952_v6, 0.0 }
 0x421   : > { %v2045_v29 = vmax.f32 %v1963_v57, 0.0 }
 0x422   : > { %v2043_v37 = vmax.f32 %v1955_v38, 0.0 }
 0x423   : > { %v2069_v19 = vpack.c.bf16 %v2045_v29, %v2044_v36 }
 0x424   : > { %v2068_v7 = vpack.c.bf16 %v2043_v37, %v2042_v43  ;;  %v4275_v42 = vpop.f32.mrb[48].mxu0 }
 0x425   : > { %v1976_v39 = vadd.f32 %v4275_v42, %v5635_v54  ;;  %v1967_v47 = vpop.f32.mrb[49].mxu0 }
 0x426   : > { %v1968_v17 = vadd.f32 %v5635_v54, %v1967_v47  ;;  %v4276_v18 = vpop.f32.mrb[50].mxu0  ;;  %4317 = vmatprep.mubr.bf16.mxu1 %v2068_v7 }
 0x427   : > { %v1979_v50 = vadd.f32 %v4276_v18, %v5635_v54  ;;  %v1970_v0 = vpop.f32.mrb[51].mxu0  ;;  %4318 = vmatmul.mubr.bf16.gmra.mrb[44].mxu1 %v2069_v19  ;;  %v2048_v45 = vmax.f32 %v1976_v39, 0.0 }
 0x428   : > { %v1971_v9 = vadd.f32 %v5635_v54, %v1970_v0  ;;  %v2046_v6 = vmax.f32 %v1968_v17, 0.0 }
 0x429   : > { %v2049_v57 = vmax.f32 %v1979_v50, 0.0 }
 0x42a   : > { %v2047_v59 = vmax.f32 %v1971_v9, 0.0 }
 0x42b   : > { %v2071_v38 = vpack.c.bf16 %v2049_v57, %v2048_v45 }
 0x42c   : > { %v2070_v36 = vpack.c.bf16 %v2047_v59, %v2046_v6  ;;  %v4279_v29 = vpop.f32.mrb[52].mxu0 }
 0x42d   : > { %v1992_v43 = vadd.f32 %v4279_v29, %v5635_v54  ;;  %v1983_v37 = vpop.f32.mrb[53].mxu0 }
 0x42e   : > { %v1984_v42 = vadd.f32 %v5635_v54, %v1983_v37  ;;  %v4280_v47 = vpop.f32.mrb[54].mxu0  ;;  %4321 = vmatprep.mubr.bf16.mxu1 %v2070_v36 }
 0x42f   : > { %v1995_v7 = vadd.f32 %v4280_v47, %v5635_v54  ;;  %v1986_v18 = vpop.f32.mrb[55].mxu0  ;;  %4322 = vmatmul.mubr.bf16.gmra.mrb[48].mxu1 %v2071_v38  ;;  %v2052_v39 = vmax.f32 %v1992_v43, 0.0 }
 0x430   : > { %v1987_v19 = vadd.f32 %v5635_v54, %v1986_v18  ;;  %v2050_v17 = vmax.f32 %v1984_v42, 0.0 }
 0x431   : > { %v2053_v50 = vmax.f32 %v1995_v7, 0.0 }
 0x432   : > { %v2051_v0 = vmax.f32 %v1987_v19, 0.0 }
 0x433   : > { %v2073_v9 = vpack.c.bf16 %v2053_v50, %v2052_v39 }
 0x434   : > { %v2072_v45 = vpack.c.bf16 %v2051_v0, %v2050_v17  ;;  %v4283_v57 = vpop.f32.mrb[56].mxu0 }
 0x435   : > { %v2008_v6 = vadd.f32 %v4283_v57, %v5635_v54  ;;  %v1999_v59 = vpop.f32.mrb[57].mxu0 }
 0x436   : > { %v2000_v29 = vadd.f32 %v5635_v54, %v1999_v59  ;;  %v4284_v37 = vpop.f32.mrb[58].mxu0  ;;  %4325 = vmatprep.mubr.bf16.mxu1 %v2072_v45 }
 0x437   : > { %v2011_v36 = vadd.f32 %v4284_v37, %v5635_v54  ;;  %v2002_v47 = vpop.f32.mrb[59].mxu0  ;;  %4326 = vmatmul.mubr.bf16.gmra.mrb[52].mxu1 %v2073_v9  ;;  %v2056_v43 = vmax.f32 %v2008_v6, 0.0 }
 0x438   : > { %v2003_v38 = vadd.f32 %v5635_v54, %v2002_v47  ;;  %v2054_v42 = vmax.f32 %v2000_v29, 0.0 }
 0x439   : > { %v2057_v7 = vmax.f32 %v2011_v36, 0.0 }
 0x43a   : > { %v2055_v18 = vmax.f32 %v2003_v38, 0.0 }
 0x43b   : > { %v2075_v19 = vpack.c.bf16 %v2057_v7, %v2056_v43  ;;  %v5672_v7 = vld [vmem:[%s6829_s10] ss:$0 sm:$0xff] }
 0x43c   : > { %v2074_v39 = vpack.c.bf16 %v2055_v18, %v2054_v42  ;;  %v4287_v50 = vpop.f32.mrb[60].mxu0 }
 0x43d   : > { %v2024_v17 = vadd.f32 %v4287_v50, %v5635_v54  ;;  %v2015_v0 = vpop.f32.mrb[61].mxu0 }
 0x43e   : > { %v2016_v57 = vadd.f32 %v5635_v54, %v2015_v0  ;;  %v4288_v59 = vpop.f32.mrb[62].mxu0  ;;  %4329 = vmatprep.mubr.bf16.mxu1 %v2074_v39 }
 0x43f   : > { %v2027_v45 = vadd.f32 %v4288_v59, %v5635_v54  ;;  %v2018_v37 = vpop.f32.mrb[63].mxu0  ;;  %4330 = vmatmul.mubr.bf16.gmra.mrb[56].mxu1 %v2075_v19  ;;  %v2060_v6 = vmax.f32 %v2024_v17, 0.0 }
 0x440   : > { %v2019_v9 = vadd.f32 %v5635_v54, %v2018_v37  ;;  %v2058_v29 = vmax.f32 %v2016_v57, 0.0 }
 0x441   : > { %v2061_v36 = vmax.f32 %v2027_v45, 0.0 }
 0x442   : > { %v2059_v47 = vmax.f32 %v2019_v9, 0.0 }
 0x443   : > { %v2077_v38 = vpack.c.bf16 %v2061_v36, %v2060_v6 }
 0x444   : > { %v2076_v43 = vpack.c.bf16 %v2059_v47, %v2058_v29 }
 0x446   : > { %4333 = vmatprep.mubr.bf16.mxu1 %v2076_v43 }
 0x447   : > { %4334 = vmatmul.mubr.bf16.gmra.mrb[60].mxu1 %v2077_v38 }
 0x4e2   : > { %v4307_v42 = vpop.f32.mrb[32].mxu1 }
 0x4e3   : > { %v2166_v18 = vpop.f32.mrb[33].mxu1  ;;  %v5682_v17 = vadd.f32 %v4307_v42, %v5672_v7 }
 0x4e4   : > { %v5675_v39 = vadd.f32 %v5672_v7, %v2166_v18  ;;  %v4308_v19 = vpop.f32.mrb[34].mxu1 }
 0x4e5   : > { %v2169_v54 = vpop.f32.mrb[35].mxu1  ;;  %v5686_v0 = vadd.f32 %v4308_v19, %v5672_v7 }
 0x4e6   : > { %v5678_v50 = vadd.f32 %v5672_v7, %v2169_v54  ;;  %2293 = vadd.xlane.f32.xlu0 %v5675_v39 }
 0x4e8   : > { %2295 = vadd.xlane.f32.xlu1 %v5678_v50 }
 0x4ea   : > { %2297 = vadd.xlane.f32.xlu0 %v5682_v17  ;;  %v4311_v57 = vpop.f32.mrb[36].mxu1 }
 0x4eb   : > { %v2182_v59 = vpop.f32.mrb[37].mxu1  ;;  %v5698_v36 = vadd.f32 %v4311_v57, %v5672_v7 }
 0x4ec   : > { %v5690_v45 = vadd.f32 %v5672_v7, %v2182_v59  ;;  %2299 = vadd.xlane.f32.xlu1 %v5686_v0  ;;  %v4312_v37 = vpop.f32.mrb[38].mxu1 }
 0x4ed   : > { %v2185_v9 = vpop.f32.mrb[39].mxu1  ;;  %v5702_v29 = vadd.f32 %v4312_v37, %v5672_v7 }
 0x4ee   : > { %v5694_v6 = vadd.f32 %v5672_v7, %v2185_v9  ;;  %2301 = vadd.xlane.f32.xlu0 %v5690_v45 }
 0x4f0   : > { %2303 = vadd.xlane.f32.xlu1 %v5694_v6 }
 0x4f2   : > { %2305 = vadd.xlane.f32.xlu0 %v5698_v36  ;;  %v4315_v47 = vpop.f32.mrb[40].mxu1 }
 0x4f3   : > { %v2198_v38 = vpop.f32.mrb[41].mxu1  ;;  %v5714_v54 = vadd.f32 %v4315_v47, %v5672_v7 }
 0x4f4   : > { %v5706_v43 = vadd.f32 %v5672_v7, %v2198_v38  ;;  %2307 = vadd.xlane.f32.xlu1 %v5702_v29  ;;  %v4316_v42 = vpop.f32.mrb[42].mxu1 }
 0x4f5   : > { %v2201_v18 = vpop.f32.mrb[43].mxu1  ;;  %v5718_v57 = vadd.f32 %v4316_v42, %v5672_v7 }
 0x4f6   : > { %v5710_v19 = vadd.f32 %v5672_v7, %v2201_v18  ;;  %2309 = vadd.xlane.f32.xlu0 %v5706_v43 }
 0x4f8   : > { %2311 = vadd.xlane.f32.xlu1 %v5710_v19 }
 0x4fa   : > { %2313 = vadd.xlane.f32.xlu0 %v5714_v54  ;;  %v4319_v59 = vpop.f32.mrb[44].mxu1 }
 0x4fb   : > { %v2214_v37 = vpop.f32.mrb[45].mxu1  ;;  %v5730_v47 = vadd.f32 %v4319_v59, %v5672_v7 }
 0x4fc   : > { %v5722_v9 = vadd.f32 %v5672_v7, %v2214_v37  ;;  %2315 = vadd.xlane.f32.xlu1 %v5718_v57  ;;  %v4320_v38 = vpop.f32.mrb[46].mxu1 }
 0x4fd   : > { %v2217_v18 = vpop.f32.mrb[47].mxu1  ;;  %v5734_v42 = vadd.f32 %v4320_v38, %v5672_v7 }
 0x4fe   : > { %v5726_v22 = vadd.f32 %v5672_v7, %v2217_v18  ;;  %2317 = vadd.xlane.f32.xlu0 %v5722_v9 }
 0x500   : > { %2319 = vadd.xlane.f32.xlu1 %v5726_v22 }
 0x502   : > { %2321 = vadd.xlane.f32.xlu0 %v5730_v47  ;;  %v4323_v37 = vpop.f32.mrb[48].mxu1 }
 0x503   : > { %v2230_v4 = vpop.f32.mrb[49].mxu1  ;;  %v5746_v59 = vadd.f32 %v4323_v37, %v5672_v7 }
 0x504   : > { %v5738_v53 = vadd.f32 %v5672_v7, %v2230_v4  ;;  %2323 = vadd.xlane.f32.xlu1 %v5734_v42  ;;  %v4324_v18 = vpop.f32.mrb[50].mxu1 }
 0x505   : > { %v2233_v11 = vpop.f32.mrb[51].mxu1  ;;  %v5750_v38 = vadd.f32 %v4324_v18, %v5672_v7 }
 0x506   : > { %v5742_v25 = vadd.f32 %v5672_v7, %v2233_v11  ;;  %2325 = vadd.xlane.f32.xlu0 %v5738_v53 }
 0x508   : > { %2327 = vadd.xlane.f32.xlu1 %v5742_v25 }
 0x50a   : > { %2329 = vadd.xlane.f32.xlu0 %v5746_v59  ;;  %v4327_v4 = vpop.f32.mrb[52].mxu1 }
 0x50b   : > { %v2246_v20 = vpop.f32.mrb[53].mxu1  ;;  %v5762_v37 = vadd.f32 %v4327_v4, %v5672_v7 }
 0x50c   : > { %v5754_v31 = vadd.f32 %v5672_v7, %v2246_v20  ;;  %2331 = vadd.xlane.f32.xlu1 %v5750_v38  ;;  %v4328_v11 = vpop.f32.mrb[54].mxu1 }
 0x50d   : > { %v2249_v15 = vpop.f32.mrb[55].mxu1  ;;  %v5766_v18 = vadd.f32 %v4328_v11, %v5672_v7 }
 0x50e   : > { %v5758_v56 = vadd.f32 %v5672_v7, %v2249_v15  ;;  %2333 = vadd.xlane.f32.xlu0 %v5754_v31 }
 0x510   : > { %2335 = vadd.xlane.f32.xlu1 %v5758_v56 }
 0x512   : > { %2337 = vadd.xlane.f32.xlu0 %v5762_v37  ;;  %v4331_v20 = vpop.f32.mrb[56].mxu1 }
 0x513   : > { %v2262_v48 = vpop.f32.mrb[57].mxu1  ;;  %v5778_v4 = vadd.f32 %v4331_v20, %v5672_v7 }
 0x514   : > { %v5770_v21 = vadd.f32 %v5672_v7, %v2262_v48  ;;  %2339 = vadd.xlane.f32.xlu1 %v5766_v18  ;;  %v4332_v15 = vpop.f32.mrb[58].mxu1 }
 0x515   : > { %v2265_v35 = vpop.f32.mrb[59].mxu1  ;;  %v5782_v11 = vadd.f32 %v4332_v15, %v5672_v7 }
 0x516   : > { %v5774_v32 = vadd.f32 %v5672_v7, %v2265_v35  ;;  %2341 = vadd.xlane.f32.xlu0 %v5770_v21 }
 0x518   : > { %2343 = vadd.xlane.f32.xlu1 %v5774_v32 }
 0x51a   : > { %2345 = vadd.xlane.f32.xlu0 %v5778_v4  ;;  %v4335_v48 = vpop.f32.mrb[60].mxu1 }
 0x51b   : > { %v2278_v44 = vpop.f32.mrb[61].mxu1  ;;  %v5794_v20 = vadd.f32 %v4335_v48, %v5672_v7  ;;  %v4477_v48 = vld [vmem:[%s6832_s13 + $0x18] sm:$0xff]  }
 0x51c   : > { %v5786_v23 = vadd.f32 %v5672_v7, %v2278_v44  ;;  %2347 = vadd.xlane.f32.xlu1 %v5782_v11  ;;  %v4336_v35 = vpop.f32.mrb[62].mxu1  ;;  %v4474_v44 = vld [vmem:[%s6832_s13] sm:$0xff]  }
 0x51d   : > { %v2281_v27 = vpop.f32.mrb[63].mxu1  ;;  %v5798_v15 = vadd.f32 %v4336_v35, %v5672_v7  ;;  %4337 = vmatprep.subr.bf16.mxu0 %v4474_v44 }
 0x51e   : > { %v5790_v55 = vadd.f32 %v5672_v7, %v2281_v27  ;;  %2349 = vadd.xlane.f32.xlu0 %v5786_v23  ;;  %v4475_v27 = vld [vmem:[%s6832_s13 + $0x8] sm:$0xff]   ;;  %4338 = vmatpush3.bf16.msra.mxu0 %v4474_v44  ;;  %v4476_v7 = vld [vmem:[%s6832_s13 + $0x10] sm:$0xff]  }
 0x51f   : > { %4339 = vmatprep.subr.bf16.mxu0 %v4475_v27 }
 0x520   : > { %2351 = vadd.xlane.f32.xlu1 %v5790_v55 }
 0x522   : > { %2353 = vadd.xlane.f32.xlu0 %v5794_v20  ;;  %4340 = vmatpush3.bf16.msra.mxu0 %v4475_v27 }
 0x523   : > { %4341 = vmatprep.subr.bf16.mxu0 %v4476_v7 }
 0x524   : > { %2355 = vadd.xlane.f32.xlu1 %v5798_v15 }
 0x526   : > { %4342 = vmatpush3.bf16.msra.mxu0 %v4476_v7 }
 0x527   : > { %4343 = vmatprep.subr.bf16.mxu0 %v4477_v48 }
 0x52a   : > { %4344 = vmatpush3.bf16.msra.mxu0 %v4477_v48 }
 0x573   : > { %v2294_v35 = vpop.xlane.xlu0 %2293 }
 0x574   : > { %v2357_v12 = vmul.f32 0.015625, %v2294_v35 }
 0x575   : > { %v2296_v34 = vpop.xlane.xlu1 %2295 }
 0x576   : > { %v2389_v60 = vsub.f32 %v5675_v39, %v2357_v12  ;;  %v2358_v44 = vmul.f32 0.015625, %v2296_v34 }
 0x577   : > { %v2298_v33 = vpop.xlane.xlu0 %2297 }
 0x578   : > { %v2390_v46 = vsub.f32 %v5678_v50, %v2358_v44  ;;  %v2359_v13 = vmul.f32 0.015625, %v2298_v33  ;;  %v5818_v27 = vsel %vm1396_vm1, %v2389_v60, 0.0 }
 0x579   : > { %v2300_v63 = vpop.xlane.xlu1 %2299  ;;  %v2453_v7 = vmul.f32 %v5818_v27, %v5818_v27 }
 0x57a   : > { %v2391_v48 = vsub.f32 %v5682_v17, %v2359_v13  ;;  %v2360_v8 = vmul.f32 0.015625, %v2300_v63  ;;  %v5825_v35 = vsel %vm1396_vm1, %v2390_v46, 0.0 }
 0x57b   : > { %2485 = vadd.xlane.f32.xlu0 %v2453_v7  ;;  %v2302_v34 = vpop.xlane.xlu0 %2301  ;;  %v2454_v33 = vmul.f32 %v5825_v35, %v5825_v35 }
 0x57c   : > { %v2392_v12 = vsub.f32 %v5686_v0, %v2360_v8  ;;  %v2361_v60 = vmul.f32 0.015625, %v2302_v34  ;;  %v5832_v39 = vsel %vm1396_vm1, %v2391_v48, 0.0 }
 0x57d   : > { %v2304_v50 = vpop.xlane.xlu1 %2303  ;;  %2487 = vadd.xlane.f32.xlu1 %v2454_v33  ;;  %v2455_v63 = vmul.f32 %v5832_v39, %v5832_v39 }
 0x57e   : > { %v2393_v13 = vsub.f32 %v5690_v45, %v2361_v60  ;;  %v2362_v46 = vmul.f32 0.015625, %v2304_v50  ;;  %v5839_v17 = vsel %vm1396_vm1, %v2392_v12, 0.0 }
 0x57f   : > { %2489 = vadd.xlane.f32.xlu0 %v2455_v63  ;;  %v2306_v44 = vpop.xlane.xlu0 %2305  ;;  %v2456_v8 = vmul.f32 %v5839_v17, %v5839_v17 }
 0x580   : > { %v2394_v0 = vsub.f32 %v5694_v6, %v2362_v46  ;;  %v2363_v7 = vmul.f32 0.015625, %v2306_v44  ;;  %v5846_v48 = vsel %vm1396_vm1, %v2393_v13, 0.0 }
 0x581   : > { %v2308_v34 = vpop.xlane.xlu1 %2307  ;;  %2491 = vadd.xlane.f32.xlu1 %v2456_v8  ;;  %v2457_v45 = vmul.f32 %v5846_v48, %v5846_v48 }
 0x582   : > { %v2395_v33 = vsub.f32 %v5698_v36, %v2363_v7  ;;  %v2364_v12 = vmul.f32 0.015625, %v2308_v34  ;;  %v5853_v60 = vsel %vm1396_vm1, %v2394_v0, 0.0 }
 0x583   : > { %2493 = vadd.xlane.f32.xlu0 %v2457_v45  ;;  %v2310_v50 = vpop.xlane.xlu0 %2309  ;;  %v2458_v6 = vmul.f32 %v5853_v60, %v5853_v60 }
 0x584   : > { %v2396_v63 = vsub.f32 %v5702_v29, %v2364_v12  ;;  %v2365_v13 = vmul.f32 0.015625, %v2310_v50  ;;  %v5860_v46 = vsel %vm1396_vm1, %v2395_v33, 0.0 }
 0x585   : > { %v2312_v44 = vpop.xlane.xlu1 %2311  ;;  %2495 = vadd.xlane.f32.xlu1 %v2458_v6  ;;  %v2459_v36 = vmul.f32 %v5860_v46, %v5860_v46 }
 0x586   : > { %v2397_v8 = vsub.f32 %v5706_v43, %v2365_v13  ;;  %v2366_v0 = vmul.f32 0.015625, %v2312_v44  ;;  %v5867_v7 = vsel %vm1396_vm1, %v2396_v63, 0.0 }
 0x587   : > { %2497 = vadd.xlane.f32.xlu0 %v2459_v36  ;;  %v2314_v34 = vpop.xlane.xlu0 %2313  ;;  %v2460_v29 = vmul.f32 %v5867_v7, %v5867_v7 }
 0x588   : > { %v2398_v45 = vsub.f32 %v5710_v19, %v2366_v0  ;;  %v2367_v33 = vmul.f32 0.015625, %v2314_v34  ;;  %v5874_v12 = vsel %vm1396_vm1, %v2397_v8, 0.0 }
 0x589   : > { %v2316_v50 = vpop.xlane.xlu1 %2315  ;;  %2499 = vadd.xlane.f32.xlu1 %v2460_v29  ;;  %v2461_v43 = vmul.f32 %v5874_v12, %v5874_v12  ;;  %v4478_v29 = vld [vmem:[%s6832_s13 + $0x20] sm:$0xff]  }
 0x58a   : > { %v2399_v6 = vsub.f32 %v5714_v54, %v2367_v33  ;;  %v2368_v63 = vmul.f32 0.015625, %v2316_v50  ;;  %v5881_v13 = vsel %vm1396_vm1, %v2398_v45, 0.0  ;;  %4345 = vmatprep.subr.bf16.mxu0 %v4478_v29 }
 0x58b   : > { %2501 = vadd.xlane.f32.xlu0 %v2461_v43  ;;  %v2318_v44 = vpop.xlane.xlu0 %2317  ;;  %v2462_v19 = vmul.f32 %v5881_v13, %v5881_v13  ;;  %4346 = vmatpush3.bf16.msra.mxu0 %v4478_v29 }
 0x58c   : > { %v2400_v36 = vsub.f32 %v5718_v57, %v2368_v63  ;;  %v2369_v8 = vmul.f32 0.015625, %v2318_v44  ;;  %v5888_v0 = vsel %vm1396_vm1, %v2399_v6, 0.0 }
 0x58d   : > { %v2320_v34 = vpop.xlane.xlu1 %2319  ;;  %2503 = vadd.xlane.f32.xlu1 %v2462_v19  ;;  %v2463_v54 = vmul.f32 %v5888_v0, %v5888_v0 }
 0x58e   : > { %v2401_v45 = vsub.f32 %v5722_v9, %v2369_v8  ;;  %v2370_v33 = vmul.f32 0.015625, %v2320_v34  ;;  %v5898_v57 = vsel %vm1396_vm1, %v2400_v36, 0.0 }
 0x58f   : > { %2505 = vadd.xlane.f32.xlu0 %v2463_v54  ;;  %v2322_v50 = vpop.xlane.xlu0 %2321  ;;  %v2464_v43 = vmul.f32 %v5898_v57, %v5898_v57 }
 0x590   : > { %v2402_v6 = vsub.f32 %v5726_v22, %v2370_v33  ;;  %v2371_v63 = vmul.f32 0.015625, %v2322_v50  ;;  %v5905_v44 = vsel %vm1396_vm1, %v2401_v45, 0.0 }
 0x591   : > { %v2324_v9 = vpop.xlane.xlu1 %2323  ;;  %2507 = vadd.xlane.f32.xlu1 %v2464_v43  ;;  %v2465_v19 = vmul.f32 %v5905_v44, %v5905_v44 }
 0x592   : > { %v2403_v36 = vsub.f32 %v5730_v47, %v2371_v63  ;;  %v2372_v8 = vmul.f32 0.015625, %v2324_v9  ;;  %v5912_v34 = vsel %vm1396_vm1, %v2402_v6, 0.0 }
 0x593   : > { %2509 = vadd.xlane.f32.xlu0 %v2465_v19  ;;  %v2326_v22 = vpop.xlane.xlu0 %2325  ;;  %v2466_v54 = vmul.f32 %v5912_v34, %v5912_v34 }
 0x594   : > { %v2404_v45 = vsub.f32 %v5734_v42, %v2372_v8  ;;  %v2373_v29 = vmul.f32 0.015625, %v2326_v22  ;;  %v5919_v33 = vsel %vm1396_vm1, %v2403_v36, 0.0 }
 0x595   : > { %v2328_v50 = vpop.xlane.xlu1 %2327  ;;  %2511 = vadd.xlane.f32.xlu1 %v2466_v54  ;;  %v2467_v47 = vmul.f32 %v5919_v33, %v5919_v33 }
 0x596   : > { %v2405_v43 = vsub.f32 %v5738_v53, %v2373_v29  ;;  %v2374_v6 = vmul.f32 0.015625, %v2328_v50  ;;  %v5926_v63 = vsel %vm1396_vm1, %v2404_v45, 0.0 }
 0x597   : > { %2513 = vadd.xlane.f32.xlu0 %v2467_v47  ;;  %v2330_v9 = vpop.xlane.xlu0 %2329  ;;  %v2468_v42 = vmul.f32 %v5926_v63, %v5926_v63 }
 0x598   : > { %v2406_v19 = vsub.f32 %v5742_v25, %v2374_v6  ;;  %v2375_v36 = vmul.f32 0.015625, %v2330_v9  ;;  %v5933_v8 = vsel %vm1396_vm1, %v2405_v43, 0.0 }
 0x599   : > { %v2332_v22 = vpop.xlane.xlu1 %2331  ;;  %2515 = vadd.xlane.f32.xlu1 %v2468_v42  ;;  %v2469_v53 = vmul.f32 %v5933_v8, %v5933_v8 }
 0x59a   : > { %v2407_v54 = vsub.f32 %v5746_v59, %v2375_v36  ;;  %v2376_v45 = vmul.f32 0.015625, %v2332_v22  ;;  %v5940_v29 = vsel %vm1396_vm1, %v2406_v19, 0.0 }
 0x59b   : > { %2517 = vadd.xlane.f32.xlu0 %v2469_v53  ;;  %v2334_v50 = vpop.xlane.xlu0 %2333  ;;  %v2470_v25 = vmul.f32 %v5940_v29, %v5940_v29 }
 0x59c   : > { %v2408_v47 = vsub.f32 %v5750_v38, %v2376_v45  ;;  %v2377_v43 = vmul.f32 0.015625, %v2334_v50  ;;  %v5947_v6 = vsel %vm1396_vm1, %v2407_v54, 0.0  ;;  %v4479_v38 = vld [vmem:[%s6832_s13 + $0x28] sm:$0xff]   ;;  %v4480_v50 = vld [vmem:[%s6832_s13 + $0x30] sm:$0xff]  }
 0x59d   : > { %v2336_v9 = vpop.xlane.xlu1 %2335  ;;  %2519 = vadd.xlane.f32.xlu1 %v2470_v25  ;;  %v2471_v59 = vmul.f32 %v5947_v6, %v5947_v6  ;;  %4347 = vmatprep.subr.bf16.mxu0 %v4479_v38 }
 0x59e   : > { %v2409_v42 = vsub.f32 %v5754_v31, %v2377_v43  ;;  %v2378_v19 = vmul.f32 0.015625, %v2336_v9  ;;  %v5954_v36 = vsel %vm1396_vm1, %v2408_v47, 0.0  ;;  %4348 = vmatpush3.bf16.msra.mxu0 %v4479_v38 }
 0x59f   : > { %2521 = vadd.xlane.f32.xlu0 %v2471_v59  ;;  %v2338_v22 = vpop.xlane.xlu0 %2337  ;;  %v2472_v53 = vmul.f32 %v5954_v36, %v5954_v36  ;;  %4349 = vmatprep.subr.bf16.mxu0 %v4480_v50 }
 0x5a0   : > { %v2410_v54 = vsub.f32 %v5758_v56, %v2378_v19  ;;  %v2379_v45 = vmul.f32 0.015625, %v2338_v22  ;;  %v5964_v31 = vsel %vm1396_vm1, %v2409_v42, 0.0 }
 0x5a1   : > { %v2340_v25 = vpop.xlane.xlu1 %2339  ;;  %2523 = vadd.xlane.f32.xlu1 %v2472_v53  ;;  %v2473_v47 = vmul.f32 %v5964_v31, %v5964_v31 }
 0x5a2   : > { %v2411_v43 = vsub.f32 %v5762_v37, %v2379_v45  ;;  %v2380_v9 = vmul.f32 0.015625, %v2340_v25  ;;  %v5974_v56 = vsel %vm1396_vm1, %v2410_v54, 0.0  ;;  %4350 = vmatpush3.bf16.msra.mxu0 %v4480_v50  ;;  %v4481_v54 = vld [vmem:[%s6832_s13 + $0x38] sm:$0xff]  }
 0x5a3   : > { %2525 = vadd.xlane.f32.xlu0 %v2473_v47  ;;  %v2342_v59 = vpop.xlane.xlu0 %2341  ;;  %v2474_v42 = vmul.f32 %v5974_v56, %v5974_v56  ;;  %4351 = vmatprep.subr.bf16.mxu0 %v4481_v54 }
 0x5a4   : > { %v2412_v19 = vsub.f32 %v5766_v18, %v2380_v9  ;;  %v2381_v22 = vmul.f32 0.015625, %v2342_v59  ;;  %v5981_v53 = vsel %vm1396_vm1, %v2411_v43, 0.0 }
 0x5a5   : > { %v2344_v38 = vpop.xlane.xlu1 %2343  ;;  %2527 = vadd.xlane.f32.xlu1 %v2474_v42  ;;  %v2475_v37 = vmul.f32 %v5981_v53, %v5981_v53 }
 0x5a6   : > { %v2413_v45 = vsub.f32 %v5770_v21, %v2381_v22  ;;  %v2382_v25 = vmul.f32 0.015625, %v2344_v38  ;;  %v5991_v18 = vsel %vm1396_vm1, %v2412_v19, 0.0  ;;  %4352 = vmatpush3.bf16.msra.mxu0 %v4481_v54 }
 0x5a7   : > { %2529 = vadd.xlane.f32.xlu0 %v2475_v37  ;;  %v2346_v47 = vpop.xlane.xlu0 %2345  ;;  %v2476_v43 = vmul.f32 %v5991_v18, %v5991_v18 }
 0x5a8   : > { %v2414_v9 = vsub.f32 %v5774_v32, %v2382_v25  ;;  %v2383_v50 = vmul.f32 0.015625, %v2346_v47  ;;  %v5998_v59 = vsel %vm1396_vm1, %v2413_v45, 0.0 }
 0x5a9   : > { %v2348_v42 = vpop.xlane.xlu1 %2347  ;;  %2531 = vadd.xlane.f32.xlu1 %v2476_v43  ;;  %v2477_v21 = vmul.f32 %v5998_v59, %v5998_v59 }
 0x5aa   : > { %v2415_v19 = vsub.f32 %v5778_v4, %v2383_v50  ;;  %v2384_v22 = vmul.f32 0.015625, %v2348_v42  ;;  %v6005_v38 = vsel %vm1396_vm1, %v2414_v9, 0.0 }
 0x5ab   : > { %2533 = vadd.xlane.f32.xlu0 %v2477_v21  ;;  %v2350_v32 = vpop.xlane.xlu0 %2349  ;;  %v2478_v37 = vmul.f32 %v6005_v38, %v6005_v38 }
 0x5ac   : > { %v2416_v45 = vsub.f32 %v5782_v11, %v2384_v22  ;;  %v2385_v25 = vmul.f32 0.015625, %v2350_v32  ;;  %v6012_v47 = vsel %vm1396_vm1, %v2415_v19, 0.0 }
 0x5ad   : > { %2535 = vadd.xlane.f32.xlu1 %v2478_v37  ;;  %v2352_v54 = vpop.xlane.xlu1 %2351  ;;  %v2479_v4 = vmul.f32 %v6012_v47, %v6012_v47 }
 0x5ae   : > { %v2417_v43 = vsub.f32 %v5786_v23, %v2385_v25  ;;  %v2386_v9 = vmul.f32 0.015625, %v2352_v54  ;;  %v6019_v50 = vsel %vm1396_vm1, %v2416_v45, 0.0 }
 0x5af   : > { %6917 = vst [vmem:[#allocation18_spill] sm:$0xff] %v6019_v50  ;;  %2537 = vadd.xlane.f32.xlu0 %v2479_v4  ;;  %v2354_v42 = vpop.xlane.xlu0 %2353  ;;  %v2480_v11 = vmul.f32 %v6019_v50, %v6019_v50 }
 0x5b0   : > { %v2418_v21 = vsub.f32 %v5790_v55, %v2386_v9  ;;  %v2387_v19 = vmul.f32 0.015625, %v2354_v42  ;;  %v6026_v22 = vsel %vm1396_vm1, %v2417_v43, 0.0  ;;  %v4482_v42 = vld [vmem:[%s6834_s15] sm:$0xff]  }
 0x5b1   : > { %6918 = vst [vmem:[#allocation19_spill] sm:$0xff] %v6026_v22  ;;  %2539 = vadd.xlane.f32.xlu1 %v2480_v11  ;;  %v2356_v32 = vpop.xlane.xlu1 %2355  ;;  %v2481_v23 = vmul.f32 %v6026_v22, %v6026_v22  ;;  %4385 = vmatprep.subr.bf16.mxu1 %v4482_v42  ;;  %v4484_v11 = vld [vmem:[%s6834_s15 + $0x10] sm:$0xff]  }
 0x5b2   : > { %v2419_v37 = vsub.f32 %v5794_v20, %v2387_v19  ;;  %v2388_v45 = vmul.f32 0.015625, %v2356_v32  ;;  %v6033_v25 = vsel %vm1396_vm1, %v2418_v21, 0.0  ;;  %4386 = vmatpush3.bf16.msra.mxu1 %v4482_v42  ;;  %v4485_v21 = vld [vmem:[%s6834_s15 + $0x18] sm:$0xff]   ;;  %v4486_v19 = vld [vmem:[%s6834_s15 + $0x20] sm:$0xff]   ;;  %v4487_v32 = vld [vmem:[%s6834_s15 + $0x28] sm:$0xff]  }
 0x5b3   : > { %6919 = vst [vmem:[#allocation20_spill] sm:$0xff] %v6033_v25  ;;  %2541 = vadd.xlane.f32.xlu0 %v2481_v23  ;;  %v2482_v55 = vmul.f32 %v6033_v25, %v6033_v25  ;;  %v4488_v23 = vld [vmem:[%s6834_s15 + $0x30] sm:$0xff]  }
 0x5b4   : > { %v6039_v54 = vsel %vm1396_vm1, %v2419_v37, 0.0  ;;  %v2420_v4 = vsub.f32 %v5798_v15, %v2388_v45  ;;  %v4483_v15 = vld [vmem:[%s6834_s15 + $0x8] sm:$0xff]  }
 0x5b5   : > { %6920 = vst [vmem:[#allocation21_spill] sm:$0xff] %v6039_v54  ;;  %2543 = vadd.xlane.f32.xlu1 %v2482_v55  ;;  %v2483_v43 = vmul.f32 %v6039_v54, %v6039_v54  ;;  %4387 = vmatprep.subr.bf16.mxu1 %v4483_v15 }
 0x5b6   : > { %v6046_v20 = vsel %vm1396_vm1, %v2420_v4, 0.0  ;;  %4388 = vmatpush3.bf16.msra.mxu1 %v4483_v15 }
 0x5b7   : > { %6921 = vst [vmem:[#allocation22_spill] sm:$0xff] %v6046_v20  ;;  %2545 = vadd.xlane.f32.xlu0 %v2483_v43  ;;  %v2484_v9 = vmul.f32 %v6046_v20, %v6046_v20  ;;  %4389 = vmatprep.subr.bf16.mxu1 %v4484_v11 }
 0x5b9   : > { %2547 = vadd.xlane.f32.xlu1 %v2484_v9 }
 0x5ba   : > { %4390 = vmatpush3.bf16.msra.mxu1 %v4484_v11 }
 0x5bb   : > { %4391 = vmatprep.subr.bf16.mxu1 %v4485_v21 }
 0x5be   : > { %4392 = vmatpush3.bf16.msra.mxu1 %v4485_v21 }
 0x5bf   : > { %4393 = vmatprep.subr.bf16.mxu1 %v4486_v19 }
 0x5c2   : > { %4394 = vmatpush3.bf16.msra.mxu1 %v4486_v19 }
 0x5c3   : > { %4395 = vmatprep.subr.bf16.mxu1 %v4487_v32 }
 0x5c6   : > { %4396 = vmatpush3.bf16.msra.mxu1 %v4487_v32 }
 0x5c7   : > { %4397 = vmatprep.subr.bf16.mxu1 %v4488_v23 }
 0x5ca   : > { %4398 = vmatpush3.bf16.msra.mxu1 %v4488_v23 }
 0x608   : > { %v2486_v37 = vpop.xlane.xlu0 %2485 }
 0x609   : > { %v2549_v45 = vmul.f32 0.015625, %v2486_v37 }
 0x60a   : > { %v2488_v55 = vpop.xlane.xlu1 %2487 }
 0x60b   : > { %v2581_v4 = vadd.f32 1e-05, %v2549_v45  ;;  %v2550_v43 = vmul.f32 0.015625, %v2488_v55 }
 0x60c   : > { %v2490_v9 = vpop.xlane.xlu0 %2489 }
 0x60d   : > { %4554 = vrsqrt.f32 %v2581_v4  ;;  %v2582_v42 = vadd.f32 1e-05, %v2550_v43  ;;  %v2551_v15 = vmul.f32 0.015625, %v2490_v9  ;;  %v6074_v43 = vld [vmem:[%s6830_s11] ss:$0 sm:$0xff] }
 0x60e   : > { %v2492_v11 = vpop.xlane.xlu1 %2491 }
 0x60f   : > { %4556 = vrsqrt.f32 %v2582_v42  ;;  %v2583_v21 = vadd.f32 1e-05, %v2551_v15  ;;  %v2552_v19 = vmul.f32 0.015625, %v2492_v11 }
 0x610   : > { %v2494_v28 = vpop.xlane.xlu0 %2493 }
 0x611   : > { %4558 = vrsqrt.f32 %v2583_v21  ;;  %v2584_v20 = vadd.f32 1e-05, %v2552_v19  ;;  %v2553_v54 = vmul.f32 0.015625, %v2494_v28 }
 0x612   : > { %v2496_v32 = vpop.xlane.xlu1 %2495 }
 0x613   : > { %4560 = vrsqrt.f32 %v2584_v20  ;;  %v2585_v23 = vadd.f32 1e-05, %v2553_v54  ;;  %v2554_v25 = vmul.f32 0.015625, %v2496_v32 }
 0x614   : > { %v2498_v37 = vpop.xlane.xlu0 %2497 }
 0x615   : > { %4562 = vrsqrt.f32 %v2585_v23  ;;  %v2586_v45 = vadd.f32 1e-05, %v2554_v25  ;;  %v2555_v55 = vmul.f32 0.015625, %v2498_v37  ;;  %v6080_v25 = vld [vmem:[%s6831_s12] ss:$0 sm:$0xff] }
 0x616   : > { %v2500_v22 = vpop.xlane.xlu1 %2499 }
 0x617   : > { %v4555_v4 = vpop.eup %4554  ;;  %4564 = vrsqrt.f32 %v2586_v45  ;;  %v2587_v9 = vadd.f32 1e-05, %v2555_v55  ;;  %v2556_v42 = vmul.f32 0.015625, %v2500_v22 }
 0x618   : > { %v2502_v15 = vpop.xlane.xlu0 %2501  ;;  %v2645_v28 = vmul.f32 %v4555_v4, %v5818_v27 }
 0x619   : > { %v4557_v20 = vpop.eup %4556  ;;  %4566 = vrsqrt.f32 %v2587_v9  ;;  %v2588_v54 = vadd.f32 1e-05, %v2556_v42  ;;  %v2557_v11 = vmul.f32 0.015625, %v2502_v15 }
 0x61a   : > { %v2504_v21 = vpop.xlane.xlu1 %2503  ;;  %v2646_v19 = vmul.f32 %v4557_v20, %v5825_v35  ;;  %v2683_v32 = vmul.f32 %v6074_v43, %v2645_v28 }
 0x61b   : > { %v4559_v23 = vpop.eup %4558  ;;  %4568 = vrsqrt.f32 %v2588_v54  ;;  %v2589_v22 = vadd.f32 1e-05, %v2557_v11  ;;  %v2558_v37 = vmul.f32 0.015625, %v2504_v21  ;;  %v6922_v54 = vmax.f32 %v5377_v52, 0.0 }
 0x61c   : > { %v2647_v27 = vmul.f32 %v4559_v23, %v5832_v39  ;;  %v2506_v45 = vpop.xlane.xlu0 %2505  ;;  %v2684_v55 = vmul.f32 %v6074_v43, %v2646_v19  ;;  %v2721_v4 = vadd.f32 %v6080_v25, %v2683_v32 }
 0x61d   : > { %v4561_v9 = vpop.eup %4560  ;;  %4570 = vrsqrt.f32 %v2589_v22  ;;  %v2590_v42 = vadd.f32 1e-05, %v2558_v37  ;;  %v2559_v15 = vmul.f32 0.015625, %v2506_v45  ;;  %v6923_v22 = vmax.f32 %v5384_v14, 0.0 }
 0x61e   : > { %v2685_v50 = vmul.f32 %v6074_v43, %v2647_v27  ;;  %v2648_v35 = vmul.f32 %v4561_v9, %v5839_v17  ;;  %v2508_v28 = vpop.xlane.xlu1 %2507  ;;  %v2722_v20 = vadd.f32 %v6080_v25, %v2684_v55  ;;  %v2753_v11 = vadd.f32 %v2721_v4, %v6922_v54 }
 0x61f   : > { %v4563_v39 = vpop.eup %4562  ;;  %4572 = vrsqrt.f32 %v2590_v42  ;;  %v2591_v21 = vadd.f32 1e-05, %v2559_v15  ;;  %v2560_v19 = vmul.f32 0.015625, %v2508_v28  ;;  %v6924_v15 = vmax.f32 %v5388_v2, 0.0 }
 0x620   : > { %v2686_v32 = vmul.f32 %v6074_v43, %v2648_v35  ;;  %v2510_v23 = vpop.xlane.xlu0 %2509  ;;  %v2754_v37 = vadd.f32 %v2722_v20, %v6923_v22  ;;  %v2785_v45 = vmax.f32 %v2753_v11, 0.0  ;;  %v2723_v27 = vadd.f32 %v6080_v25, %v2685_v50 }
 0x621   : > { %v4565_v17 = vpop.eup %4564  ;;  %4574 = vrsqrt.f32 %v2591_v21  ;;  %v2592_v9 = vadd.f32 1e-05, %v2560_v19  ;;  %v2561_v55 = vmul.f32 0.015625, %v2510_v23  ;;  %v2649_v52 = vmul.f32 %v4563_v39, %v5846_v48 }
 0x622   : > { %v2512_v4 = vpop.xlane.xlu1 %2511  ;;  %v2786_v54 = vmax.f32 %v2754_v37, 0.0  ;;  %v2724_v42 = vadd.f32 %v6080_v25, %v2686_v32  ;;  %v2755_v35 = vadd.f32 %v2723_v27, %v6924_v15  ;;  %v2650_v28 = vmul.f32 %v4565_v17, %v5853_v60 }
 0x623   : > { %v4567_v14 = vpop.eup %4566  ;;  %4576 = vrsqrt.f32 %v2592_v9  ;;  %v2593_v20 = vadd.f32 1e-05, %v2561_v55  ;;  %v2562_v11 = vmul.f32 0.015625, %v2512_v4  ;;  %v2687_v50 = vmul.f32 %v6074_v43, %v2649_v52 }
 0x624   : > { %v2514_v21 = vpop.xlane.xlu0 %2513  ;;  %v2853_v19 = vpack.c.bf16 %v2786_v54, %v2785_v45  ;;  %v6925_v23 = vmax.f32 %v5399_v26, 0.0  ;;  %v2787_v39 = vmax.f32 %v2755_v35, 0.0  ;;  %v2688_v22 = vmul.f32 %v6074_v43, %v2650_v28 }
 0x625   : > { %v4569_v32 = vpop.eup %4568  ;;  %4578 = vrsqrt.f32 %v2593_v20  ;;  %v2594_v2 = vadd.f32 1e-05, %v2562_v11  ;;  %v2563_v37 = vmul.f32 0.015625, %v2514_v21  ;;  %v2725_v60 = vadd.f32 %v6080_v25, %v2687_v50 }
 0x626   : > { %v2756_v48 = vadd.f32 %v2724_v42, %v6925_v23  ;;  %v2516_v27 = vpop.xlane.xlu1 %2515  ;;  %4353 = vmatprep.mubr.bf16.mxu0 %v2853_v19  ;;  %v2726_v9 = vadd.f32 %v6080_v25, %v2688_v22  ;;  %v2651_v55 = vmul.f32 %v4567_v14, %v5860_v46  ;;  %v2652_v45 = vmul.f32 %v4569_v32, %v5867_v7 }
 0x627   : > { %v4571_v26 = vpop.eup %4570  ;;  %4580 = vrsqrt.f32 %v2594_v2  ;;  %v2595_v52 = vadd.f32 1e-05, %v2563_v37  ;;  %v2564_v4 = vmul.f32 0.015625, %v2516_v27  ;;  %v6926_v54 = vmax.f32 %v5407_v10, 0.0 }
 0x628   : > { %v2788_v17 = vmax.f32 %v2756_v48, 0.0  ;;  %v2518_v15 = vpop.xlane.xlu0 %2517  ;;  %v6927_v28 = vmax.f32 %v5415_v61, 0.0  ;;  %v2689_v11 = vmul.f32 %v6074_v43, %v2651_v55  ;;  %v2690_v50 = vmul.f32 %v6074_v43, %v2652_v45 }
 0x629   : > { %v2757_v42 = vadd.f32 %v2725_v60, %v6926_v54  ;;  %v4573_v21 = vpop.eup %4572  ;;  %4582 = vrsqrt.f32 %v2595_v52  ;;  %v2596_v46 = vadd.f32 1e-05, %v2564_v4  ;;  %v2565_v7 = vmul.f32 0.015625, %v2518_v15 }
 0x62a   : > { %v2854_v35 = vpack.c.bf16 %v2788_v17, %v2787_v39  ;;  %v2758_v20 = vadd.f32 %v2726_v9, %v6927_v28  ;;  %v2520_v19 = vpop.xlane.xlu1 %2519  ;;  %v2727_v10 = vadd.f32 %v6080_v25, %v2689_v11  ;;  %v2728_v48 = vadd.f32 %v6080_v25, %v2690_v50 }
 0x62b   : > { %v2789_v14 = vmax.f32 %v2757_v42, 0.0  ;;  %v2653_v39 = vmul.f32 %v4571_v26, %v5874_v12  ;;  %v4575_v61 = vpop.eup %4574  ;;  %4584 = vrsqrt.f32 %v2596_v46  ;;  %v2597_v22 = vadd.f32 1e-05, %v2565_v7 }
 0x62c   : > { %4354 = vmatmul.mubr.bf16.vlgmr.msra.gmra.mrb[64].mxu0 %v2854_v35  ;;  %v2790_v23 = vmax.f32 %v2758_v20, 0.0  ;;  %v2566_v32 = vmul.f32 0.015625, %v2520_v19  ;;  %v2654_v2 = vmul.f32 %v4573_v21, %v5881_v13  ;;  %v2522_v37 = vpop.xlane.xlu0 %2521  ;;  %v6928_v27 = vmax.f32 %v5420_v5, 0.0 }
 0x62d   : > { %v6929_v9 = vmax.f32 %v5431_v58, 0.0  ;;  %v2691_v45 = vmul.f32 %v6074_v43, %v2653_v39  ;;  %v4577_v52 = vpop.eup %4576  ;;  %4586 = vrsqrt.f32 %v2597_v22  ;;  %v2567_v12 = vmul.f32 0.015625, %v2522_v37 }
 0x62e   : > { %v2855_v60 = vpack.c.bf16 %v2790_v23, %v2789_v14  ;;  %v2759_v17 = vadd.f32 %v2727_v10, %v6928_v27  ;;  %v2598_v4 = vadd.f32 1e-05, %v2566_v32  ;;  %v2692_v26 = vmul.f32 %v6074_v43, %v2654_v2  ;;  %v2524_v54 = vpop.xlane.xlu1 %2523 }
 0x62f   : > { %v2760_v55 = vadd.f32 %v2728_v48, %v6929_v9  ;;  %v2729_v15 = vadd.f32 %v6080_v25, %v2691_v45  ;;  %v2655_v5 = vmul.f32 %v4575_v61, %v5888_v0  ;;  %v4579_v35 = vpop.eup %4578  ;;  %v2599_v58 = vadd.f32 1e-05, %v2567_v12 }
 0x630   : > { %4357 = vmatprep.mubr.bf16.mxu0 %v2855_v60  ;;  %v2791_v42 = vmax.f32 %v2759_v17, 0.0  ;;  %4588 = vrsqrt.f32 %v2598_v4  ;;  %v2568_v28 = vmul.f32 0.015625, %v2524_v54  ;;  %v2730_v20 = vadd.f32 %v6080_v25, %v2692_v26  ;;  %v2526_v11 = vpop.xlane.xlu0 %2525 }
 0x631   : > { %v2792_v13 = vmax.f32 %v2760_v55, 0.0  ;;  %v6930_v21 = vmax.f32 %v5439_v62, 0.0  ;;  %v2656_v7 = vmul.f32 %v4577_v52, %v5898_v57  ;;  %v2693_v14 = vmul.f32 %v6074_v43, %v2655_v5  ;;  %v4581_v19 = vpop.eup %4580 }
 0x632   : > { %4590 = vrsqrt.f32 %v2599_v58  ;;  %v2600_v23 = vadd.f32 1e-05, %v2568_v28  ;;  %v2569_v10 = vmul.f32 0.015625, %v2526_v11  ;;  %v6931_v0 = vmax.f32 %v5447_v3, 0.0  ;;  %v2528_v39 = vpop.xlane.xlu1 %2527 }
 0x633   : > { %v2856_v50 = vpack.c.bf16 %v2792_v13, %v2791_v42  ;;  %v2761_v46 = vadd.f32 %v2729_v15, %v6930_v21  ;;  %v2694_v22 = vmul.f32 %v6074_v43, %v2656_v7  ;;  %v2731_v32 = vadd.f32 %v6080_v25, %v2693_v14  ;;  %v4583_v2 = vpop.eup %4582 }
 0x634   : > { %v2762_v48 = vadd.f32 %v2730_v20, %v6931_v0  ;;  %v2657_v62 = vmul.f32 %v4579_v35, %v5905_v44  ;;  %4592 = vrsqrt.f32 %v2600_v23  ;;  %v2601_v57 = vadd.f32 1e-05, %v2569_v10  ;;  %v2530_v27 = vpop.xlane.xlu0 %2529 }
 0x635   : > { %4358 = vmatmul.mubr.bf16.gmra.mrb[68].mxu0 %v2856_v50  ;;  %v2793_v61 = vmax.f32 %v2761_v46, 0.0  ;;  %v2570_v37 = vmul.f32 0.015625, %v2528_v39  ;;  %v2732_v17 = vadd.f32 %v6080_v25, %v2694_v22  ;;  %v6932_v3 = vmax.f32 %v5452_v40, 0.0  ;;  %v4585_v52 = vpop.eup %4584 }
 0x636   : > { %v2794_v60 = vmax.f32 %v2762_v48, 0.0  ;;  %v2658_v55 = vmul.f32 %v4581_v19, %v5912_v34  ;;  %v2695_v45 = vmul.f32 %v6074_v43, %v2657_v62  ;;  %4594 = vrsqrt.f32 %v2601_v57  ;;  %v2532_v26 = vpop.xlane.xlu1 %2531 }
 0x637   : > { %v2763_v9 = vadd.f32 %v2731_v32, %v6932_v3  ;;  %v2602_v4 = vadd.f32 1e-05, %v2570_v37  ;;  %v2571_v12 = vmul.f32 0.015625, %v2530_v27  ;;  %v6933_v54 = vmax.f32 %v5463_v1, 0.0  ;;  %v4587_v40 = vpop.eup %4586 }
 0x638   : > { %v2857_v44 = vpack.c.bf16 %v2794_v60, %v2793_v61  ;;  %v2696_v15 = vmul.f32 %v6074_v43, %v2658_v55  ;;  %v2733_v5 = vadd.f32 %v6080_v25, %v2695_v45  ;;  %v2572_v34 = vmul.f32 0.015625, %v2532_v26  ;;  %v2534_v28 = vpop.xlane.xlu0 %2533 }
 0x639   : > { %v2764_v42 = vadd.f32 %v2732_v17, %v6933_v54  ;;  %v2795_v13 = vmax.f32 %v2763_v9, 0.0  ;;  %4596 = vrsqrt.f32 %v2602_v4  ;;  %v2603_v35 = vadd.f32 1e-05, %v2571_v12 }
 0x63a   : > { %4361 = vmatprep.mubr.bf16.mxu0 %v2857_v44  ;;  %v2659_v58 = vmul.f32 %v4583_v2, %v5919_v33  ;;  %v2734_v11 = vadd.f32 %v6080_v25, %v2696_v15  ;;  %v6934_v50 = vmax.f32 %v5471_v41, 0.0  ;;  %v2660_v21 = vmul.f32 %v4585_v52, %v5926_v63  ;;  %v4589_v46 = vpop.eup %4588  ;;  %v2536_v23 = vpop.xlane.xlu1 %2535 }
 0x63b   : > { %v2796_v20 = vmax.f32 %v2764_v42, 0.0  ;;  %4598 = vrsqrt.f32 %v2603_v35  ;;  %v2604_v7 = vadd.f32 1e-05, %v2572_v34  ;;  %v2573_v14 = vmul.f32 0.015625, %v2534_v28 }
 0x63c   : > { %v2765_v1 = vadd.f32 %v2733_v5, %v6934_v50  ;;  %v2697_v19 = vmul.f32 %v6074_v43, %v2659_v58  ;;  %v6935_v0 = vmax.f32 %v5479_v16, 0.0  ;;  %v2698_v39 = vmul.f32 %v6074_v43, %v2660_v21  ;;  %v4591_v61 = vpop.eup %4590  ;;  %v2538_v32 = vpop.xlane.xlu0 %2537 }
 0x63d   : > { %v2858_v10 = vpack.c.bf16 %v2796_v20, %v2795_v13  ;;  %4600 = vrsqrt.f32 %v2604_v7  ;;  %v2605_v41 = vadd.f32 1e-05, %v2573_v14  ;;  %v2574_v22 = vmul.f32 0.015625, %v2536_v23 }
 0x63e   : > { %v2766_v33 = vadd.f32 %v2734_v11, %v6935_v0  ;;  %v2797_v48 = vmax.f32 %v2765_v1, 0.0  ;;  %v2735_v63 = vadd.f32 %v6080_v25, %v2697_v19  ;;  %v2736_v2 = vadd.f32 %v6080_v25, %v2698_v39  ;;  %v4593_v16 = vpop.eup %4592  ;;  %v2540_v9 = vpop.xlane.xlu1 %2539 }
 0x63f   : > { %4362 = vmatmul.mubr.bf16.gmra.mrb[72].mxu0 %v2858_v10  ;;  %v2661_v57 = vmul.f32 %v4587_v40, %v5933_v8  ;;  %v2662_v37 = vmul.f32 %v4589_v46, %v5940_v29  ;;  %4602 = vrsqrt.f32 %v2605_v41  ;;  %v2606_v60 = vadd.f32 1e-05, %v2574_v22 }
 0x640   : > { %v2798_v62 = vmax.f32 %v2766_v33, 0.0  ;;  %v2575_v27 = vmul.f32 0.015625, %v2538_v32  ;;  %v6936_v17 = vmax.f32 %v5484_v30, 0.0  ;;  %v6937_v45 = vmax.f32 %v5495_v49, 0.0  ;;  %v4595_v44 = vpop.eup %4594  ;;  %v2542_v54 = vpop.xlane.xlu0 %2541 }
 0x641   : > { %v2699_v4 = vmul.f32 %v6074_v43, %v2661_v57  ;;  %v2700_v12 = vmul.f32 %v6074_v43, %v2662_v37  ;;  %4604 = vrsqrt.f32 %v2606_v60  ;;  %v2576_v29 = vmul.f32 0.015625, %v2540_v9 }
 0x642   : > { %v2767_v3 = vadd.f32 %v2735_v63, %v6936_v17  ;;  %v2859_v55 = vpack.c.bf16 %v2798_v62, %v2797_v48  ;;  %v2768_v52 = vadd.f32 %v2736_v2, %v6937_v45  ;;  %v2607_v8 = vadd.f32 1e-05, %v2575_v27  ;;  %v2544_v34 = vpop.xlane.xlu1 %2543 }
 0x643   : > { %v2737_v30 = vadd.f32 %v6080_v25, %v2699_v4  ;;  %v2738_v13 = vadd.f32 %v6080_v25, %v2700_v12  ;;  %v2663_v15 = vmul.f32 %v4591_v61, %v5947_v6  ;;  %v4597_v49 = vpop.eup %4596  ;;  %v2608_v5 = vadd.f32 1e-05, %v2576_v29  ;;  %v6940_v61 = vld [vmem:[#allocation4_spill] sm:$0xff]  ;;  %v6944_v4 = vld [vmem:[#allocation6_spill] sm:$0xff] }
 0x644   : > { %v2799_v26 = vmax.f32 %v2767_v3, 0.0  ;;  %4365 = vmatprep.mubr.bf16.mxu0 %v2859_v55  ;;  %v2800_v42 = vmax.f32 %v2768_v52, 0.0  ;;  %4606 = vrsqrt.f32 %v2607_v8  ;;  %v2577_v40 = vmul.f32 0.015625, %v2542_v54  ;;  %v2546_v14 = vpop.xlane.xlu0 %2545 }
 0x645   : > { %v2664_v35 = vmul.f32 %v4593_v16, %v5954_v36  ;;  %v6938_v28 = vmax.f32 %v5503_v24, 0.0  ;;  %v6939_v11 = vmax.f32 %v5511_v51, 0.0  ;;  %v2701_v1 = vmul.f32 %v6074_v43, %v2663_v15  ;;  %v4599_v21 = vpop.eup %4598 }
 0x646   : > { %v2860_v58 = vpack.c.bf16 %v2800_v42, %v2799_v26  ;;  %4608 = vrsqrt.f32 %v2608_v5  ;;  %v2609_v46 = vadd.f32 1e-05, %v2577_v40  ;;  %v2578_v6 = vmul.f32 0.015625, %v2544_v34  ;;  %v2548_v48 = vpop.xlane.xlu1 %2547 }
 0x647   : > { %v2769_v20 = vadd.f32 %v2737_v30, %v6938_v28  ;;  %v2770_v50 = vadd.f32 %v2738_v13, %v6939_v11  ;;  %v2702_v7 = vmul.f32 %v6074_v43, %v2664_v35  ;;  %v2739_v23 = vadd.f32 %v6080_v25, %v2701_v1  ;;  %v4601_v10 = vpop.eup %4600  ;;  %v6946_v30 = vld [vmem:[#allocation7_spill] sm:$0xff]  ;;  %v6948_v28 = vld [vmem:[#allocation8_spill] sm:$0xff] }
 0x648   : > { %4366 = vmatmul.mubr.bf16.gmra.mrb[76].mxu0 %v2860_v58  ;;  %v2665_v24 = vmul.f32 %v4595_v44, %v5964_v31  ;;  %4610 = vrsqrt.f32 %v2609_v46  ;;  %v2610_v51 = vadd.f32 1e-05, %v2578_v6  ;;  %v2579_v0 = vmul.f32 0.015625, %v2546_v14  ;;  %v6942_v31 = vld [vmem:[#allocation5_spill] sm:$0xff] }
 0x649   : > { %v2801_v19 = vmax.f32 %v2769_v20, 0.0  ;;  %v2802_v36 = vmax.f32 %v2770_v50, 0.0  ;;  %v2740_v33 = vadd.f32 %v6080_v25, %v2702_v7  ;;  %v6941_v41 = vmax.f32 %v6940_v61, 0.0  ;;  %v4603_v62 = vpop.eup %4602  ;;  %v6950_v50 = vld [vmem:[#allocation18_spill] sm:$0xff]  ;;  %v6951_v46 = vld [vmem:[#allocation9_spill] sm:$0xff] }
 0x64a   : > { %v2666_v63 = vmul.f32 %v4597_v49, %v5974_v56  ;;  %v2703_v32 = vmul.f32 %v6074_v43, %v2665_v24  ;;  %4612 = vrsqrt.f32 %v2610_v51  ;;  %v2611_v2 = vadd.f32 1e-05, %v2579_v0  ;;  %v6953_v24 = vld [vmem:[#allocation10_spill] sm:$0xff] }
 0x64b   : > { %v2861_v39 = vpack.c.bf16 %v2802_v36, %v2801_v19  ;;  %v2771_v22 = vadd.f32 %v2739_v23, %v6941_v41  ;;  %v2580_v57 = vmul.f32 0.015625, %v2548_v48  ;;  %v6943_v37 = vmax.f32 %v6942_v31, 0.0  ;;  %v4605_v9 = vpop.eup %4604  ;;  %v6955_v48 = vld [vmem:[#allocation11_spill] sm:$0xff] }
 0x64c   : > { %v2704_v27 = vmul.f32 %v6074_v43, %v2666_v63  ;;  %v2741_v17 = vadd.f32 %v6080_v25, %v2703_v32  ;;  %v2667_v3 = vmul.f32 %v4599_v21, %v5981_v53  ;;  %4614 = vrsqrt.f32 %v2611_v2  ;;  %v6958_v2 = vld [vmem:[#allocation20_spill] sm:$0xff] }
 0x64d   : > { %v2772_v16 = vadd.f32 %v2740_v33, %v6943_v37  ;;  %4369 = vmatprep.mubr.bf16.mxu0 %v2861_v39  ;;  %v2803_v60 = vmax.f32 %v2771_v22, 0.0  ;;  %v2612_v56 = vadd.f32 1e-05, %v2580_v57  ;;  %v2668_v45 = vmul.f32 %v4601_v10, %v5991_v18  ;;  %v6957_v22 = vld [vmem:[#allocation19_spill] sm:$0xff] }
 0x64e   : > { %v2742_v52 = vadd.f32 %v6080_v25, %v2704_v27  ;;  %v6945_v12 = vmax.f32 %v6944_v4, 0.0  ;;  %v2705_v8 = vmul.f32 %v6074_v43, %v2667_v3  ;;  %v2669_v29 = vmul.f32 %v4603_v62, %v5998_v59  ;;  %v4607_v26 = vpop.eup %4606 }
 0x64f   : > { %v2804_v55 = vmax.f32 %v2772_v16, 0.0  ;;  %4616 = vrsqrt.f32 %v2612_v56  ;;  %v2706_v53 = vmul.f32 %v6074_v43, %v2668_v45  ;;  %v2670_v42 = vmul.f32 %v4605_v9, %v6005_v38  ;;  %v6961_v9 = vld [vmem:[#allocation13_spill] sm:$0xff] }
 0x650   : > { %v2773_v44 = vadd.f32 %v2741_v17, %v6945_v12  ;;  %v6947_v13 = vmax.f32 %v6946_v30, 0.0  ;;  %v2743_v18 = vadd.f32 %v6080_v25, %v2705_v8  ;;  %v2707_v49 = vmul.f32 %v6074_v43, %v2669_v29  ;;  %v4609_v5 = vpop.eup %4608 }
 0x651   : > { %v2862_v54 = vpack.c.bf16 %v2804_v55, %v2803_v60  ;;  %v2744_v35 = vadd.f32 %v6080_v25, %v2706_v53  ;;  %v2708_v59 = vmul.f32 %v6074_v43, %v2670_v42  ;;  %v2671_v34 = vmul.f32 %v4607_v26, %v6012_v47  ;;  %v6959_v60 = vld [vmem:[#allocation12_spill] sm:$0xff] }
 0x652   : > { %v2774_v15 = vadd.f32 %v2742_v52, %v6947_v13  ;;  %v2805_v40 = vmax.f32 %v2773_v44, 0.0  ;;  %v6949_v20 = vmax.f32 %v6948_v28, 0.0  ;;  %v2745_v11 = vadd.f32 %v6080_v25, %v2707_v49  ;;  %v4611_v21 = vpop.eup %4610  ;;  %v6963_v52 = vld [vmem:[#allocation21_spill] sm:$0xff]  ;;  %v6965_v13 = vld [vmem:[#allocation14_spill] sm:$0xff]  ;;  %v6967_v49 = vld [vmem:[#allocation15_spill] sm:$0xff] }
 0x653   : > { %4370 = vmatmul.mubr.bf16.gmra.mrb[80].mxu0 %v2862_v54  ;;  %v2672_v1 = vmul.f32 %v4609_v5, %v6950_v50  ;;  %v6952_v6 = vmax.f32 %v6951_v46, 0.0  ;;  %v2746_v14 = vadd.f32 %v6080_v25, %v2708_v59  ;;  %v2709_v19 = vmul.f32 %v6074_v43, %v2671_v34  ;;  %v6964_v54 = vld [vmem:[#allocation22_spill] sm:$0xff] }
 0x654   : > { %v2806_v58 = vmax.f32 %v2774_v15, 0.0  ;;  %v2775_v38 = vadd.f32 %v2743_v18, %v6949_v20  ;;  %v6954_v47 = vmax.f32 %v6953_v24, 0.0  ;;  %v4613_v0 = vpop.eup %4612  ;;  %v6956_v39 = vmax.f32 %v6955_v48, 0.0 }
 0x655   : > { %v2776_v7 = vadd.f32 %v2744_v35, %v6952_v6  ;;  %v2710_v51 = vmul.f32 %v6074_v43, %v2672_v1  ;;  %v2747_v41 = vadd.f32 %v6080_v25, %v2709_v19  ;;  %v2673_v63 = vmul.f32 %v4611_v21, %v6957_v22  ;;  %v6971_v21 = vld [vmem:[#allocation17_spill] sm:$0xff] }
 0x656   : > { %v2863_v36 = vpack.c.bf16 %v2806_v58, %v2805_v40  ;;  %v2807_v23 = vmax.f32 %v2775_v38, 0.0  ;;  %v2777_v10 = vadd.f32 %v2745_v11, %v6954_v47  ;;  %v2778_v61 = vadd.f32 %v2746_v14, %v6956_v39  ;;  %v4615_v31 = vpop.eup %4614  ;;  %v6969_v38 = vld [vmem:[#allocation16_spill] sm:$0xff] }
 0x657   : > { %v2808_v33 = vmax.f32 %v2776_v7, 0.0  ;;  %v2748_v62 = vadd.f32 %v6080_v25, %v2710_v51  ;;  %v2674_v57 = vmul.f32 %v4613_v0, %v6958_v2  ;;  %v6960_v27 = vmax.f32 %v6959_v60, 0.0 }
 0x658   : > { %4373 = vmatprep.mubr.bf16.mxu0 %v2863_v36  ;;  %v2809_v32 = vmax.f32 %v2777_v10, 0.0  ;;  %v2810_v16 = vmax.f32 %v2778_v61, 0.0  ;;  %v2711_v3 = vmul.f32 %v6074_v43, %v2673_v63  ;;  %v6962_v56 = vmax.f32 %v6961_v9, 0.0 }
 0x659   : > { %v2864_v37 = vpack.c.bf16 %v2808_v33, %v2807_v23  ;;  %v2779_v17 = vadd.f32 %v2747_v41, %v6960_v27  ;;  %v2712_v45 = vmul.f32 %v6074_v43, %v2674_v57  ;;  %v2675_v4 = vmul.f32 %v4615_v31, %v6963_v52  ;;  %v4617_v12 = vpop.eup %4616 }
 0x65a   : > { %v2780_v55 = vadd.f32 %v2748_v62, %v6962_v56  ;;  %v2865_v44 = vpack.c.bf16 %v2810_v16, %v2809_v32  ;;  %v2749_v8 = vadd.f32 %v6080_v25, %v2711_v3  ;;  %v2676_v53 = vmul.f32 %v4617_v12, %v6964_v54 }
 0x65b   : > { %4374 = vmatmul.mubr.bf16.gmra.mrb[84].mxu0 %v2864_v37  ;;  %v2750_v26 = vadd.f32 %v6080_v25, %v2712_v45  ;;  %v2713_v42 = vmul.f32 %v6074_v43, %v2675_v4  ;;  %v2811_v30 = vmax.f32 %v2779_v17, 0.0  ;;  %v6966_v15 = vmax.f32 %v6965_v13, 0.0 }
 0x65c   : > { %v2812_v29 = vmax.f32 %v2780_v55, 0.0  ;;  %4377 = vmatprep.mubr.bf16.mxu0 %v2865_v44  ;;  %v6968_v5 = vmax.f32 %v6967_v49, 0.0  ;;  %v2714_v35 = vmul.f32 %v6074_v43, %v2676_v53  ;;  %v6970_v11 = vmax.f32 %v6969_v38, 0.0  ;;  %v4489_v43 = vld [vmem:[%s6834_s15 + $0x38] sm:$0xff]  }
 0x65d   : > { %v2781_v18 = vadd.f32 %v2749_v8, %v6966_v15  ;;  %v2751_v59 = vadd.f32 %v6080_v25, %v2713_v42  ;;  %v6972_v46 = vmax.f32 %v6971_v21, 0.0  ;;  %4399 = vmatprep.subr.bf16.mxu1 %v4489_v43 }
 0x65e   : > { %v2782_v40 = vadd.f32 %v2750_v26, %v6968_v5  ;;  %v2866_v34 = vpack.c.bf16 %v2812_v29, %v2811_v30  ;;  %v2752_v20 = vadd.f32 %v6080_v25, %v2714_v35  ;;  %4400 = vmatpush3.bf16.msra.mxu1 %v4489_v43  ;;  %v6247_v25 = vld [vmem:[%s6833_s14] ss:$0 sm:$0xff] }
 0x65f   : > { %v2813_v58 = vmax.f32 %v2781_v18, 0.0  ;;  %v2783_v50 = vadd.f32 %v2751_v59, %v6970_v11 }
 0x660   : > { %v2814_v28 = vmax.f32 %v2782_v40, 0.0  ;;  %v2784_v6 = vadd.f32 %v2752_v20, %v6972_v46 }
 0x661   : > { %v2815_v14 = vmax.f32 %v2783_v50, 0.0 }
 0x662   : > { %v2867_v1 = vpack.c.bf16 %v2814_v28, %v2813_v58  ;;  %v2816_v7 = vmax.f32 %v2784_v6, 0.0 }
 0x663   : > { %4378 = vmatmul.mubr.bf16.gmra.mrb[88].mxu0 %v2866_v34 }
 0x664   : > { %4381 = vmatprep.mubr.bf16.mxu0 %v2867_v1  ;;  %v2868_v19 = vpack.c.bf16 %v2816_v7, %v2815_v14 }
 0x66b   : > { %4382 = vmatmul.mubr.bf16.gmra.mrb[92].mxu0 %v2868_v19 }
 0x6ff   : > { %v4355_v36 = vpop.f32.mrb[64].mxu0 }
 0x700   : > { %v2966_v23 = vadd.f32 %v4355_v36, %v6247_v25  ;;  %v2957_v24 = vpop.f32.mrb[65].mxu0 }
 0x701   : > { %v2958_v47 = vadd.f32 %v6247_v25, %v2957_v24  ;;  %v4356_v10 = vpop.f32.mrb[66].mxu0 }
 0x702   : > { %v2969_v51 = vadd.f32 %v4356_v10, %v6247_v25  ;;  %v2960_v0 = vpop.f32.mrb[67].mxu0  ;;  %v3086_v48 = vmax.f32 %v2966_v23, 0.0 }
 0x703   : > { %v2961_v33 = vadd.f32 %v6247_v25, %v2960_v0  ;;  %v3084_v61 = vmax.f32 %v2958_v47, 0.0 }
 0x704   : > { %v3087_v39 = vmax.f32 %v2969_v51, 0.0 }
 0x705   : > { %v3085_v41 = vmax.f32 %v2961_v33, 0.0 }
 0x706   : > { %v3117_v22 = vpack.c.bf16 %v3087_v39, %v3086_v48 }
 0x707   : > { %v3116_v63 = vpack.c.bf16 %v3085_v41, %v3084_v61 }
 0x708   : > { %v4359_v32 = vpop.f32.mrb[68].mxu0 }
 0x709   : > { %v2982_v62 = vadd.f32 %v4359_v32, %v6247_v25  ;;  %v2973_v2 = vpop.f32.mrb[69].mxu0  ;;  %4401 = vmatprep.mubr.bf16.mxu1 %v3116_v63 }
 0x70a   : > { %v2974_v57 = vadd.f32 %v6247_v25, %v2973_v2  ;;  %v4360_v31 = vpop.f32.mrb[70].mxu0  ;;  %4402 = vmatmul.mubr.bf16.vlgmr.msra.gmra.mrb[64].mxu1 %v3117_v22 }
 0x70b   : > { %v2985_v37 = vadd.f32 %v4360_v31, %v6247_v25  ;;  %v2976_v16 = vpop.f32.mrb[71].mxu0  ;;  %v3090_v27 = vmax.f32 %v2982_v62, 0.0 }
 0x70c   : > { %v2977_v60 = vadd.f32 %v6247_v25, %v2976_v16  ;;  %v3088_v3 = vmax.f32 %v2974_v57, 0.0 }
 0x70d   : > { %v3091_v17 = vmax.f32 %v2985_v37, 0.0 }
 0x70e   : > { %v3089_v9 = vmax.f32 %v2977_v60, 0.0 }
 0x70f   : > { %v3119_v56 = vpack.c.bf16 %v3091_v17, %v3090_v27 }
 0x710   : > { %v3118_v55 = vpack.c.bf16 %v3089_v9, %v3088_v3 }
 0x712   : > { %v4363_v45 = vpop.f32.mrb[72].mxu0  ;;  %4405 = vmatprep.mubr.bf16.mxu1 %v3118_v55 }
 0x713   : > { %v2998_v52 = vadd.f32 %v4363_v45, %v6247_v25  ;;  %v2989_v4 = vpop.f32.mrb[73].mxu0  ;;  %4406 = vmatmul.mubr.bf16.gmra.mrb[68].mxu1 %v3119_v56 }
 0x714   : > { %v2990_v12 = vadd.f32 %v6247_v25, %v2989_v4  ;;  %v4364_v44 = vpop.f32.mrb[74].mxu0 }
 0x715   : > { %v3001_v8 = vadd.f32 %v4364_v44, %v6247_v25  ;;  %v2992_v29 = vpop.f32.mrb[75].mxu0  ;;  %v3094_v54 = vmax.f32 %v2998_v52, 0.0 }
 0x716   : > { %v2993_v26 = vadd.f32 %v6247_v25, %v2992_v29  ;;  %v3092_v42 = vmax.f32 %v2990_v12, 0.0 }
 0x717   : > { %v3095_v53 = vmax.f32 %v3001_v8, 0.0 }
 0x718   : > { %v3093_v30 = vmax.f32 %v2993_v26, 0.0 }
 0x719   : > { %v3121_v13 = vpack.c.bf16 %v3095_v53, %v3094_v54 }
 0x71a   : > { %v3120_v15 = vpack.c.bf16 %v3093_v30, %v3092_v42 }
 0x71b   : > { %v4367_v18 = vpop.f32.mrb[76].mxu0 }
 0x71c   : > { %v3014_v49 = vadd.f32 %v4367_v18, %v6247_v25  ;;  %v3005_v5 = vpop.f32.mrb[77].mxu0  ;;  %4409 = vmatprep.mubr.bf16.mxu1 %v3120_v15 }
 0x71d   : > { %v3006_v40 = vadd.f32 %v6247_v25, %v3005_v5  ;;  %v4368_v35 = vpop.f32.mrb[78].mxu0  ;;  %4410 = vmatmul.mubr.bf16.gmra.mrb[72].mxu1 %v3121_v13 }
 0x71e   : > { %v3017_v59 = vadd.f32 %v4368_v35, %v6247_v25  ;;  %v3008_v34 = vpop.f32.mrb[79].mxu0  ;;  %v3098_v28 = vmax.f32 %v3014_v49, 0.0 }
 0x71f   : > { %v3009_v58 = vadd.f32 %v6247_v25, %v3008_v34  ;;  %v3096_v38 = vmax.f32 %v3006_v40, 0.0 }
 0x720   : > { %v3099_v20 = vmax.f32 %v3017_v59, 0.0 }
 0x721   : > { %v3097_v11 = vmax.f32 %v3009_v58, 0.0  ;;  %v6284_v58 = vld [vmem:[%s6835_s16] ss:$0 sm:$0xff] }
 0x722   : > { %v3123_v50 = vpack.c.bf16 %v3099_v20, %v3098_v28 }
 0x723   : > { %v3122_v1 = vpack.c.bf16 %v3097_v11, %v3096_v38 }
 0x725   : > { %4413 = vmatprep.mubr.bf16.mxu1 %v3122_v1 }
 0x726   : > { %v4371_v21 = vpop.f32.mrb[80].mxu0  ;;  %4414 = vmatmul.mubr.bf16.gmra.mrb[76].mxu1 %v3123_v50 }
 0x727   : > { %v3030_v46 = vadd.f32 %v4371_v21, %v6247_v25  ;;  %v3021_v6 = vpop.f32.mrb[81].mxu0 }
 0x728   : > { %v3022_v7 = vadd.f32 %v6247_v25, %v3021_v6  ;;  %v4372_v14 = vpop.f32.mrb[82].mxu0 }
 0x729   : > { %v3033_v19 = vadd.f32 %v4372_v14, %v6247_v25  ;;  %v3024_v43 = vpop.f32.mrb[83].mxu0  ;;  %v3102_v23 = vmax.f32 %v3030_v46, 0.0 }
 0x72a   : > { %v3025_v36 = vadd.f32 %v6247_v25, %v3024_v43  ;;  %v3100_v47 = vmax.f32 %v3022_v7, 0.0 }
 0x72b   : > { %v3103_v24 = vmax.f32 %v3033_v19, 0.0 }
 0x72c   : > { %v3101_v10 = vmax.f32 %v3025_v36, 0.0 }
 0x72d   : > { %v3125_v51 = vpack.c.bf16 %v3103_v24, %v3102_v23 }
 0x72e   : > { %v3124_v0 = vpack.c.bf16 %v3101_v10, %v3100_v47  ;;  %v4375_v33 = vpop.f32.mrb[84].mxu0 }
 0x72f   : > { %v3046_v48 = vadd.f32 %v4375_v33, %v6247_v25  ;;  %v3037_v39 = vpop.f32.mrb[85].mxu0 }
 0x730   : > { %v3038_v61 = vadd.f32 %v6247_v25, %v3037_v39  ;;  %v4376_v41 = vpop.f32.mrb[86].mxu0  ;;  %4417 = vmatprep.mubr.bf16.mxu1 %v3124_v0 }
 0x731   : > { %v3049_v22 = vadd.f32 %v4376_v41, %v6247_v25  ;;  %v3040_v63 = vpop.f32.mrb[87].mxu0  ;;  %4418 = vmatmul.mubr.bf16.gmra.mrb[80].mxu1 %v3125_v51  ;;  %v3106_v62 = vmax.f32 %v3046_v48, 0.0 }
 0x732   : > { %v3041_v32 = vadd.f32 %v6247_v25, %v3040_v63  ;;  %v3104_v57 = vmax.f32 %v3038_v61, 0.0 }
 0x733   : > { %v3107_v2 = vmax.f32 %v3049_v22, 0.0 }
 0x734   : > { %v3105_v31 = vmax.f32 %v3041_v32, 0.0 }
 0x735   : > { %v3127_v37 = vpack.c.bf16 %v3107_v2, %v3106_v62 }
 0x736   : > { %v3126_v16 = vpack.c.bf16 %v3105_v31, %v3104_v57  ;;  %v4379_v60 = vpop.f32.mrb[88].mxu0 }
 0x737   : > { %v3062_v27 = vadd.f32 %v4379_v60, %v6247_v25  ;;  %v3053_v17 = vpop.f32.mrb[89].mxu0 }
 0x738   : > { %v3054_v3 = vadd.f32 %v6247_v25, %v3053_v17  ;;  %v4380_v9 = vpop.f32.mrb[90].mxu0  ;;  %4421 = vmatprep.mubr.bf16.mxu1 %v3126_v16 }
 0x739   : > { %v3065_v56 = vadd.f32 %v4380_v9, %v6247_v25  ;;  %v3056_v55 = vpop.f32.mrb[91].mxu0  ;;  %4422 = vmatmul.mubr.bf16.gmra.mrb[84].mxu1 %v3127_v37  ;;  %v3110_v52 = vmax.f32 %v3062_v27, 0.0 }
 0x73a   : > { %v3057_v45 = vadd.f32 %v6247_v25, %v3056_v55  ;;  %v3108_v12 = vmax.f32 %v3054_v3, 0.0 }
 0x73b   : > { %v3111_v4 = vmax.f32 %v3065_v56, 0.0 }
 0x73c   : > { %v3109_v44 = vmax.f32 %v3057_v45, 0.0 }
 0x73d   : > { %v3129_v8 = vpack.c.bf16 %v3111_v4, %v3110_v52 }
 0x73e   : > { %v3128_v29 = vpack.c.bf16 %v3109_v44, %v3108_v12  ;;  %v4383_v26 = vpop.f32.mrb[92].mxu0 }
 0x73f   : > { %v3078_v54 = vadd.f32 %v4383_v26, %v6247_v25  ;;  %v3069_v53 = vpop.f32.mrb[93].mxu0 }
 0x740   : > { %v3070_v42 = vadd.f32 %v6247_v25, %v3069_v53  ;;  %v4384_v30 = vpop.f32.mrb[94].mxu0  ;;  %4425 = vmatprep.mubr.bf16.mxu1 %v3128_v29 }
 0x741   : > { %v3081_v13 = vadd.f32 %v4384_v30, %v6247_v25  ;;  %v3072_v15 = vpop.f32.mrb[95].mxu0  ;;  %4426 = vmatmul.mubr.bf16.gmra.mrb[88].mxu1 %v3129_v8  ;;  %v3114_v49 = vmax.f32 %v3078_v54, 0.0 }
 0x742   : > { %v3073_v18 = vadd.f32 %v6247_v25, %v3072_v15  ;;  %v3112_v40 = vmax.f32 %v3070_v42, 0.0 }
 0x743   : > { %v3115_v5 = vmax.f32 %v3081_v13, 0.0 }
 0x744   : > { %v3113_v35 = vmax.f32 %v3073_v18, 0.0 }
 0x745   : > { %v3131_v59 = vpack.c.bf16 %v3115_v5, %v3114_v49 }
 0x746   : > { %v3130_v34 = vpack.c.bf16 %v3113_v35, %v3112_v40 }
 0x748   : > { %4429 = vmatprep.mubr.bf16.mxu1 %v3130_v34 }
 0x749   : > { %4430 = vmatmul.mubr.bf16.gmra.mrb[92].mxu1 %v3131_v59 }
 0x7dd   : > { %v4403_v28 = vpop.f32.mrb[64].mxu1 }
 0x7de   : > { %v6287_v20 = vadd.f32 %v4403_v28, %v6284_v58  ;;  %v3220_v38 = vpop.f32.mrb[65].mxu1 }
 0x7df   : > { %v4404_v11 = vpop.f32.mrb[66].mxu1  ;;  %v6294_v1 = vadd.f32 %v6284_v58, %v3220_v38 }
 0x7e0   : > { %v6290_v25 = vadd.f32 %v4404_v11, %v6284_v58  ;;  %3351 = vadd.xlane.f32.xlu0 %v6287_v20  ;;  %v3223_v50 = vpop.f32.mrb[67].mxu1 }
 0x7e1   : > { %v6298_v21 = vadd.f32 %v6284_v58, %v3223_v50  ;;  %v6973_v50 = vld [vmem:[#allocation3_spill] sm:$0xff] }
 0x7e2   : > { %3353 = vadd.xlane.f32.xlu1 %v6290_v25  ;;  %vm3475_vm2 = vcmp.lt.s32.totalorder %v6973_v50, 32 }
 0x7e4   : > { %3347 = vadd.xlane.f32.xlu0 %v6294_v1 }
 0x7e6   : > { %v4407_v46 = vpop.f32.mrb[68].mxu1  ;;  %3349 = vadd.xlane.f32.xlu1 %v6298_v21 }
 0x7e7   : > { %v6302_v6 = vadd.f32 %v4407_v46, %v6284_v58  ;;  %v3236_v7 = vpop.f32.mrb[69].mxu1 }
 0x7e8   : > { %v4408_v14 = vpop.f32.mrb[70].mxu1  ;;  %v6310_v36 = vadd.f32 %v6284_v58, %v3236_v7 }
 0x7e9   : > { %v6306_v19 = vadd.f32 %v4408_v14, %v6284_v58  ;;  %3359 = vadd.xlane.f32.xlu0 %v6302_v6  ;;  %v3239_v43 = vpop.f32.mrb[71].mxu1 }
 0x7ea   : > { %v6314_v23 = vadd.f32 %v6284_v58, %v3239_v43 }
 0x7eb   : > { %3361 = vadd.xlane.f32.xlu1 %v6306_v19 }
 0x7ed   : > { %3355 = vadd.xlane.f32.xlu0 %v6310_v36 }
 0x7ef   : > { %3357 = vadd.xlane.f32.xlu1 %v6314_v23 }
 0x7f0   : > { %v4411_v24 = vpop.f32.mrb[72].mxu1 }
 0x7f1   : > { %v6319_v47 = vadd.f32 %v4411_v24, %v6284_v58  ;;  %v3252_v10 = vpop.f32.mrb[73].mxu1 }
 0x7f2   : > { %v4412_v51 = vpop.f32.mrb[74].mxu1  ;;  %v6326_v48 = vadd.f32 %v6284_v58, %v3252_v10 }
 0x7f3   : > { %v6322_v0 = vadd.f32 %v4412_v51, %v6284_v58  ;;  %3367 = vadd.xlane.f32.xlu0 %v6319_v47  ;;  %v3255_v33 = vpop.f32.mrb[75].mxu1 }
 0x7f4   : > { %v6330_v39 = vadd.f32 %v6284_v58, %v3255_v33 }
 0x7f5   : > { %3369 = vadd.xlane.f32.xlu1 %v6322_v0 }
 0x7f7   : > { %3363 = vadd.xlane.f32.xlu0 %v6326_v48 }
 0x7f9   : > { %v4415_v61 = vpop.f32.mrb[76].mxu1  ;;  %3365 = vadd.xlane.f32.xlu1 %v6330_v39 }
 0x7fa   : > { %v6334_v41 = vadd.f32 %v4415_v61, %v6284_v58  ;;  %v3268_v22 = vpop.f32.mrb[77].mxu1 }
 0x7fb   : > { %v4416_v63 = vpop.f32.mrb[78].mxu1  ;;  %v6342_v2 = vadd.f32 %v6284_v58, %v3268_v22 }
 0x7fc   : > { %v6338_v32 = vadd.f32 %v4416_v63, %v6284_v58  ;;  %3375 = vadd.xlane.f32.xlu0 %v6334_v41  ;;  %v3271_v62 = vpop.f32.mrb[79].mxu1 }
 0x7fd   : > { %v6346_v57 = vadd.f32 %v6284_v58, %v3271_v62 }
 0x7fe   : > { %3377 = vadd.xlane.f32.xlu1 %v6338_v32 }
 0x800   : > { %3371 = vadd.xlane.f32.xlu0 %v6342_v2 }
 0x802   : > { %3373 = vadd.xlane.f32.xlu1 %v6346_v57 }
 0x804   : > { %v4419_v31 = vpop.f32.mrb[80].mxu1 }
 0x805   : > { %v6351_v37 = vadd.f32 %v4419_v31, %v6284_v58  ;;  %v3284_v16 = vpop.f32.mrb[81].mxu1 }
 0x806   : > { %v4420_v60 = vpop.f32.mrb[82].mxu1  ;;  %v6358_v3 = vadd.f32 %v6284_v58, %v3284_v16 }
 0x807   : > { %v6354_v27 = vadd.f32 %v4420_v60, %v6284_v58  ;;  %3383 = vadd.xlane.f32.xlu0 %v6351_v37  ;;  %v3287_v17 = vpop.f32.mrb[83].mxu1 }
 0x808   : > { %v6362_v9 = vadd.f32 %v6284_v58, %v3287_v17 }
 0x809   : > { %3385 = vadd.xlane.f32.xlu1 %v6354_v27 }
 0x80b   : > { %3379 = vadd.xlane.f32.xlu0 %v6358_v3 }
 0x80c   : > { %v4423_v56 = vpop.f32.mrb[84].mxu1 }
 0x80d   : > { %v6366_v55 = vadd.f32 %v4423_v56, %v6284_v58  ;;  %3381 = vadd.xlane.f32.xlu1 %v6362_v9  ;;  %v3300_v45 = vpop.f32.mrb[85].mxu1 }
 0x80e   : > { %v4424_v52 = vpop.f32.mrb[86].mxu1  ;;  %v6374_v44 = vadd.f32 %v6284_v58, %v3300_v45 }
 0x80f   : > { %v6370_v4 = vadd.f32 %v4424_v52, %v6284_v58  ;;  %3391 = vadd.xlane.f32.xlu0 %v6366_v55  ;;  %v3303_v12 = vpop.f32.mrb[87].mxu1 }
 0x810   : > { %v6378_v8 = vadd.f32 %v6284_v58, %v3303_v12 }
 0x811   : > { %3393 = vadd.xlane.f32.xlu1 %v6370_v4 }
 0x813   : > { %3387 = vadd.xlane.f32.xlu0 %v6374_v44 }
 0x814   : > { %v4427_v29 = vpop.f32.mrb[88].mxu1 }
 0x815   : > { %v6382_v26 = vadd.f32 %v4427_v29, %v6284_v58  ;;  %3389 = vadd.xlane.f32.xlu1 %v6378_v8  ;;  %v3316_v54 = vpop.f32.mrb[89].mxu1 }
 0x816   : > { %v4428_v53 = vpop.f32.mrb[90].mxu1  ;;  %v6390_v13 = vadd.f32 %v6284_v58, %v3316_v54 }
 0x817   : > { %v6386_v42 = vadd.f32 %v4428_v53, %v6284_v58  ;;  %3399 = vadd.xlane.f32.xlu0 %v6382_v26  ;;  %v3319_v30 = vpop.f32.mrb[91].mxu1 }
 0x818   : > { %v6394_v15 = vadd.f32 %v6284_v58, %v3319_v30 }
 0x819   : > { %3401 = vadd.xlane.f32.xlu1 %v6386_v42 }
 0x81b   : > { %3395 = vadd.xlane.f32.xlu0 %v6390_v13 }
 0x81c   : > { %v4431_v18 = vpop.f32.mrb[92].mxu1 }
 0x81d   : > { %v6398_v49 = vadd.f32 %v4431_v18, %v6284_v58  ;;  %3397 = vadd.xlane.f32.xlu1 %v6394_v15  ;;  %v3332_v5 = vpop.f32.mrb[93].mxu1 }
 0x81e   : > { %v6402_v40 = vadd.f32 %v6284_v58, %v3332_v5  ;;  %v4432_v35 = vpop.f32.mrb[94].mxu1 }
 0x81f   : > { %v6405_v59 = vadd.f32 %v4432_v35, %v6284_v58  ;;  %v3335_v34 = vpop.f32.mrb[95].mxu1 }
 0x820   : > { %v6408_v28 = vadd.f32 %v6284_v58, %v3335_v34  ;;  %3403 = vadd.xlane.f32.xlu0 %v6402_v40 }
 0x822   : > { %3405 = vadd.xlane.f32.xlu1 %v6408_v28 }
 0x824   : > { %3407 = vadd.xlane.f32.xlu0 %v6398_v49 }
 0x826   : > { %3409 = vadd.xlane.f32.xlu1 %v6405_v59 }
 0x86d   : > { %v3352_v38 = vpop.xlane.xlu0 %3351 }
 0x86e   : > { %v3413_v11 = vmul.f32 0.03125, %v3352_v38 }
 0x86f   : > { %v3354_v46 = vpop.xlane.xlu1 %3353 }
 0x870   : > { %v3445_v7 = vsub.f32 %v6287_v20, %v3413_v11  ;;  %v3414_v14 = vmul.f32 0.03125, %v3354_v46 }
 0x871   : > { %v3348_v43 = vpop.xlane.xlu0 %3347 }
 0x872   : > { %v6418_v58 = vsel %vm3475_vm2, %v3445_v7, 0.0  ;;  %v3446_v24 = vsub.f32 %v6290_v25, %v3414_v14  ;;  %v3411_v10 = vmul.f32 0.03125, %v3348_v43 }
 0x873   : > { %v3350_v51 = vpop.xlane.xlu1 %3349  ;;  %v3512_v33 = vmul.f32 %v6418_v58, %v6418_v58 }
 0x874   : > { %v6425_v61 = vsel %vm3475_vm2, %v3446_v24, 0.0  ;;  %v3443_v22 = vsub.f32 %v6294_v1, %v3411_v10  ;;  %v3412_v20 = vmul.f32 0.03125, %v3350_v51 }
 0x875   : > { %3546 = vadd.xlane.f32.xlu0 %v3512_v33  ;;  %v3513_v62 = vmul.f32 %v6425_v61, %v6425_v61 }
 0x876   : > { %v3360_v63 = vpop.xlane.xlu0 %3359  ;;  %v6432_v25 = vsel %vm3475_vm2, %v3443_v22, 0.0  ;;  %v3444_v31 = vsub.f32 %v6298_v21, %v3412_v20 }
 0x877   : > { %v3417_v16 = vmul.f32 0.03125, %v3360_v63  ;;  %3548 = vadd.xlane.f32.xlu1 %v3513_v62  ;;  %v3510_v17 = vmul.f32 %v6432_v25, %v6432_v25 }
 0x878   : > { %v3362_v60 = vpop.xlane.xlu1 %3361  ;;  %v6439_v1 = vsel %vm3475_vm2, %v3444_v31, 0.0 }
 0x879   : > { %v3449_v56 = vsub.f32 %v6302_v6, %v3417_v16  ;;  %v3418_v45 = vmul.f32 0.03125, %v3362_v60  ;;  %3542 = vadd.xlane.f32.xlu0 %v3510_v17  ;;  %v3511_v12 = vmul.f32 %v6439_v1, %v6439_v1 }
 0x87a   : > { %v3356_v52 = vpop.xlane.xlu0 %3355 }
 0x87b   : > { %v6446_v21 = vsel %vm3475_vm2, %v3449_v56, 0.0  ;;  %v3450_v29 = vsub.f32 %v6306_v19, %v3418_v45  ;;  %v3415_v54 = vmul.f32 0.03125, %v3356_v52  ;;  %3544 = vadd.xlane.f32.xlu1 %v3511_v12 }
 0x87c   : > { %v3358_v53 = vpop.xlane.xlu1 %3357  ;;  %v3516_v30 = vmul.f32 %v6446_v21, %v6446_v21 }
 0x87d   : > { %v6453_v6 = vsel %vm3475_vm2, %v3450_v29, 0.0  ;;  %v3447_v18 = vsub.f32 %v6310_v36, %v3415_v54  ;;  %v3416_v5 = vmul.f32 0.03125, %v3358_v53 }
 0x87e   : > { %3554 = vadd.xlane.f32.xlu0 %v3516_v30  ;;  %v3517_v35 = vmul.f32 %v6453_v6, %v6453_v6 }
 0x87f   : > { %v6460_v19 = vsel %vm3475_vm2, %v3447_v18, 0.0  ;;  %v3448_v34 = vsub.f32 %v6314_v23, %v3416_v5 }
 0x880   : > { %v3368_v38 = vpop.xlane.xlu0 %3367  ;;  %3556 = vadd.xlane.f32.xlu1 %v3517_v35  ;;  %v3514_v11 = vmul.f32 %v6460_v19, %v6460_v19 }
 0x881   : > { %v6467_v46 = vsel %vm3475_vm2, %v3448_v34, 0.0  ;;  %v3421_v36 = vmul.f32 0.03125, %v3368_v38 }
 0x882   : > { %v3370_v7 = vpop.xlane.xlu1 %3369  ;;  %3550 = vadd.xlane.f32.xlu0 %v3514_v11  ;;  %v3515_v14 = vmul.f32 %v6467_v46, %v6467_v46 }
 0x883   : > { %v3453_v43 = vsub.f32 %v6319_v47, %v3421_v36  ;;  %v3422_v24 = vmul.f32 0.03125, %v3370_v7 }
 0x884   : > { %v3364_v10 = vpop.xlane.xlu0 %3363  ;;  %3552 = vadd.xlane.f32.xlu1 %v3515_v14 }
 0x885   : > { %v6474_v23 = vsel %vm3475_vm2, %v3453_v43, 0.0  ;;  %v3454_v51 = vsub.f32 %v6322_v0, %v3422_v24  ;;  %v3419_v33 = vmul.f32 0.03125, %v3364_v10 }
 0x886   : > { %v3366_v22 = vpop.xlane.xlu1 %3365  ;;  %v3520_v20 = vmul.f32 %v6474_v23, %v6474_v23 }
 0x887   : > { %v6481_v63 = vsel %vm3475_vm2, %v3454_v51, 0.0  ;;  %v3451_v47 = vsub.f32 %v6326_v48, %v3419_v33  ;;  %v3420_v62 = vmul.f32 0.03125, %v3366_v22 }
 0x888   : > { %3562 = vadd.xlane.f32.xlu0 %v3520_v20  ;;  %v3521_v16 = vmul.f32 %v6481_v63, %v6481_v63 }
 0x889   : > { %v3376_v31 = vpop.xlane.xlu0 %3375  ;;  %v6488_v0 = vsel %vm3475_vm2, %v3451_v47, 0.0  ;;  %v3452_v60 = vsub.f32 %v6330_v39, %v3420_v62 }
 0x88a   : > { %v3425_v17 = vmul.f32 0.03125, %v3376_v31  ;;  %3564 = vadd.xlane.f32.xlu1 %v3521_v16  ;;  %v3518_v45 = vmul.f32 %v6488_v0, %v6488_v0 }
 0x88b   : > { %v3378_v56 = vpop.xlane.xlu1 %3377  ;;  %v6495_v48 = vsel %vm3475_vm2, %v3452_v60, 0.0 }
 0x88c   : > { %v3457_v52 = vsub.f32 %v6334_v41, %v3425_v17  ;;  %v3426_v12 = vmul.f32 0.03125, %v3378_v56  ;;  %3558 = vadd.xlane.f32.xlu0 %v3518_v45  ;;  %v3519_v54 = vmul.f32 %v6495_v48, %v6495_v48 }
 0x88d   : > { %v3372_v29 = vpop.xlane.xlu0 %3371 }
 0x88e   : > { %v6502_v39 = vsel %vm3475_vm2, %v3457_v52, 0.0  ;;  %v3458_v53 = vsub.f32 %v6338_v32, %v3426_v12  ;;  %v3423_v30 = vmul.f32 0.03125, %v3372_v29  ;;  %3560 = vadd.xlane.f32.xlu1 %v3519_v54 }
 0x88f   : > { %v3374_v18 = vpop.xlane.xlu1 %3373  ;;  %v3524_v5 = vmul.f32 %v6502_v39, %v6502_v39 }
 0x890   : > { %v6509_v41 = vsel %vm3475_vm2, %v3458_v53, 0.0  ;;  %v3455_v35 = vsub.f32 %v6342_v2, %v3423_v30  ;;  %v3424_v34 = vmul.f32 0.03125, %v3374_v18 }
 0x891   : > { %3570 = vadd.xlane.f32.xlu0 %v3524_v5  ;;  %v3525_v38 = vmul.f32 %v6509_v41, %v6509_v41 }
 0x892   : > { %v6516_v32 = vsel %vm3475_vm2, %v3455_v35, 0.0  ;;  %v3456_v11 = vsub.f32 %v6346_v57, %v3424_v34 }
 0x893   : > { %3572 = vadd.xlane.f32.xlu1 %v3525_v38  ;;  %v3522_v14 = vmul.f32 %v6516_v32, %v6516_v32 }
 0x894   : > { %v3384_v36 = vpop.xlane.xlu0 %3383  ;;  %v6523_v2 = vsel %vm3475_vm2, %v3456_v11, 0.0 }
 0x895   : > { %v3429_v7 = vmul.f32 0.03125, %v3384_v36  ;;  %3566 = vadd.xlane.f32.xlu0 %v3522_v14  ;;  %v3523_v51 = vmul.f32 %v6523_v2, %v6523_v2 }
 0x896   : > { %v3386_v43 = vpop.xlane.xlu1 %3385 }
 0x897   : > { %v3461_v24 = vsub.f32 %v6351_v37, %v3429_v7  ;;  %v3430_v10 = vmul.f32 0.03125, %v3386_v43  ;;  %3568 = vadd.xlane.f32.xlu1 %v3523_v51 }
 0x898   : > { %v3380_v33 = vpop.xlane.xlu0 %3379 }
 0x899   : > { %v6530_v57 = vsel %vm3475_vm2, %v3461_v24, 0.0  ;;  %v3462_v22 = vsub.f32 %v6354_v27, %v3430_v10  ;;  %v3427_v20 = vmul.f32 0.03125, %v3380_v33 }
 0x89a   : > { %v3382_v47 = vpop.xlane.xlu1 %3381  ;;  %v3528_v62 = vmul.f32 %v6530_v57, %v6530_v57 }
 0x89b   : > { %v6537_v37 = vsel %vm3475_vm2, %v3462_v22, 0.0  ;;  %v3459_v31 = vsub.f32 %v6358_v3, %v3427_v20  ;;  %v3428_v16 = vmul.f32 0.03125, %v3382_v47 }
 0x89c   : > { %3578 = vadd.xlane.f32.xlu0 %v3528_v62  ;;  %v3392_v60 = vpop.xlane.xlu0 %3391  ;;  %v3529_v17 = vmul.f32 %v6537_v37, %v6537_v37 }
 0x89d   : > { %v6544_v27 = vsel %vm3475_vm2, %v3459_v31, 0.0  ;;  %v3460_v56 = vsub.f32 %v6362_v9, %v3428_v16  ;;  %v3433_v45 = vmul.f32 0.03125, %v3392_v60 }
 0x89e   : > { %v3394_v52 = vpop.xlane.xlu1 %3393  ;;  %3580 = vadd.xlane.f32.xlu1 %v3529_v17  ;;  %v3526_v12 = vmul.f32 %v6544_v27, %v6544_v27 }
 0x89f   : > { %v6551_v3 = vsel %vm3475_vm2, %v3460_v56, 0.0  ;;  %v3465_v29 = vsub.f32 %v6366_v55, %v3433_v45  ;;  %v3434_v54 = vmul.f32 0.03125, %v3394_v52 }
 0x8a0   : > { %3574 = vadd.xlane.f32.xlu0 %v3526_v12  ;;  %v3388_v53 = vpop.xlane.xlu0 %3387  ;;  %v3527_v30 = vmul.f32 %v6551_v3, %v6551_v3 }
 0x8a1   : > { %v6558_v9 = vsel %vm3475_vm2, %v3465_v29, 0.0  ;;  %v3466_v18 = vsub.f32 %v6370_v4, %v3434_v54  ;;  %v3431_v5 = vmul.f32 0.03125, %v3388_v53 }
 0x8a2   : > { %v3390_v35 = vpop.xlane.xlu1 %3389  ;;  %3576 = vadd.xlane.f32.xlu1 %v3527_v30  ;;  %v3532_v34 = vmul.f32 %v6558_v9, %v6558_v9 }
 0x8a3   : > { %v6565_v55 = vsel %vm3475_vm2, %v3466_v18, 0.0  ;;  %v3463_v38 = vsub.f32 %v6374_v44, %v3431_v5  ;;  %v3432_v11 = vmul.f32 0.03125, %v3390_v35 }
 0x8a4   : > { %3586 = vadd.xlane.f32.xlu0 %v3532_v34  ;;  %v3400_v36 = vpop.xlane.xlu0 %3399  ;;  %v3533_v7 = vmul.f32 %v6565_v55, %v6565_v55 }
 0x8a5   : > { %v6572_v4 = vsel %vm3475_vm2, %v3463_v38, 0.0  ;;  %v3464_v14 = vsub.f32 %v6378_v8, %v3432_v11  ;;  %v3437_v43 = vmul.f32 0.03125, %v3400_v36 }
 0x8a6   : > { %v3402_v24 = vpop.xlane.xlu1 %3401  ;;  %3588 = vadd.xlane.f32.xlu1 %v3533_v7  ;;  %v3530_v10 = vmul.f32 %v6572_v4, %v6572_v4 }
 0x8a7   : > { %v6579_v44 = vsel %vm3475_vm2, %v3464_v14, 0.0  ;;  %v3469_v51 = vsub.f32 %v6382_v26, %v3437_v43  ;;  %v3438_v33 = vmul.f32 0.03125, %v3402_v24 }
 0x8a8   : > { %3582 = vadd.xlane.f32.xlu0 %v3530_v10  ;;  %v3396_v22 = vpop.xlane.xlu0 %3395  ;;  %v3531_v20 = vmul.f32 %v6579_v44, %v6579_v44 }
 0x8a9   : > { %v6586_v8 = vsel %vm3475_vm2, %v3469_v51, 0.0  ;;  %v3470_v47 = vsub.f32 %v6386_v42, %v3438_v33  ;;  %v3435_v62 = vmul.f32 0.03125, %v3396_v22 }
 0x8aa   : > { %v3398_v31 = vpop.xlane.xlu1 %3397  ;;  %3584 = vadd.xlane.f32.xlu1 %v3531_v20  ;;  %v3536_v16 = vmul.f32 %v6586_v8, %v6586_v8 }
 0x8ab   : > { %v6593_v26 = vsel %vm3475_vm2, %v3470_v47, 0.0  ;;  %v3467_v60 = vsub.f32 %v6390_v13, %v3435_v62  ;;  %v3436_v17 = vmul.f32 0.03125, %v3398_v31 }
 0x8ac   : > { %3594 = vadd.xlane.f32.xlu0 %v3536_v16  ;;  %v3537_v56 = vmul.f32 %v6593_v26, %v6593_v26 }
 0x8ad   : > { %v6600_v42 = vsel %vm3475_vm2, %v3467_v60, 0.0  ;;  %v3468_v45 = vsub.f32 %v6394_v15, %v3436_v17  ;;  %v3404_v52 = vpop.xlane.xlu0 %3403 }
 0x8ae   : > { %v3439_v12 = vmul.f32 0.03125, %v3404_v52  ;;  %3596 = vadd.xlane.f32.xlu1 %v3537_v56  ;;  %v3534_v29 = vmul.f32 %v6600_v42, %v6600_v42 }
 0x8af   : > { %v6607_v13 = vsel %vm3475_vm2, %v3468_v45, 0.0  ;;  %v3406_v54 = vpop.xlane.xlu1 %3405 }
 0x8b0   : > { %v3471_v53 = vsub.f32 %v6402_v40, %v3439_v12  ;;  %v3440_v30 = vmul.f32 0.03125, %v3406_v54  ;;  %3590 = vadd.xlane.f32.xlu0 %v3534_v29  ;;  %v3535_v18 = vmul.f32 %v6607_v13, %v6607_v13 }
 0x8b1   : > { %v3408_v5 = vpop.xlane.xlu0 %3407 }
 0x8b2   : > { %v6614_v15 = vsel %vm3475_vm2, %v3471_v53, 0.0  ;;  %v3472_v35 = vsub.f32 %v6408_v28, %v3440_v30  ;;  %v3441_v34 = vmul.f32 0.03125, %v3408_v5  ;;  %3592 = vadd.xlane.f32.xlu1 %v3535_v18 }
 0x8b3   : > { %v3410_v38 = vpop.xlane.xlu1 %3409  ;;  %v3538_v11 = vmul.f32 %v6614_v15, %v6614_v15 }
 0x8b4   : > { %v6621_v40 = vsel %vm3475_vm2, %v3472_v35, 0.0  ;;  %v3473_v36 = vsub.f32 %v6398_v49, %v3441_v34  ;;  %v3442_v7 = vmul.f32 0.03125, %v3410_v38  ;;  %v6642_v35 = vld [vmem:[%s6836_s17] ss:$0 sm:$0xff] }
 0x8b5   : > { %3598 = vadd.xlane.f32.xlu0 %v3538_v11  ;;  %v3539_v14 = vmul.f32 %v6621_v40, %v6621_v40 }
 0x8b6   : > { %v6628_v28 = vsel %vm3475_vm2, %v3473_v36, 0.0  ;;  %v3474_v43 = vsub.f32 %v6405_v59, %v3442_v7  ;;  %v6648_v7 = vld [vmem:[%s6837_s18] ss:$0 sm:$0xff] }
 0x8b7   : > { %3600 = vadd.xlane.f32.xlu1 %v3539_v14  ;;  %v3540_v24 = vmul.f32 %v6628_v28, %v6628_v28 }
 0x8b8   : > { %v6635_v10 = vsel %vm3475_vm2, %v3474_v43, 0.0 }
 0x8b9   : > { %3602 = vadd.xlane.f32.xlu0 %v3540_v24  ;;  %v3541_v49 = vmul.f32 %v6635_v10, %v6635_v10 }
 0x8bb   : > { %3604 = vadd.xlane.f32.xlu1 %v3541_v49 }
 0x902   : > { %v3547_v51 = vpop.xlane.xlu0 %3546 }
 0x903   : > { %v3608_v33 = vmul.f32 0.03125, %v3547_v51 }
 0x904   : > { %v3549_v22 = vpop.xlane.xlu1 %3548 }
 0x905   : > { %v3640_v20 = vadd.f32 1e-05, %v3608_v33  ;;  %v3609_v47 = vmul.f32 0.03125, %v3549_v22 }
 0x906   : > { %v3543_v62 = vpop.xlane.xlu0 %3542 }
 0x907   : > { %4618 = vrsqrt.f32 %v3640_v20  ;;  %v3641_v59 = vadd.f32 1e-05, %v3609_v47  ;;  %v3606_v31 = vmul.f32 0.03125, %v3543_v62 }
 0x908   : > { %v3545_v16 = vpop.xlane.xlu1 %3544 }
 0x909   : > { %4620 = vrsqrt.f32 %v3641_v59  ;;  %v3638_v60 = vadd.f32 1e-05, %v3606_v31  ;;  %v3607_v50 = vmul.f32 0.03125, %v3545_v16 }
 0x90b   : > { %v3555_v17 = vpop.xlane.xlu0 %3554  ;;  %4622 = vrsqrt.f32 %v3638_v60  ;;  %v3639_v56 = vadd.f32 1e-05, %v3607_v50 }
 0x90c   : > { %v3612_v45 = vmul.f32 0.03125, %v3555_v17 }
 0x90d   : > { %v3557_v52 = vpop.xlane.xlu1 %3556  ;;  %4624 = vrsqrt.f32 %v3639_v56 }
 0x90e   : > { %v3644_v12 = vadd.f32 1e-05, %v3612_v45  ;;  %v3613_v29 = vmul.f32 0.03125, %v3557_v52 }
 0x90f   : > { %v3551_v54 = vpop.xlane.xlu0 %3550 }
 0x910   : > { %4626 = vrsqrt.f32 %v3644_v12  ;;  %v3645_v53 = vadd.f32 1e-05, %v3613_v29  ;;  %v3610_v30 = vmul.f32 0.03125, %v3551_v54 }
 0x911   : > { %v3553_v18 = vpop.xlane.xlu1 %3552  ;;  %v4619_v5 = vpop.eup %4618 }
 0x912   : > { %4628 = vrsqrt.f32 %v3645_v53  ;;  %v3642_v34 = vadd.f32 1e-05, %v3610_v30  ;;  %v3611_v38 = vmul.f32 0.03125, %v3553_v18  ;;  %v3704_v11 = vmul.f32 %v4619_v5, %v6418_v58 }
 0x913   : > { %v4621_v36 = vpop.eup %4620 }
 0x914   : > { %4630 = vrsqrt.f32 %v3642_v34  ;;  %v3643_v14 = vadd.f32 1e-05, %v3611_v38  ;;  %v3742_v43 = vmul.f32 %v6642_v35, %v3704_v11  ;;  %v3705_v24 = vmul.f32 %v4621_v36, %v6425_v61 }
 0x915   : > { %v3563_v49 = vpop.xlane.xlu0 %3562  ;;  %v4623_v51 = vpop.eup %4622 }
 0x916   : > { %4632 = vrsqrt.f32 %v3643_v14  ;;  %v3616_v33 = vmul.f32 0.03125, %v3563_v49  ;;  %v3780_v22 = vadd.f32 %v6648_v7, %v3742_v43  ;;  %v3743_v58 = vmul.f32 %v6642_v35, %v3705_v24 }
 0x917   : > { %v3702_v20 = vmul.f32 %v4623_v51, %v6432_v25  ;;  %v3565_v47 = vpop.xlane.xlu1 %3564  ;;  %v4625_v62 = vpop.eup %4624 }
 0x918   : > { %v3648_v61 = vadd.f32 1e-05, %v3616_v33  ;;  %v3617_v59 = vmul.f32 0.03125, %v3565_v47  ;;  %v3812_v31 = vmax.f32 %v3780_v22, 0.0  ;;  %v3781_v16 = vadd.f32 %v6648_v7, %v3743_v58 }
 0x919   : > { %v3740_v60 = vmul.f32 %v6642_v35, %v3702_v20  ;;  %v3703_v50 = vmul.f32 %v4625_v62, %v6439_v1  ;;  %v3559_v25 = vpop.xlane.xlu0 %3558 }
 0x91a   : > { %v4627_v17 = vpop.eup %4626  ;;  %4634 = vrsqrt.f32 %v3648_v61  ;;  %v3649_v56 = vadd.f32 1e-05, %v3617_v59  ;;  %v3614_v45 = vmul.f32 0.03125, %v3559_v25  ;;  %3844 = vst.msk [vmem:[%s6660_s26 + $0x10] sm:$0xff] %vm671_vm0, %v3812_v31  ;;  %v3813_v52 = vmax.f32 %v3781_v16, 0.0 }
 0x91b   : > { %v3778_v12 = vadd.f32 %v6648_v7, %v3740_v60  ;;  %v3741_v29 = vmul.f32 %v6642_v35, %v3703_v50  ;;  %v3708_v54 = vmul.f32 %v4627_v17, %v6446_v21  ;;  %v3561_v53 = vpop.xlane.xlu1 %3560 }
 0x91c   : > { %v4629_v30 = vpop.eup %4628  ;;  %4636 = vrsqrt.f32 %v3649_v56  ;;  %v3646_v1 = vadd.f32 1e-05, %v3614_v45  ;;  %v3615_v18 = vmul.f32 0.03125, %v3561_v53  ;;  %3845 = vst.msk [vmem:[%s6660_s26 + $0x18] sm:$0xff] %vm671_vm0, %v3813_v52 }
 0x91d   : > { %v3810_v5 = vmax.f32 %v3778_v12, 0.0  ;;  %v3779_v34 = vadd.f32 %v6648_v7, %v3741_v29  ;;  %v3746_v38 = vmul.f32 %v6642_v35, %v3708_v54  ;;  %v3709_v11 = vmul.f32 %v4629_v30, %v6453_v6 }
 0x91e   : > { %v3571_v36 = vpop.xlane.xlu0 %3570  ;;  %v4631_v14 = vpop.eup %4630  ;;  %4638 = vrsqrt.f32 %v3646_v1  ;;  %v3647_v21 = vadd.f32 1e-05, %v3615_v18 }
 0x91f   : > { %v3620_v43 = vmul.f32 0.03125, %v3571_v36  ;;  %3842 = vst.msk [vmem:[%s6660_s26] sm:$0xff] %vm671_vm0, %v3810_v5  ;;  %v3811_v24 = vmax.f32 %v3779_v34, 0.0  ;;  %v3784_v49 = vadd.f32 %v6648_v7, %v3746_v38  ;;  %v3747_v51 = vmul.f32 %v6642_v35, %v3709_v11 }
 0x920   : > { %v3706_v33 = vmul.f32 %v4631_v14, %v6460_v19  ;;  %v3573_v22 = vpop.xlane.xlu1 %3572  ;;  %v4633_v58 = vpop.eup %4632  ;;  %4640 = vrsqrt.f32 %v3647_v21 }
 0x921   : > { %v3652_v6 = vadd.f32 1e-05, %v3620_v43  ;;  %v3621_v20 = vmul.f32 0.03125, %v3573_v22  ;;  %3843 = vst.msk [vmem:[%s6660_s26 + $0x8] sm:$0xff] %vm671_vm0, %v3811_v24  ;;  %v3816_v47 = vmax.f32 %v3784_v49, 0.0  ;;  %v3785_v62 = vadd.f32 %v6648_v7, %v3747_v51 }
 0x922   : > { %v3744_v61 = vmul.f32 %v6642_v35, %v3706_v33  ;;  %v3707_v59 = vmul.f32 %v4633_v58, %v6467_v46  ;;  %v3567_v31 = vpop.xlane.xlu0 %3566 }
 0x923   : > { %4642 = vrsqrt.f32 %v3652_v6  ;;  %v3653_v16 = vadd.f32 1e-05, %v3621_v20  ;;  %v3618_v60 = vmul.f32 0.03125, %v3567_v31  ;;  %3848 = vst.msk [vmem:[%s6660_s26 + $0x30] sm:$0xff] %vm671_vm0, %v3816_v47  ;;  %v3817_v19 = vmax.f32 %v3785_v62, 0.0 }
 0x924   : > { %v3782_v50 = vadd.f32 %v6648_v7, %v3744_v61  ;;  %v3745_v25 = vmul.f32 %v6642_v35, %v3707_v59  ;;  %v3569_v17 = vpop.xlane.xlu1 %3568  ;;  %v4635_v56 = vpop.eup %4634 }
 0x925   : > { %4644 = vrsqrt.f32 %v3653_v16  ;;  %v3650_v45 = vadd.f32 1e-05, %v3618_v60  ;;  %v3619_v52 = vmul.f32 0.03125, %v3569_v17  ;;  %3849 = vst.msk [vmem:[%s6660_s26 + $0x38] sm:$0xff] %vm671_vm0, %v3817_v19  ;;  %v3712_v29 = vmul.f32 %v4635_v56, %v6474_v23 }
 0x926   : > { %v3814_v46 = vmax.f32 %v3782_v50, 0.0  ;;  %v3783_v12 = vadd.f32 %v6648_v7, %v3745_v25  ;;  %v4637_v54 = vpop.eup %4636 }
 0x927   : > { %4646 = vrsqrt.f32 %v3650_v45  ;;  %v3651_v53 = vadd.f32 1e-05, %v3619_v52  ;;  %v3750_v18 = vmul.f32 %v6642_v35, %v3712_v29  ;;  %v3713_v5 = vmul.f32 %v4637_v54, %v6481_v63 }
 0x928   : > { %3846 = vst.msk [vmem:[%s6660_s26 + $0x20] sm:$0xff] %vm671_vm0, %v3814_v46  ;;  %v3815_v1 = vmax.f32 %v3783_v12, 0.0  ;;  %v4639_v38 = vpop.eup %4638 }
 0x929   : > { %v3579_v30 = vpop.xlane.xlu0 %3578  ;;  %4648 = vrsqrt.f32 %v3651_v53  ;;  %v3788_v36 = vadd.f32 %v6648_v7, %v3750_v18  ;;  %v3751_v23 = vmul.f32 %v6642_v35, %v3713_v5  ;;  %v3710_v14 = vmul.f32 %v4639_v38, %v6488_v0 }
 0x92a   : > { %v3624_v34 = vmul.f32 0.03125, %v3579_v30  ;;  %3847 = vst.msk [vmem:[%s6660_s26 + $0x28] sm:$0xff] %vm671_vm0, %v3815_v1  ;;  %v4641_v43 = vpop.eup %4640 }
 0x92b   : > { %v3581_v11 = vpop.xlane.xlu1 %3580  ;;  %v3820_v51 = vmax.f32 %v3788_v36, 0.0  ;;  %v3789_v63 = vadd.f32 %v6648_v7, %v3751_v23  ;;  %v3748_v33 = vmul.f32 %v6642_v35, %v3710_v14  ;;  %v3711_v22 = vmul.f32 %v4641_v43, %v6495_v48 }
 0x92c   : > { %v3656_v21 = vadd.f32 1e-05, %v3624_v34  ;;  %v3625_v24 = vmul.f32 0.03125, %v3581_v11 }
 0x92d   : > { %v3575_v49 = vpop.xlane.xlu0 %3574  ;;  %v4643_v58 = vpop.eup %4642  ;;  %3852 = vst.msk [vmem:[%s6660_s26 + $0x50] sm:$0xff] %vm671_vm0, %v3820_v51  ;;  %v3821_v0 = vmax.f32 %v3789_v63, 0.0  ;;  %v3786_v62 = vadd.f32 %v6648_v7, %v3748_v33  ;;  %v3749_v61 = vmul.f32 %v6642_v35, %v3711_v22 }
 0x92e   : > { %4650 = vrsqrt.f32 %v3656_v21  ;;  %v3657_v6 = vadd.f32 1e-05, %v3625_v24  ;;  %v3622_v20 = vmul.f32 0.03125, %v3575_v49  ;;  %v3716_v59 = vmul.f32 %v4643_v58, %v6502_v39 }
 0x92f   : > { %v3577_v47 = vpop.xlane.xlu1 %3576  ;;  %v4645_v31 = vpop.eup %4644  ;;  %3853 = vst.msk [vmem:[%s6660_s26 + $0x58] sm:$0xff] %vm671_vm0, %v3821_v0  ;;  %v3818_v19 = vmax.f32 %v3786_v62, 0.0  ;;  %v3787_v50 = vadd.f32 %v6648_v7, %v3749_v61 }
 0x930   : > { %4652 = vrsqrt.f32 %v3657_v6  ;;  %v3654_v16 = vadd.f32 1e-05, %v3622_v20  ;;  %v3623_v48 = vmul.f32 0.03125, %v3577_v47  ;;  %v3754_v25 = vmul.f32 %v6642_v35, %v3716_v59 }
 0x931   : > { %v3587_v60 = vpop.xlane.xlu0 %3586  ;;  %v3717_v17 = vmul.f32 %v4645_v31, %v6509_v41  ;;  %v4647_v56 = vpop.eup %4646  ;;  %3850 = vst.msk [vmem:[%s6660_s26 + $0x40] sm:$0xff] %vm671_vm0, %v3818_v19  ;;  %v3819_v46 = vmax.f32 %v3787_v50, 0.0 }
 0x932   : > { %4654 = vrsqrt.f32 %v3654_v16  ;;  %v3655_v45 = vadd.f32 1e-05, %v3623_v48  ;;  %v3628_v39 = vmul.f32 0.03125, %v3587_v60  ;;  %v3792_v12 = vadd.f32 %v6648_v7, %v3754_v25 }
 0x933   : > { %v3589_v52 = vpop.xlane.xlu1 %3588  ;;  %v3755_v29 = vmul.f32 %v6642_v35, %v3717_v17  ;;  %v3714_v54 = vmul.f32 %v4647_v56, %v6516_v32  ;;  %v4649_v53 = vpop.eup %4648  ;;  %3851 = vst.msk [vmem:[%s6660_s26 + $0x48] sm:$0xff] %vm671_vm0, %v3819_v46 }
 0x934   : > { %4656 = vrsqrt.f32 %v3655_v45  ;;  %v3660_v30 = vadd.f32 1e-05, %v3628_v39  ;;  %v3629_v41 = vmul.f32 0.03125, %v3589_v52  ;;  %v3824_v18 = vmax.f32 %v3792_v12, 0.0 }
 0x935   : > { %v3583_v1 = vpop.xlane.xlu0 %3582  ;;  %v3793_v5 = vadd.f32 %v6648_v7, %v3755_v29  ;;  %v3752_v34 = vmul.f32 %v6642_v35, %v3714_v54  ;;  %v3715_v38 = vmul.f32 %v4649_v53, %v6523_v2 }
 0x936   : > { %4658 = vrsqrt.f32 %v3660_v30  ;;  %v3661_v11 = vadd.f32 1e-05, %v3629_v41  ;;  %v3626_v36 = vmul.f32 0.03125, %v3583_v1  ;;  %3856 = vst.msk [vmem:[%s6660_s26 + $0x70] sm:$0xff] %vm671_vm0, %v3824_v18 }
 0x937   : > { %v3585_v23 = vpop.xlane.xlu1 %3584  ;;  %v3825_v32 = vmax.f32 %v3793_v5, 0.0  ;;  %v3790_v14 = vadd.f32 %v6648_v7, %v3752_v34  ;;  %v3753_v21 = vmul.f32 %v6642_v35, %v3715_v38 }
 0x938   : > { %v3627_v43 = vmul.f32 0.03125, %v3585_v23  ;;  %v4651_v24 = vpop.eup %4650  ;;  %4660 = vrsqrt.f32 %v3661_v11  ;;  %v3658_v49 = vadd.f32 1e-05, %v3626_v36 }
 0x939   : > { %v3595_v51 = vpop.xlane.xlu0 %3594  ;;  %3857 = vst.msk [vmem:[%s6660_s26 + $0x78] sm:$0xff] %vm671_vm0, %v3825_v32  ;;  %v3822_v2 = vmax.f32 %v3790_v14, 0.0  ;;  %v3791_v63 = vadd.f32 %v6648_v7, %v3753_v21  ;;  %v3720_v33 = vmul.f32 %v4651_v24, %v6530_v57 }
 0x93a   : > { %v3659_v22 = vadd.f32 1e-05, %v3627_v43  ;;  %v4653_v58 = vpop.eup %4652  ;;  %4662 = vrsqrt.f32 %v3658_v49  ;;  %v3632_v6 = vmul.f32 0.03125, %v3595_v51 }
 0x93b   : > { %v3597_v20 = vpop.xlane.xlu1 %3596  ;;  %3854 = vst.msk [vmem:[%s6660_s26 + $0x60] sm:$0xff] %vm671_vm0, %v3822_v2  ;;  %v3823_v47 = vmax.f32 %v3791_v63, 0.0  ;;  %v3758_v0 = vmul.f32 %v6642_v35, %v3720_v33  ;;  %v3721_v62 = vmul.f32 %v4653_v58, %v6537_v37 }
 0x93c   : > { %4664 = vrsqrt.f32 %v3659_v22  ;;  %v4655_v61 = vpop.eup %4654  ;;  %v3664_v59 = vadd.f32 1e-05, %v3632_v6  ;;  %v3633_v31 = vmul.f32 0.03125, %v3597_v20 }
 0x93d   : > { %v3591_v16 = vpop.xlane.xlu0 %3590  ;;  %3855 = vst.msk [vmem:[%s6660_s26 + $0x68] sm:$0xff] %vm671_vm0, %v3823_v47  ;;  %v3796_v57 = vadd.f32 %v6648_v7, %v3758_v0  ;;  %v3759_v48 = vmul.f32 %v6642_v35, %v3721_v62  ;;  %v3718_v60 = vmul.f32 %v4655_v61, %v6544_v27 }
 0x93e   : > { %v3630_v19 = vmul.f32 0.03125, %v3591_v16  ;;  %v4657_v50 = vpop.eup %4656  ;;  %4666 = vrsqrt.f32 %v3664_v59  ;;  %v3665_v25 = vadd.f32 1e-05, %v3633_v31 }
 0x93f   : > { %v3593_v17 = vpop.xlane.xlu1 %3592  ;;  %v3828_v37 = vmax.f32 %v3796_v57, 0.0  ;;  %v3797_v56 = vadd.f32 %v6648_v7, %v3759_v48  ;;  %v3756_v45 = vmul.f32 %v6642_v35, %v3718_v60  ;;  %v3719_v39 = vmul.f32 %v4657_v50, %v6551_v3 }
 0x940   : > { %v4659_v52 = vpop.eup %4658  ;;  %4668 = vrsqrt.f32 %v3665_v25  ;;  %v3662_v46 = vadd.f32 1e-05, %v3630_v19  ;;  %v3631_v12 = vmul.f32 0.03125, %v3593_v17 }
 0x941   : > { %3860 = vst.msk [vmem:[%s6660_s26 + $0x90] sm:$0xff] %vm671_vm0, %v3828_v37  ;;  %v3829_v27 = vmax.f32 %v3797_v56, 0.0  ;;  %v3794_v29 = vadd.f32 %v6648_v7, %v3756_v45  ;;  %v3757_v54 = vmul.f32 %v6642_v35, %v3719_v39  ;;  %v3724_v53 = vmul.f32 %v4659_v52, %v6558_v9 }
 0x942   : > { %v3599_v30 = vpop.xlane.xlu0 %3598  ;;  %v4661_v41 = vpop.eup %4660  ;;  %4670 = vrsqrt.f32 %v3662_v46  ;;  %v3663_v1 = vadd.f32 1e-05, %v3631_v12 }
 0x943   : > { %v3634_v18 = vmul.f32 0.03125, %v3599_v30  ;;  %3861 = vst.msk [vmem:[%s6660_s26 + $0x98] sm:$0xff] %vm671_vm0, %v3829_v27  ;;  %v3826_v3 = vmax.f32 %v3794_v29, 0.0  ;;  %v3795_v5 = vadd.f32 %v6648_v7, %v3757_v54  ;;  %v3762_v34 = vmul.f32 %v6642_v35, %v3724_v53 }
 0x944   : > { %v3725_v38 = vmul.f32 %v4661_v41, %v6565_v55  ;;  %v3601_v11 = vpop.xlane.xlu1 %3600  ;;  %v4663_v36 = vpop.eup %4662  ;;  %4672 = vrsqrt.f32 %v3663_v1 }
 0x945   : > { %v3666_v9 = vadd.f32 1e-05, %v3634_v18  ;;  %v3635_v23 = vmul.f32 0.03125, %v3601_v11  ;;  %3858 = vst.msk [vmem:[%s6660_s26 + $0x80] sm:$0xff] %vm671_vm0, %v3826_v3  ;;  %v3827_v14 = vmax.f32 %v3795_v5, 0.0  ;;  %v3800_v21 = vadd.f32 %v6648_v7, %v3762_v34 }
 0x946   : > { %v4665_v32 = vpop.eup %4664  ;;  %v3763_v43 = vmul.f32 %v6642_v35, %v3725_v38  ;;  %v3722_v24 = vmul.f32 %v4663_v36, %v6572_v4  ;;  %v3603_v49 = vpop.xlane.xlu0 %3602 }
 0x947   : > { %v3723_v55 = vmul.f32 %v4665_v32, %v6579_v44  ;;  %4674 = vrsqrt.f32 %v3666_v9  ;;  %v3667_v51 = vadd.f32 1e-05, %v3635_v23  ;;  %v3636_v2 = vmul.f32 0.03125, %v3603_v49  ;;  %3859 = vst.msk [vmem:[%s6660_s26 + $0x88] sm:$0xff] %vm671_vm0, %v3827_v14 }
 0x948   : > { %v3832_v63 = vmax.f32 %v3800_v21, 0.0  ;;  %v3801_v33 = vadd.f32 %v6648_v7, %v3763_v43  ;;  %v3760_v22 = vmul.f32 %v6642_v35, %v3722_v24  ;;  %v3605_v58 = vpop.xlane.xlu1 %3604  ;;  %v4667_v6 = vpop.eup %4666 }
 0x949   : > { %v3761_v20 = vmul.f32 %v6642_v35, %v3723_v55  ;;  %4676 = vrsqrt.f32 %v3667_v51  ;;  %v3668_v4 = vadd.f32 1e-05, %v3636_v2  ;;  %v3637_v47 = vmul.f32 0.03125, %v3605_v58 }
 0x94a   : > { %3864 = vst.msk [vmem:[%s6660_s26 + $0xb0] sm:$0xff] %vm671_vm0, %v3832_v63  ;;  %v3833_v44 = vmax.f32 %v3801_v33, 0.0  ;;  %v3798_v0 = vadd.f32 %v6648_v7, %v3760_v22  ;;  %v3728_v62 = vmul.f32 %v4667_v6, %v6586_v8  ;;  %v4669_v61 = vpop.eup %4668 }
 0x94b   : > { %v3799_v59 = vadd.f32 %v6648_v7, %v3761_v20  ;;  %4678 = vrsqrt.f32 %v3668_v4  ;;  %v3669_v31 = vadd.f32 1e-05, %v3637_v47  ;;  %v3729_v48 = vmul.f32 %v4669_v61, %v6593_v26 }
 0x94c   : > { %3865 = vst.msk [vmem:[%s6660_s26 + $0xb8] sm:$0xff] %vm671_vm0, %v3833_v44  ;;  %v3830_v16 = vmax.f32 %v3798_v0, 0.0  ;;  %v3766_v57 = vmul.f32 %v6642_v35, %v3728_v62  ;;  %v4671_v60 = vpop.eup %4670 }
 0x94d   : > { %v3831_v19 = vmax.f32 %v3799_v59, 0.0  ;;  %4680 = vrsqrt.f32 %v3669_v31  ;;  %v3767_v50 = vmul.f32 %v6642_v35, %v3729_v48  ;;  %v3726_v25 = vmul.f32 %v4671_v60, %v6600_v42 }
 0x94e   : > { %3862 = vst.msk [vmem:[%s6660_s26 + $0xa0] sm:$0xff] %vm671_vm0, %v3830_v16  ;;  %v3804_v8 = vadd.f32 %v6648_v7, %v3766_v57  ;;  %v4673_v17 = vpop.eup %4672 }
 0x94f   : > { %3863 = vst.msk [vmem:[%s6660_s26 + $0xa8] sm:$0xff] %vm671_vm0, %v3831_v19  ;;  %v3805_v56 = vadd.f32 %v6648_v7, %v3767_v50  ;;  %v3764_v26 = vmul.f32 %v6642_v35, %v3726_v25  ;;  %v3727_v45 = vmul.f32 %v4673_v17, %v6607_v13 }
 0x950   : > { %v3836_v37 = vmax.f32 %v3804_v8, 0.0 }
 0x951   : > { %v4675_v39 = vpop.eup %4674  ;;  %v3837_v52 = vmax.f32 %v3805_v56, 0.0  ;;  %v3802_v46 = vadd.f32 %v6648_v7, %v3764_v26  ;;  %v3765_v42 = vmul.f32 %v6642_v35, %v3727_v45 }
 0x952   : > { %3868 = vst.msk [vmem:[%s6660_s26 + $0xd0] sm:$0xff] %vm671_vm0, %v3836_v37  ;;  %v3730_v12 = vmul.f32 %v4675_v39, %v6614_v15 }
 0x953   : > { %v4677_v27 = vpop.eup %4676  ;;  %3869 = vst.msk [vmem:[%s6660_s26 + $0xd8] sm:$0xff] %vm671_vm0, %v3837_v52  ;;  %v3834_v29 = vmax.f32 %v3802_v46, 0.0  ;;  %v3803_v54 = vadd.f32 %v6648_v7, %v3765_v42 }
 0x954   : > { %v3768_v13 = vmul.f32 %v6642_v35, %v3730_v12  ;;  %v3731_v53 = vmul.f32 %v4677_v27, %v6621_v40 }
 0x955   : > { %v4679_v30 = vpop.eup %4678  ;;  %3866 = vst.msk [vmem:[%s6660_s26 + $0xc0] sm:$0xff] %vm671_vm0, %v3834_v29  ;;  %v3835_v41 = vmax.f32 %v3803_v54, 0.0 }
 0x956   : > { %v3806_v1 = vadd.f32 %v6648_v7, %v3768_v13  ;;  %v3769_v15 = vmul.f32 %v6642_v35, %v3731_v53  ;;  %v3732_v18 = vmul.f32 %v4679_v30, %v6628_v28 }
 0x957   : > { %v4681_v3 = vpop.eup %4680  ;;  %3867 = vst.msk [vmem:[%s6660_s26 + $0xc8] sm:$0xff] %vm671_vm0, %v3835_v41 }
 0x958   : > { %v3838_v5 = vmax.f32 %v3806_v1, 0.0  ;;  %v3807_v34 = vadd.f32 %v6648_v7, %v3769_v15  ;;  %v3770_v40 = vmul.f32 %v6642_v35, %v3732_v18  ;;  %v3733_v38 = vmul.f32 %v4681_v3, %v6635_v10 }
 0x95a   : > { %3870 = vst.msk [vmem:[%s6660_s26 + $0xe0] sm:$0xff] %vm671_vm0, %v3838_v5  ;;  %v3839_v11 = vmax.f32 %v3807_v34, 0.0  ;;  %v3808_v36 = vadd.f32 %v6648_v7, %v3770_v40  ;;  %v3771_v9 = vmul.f32 %v6642_v35, %v3733_v38 }
 0x95c   : > { %3871 = vst.msk [vmem:[%s6660_s26 + $0xe8] sm:$0xff] %vm671_vm0, %v3839_v11  ;;  %v3840_v28 = vmax.f32 %v3808_v36, 0.0  ;;  %v3809_v23 = vadd.f32 %v6648_v7, %v3771_v9 }
 0x95e   : > { %3872 = vst.msk [vmem:[%s6660_s26 + $0xf0] sm:$0xff] %vm671_vm0, %v3840_v28  ;;  %v3841_v32 = vmax.f32 %v3809_v23, 0.0 }
 0x960   : > { %3873 = vst.msk [vmem:[%s6660_s26 + $0xf8] sm:$0xff] %vm671_vm0, %v3841_v32 }
 0x961 PF: > { %s29_s0 = sadd.s32 1, %s4688_s0  }
 0x962   : > { %p26_p4 = scmp.ge.s32.totalorder %s29_s0, 4  }
 0x964   :  { %28 = sbr.rel (!%p26_p4) target bundleno = 5 (0x5), region = 126 }

</bundles_post_ra>
